<compile_context>
chip_gen: v5e
topology: v5e:2x2
jax: 0.10.0
libtpu: 0.0.40
codegen_flags: <defaults>
</compile_context>

<pallas_src>
import functools

import numpy as np
import jax
import jax.numpy as jnp
from jax import lax
from jax.experimental import pallas as pl
from jax.experimental.pallas import tpu as pltpu


def _spatial_attention_kernel(x_ref, w_ref, mask_ref, scale_ref, shift_ref,
                              out_ref, buf_ref, patch_ref, *,
                              levels, batch_block, kernel_size, height, width):
    # x_ref     : VMEM [L, B, C, H*W]      B batch elements, all levels
    # w_ref     : VMEM [LP, K*K*2L]        conv weights, contraction ordered (kh,kw,c)
    # mask_ref  : VMEM [K, H*W]            column-validity mask per kw tap (0/1)
    # scale_ref : SMEM [L]                 folded BN scale  gamma/sqrt(var+eps)
    # shift_ref : SMEM [L]                 folded BN shift  beta - mean*scale
    # out_ref   : VMEM [L, B, 1, H*W]
    # buf_ref   : VMEM scratch [B, 2L, LEN]      flat zero-padded attention map
    # patch_ref : VMEM scratch [K*K*2L, B*H*W]   im2col patches
    L, B, K, H, W = levels, batch_block, kernel_size, height, width
    P = (K - 1) // 2
    HW = H * W
    C2 = 2 * L
    OFF = P * W + P                 # flat offset of element (0,0) in the padded map
    LEN = HW + 2 * OFF              # flat padded length per channel

    # Zero only the constant zero border (interior is fully overwritten below).
    # Done every step so it stays correct when the "parallel" batch axis is
    # sharded across TensorCores (scratch is per-core).
    buf_ref[:, :, 0:OFF] = jnp.zeros((B, C2, OFF), jnp.float32)
    buf_ref[:, :, OFF + HW:LEN] = jnp.zeros((B, C2, OFF), jnp.float32)

    # ---- ChannelPool: per (batch, level) max/mean over C on lane-dense [H*W] ----
    for b in range(B):
        for l in range(L):
            xl = x_ref[l, b]                                   # [C, HW]
            buf_ref[b, 2 * l, OFF:OFF + HW] = jnp.max(xl, axis=0)
            buf_ref[b, 2 * l + 1, OFF:OFF + HW] = jnp.mean(xl, axis=0)

    # ---- im2col: each tap (kh,kw) is a lane-shift of the flat padded map.
    # For output pixel s = h*W + w, the tap reads flat index s + kh*W + kw; the
    # row padding is handled by the zero border, the column wrap is masked.
    mask_all = mask_ref[...]                                   # [K, HW]
    for b in range(B):
        slab = buf_ref[b]                                      # [2L, LEN]
        for kh in range(K):
            for kw in range(K):
                t = kh * K + kw
                s0 = kh * W + kw
                shifted = slab[:, s0:s0 + HW]                  # [2L, HW]
                patch_ref[t * C2:(t + 1) * C2, b * HW:(b + 1) * HW] = (
                    shifted * mask_all[kw])

    # ---- the whole conv as one MXU matmul: [LP, K*K*2L] x [K*K*2L, B*HW] ----
    res = jnp.dot(w_ref[...], patch_ref[...],
                  preferred_element_type=jnp.float32)          # [LP, B*HW]

    # ---- folded inference BN + sigmoid, lane-dense stores ----
    for l in range(L):
        for b in range(B):
            y = res[l, b * HW:(b + 1) * HW] * scale_ref[l] + shift_ref[l]
            out_ref[l, b, 0, :] = jax.nn.sigmoid(y).astype(out_ref.dtype)


def spatial_attention(xs, conv_weights, bn_gamma, bn_beta, bn_mean, bn_var,
                      kernel_size=7, eps=1e-5, batch_block=8):
    """xs: list of L arrays [N, C, H, W]. conv_weights: [L, 2L, K, K]."""
    L = len(xs)
    x = jnp.stack(xs, axis=0).astype(jnp.float32)              # [L, N, C, H, W]
    _, N, C, H, W = x.shape
    K = kernel_size
    P = (K - 1) // 2
    HW = H * W
    C2 = 2 * L
    OFF = P * W + P
    LEN = HW + 2 * OFF

    # Batch B elements per grid step; pad N up to a multiple of B.
    B = min(batch_block, N)
    n_blocks = -(-N // B)
    Npad = n_blocks * B
    x = x.reshape(L, N, C, HW)                                 # lane-dense input
    if Npad != N:
        x = jnp.pad(x, ((0, 0), (0, Npad - N), (0, 0), (0, 0)))

    # Conv weights with contraction dim ordered (kh, kw, c); pad rows to 8.
    LP = max(8, L)
    w_tile = jnp.transpose(conv_weights.astype(jnp.float32), (0, 2, 3, 1))
    w_tile = w_tile.reshape(L, K * K * C2)
    w_tile = jnp.pad(w_tile, ((0, LP - L), (0, 0)))            # [LP, K*K*2L]

    # Fold inference-mode BatchNorm into per-level scale/shift.
    scale = (bn_gamma / jnp.sqrt(bn_var + eps)).astype(jnp.float32)
    shift = (bn_beta - bn_mean * scale).astype(jnp.float32)

    # Column-validity mask per kw tap: 1 iff 0 <= (s % W) + kw - P < W.
    wcoord = jnp.arange(HW, dtype=jnp.int32) % W
    kws = jnp.arange(K, dtype=jnp.int32)[:, None]
    mask = ((wcoord[None, :] + kws >= P) &
            (wcoord[None, :] + kws < W + P)).astype(jnp.float32)   # [K, HW]

    kern = functools.partial(_spatial_attention_kernel, levels=L,
                             batch_block=B, kernel_size=K, height=H, width=W)
    out = pl.pallas_call(
        kern,
        out_shape=jax.ShapeDtypeStruct((L, Npad, 1, HW), jnp.float32),
        grid=(n_blocks,),
        in_specs=[
            pl.BlockSpec((L, B, C, HW), lambda n: (0, n, 0, 0)),
            pl.BlockSpec((LP, K * K * C2), lambda n: (0, 0)),
            pl.BlockSpec((K, HW), lambda n: (0, 0)),
            pl.BlockSpec(memory_space=pltpu.MemorySpace.SMEM),
            pl.BlockSpec(memory_space=pltpu.MemorySpace.SMEM),
        ],
        out_specs=pl.BlockSpec((L, B, 1, HW), lambda n: (0, n, 0, 0)),
        scratch_shapes=[pltpu.VMEM((B, C2, LEN), jnp.float32),
                        pltpu.VMEM((K * K * C2, B * HW), jnp.float32)],
        compiler_params=pltpu.CompilerParams(
            dimension_semantics=("parallel",)),
    )(x, w_tile, mask, scale, shift)

    out = out[:, :N].reshape(L, N, 1, H, W)
    return [out[i] for i in range(L)]                          # list of [N, 1, H, W]


def spatial_attention_reference(xs, conv_weights, gamma, beta, mean, var,
                                kernel_size=7, eps=1e-5):
    L = len(xs)
    P = (kernel_size - 1) // 2
    pools = []
    for x in xs:
        mx = jnp.max(x, axis=1, keepdims=True)
        mn = jnp.mean(x, axis=1, keepdims=True)
        pools.append(jnp.concatenate([mx, mn], axis=1))
    att = jnp.concatenate(pools, axis=1)                       # [N, 2L, H, W]
    outs = []
    for l in range(L):
        w = conv_weights[l][None]                              # [1, 2L, K, K]
        y = lax.conv_general_dilated(
            att, w, window_strides=(1, 1), padding=[(P, P), (P, P)],
            dimension_numbers=("NCHW", "OIHW", "NCHW"),
            precision=lax.Precision.HIGHEST)
        s = gamma[l] / jnp.sqrt(var[l] + eps)
        y = y * s + (beta[l] - mean[l] * s)
        outs.append(jax.nn.sigmoid(y))
    return outs


if __name__ == "__main__":
    levels, N, C, H, W, K = 2, 4, 4, 16, 16, 7
    key = jax.random.PRNGKey(0)
    keys = jax.random.split(key, 8)

    xs = [jax.random.normal(keys[i], (N, C, H, W), jnp.float32)
          for i in range(levels)]

    fan_in = 2 * levels * K * K
    bound = (1.0 / fan_in) ** 0.5
    conv_w = jax.random.uniform(keys[4], (levels, 2 * levels, K, K),
                                jnp.float32, -bound, bound)
    gamma = 1.0 + 0.1 * jax.random.normal(keys[5], (levels,), jnp.float32)
    beta = 0.1 * jax.random.normal(keys[6], (levels,), jnp.float32)
    rmean = 0.05 * jax.random.normal(keys[7], (levels,), jnp.float32)
    rvar = jnp.abs(jax.random.normal(keys[3], (levels,), jnp.float32)) + 0.5

    outs = spatial_attention(xs, conv_w, gamma, beta, rmean, rvar,
                             kernel_size=K, batch_block=2)
    outs = [jax.block_until_ready(o) for o in outs]

    refs = spatial_attention_reference(xs, conv_w, gamma, beta, rmean, rvar,
                                       kernel_size=K)
    for o, r in zip(outs, refs):
        np.testing.assert_allclose(np.asarray(o), np.asarray(r),
                                   rtol=5e-5, atol=5e-5)
    print("KERNEL_OK")
</pallas_src>

<mosaic_0001>
module attributes {stable_mosaic.version = 11 : i64} {
  func.func @_spatial_attention_kernel(%arg0: i32, %arg1: memref<2x2x4x256xf32, #tpu.memory_space<vmem>>, %arg2: memref<8x196xf32, #tpu.memory_space<vmem>>, %arg3: memref<7x256xf32, #tpu.memory_space<vmem>>, %arg4: memref<2xf32, #tpu.memory_space<smem>>, %arg5: memref<2xf32, #tpu.memory_space<smem>>, %arg6: memref<2x2x1x256xf32, #tpu.memory_space<vmem>>, %arg7: memref<2x4x358xf32, #tpu.memory_space<vmem>>, %arg8: memref<196x512xf32, #tpu.memory_space<vmem>>) attributes {dimension_semantics = [#tpu.dimension_semantics<parallel>], iteration_bounds = array<i64: 2>, scalar_prefetch = 0 : i64, scratch_operands = 2 : i64, tpu.core_type = #tpu.core_type<tc>, window_params = [{transform_indices = @transform_0, window_bounds = array<i64: 2, 2, 4, 256>}, {pipeline_mode = #tpu.pipeline_mode<synchronous>, transform_indices = @transform_1, window_bounds = array<i64: 8, 196>}, {pipeline_mode = #tpu.pipeline_mode<synchronous>, transform_indices = @transform_2, window_bounds = array<i64: 7, 256>}, {transform_indices = @transform_3, window_bounds = array<i64: 2>}, {transform_indices = @transform_4, window_bounds = array<i64: 2>}, {transform_indices = @transform_5, window_bounds = array<i64: 2, 2, 1, 256>}]} {
    %cst = arith.constant 0.000000e+00 : f32
    %0 = vector.broadcast %cst : f32 to vector<2x4x51xf32>
    %c0 = arith.constant 0 : index
    %c0_0 = arith.constant 0 : index
    %c0_1 = arith.constant 0 : index
    %1 = vector.load %arg7[%c0, %c0_0, %c0_1] : memref<2x4x358xf32, #tpu.memory_space<vmem>>, vector<2x4x51xf32>
    tpu.vector_store %arg7[%c0, %c0_0, %c0_1], %0 {strides = array<i32>} : memref<2x4x358xf32, #tpu.memory_space<vmem>>, vector<2x4x51xf32>,
    %cst_2 = arith.constant 0.000000e+00 : f32
    %2 = vector.broadcast %cst_2 : f32 to vector<2x4x51xf32>
    %c0_3 = arith.constant 0 : index
    %c0_4 = arith.constant 0 : index
    %c307 = arith.constant 307 : index
    %3 = vector.load %arg7[%c0_3, %c0_4, %c307] : memref<2x4x358xf32, #tpu.memory_space<vmem>>, vector<2x4x51xf32>
    tpu.vector_store %arg7[%c0_3, %c0_4, %c307], %2 {strides = array<i32>} : memref<2x4x358xf32, #tpu.memory_space<vmem>>, vector<2x4x51xf32>,
    %c0_5 = arith.constant 0 : index
    %c0_6 = arith.constant 0 : index
    %c0_7 = arith.constant 0 : index
    %c0_8 = arith.constant 0 : index
    %4 = vector.load %arg1[%c0_5, %c0_6, %c0_7, %c0_8] : memref<2x2x4x256xf32, #tpu.memory_space<vmem>>, vector<1x1x4x256xf32>
    %5 = vector.shape_cast %4 : vector<1x1x4x256xf32> to vector<4x256xf32>
    %cst_9 = arith.constant dense<0xFF800000> : vector<256xf32>
    %6 = vector.multi_reduction <maximumf>, %5, %cst_9 [0] : vector<4x256xf32> to vector<256xf32>
    %c0_10 = arith.constant 0 : index
    %c0_11 = arith.constant 0 : index
    %c51 = arith.constant 51 : index
    %7 = vector.load %arg7[%c0_10, %c0_11, %c51] : memref<2x4x358xf32, #tpu.memory_space<vmem>>, vector<1x1x256xf32>
    %8 = vector.shape_cast %7 : vector<1x1x256xf32> to vector<256xf32>
    %9 = vector.shape_cast %6 : vector<256xf32> to vector<1x1x256xf32>
    tpu.vector_store %arg7[%c0_10, %c0_11, %c51], %9 {strides = array<i32>} : memref<2x4x358xf32, #tpu.memory_space<vmem>>, vector<1x1x256xf32>,
    %cst_12 = arith.constant dense<0.000000e+00> : vector<256xf32>
    %10 = vector.multi_reduction <add>, %5, %cst_12 [0] : vector<4x256xf32> to vector<256xf32>
    %cst_13 = arith.constant 4.000000e+00 : f32
    %11 = vector.broadcast %cst_13 : f32 to vector<256xf32>
    %12 = arith.divf %10, %11 : vector<256xf32>
    %c0_14 = arith.constant 0 : index
    %c1 = arith.constant 1 : index
    %c51_15 = arith.constant 51 : index
    %13 = vector.load %arg7[%c0_14, %c1, %c51_15] : memref<2x4x358xf32, #tpu.memory_space<vmem>>, vector<1x1x256xf32>
    %14 = vector.shape_cast %13 : vector<1x1x256xf32> to vector<256xf32>
    %15 = vector.shape_cast %12 : vector<256xf32> to vector<1x1x256xf32>
    tpu.vector_store %arg7[%c0_14, %c1, %c51_15], %15 {strides = array<i32>} : memref<2x4x358xf32, #tpu.memory_space<vmem>>, vector<1x1x256xf32>,
    %c1_16 = arith.constant 1 : index
    %c0_17 = arith.constant 0 : index
    %c0_18 = arith.constant 0 : index
    %c0_19 = arith.constant 0 : index
    %16 = vector.load %arg1[%c1_16, %c0_17, %c0_18, %c0_19] : memref<2x2x4x256xf32, #tpu.memory_space<vmem>>, vector<1x1x4x256xf32>
    %17 = vector.shape_cast %16 : vector<1x1x4x256xf32> to vector<4x256xf32>
    %cst_20 = arith.constant dense<0xFF800000> : vector<256xf32>
    %18 = vector.multi_reduction <maximumf>, %17, %cst_20 [0] : vector<4x256xf32> to vector<256xf32>
    %c0_21 = arith.constant 0 : index
    %c2 = arith.constant 2 : index
    %c51_22 = arith.constant 51 : index
    %19 = vector.load %arg7[%c0_21, %c2, %c51_22] : memref<2x4x358xf32, #tpu.memory_space<vmem>>, vector<1x1x256xf32>
    %20 = vector.shape_cast %19 : vector<1x1x256xf32> to vector<256xf32>
    %21 = vector.shape_cast %18 : vector<256xf32> to vector<1x1x256xf32>
    tpu.vector_store %arg7[%c0_21, %c2, %c51_22], %21 {strides = array<i32>} : memref<2x4x358xf32, #tpu.memory_space<vmem>>, vector<1x1x256xf32>,
    %cst_23 = arith.constant dense<0.000000e+00> : vector<256xf32>
    %22 = vector.multi_reduction <add>, %17, %cst_23 [0] : vector<4x256xf32> to vector<256xf32>
    %cst_24 = arith.constant 4.000000e+00 : f32
    %23 = vector.broadcast %cst_24 : f32 to vector<256xf32>
    %24 = arith.divf %22, %23 : vector<256xf32>
    %c0_25 = arith.constant 0 : index
    %c3 = arith.constant 3 : index
    %c51_26 = arith.constant 51 : index
    %25 = vector.load %arg7[%c0_25, %c3, %c51_26] : memref<2x4x358xf32, #tpu.memory_space<vmem>>, vector<1x1x256xf32>
    %26 = vector.shape_cast %25 : vector<1x1x256xf32> to vector<256xf32>
    %27 = vector.shape_cast %24 : vector<256xf32> to vector<1x1x256xf32>
    tpu.vector_store %arg7[%c0_25, %c3, %c51_26], %27 {strides = array<i32>} : memref<2x4x358xf32, #tpu.memory_space<vmem>>, vector<1x1x256xf32>,
    %c0_27 = arith.constant 0 : index
    %c1_28 = arith.constant 1 : index
    %c0_29 = arith.constant 0 : index
    %c0_30 = arith.constant 0 : index
    %28 = vector.load %arg1[%c0_27, %c1_28, %c0_29, %c0_30] : memref<2x2x4x256xf32, #tpu.memory_space<vmem>>, vector<1x1x4x256xf32>
    %29 = vector.shape_cast %28 : vector<1x1x4x256xf32> to vector<4x256xf32>
    %cst_31 = arith.constant dense<0xFF800000> : vector<256xf32>
    %30 = vector.multi_reduction <maximumf>, %29, %cst_31 [0] : vector<4x256xf32> to vector<256xf32>
    %c1_32 = arith.constant 1 : index
    %c0_33 = arith.constant 0 : index
    %c51_34 = arith.constant 51 : index
    %31 = vector.load %arg7[%c1_32, %c0_33, %c51_34] : memref<2x4x358xf32, #tpu.memory_space<vmem>>, vector<1x1x256xf32>
    %32 = vector.shape_cast %31 : vector<1x1x256xf32> to vector<256xf32>
    %33 = vector.shape_cast %30 : vector<256xf32> to vector<1x1x256xf32>
    tpu.vector_store %arg7[%c1_32, %c0_33, %c51_34], %33 {strides = array<i32>} : memref<2x4x358xf32, #tpu.memory_space<vmem>>, vector<1x1x256xf32>,
    %cst_35 = arith.constant dense<0.000000e+00> : vector<256xf32>
    %34 = vector.multi_reduction <add>, %29, %cst_35 [0] : vector<4x256xf32> to vector<256xf32>
    %cst_36 = arith.constant 4.000000e+00 : f32
    %35 = vector.broadcast %cst_36 : f32 to vector<256xf32>
    %36 = arith.divf %34, %35 : vector<256xf32>
    %c1_37 = arith.constant 1 : index
    %c1_38 = arith.constant 1 : index
    %c51_39 = arith.constant 51 : index
    %37 = vector.load %arg7[%c1_37, %c1_38, %c51_39] : memref<2x4x358xf32, #tpu.memory_space<vmem>>, vector<1x1x256xf32>
    %38 = vector.shape_cast %37 : vector<1x1x256xf32> to vector<256xf32>
    %39 = vector.shape_cast %36 : vector<256xf32> to vector<1x1x256xf32>
    tpu.vector_store %arg7[%c1_37, %c1_38, %c51_39], %39 {strides = array<i32>} : memref<2x4x358xf32, #tpu.memory_space<vmem>>, vector<1x1x256xf32>,
    %c1_40 = arith.constant 1 : index
    %c1_41 = arith.constant 1 : index
    %c0_42 = arith.constant 0 : index
    %c0_43 = arith.constant 0 : index
    %40 = vector.load %arg1[%c1_40, %c1_41, %c0_42, %c0_43] : memref<2x2x4x256xf32, #tpu.memory_space<vmem>>, vector<1x1x4x256xf32>
    %41 = vector.shape_cast %40 : vector<1x1x4x256xf32> to vector<4x256xf32>
    %cst_44 = arith.constant dense<0xFF800000> : vector<256xf32>
    %42 = vector.multi_reduction <maximumf>, %41, %cst_44 [0] : vector<4x256xf32> to vector<256xf32>
    %c1_45 = arith.constant 1 : index
    %c2_46 = arith.constant 2 : index
    %c51_47 = arith.constant 51 : index
    %43 = vector.load %arg7[%c1_45, %c2_46, %c51_47] : memref<2x4x358xf32, #tpu.memory_space<vmem>>, vector<1x1x256xf32>
    %44 = vector.shape_cast %43 : vector<1x1x256xf32> to vector<256xf32>
    %45 = vector.shape_cast %42 : vector<256xf32> to vector<1x1x256xf32>
    tpu.vector_store %arg7[%c1_45, %c2_46, %c51_47], %45 {strides = array<i32>} : memref<2x4x358xf32, #tpu.memory_space<vmem>>, vector<1x1x256xf32>,
    %cst_48 = arith.constant dense<0.000000e+00> : vector<256xf32>
    %46 = vector.multi_reduction <add>, %41, %cst_48 [0] : vector<4x256xf32> to vector<256xf32>
    %cst_49 = arith.constant 4.000000e+00 : f32
    %47 = vector.broadcast %cst_49 : f32 to vector<256xf32>
    %48 = arith.divf %46, %47 : vector<256xf32>
    %c1_50 = arith.constant 1 : index
    %c3_51 = arith.constant 3 : index
    %c51_52 = arith.constant 51 : index
    %49 = vector.load %arg7[%c1_50, %c3_51, %c51_52] : memref<2x4x358xf32, #tpu.memory_space<vmem>>, vector<1x1x256xf32>
    %50 = vector.shape_cast %49 : vector<1x1x256xf32> to vector<256xf32>
    %51 = vector.shape_cast %48 : vector<256xf32> to vector<1x1x256xf32>
    tpu.vector_store %arg7[%c1_50, %c3_51, %c51_52], %51 {strides = array<i32>} : memref<2x4x358xf32, #tpu.memory_space<vmem>>, vector<1x1x256xf32>,
    %c0_53 = arith.constant 0 : index
    %c0_54 = arith.constant 0 : index
    %52 = vector.load %arg3[%c0_53, %c0_54] : memref<7x256xf32, #tpu.memory_space<vmem>>, vector<7x256xf32>
    %c0_55 = arith.constant 0 : index
    %c0_56 = arith.constant 0 : index
    %c0_57 = arith.constant 0 : index
    %53 = vector.load %arg7[%c0_55, %c0_56, %c0_57] : memref<2x4x358xf32, #tpu.memory_space<vmem>>, vector<1x4x358xf32>
    %54 = vector.shape_cast %53 : vector<1x4x358xf32> to vector<4x358xf32>
    %55 = vector.extract_strided_slice %54 {offsets = [0, 0], sizes = [4, 256], strides = [1, 1]} : vector<4x358xf32> to vector<4x256xf32>
    %56 = vector.extract_strided_slice %52 {offsets = [0, 0], sizes = [1, 256], strides = [1, 1]} : vector<7x256xf32> to vector<1x256xf32>
    %57 = vector.shape_cast %56 : vector<1x256xf32> to vector<256xf32>
    %58 = vector.shape_cast %57 : vector<256xf32> to vector<1x256xf32>
    %59 = vector.broadcast %58 : vector<1x256xf32> to vector<4x256xf32>
    %60 = arith.mulf %55, %59 : vector<4x256xf32>
    %c0_58 = arith.constant 0 : index
    %c0_59 = arith.constant 0 : index
    %61 = vector.load %arg8[%c0_58, %c0_59] : memref<196x512xf32, #tpu.memory_space<vmem>>, vector<4x256xf32>
    tpu.vector_store %arg8[%c0_58, %c0_59], %60 {strides = array<i32>} : memref<196x512xf32, #tpu.memory_space<vmem>>, vector<4x256xf32>,
    %62 = vector.extract_strided_slice %54 {offsets = [0, 1], sizes = [4, 256], strides = [1, 1]} : vector<4x358xf32> to vector<4x256xf32>
    %63 = vector.extract_strided_slice %52 {offsets = [1, 0], sizes = [1, 256], strides = [1, 1]} : vector<7x256xf32> to vector<1x256xf32>
    %64 = vector.shape_cast %63 : vector<1x256xf32> to vector<256xf32>
    %65 = vector.shape_cast %64 : vector<256xf32> to vector<1x256xf32>
    %66 = vector.broadcast %65 : vector<1x256xf32> to vector<4x256xf32>
    %67 = arith.mulf %62, %66 : vector<4x256xf32>
    %c4 = arith.constant 4 : index
    %c0_60 = arith.constant 0 : index
    %68 = vector.load %arg8[%c4, %c0_60] : memref<196x512xf32, #tpu.memory_space<vmem>>, vector<4x256xf32>
    tpu.vector_store %arg8[%c4, %c0_60], %67 {strides = array<i32>} : memref<196x512xf32, #tpu.memory_space<vmem>>, vector<4x256xf32>,
    %69 = vector.extract_strided_slice %54 {offsets = [0, 2], sizes = [4, 256], strides = [1, 1]} : vector<4x358xf32> to vector<4x256xf32>
    %70 = vector.extract_strided_slice %52 {offsets = [2, 0], sizes = [1, 256], strides = [1, 1]} : vector<7x256xf32> to vector<1x256xf32>
    %71 = vector.shape_cast %70 : vector<1x256xf32> to vector<256xf32>
    %72 = vector.shape_cast %71 : vector<256xf32> to vector<1x256xf32>
    %73 = vector.broadcast %72 : vector<1x256xf32> to vector<4x256xf32>
    %74 = arith.mulf %69, %73 : vector<4x256xf32>
    %c8 = arith.constant 8 : index
    %c0_61 = arith.constant 0 : index
    %75 = vector.load %arg8[%c8, %c0_61] : memref<196x512xf32, #tpu.memory_space<vmem>>, vector<4x256xf32>
    tpu.vector_store %arg8[%c8, %c0_61], %74 {strides = array<i32>} : memref<196x512xf32, #tpu.memory_space<vmem>>, vector<4x256xf32>,
    %76 = vector.extract_strided_slice %54 {offsets = [0, 3], sizes = [4, 256], strides = [1, 1]} : vector<4x358xf32> to vector<4x256xf32>
    %77 = vector.extract_strided_slice %52 {offsets = [3, 0], sizes = [1, 256], strides = [1, 1]} : vector<7x256xf32> to vector<1x256xf32>
    %78 = vector.shape_cast %77 : vector<1x256xf32> to vector<256xf32>
    %79 = vector.shape_cast %78 : vector<256xf32> to vector<1x256xf32>
    %80 = vector.broadcast %79 : vector<1x256xf32> to vector<4x256xf32>
    %81 = arith.mulf %76, %80 : vector<4x256xf32>
    %c12 = arith.constant 12 : index
    %c0_62 = arith.constant 0 : index
    %82 = vector.load %arg8[%c12, %c0_62] : memref<196x512xf32, #tpu.memory_space<vmem>>, vector<4x256xf32>
    tpu.vector_store %arg8[%c12, %c0_62], %81 {strides = array<i32>} : memref<196x512xf32, #tpu.memory_space<vmem>>, vector<4x256xf32>,
    %83 = vector.extract_strided_slice %54 {offsets = [0, 4], sizes = [4, 256], strides = [1, 1]} : vector<4x358xf32> to vector<4x256xf32>
    %84 = vector.extract_strided_slice %52 {offsets = [4, 0], sizes = [1, 256], strides = [1, 1]} : vector<7x256xf32> to vector<1x256xf32>
    %85 = vector.shape_cast %84 : vector<1x256xf32> to vector<256xf32>
    %86 = vector.shape_cast %85 : vector<256xf32> to vector<1x256xf32>
    %87 = vector.broadcast %86 : vector<1x256xf32> to vector<4x256xf32>
    %88 = arith.mulf %83, %87 : vector<4x256xf32>
    %c16 = arith.constant 16 : index
    %c0_63 = arith.constant 0 : index
    %89 = vector.load %arg8[%c16, %c0_63] : memref<196x512xf32, #tpu.memory_space<vmem>>, vector<4x256xf32>
    tpu.vector_store %arg8[%c16, %c0_63], %88 {strides = array<i32>} : memref<196x512xf32, #tpu.memory_space<vmem>>, vector<4x256xf32>,
    %90 = vector.extract_strided_slice %54 {offsets = [0, 5], sizes = [4, 256], strides = [1, 1]} : vector<4x358xf32> to vector<4x256xf32>
    %91 = vector.extract_strided_slice %52 {offsets = [5, 0], sizes = [1, 256], strides = [1, 1]} : vector<7x256xf32> to vector<1x256xf32>
    %92 = vector.shape_cast %91 : vector<1x256xf32> to vector<256xf32>
    %93 = vector.shape_cast %92 : vector<256xf32> to vector<1x256xf32>
    %94 = vector.broadcast %93 : vector<1x256xf32> to vector<4x256xf32>
    %95 = arith.mulf %90, %94 : vector<4x256xf32>
    %c20 = arith.constant 20 : index
    %c0_64 = arith.constant 0 : index
    %96 = vector.load %arg8[%c20, %c0_64] : memref<196x512xf32, #tpu.memory_space<vmem>>, vector<4x256xf32>
    tpu.vector_store %arg8[%c20, %c0_64], %95 {strides = array<i32>} : memref<196x512xf32, #tpu.memory_space<vmem>>, vector<4x256xf32>,
    %97 = vector.extract_strided_slice %54 {offsets = [0, 6], sizes = [4, 256], strides = [1, 1]} : vector<4x358xf32> to vector<4x256xf32>
    %98 = vector.extract_strided_slice %52 {offsets = [6, 0], sizes = [1, 256], strides = [1, 1]} : vector<7x256xf32> to vector<1x256xf32>
    %99 = vector.shape_cast %98 : vector<1x256xf32> to vector<256xf32>
    %100 = vector.shape_cast %99 : vector<256xf32> to vector<1x256xf32>
    %101 = vector.broadcast %100 : vector<1x256xf32> to vector<4x256xf32>
    %102 = arith.mulf %97, %101 : vector<4x256xf32>
    %c24 = arith.constant 24 : index
    %c0_65 = arith.constant 0 : index
    %103 = vector.load %arg8[%c24, %c0_65] : memref<196x512xf32, #tpu.memory_space<vmem>>, vector<4x256xf32>
    tpu.vector_store %arg8[%c24, %c0_65], %102 {strides = array<i32>} : memref<196x512xf32, #tpu.memory_space<vmem>>, vector<4x256xf32>,
    %104 = vector.extract_strided_slice %54 {offsets = [0, 16], sizes = [4, 256], strides = [1, 1]} : vector<4x358xf32> to vector<4x256xf32>
    %105 = vector.extract_strided_slice %52 {offsets = [0, 0], sizes = [1, 256], strides = [1, 1]} : vector<7x256xf32> to vector<1x256xf32>
    %106 = vector.shape_cast %105 : vector<1x256xf32> to vector<256xf32>
    %107 = vector.shape_cast %106 : vector<256xf32> to vector<1x256xf32>
    %108 = vector.broadcast %107 : vector<1x256xf32> to vector<4x256xf32>
    %109 = arith.mulf %104, %108 : vector<4x256xf32>
    %c28 = arith.constant 28 : index
    %c0_66 = arith.constant 0 : index
    %110 = vector.load %arg8[%c28, %c0_66] : memref<196x512xf32, #tpu.memory_space<vmem>>, vector<4x256xf32>
    tpu.vector_store %arg8[%c28, %c0_66], %109 {strides = array<i32>} : memref<196x512xf32, #tpu.memory_space<vmem>>, vector<4x256xf32>,
    %111 = vector.extract_strided_slice %54 {offsets = [0, 17], sizes = [4, 256], strides = [1, 1]} : vector<4x358xf32> to vector<4x256xf32>
    %112 = vector.extract_strided_slice %52 {offsets = [1, 0], sizes = [1, 256], strides = [1, 1]} : vector<7x256xf32> to vector<1x256xf32>
    %113 = vector.shape_cast %112 : vector<1x256xf32> to vector<256xf32>
    %114 = vector.shape_cast %113 : vector<256xf32> to vector<1x256xf32>
    %115 = vector.broadcast %114 : vector<1x256xf32> to vector<4x256xf32>
    %116 = arith.mulf %111, %115 : vector<4x256xf32>
    %c32 = arith.constant 32 : index
    %c0_67 = arith.constant 0 : index
    %117 = vector.load %arg8[%c32, %c0_67] : memref<196x512xf32, #tpu.memory_space<vmem>>, vector<4x256xf32>
    tpu.vector_store %arg8[%c32, %c0_67], %116 {strides = array<i32>} : memref<196x512xf32, #tpu.memory_space<vmem>>, vector<4x256xf32>,
    %118 = vector.extract_strided_slice %54 {offsets = [0, 18], sizes = [4, 256], strides = [1, 1]} : vector<4x358xf32> to vector<4x256xf32>
    %119 = vector.extract_strided_slice %52 {offsets = [2, 0], sizes = [1, 256], strides = [1, 1]} : vector<7x256xf32> to vector<1x256xf32>
    %120 = vector.shape_cast %119 : vector<1x256xf32> to vector<256xf32>
    %121 = vector.shape_cast %120 : vector<256xf32> to vector<1x256xf32>
    %122 = vector.broadcast %121 : vector<1x256xf32> to vector<4x256xf32>
    %123 = arith.mulf %118, %122 : vector<4x256xf32>
    %c36 = arith.constant 36 : index
    %c0_68 = arith.constant 0 : index
    %124 = vector.load %arg8[%c36, %c0_68] : memref<196x512xf32, #tpu.memory_space<vmem>>, vector<4x256xf32>
    tpu.vector_store %arg8[%c36, %c0_68], %123 {strides = array<i32>} : memref<196x512xf32, #tpu.memory_space<vmem>>, vector<4x256xf32>,
    %125 = vector.extract_strided_slice %54 {offsets = [0, 19], sizes = [4, 256], strides = [1, 1]} : vector<4x358xf32> to vector<4x256xf32>
    %126 = vector.extract_strided_slice %52 {offsets = [3, 0], sizes = [1, 256], strides = [1, 1]} : vector<7x256xf32> to vector<1x256xf32>
    %127 = vector.shape_cast %126 : vector<1x256xf32> to vector<256xf32>
    %128 = vector.shape_cast %127 : vector<256xf32> to vector<1x256xf32>
    %129 = vector.broadcast %128 : vector<1x256xf32> to vector<4x256xf32>
    %130 = arith.mulf %125, %129 : vector<4x256xf32>
    %c40 = arith.constant 40 : index
    %c0_69 = arith.constant 0 : index
    %131 = vector.load %arg8[%c40, %c0_69] : memref<196x512xf32, #tpu.memory_space<vmem>>, vector<4x256xf32>
    tpu.vector_store %arg8[%c40, %c0_69], %130 {strides = array<i32>} : memref<196x512xf32, #tpu.memory_space<vmem>>, vector<4x256xf32>,
    %132 = vector.extract_strided_slice %54 {offsets = [0, 20], sizes = [4, 256], strides = [1, 1]} : vector<4x358xf32> to vector<4x256xf32>
    %133 = vector.extract_strided_slice %52 {offsets = [4, 0], sizes = [1, 256], strides = [1, 1]} : vector<7x256xf32> to vector<1x256xf32>
    %134 = vector.shape_cast %133 : vector<1x256xf32> to vector<256xf32>
    %135 = vector.shape_cast %134 : vector<256xf32> to vector<1x256xf32>
    %136 = vector.broadcast %135 : vector<1x256xf32> to vector<4x256xf32>
    %137 = arith.mulf %132, %136 : vector<4x256xf32>
    %c44 = arith.constant 44 : index
    %c0_70 = arith.constant 0 : index
    %138 = vector.load %arg8[%c44, %c0_70] : memref<196x512xf32, #tpu.memory_space<vmem>>, vector<4x256xf32>
    tpu.vector_store %arg8[%c44, %c0_70], %137 {strides = array<i32>} : memref<196x512xf32, #tpu.memory_space<vmem>>, vector<4x256xf32>,
    %139 = vector.extract_strided_slice %54 {offsets = [0, 21], sizes = [4, 256], strides = [1, 1]} : vector<4x358xf32> to vector<4x256xf32>
    %140 = vector.extract_strided_slice %52 {offsets = [5, 0], sizes = [1, 256], strides = [1, 1]} : vector<7x256xf32> to vector<1x256xf32>
    %141 = vector.shape_cast %140 : vector<1x256xf32> to vector<256xf32>
    %142 = vector.shape_cast %141 : vector<256xf32> to vector<1x256xf32>
    %143 = vector.broadcast %142 : vector<1x256xf32> to vector<4x256xf32>
    %144 = arith.mulf %139, %143 : vector<4x256xf32>
    %c48 = arith.constant 48 : index
    %c0_71 = arith.constant 0 : index
    %145 = vector.load %arg8[%c48, %c0_71] : memref<196x512xf32, #tpu.memory_space<vmem>>, vector<4x256xf32>
    tpu.vector_store %arg8[%c48, %c0_71], %144 {strides = array<i32>} : memref<196x512xf32, #tpu.memory_space<vmem>>, vector<4x256xf32>,
    %146 = vector.extract_strided_slice %54 {offsets = [0, 22], sizes = [4, 256], strides = [1, 1]} : vector<4x358xf32> to vector<4x256xf32>
    %147 = vector.extract_strided_slice %52 {offsets = [6, 0], sizes = [1, 256], strides = [1, 1]} : vector<7x256xf32> to vector<1x256xf32>
    %148 = vector.shape_cast %147 : vector<1x256xf32> to vector<256xf32>
    %149 = vector.shape_cast %148 : vector<256xf32> to vector<1x256xf32>
    %150 = vector.broadcast %149 : vector<1x256xf32> to vector<4x256xf32>
    %151 = arith.mulf %146, %150 : vector<4x256xf32>
    %c52 = arith.constant 52 : index
    %c0_72 = arith.constant 0 : index
    %152 = vector.load %arg8[%c52, %c0_72] : memref<196x512xf32, #tpu.memory_space<vmem>>, vector<4x256xf32>
    tpu.vector_store %arg8[%c52, %c0_72], %151 {strides = array<i32>} : memref<196x512xf32, #tpu.memory_space<vmem>>, vector<4x256xf32>,
    %153 = vector.extract_strided_slice %54 {offsets = [0, 32], sizes = [4, 256], strides = [1, 1]} : vector<4x358xf32> to vector<4x256xf32>
    %154 = vector.extract_strided_slice %52 {offsets = [0, 0], sizes = [1, 256], strides = [1, 1]} : vector<7x256xf32> to vector<1x256xf32>
    %155 = vector.shape_cast %154 : vector<1x256xf32> to vector<256xf32>
    %156 = vector.shape_cast %155 : vector<256xf32> to vector<1x256xf32>
    %157 = vector.broadcast %156 : vector<1x256xf32> to vector<4x256xf32>
    %158 = arith.mulf %153, %157 : vector<4x256xf32>
    %c56 = arith.constant 56 : index
    %c0_73 = arith.constant 0 : index
    %159 = vector.load %arg8[%c56, %c0_73] : memref<196x512xf32, #tpu.memory_space<vmem>>, vector<4x256xf32>
    tpu.vector_store %arg8[%c56, %c0_73], %158 {strides = array<i32>} : memref<196x512xf32, #tpu.memory_space<vmem>>, vector<4x256xf32>,
    %160 = vector.extract_strided_slice %54 {offsets = [0, 33], sizes = [4, 256], strides = [1, 1]} : vector<4x358xf32> to vector<4x256xf32>
    %161 = vector.extract_strided_slice %52 {offsets = [1, 0], sizes = [1, 256], strides = [1, 1]} : vector<7x256xf32> to vector<1x256xf32>
    %162 = vector.shape_cast %161 : vector<1x256xf32> to vector<256xf32>
    %163 = vector.shape_cast %162 : vector<256xf32> to vector<1x256xf32>
    %164 = vector.broadcast %163 : vector<1x256xf32> to vector<4x256xf32>
    %165 = arith.mulf %160, %164 : vector<4x256xf32>
    %c60 = arith.constant 60 : index
    %c0_74 = arith.constant 0 : index
    %166 = vector.load %arg8[%c60, %c0_74] : memref<196x512xf32, #tpu.memory_space<vmem>>, vector<4x256xf32>
    tpu.vector_store %arg8[%c60, %c0_74], %165 {strides = array<i32>} : memref<196x512xf32, #tpu.memory_space<vmem>>, vector<4x256xf32>,
    %167 = vector.extract_strided_slice %54 {offsets = [0, 34], sizes = [4, 256], strides = [1, 1]} : vector<4x358xf32> to vector<4x256xf32>
    %168 = vector.extract_strided_slice %52 {offsets = [2, 0], sizes = [1, 256], strides = [1, 1]} : vector<7x256xf32> to vector<1x256xf32>
    %169 = vector.shape_cast %168 : vector<1x256xf32> to vector<256xf32>
    %170 = vector.shape_cast %169 : vector<256xf32> to vector<1x256xf32>
    %171 = vector.broadcast %170 : vector<1x256xf32> to vector<4x256xf32>
    %172 = arith.mulf %167, %171 : vector<4x256xf32>
    %c64 = arith.constant 64 : index
    %c0_75 = arith.constant 0 : index
    %173 = vector.load %arg8[%c64, %c0_75] : memref<196x512xf32, #tpu.memory_space<vmem>>, vector<4x256xf32>
    tpu.vector_store %arg8[%c64, %c0_75], %172 {strides = array<i32>} : memref<196x512xf32, #tpu.memory_space<vmem>>, vector<4x256xf32>,
    %174 = vector.extract_strided_slice %54 {offsets = [0, 35], sizes = [4, 256], strides = [1, 1]} : vector<4x358xf32> to vector<4x256xf32>
    %175 = vector.extract_strided_slice %52 {offsets = [3, 0], sizes = [1, 256], strides = [1, 1]} : vector<7x256xf32> to vector<1x256xf32>
    %176 = vector.shape_cast %175 : vector<1x256xf32> to vector<256xf32>
    %177 = vector.shape_cast %176 : vector<256xf32> to vector<1x256xf32>
    %178 = vector.broadcast %177 : vector<1x256xf32> to vector<4x256xf32>
    %179 = arith.mulf %174, %178 : vector<4x256xf32>
    %c68 = arith.constant 68 : index
    %c0_76 = arith.constant 0 : index
    %180 = vector.load %arg8[%c68, %c0_76] : memref<196x512xf32, #tpu.memory_space<vmem>>, vector<4x256xf32>
    tpu.vector_store %arg8[%c68, %c0_76], %179 {strides = array<i32>} : memref<196x512xf32, #tpu.memory_space<vmem>>, vector<4x256xf32>,
    %181 = vector.extract_strided_slice %54 {offsets = [0, 36], sizes = [4, 256], strides = [1, 1]} : vector<4x358xf32> to vector<4x256xf32>
    %182 = vector.extract_strided_slice %52 {offsets = [4, 0], sizes = [1, 256], strides = [1, 1]} : vector<7x256xf32> to vector<1x256xf32>
    %183 = vector.shape_cast %182 : vector<1x256xf32> to vector<256xf32>
    %184 = vector.shape_cast %183 : vector<256xf32> to vector<1x256xf32>
    %185 = vector.broadcast %184 : vector<1x256xf32> to vector<4x256xf32>
    %186 = arith.mulf %181, %185 : vector<4x256xf32>
    %c72 = arith.constant 72 : index
    %c0_77 = arith.constant 0 : index
    %187 = vector.load %arg8[%c72, %c0_77] : memref<196x512xf32, #tpu.memory_space<vmem>>, vector<4x256xf32>
    tpu.vector_store %arg8[%c72, %c0_77], %186 {strides = array<i32>} : memref<196x512xf32, #tpu.memory_space<vmem>>, vector<4x256xf32>,
    %188 = vector.extract_strided_slice %54 {offsets = [0, 37], sizes = [4, 256], strides = [1, 1]} : vector<4x358xf32> to vector<4x256xf32>
    %189 = vector.extract_strided_slice %52 {offsets = [5, 0], sizes = [1, 256], strides = [1, 1]} : vector<7x256xf32> to vector<1x256xf32>
    %190 = vector.shape_cast %189 : vector<1x256xf32> to vector<256xf32>
    %191 = vector.shape_cast %190 : vector<256xf32> to vector<1x256xf32>
    %192 = vector.broadcast %191 : vector<1x256xf32> to vector<4x256xf32>
    %193 = arith.mulf %188, %192 : vector<4x256xf32>
    %c76 = arith.constant 76 : index
    %c0_78 = arith.constant 0 : index
    %194 = vector.load %arg8[%c76, %c0_78] : memref<196x512xf32, #tpu.memory_space<vmem>>, vector<4x256xf32>
    tpu.vector_store %arg8[%c76, %c0_78], %193 {strides = array<i32>} : memref<196x512xf32, #tpu.memory_space<vmem>>, vector<4x256xf32>,
    %195 = vector.extract_strided_slice %54 {offsets = [0, 38], sizes = [4, 256], strides = [1, 1]} : vector<4x358xf32> to vector<4x256xf32>
    %196 = vector.extract_strided_slice %52 {offsets = [6, 0], sizes = [1, 256], strides = [1, 1]} : vector<7x256xf32> to vector<1x256xf32>
    %197 = vector.shape_cast %196 : vector<1x256xf32> to vector<256xf32>
    %198 = vector.shape_cast %197 : vector<256xf32> to vector<1x256xf32>
    %199 = vector.broadcast %198 : vector<1x256xf32> to vector<4x256xf32>
    %200 = arith.mulf %195, %199 : vector<4x256xf32>
    %c80 = arith.constant 80 : index
    %c0_79 = arith.constant 0 : index
    %201 = vector.load %arg8[%c80, %c0_79] : memref<196x512xf32, #tpu.memory_space<vmem>>, vector<4x256xf32>
    tpu.vector_store %arg8[%c80, %c0_79], %200 {strides = array<i32>} : memref<196x512xf32, #tpu.memory_space<vmem>>, vector<4x256xf32>,
    %202 = vector.extract_strided_slice %54 {offsets = [0, 48], sizes = [4, 256], strides = [1, 1]} : vector<4x358xf32> to vector<4x256xf32>
    %203 = vector.extract_strided_slice %52 {offsets = [0, 0], sizes = [1, 256], strides = [1, 1]} : vector<7x256xf32> to vector<1x256xf32>
    %204 = vector.shape_cast %203 : vector<1x256xf32> to vector<256xf32>
    %205 = vector.shape_cast %204 : vector<256xf32> to vector<1x256xf32>
    %206 = vector.broadcast %205 : vector<1x256xf32> to vector<4x256xf32>
    %207 = arith.mulf %202, %206 : vector<4x256xf32>
    %c84 = arith.constant 84 : index
    %c0_80 = arith.constant 0 : index
    %208 = vector.load %arg8[%c84, %c0_80] : memref<196x512xf32, #tpu.memory_space<vmem>>, vector<4x256xf32>
    tpu.vector_store %arg8[%c84, %c0_80], %207 {strides = array<i32>} : memref<196x512xf32, #tpu.memory_space<vmem>>, vector<4x256xf32>,
    %209 = vector.extract_strided_slice %54 {offsets = [0, 49], sizes = [4, 256], strides = [1, 1]} : vector<4x358xf32> to vector<4x256xf32>
    %210 = vector.extract_strided_slice %52 {offsets = [1, 0], sizes = [1, 256], strides = [1, 1]} : vector<7x256xf32> to vector<1x256xf32>
    %211 = vector.shape_cast %210 : vector<1x256xf32> to vector<256xf32>
    %212 = vector.shape_cast %211 : vector<256xf32> to vector<1x256xf32>
    %213 = vector.broadcast %212 : vector<1x256xf32> to vector<4x256xf32>
    %214 = arith.mulf %209, %213 : vector<4x256xf32>
    %c88 = arith.constant 88 : index
    %c0_81 = arith.constant 0 : index
    %215 = vector.load %arg8[%c88, %c0_81] : memref<196x512xf32, #tpu.memory_space<vmem>>, vector<4x256xf32>
    tpu.vector_store %arg8[%c88, %c0_81], %214 {strides = array<i32>} : memref<196x512xf32, #tpu.memory_space<vmem>>, vector<4x256xf32>,
    %216 = vector.extract_strided_slice %54 {offsets = [0, 50], sizes = [4, 256], strides = [1, 1]} : vector<4x358xf32> to vector<4x256xf32>
    %217 = vector.extract_strided_slice %52 {offsets = [2, 0], sizes = [1, 256], strides = [1, 1]} : vector<7x256xf32> to vector<1x256xf32>
    %218 = vector.shape_cast %217 : vector<1x256xf32> to vector<256xf32>
    %219 = vector.shape_cast %218 : vector<256xf32> to vector<1x256xf32>
    %220 = vector.broadcast %219 : vector<1x256xf32> to vector<4x256xf32>
    %221 = arith.mulf %216, %220 : vector<4x256xf32>
    %c92 = arith.constant 92 : index
    %c0_82 = arith.constant 0 : index
    %222 = vector.load %arg8[%c92, %c0_82] : memref<196x512xf32, #tpu.memory_space<vmem>>, vector<4x256xf32>
    tpu.vector_store %arg8[%c92, %c0_82], %221 {strides = array<i32>} : memref<196x512xf32, #tpu.memory_space<vmem>>, vector<4x256xf32>,
    %223 = vector.extract_strided_slice %54 {offsets = [0, 51], sizes = [4, 256], strides = [1, 1]} : vector<4x358xf32> to vector<4x256xf32>
    %224 = vector.extract_strided_slice %52 {offsets = [3, 0], sizes = [1, 256], strides = [1, 1]} : vector<7x256xf32> to vector<1x256xf32>
    %225 = vector.shape_cast %224 : vector<1x256xf32> to vector<256xf32>
    %226 = vector.shape_cast %225 : vector<256xf32> to vector<1x256xf32>
    %227 = vector.broadcast %226 : vector<1x256xf32> to vector<4x256xf32>
    %228 = arith.mulf %223, %227 : vector<4x256xf32>
    %c96 = arith.constant 96 : index
    %c0_83 = arith.constant 0 : index
    %229 = vector.load %arg8[%c96, %c0_83] : memref<196x512xf32, #tpu.memory_space<vmem>>, vector<4x256xf32>
    tpu.vector_store %arg8[%c96, %c0_83], %228 {strides = array<i32>} : memref<196x512xf32, #tpu.memory_space<vmem>>, vector<4x256xf32>,
    %230 = vector.extract_strided_slice %54 {offsets = [0, 52], sizes = [4, 256], strides = [1, 1]} : vector<4x358xf32> to vector<4x256xf32>
    %231 = vector.extract_strided_slice %52 {offsets = [4, 0], sizes = [1, 256], strides = [1, 1]} : vector<7x256xf32> to vector<1x256xf32>
    %232 = vector.shape_cast %231 : vector<1x256xf32> to vector<256xf32>
    %233 = vector.shape_cast %232 : vector<256xf32> to vector<1x256xf32>
    %234 = vector.broadcast %233 : vector<1x256xf32> to vector<4x256xf32>
    %235 = arith.mulf %230, %234 : vector<4x256xf32>
    %c100 = arith.constant 100 : index
    %c0_84 = arith.constant 0 : index
    %236 = vector.load %arg8[%c100, %c0_84] : memref<196x512xf32, #tpu.memory_space<vmem>>, vector<4x256xf32>
    tpu.vector_store %arg8[%c100, %c0_84], %235 {strides = array<i32>} : memref<196x512xf32, #tpu.memory_space<vmem>>, vector<4x256xf32>,
    %237 = vector.extract_strided_slice %54 {offsets = [0, 53], sizes = [4, 256], strides = [1, 1]} : vector<4x358xf32> to vector<4x256xf32>
    %238 = vector.extract_strided_slice %52 {offsets = [5, 0], sizes = [1, 256], strides = [1, 1]} : vector<7x256xf32> to vector<1x256xf32>
    %239 = vector.shape_cast %238 : vector<1x256xf32> to vector<256xf32>
    %240 = vector.shape_cast %239 : vector<256xf32> to vector<1x256xf32>
    %241 = vector.broadcast %240 : vector<1x256xf32> to vector<4x256xf32>
    %242 = arith.mulf %237, %241 : vector<4x256xf32>
    %c104 = arith.constant 104 : index
    %c0_85 = arith.constant 0 : index
    %243 = vector.load %arg8[%c104, %c0_85] : memref<196x512xf32, #tpu.memory_space<vmem>>, vector<4x256xf32>
    tpu.vector_store %arg8[%c104, %c0_85], %242 {strides = array<i32>} : memref<196x512xf32, #tpu.memory_space<vmem>>, vector<4x256xf32>,
    %244 = vector.extract_strided_slice %54 {offsets = [0, 54], sizes = [4, 256], strides = [1, 1]} : vector<4x358xf32> to vector<4x256xf32>
    %245 = vector.extract_strided_slice %52 {offsets = [6, 0], sizes = [1, 256], strides = [1, 1]} : vector<7x256xf32> to vector<1x256xf32>
    %246 = vector.shape_cast %245 : vector<1x256xf32> to vector<256xf32>
    %247 = vector.shape_cast %246 : vector<256xf32> to vector<1x256xf32>
    %248 = vector.broadcast %247 : vector<1x256xf32> to vector<4x256xf32>
    %249 = arith.mulf %244, %248 : vector<4x256xf32>
    %c108 = arith.constant 108 : index
    %c0_86 = arith.constant 0 : index
    %250 = vector.load %arg8[%c108, %c0_86] : memref<196x512xf32, #tpu.memory_space<vmem>>, vector<4x256xf32>
    tpu.vector_store %arg8[%c108, %c0_86], %249 {strides = array<i32>} : memref<196x512xf32, #tpu.memory_space<vmem>>, vector<4x256xf32>,
    %251 = vector.extract_strided_slice %54 {offsets = [0, 64], sizes = [4, 256], strides = [1, 1]} : vector<4x358xf32> to vector<4x256xf32>
    %252 = vector.extract_strided_slice %52 {offsets = [0, 0], sizes = [1, 256], strides = [1, 1]} : vector<7x256xf32> to vector<1x256xf32>
    %253 = vector.shape_cast %252 : vector<1x256xf32> to vector<256xf32>
    %254 = vector.shape_cast %253 : vector<256xf32> to vector<1x256xf32>
    %255 = vector.broadcast %254 : vector<1x256xf32> to vector<4x256xf32>
    %256 = arith.mulf %251, %255 : vector<4x256xf32>
    %c112 = arith.constant 112 : index
    %c0_87 = arith.constant 0 : index
    %257 = vector.load %arg8[%c112, %c0_87] : memref<196x512xf32, #tpu.memory_space<vmem>>, vector<4x256xf32>
    tpu.vector_store %arg8[%c112, %c0_87], %256 {strides = array<i32>} : memref<196x512xf32, #tpu.memory_space<vmem>>, vector<4x256xf32>,
    %258 = vector.extract_strided_slice %54 {offsets = [0, 65], sizes = [4, 256], strides = [1, 1]} : vector<4x358xf32> to vector<4x256xf32>
    %259 = vector.extract_strided_slice %52 {offsets = [1, 0], sizes = [1, 256], strides = [1, 1]} : vector<7x256xf32> to vector<1x256xf32>
    %260 = vector.shape_cast %259 : vector<1x256xf32> to vector<256xf32>
    %261 = vector.shape_cast %260 : vector<256xf32> to vector<1x256xf32>
    %262 = vector.broadcast %261 : vector<1x256xf32> to vector<4x256xf32>
    %263 = arith.mulf %258, %262 : vector<4x256xf32>
    %c116 = arith.constant 116 : index
    %c0_88 = arith.constant 0 : index
    %264 = vector.load %arg8[%c116, %c0_88] : memref<196x512xf32, #tpu.memory_space<vmem>>, vector<4x256xf32>
    tpu.vector_store %arg8[%c116, %c0_88], %263 {strides = array<i32>} : memref<196x512xf32, #tpu.memory_space<vmem>>, vector<4x256xf32>,
    %265 = vector.extract_strided_slice %54 {offsets = [0, 66], sizes = [4, 256], strides = [1, 1]} : vector<4x358xf32> to vector<4x256xf32>
    %266 = vector.extract_strided_slice %52 {offsets = [2, 0], sizes = [1, 256], strides = [1, 1]} : vector<7x256xf32> to vector<1x256xf32>
    %267 = vector.shape_cast %266 : vector<1x256xf32> to vector<256xf32>
    %268 = vector.shape_cast %267 : vector<256xf32> to vector<1x256xf32>
    %269 = vector.broadcast %268 : vector<1x256xf32> to vector<4x256xf32>
    %270 = arith.mulf %265, %269 : vector<4x256xf32>
    %c120 = arith.constant 120 : index
    %c0_89 = arith.constant 0 : index
    %271 = vector.load %arg8[%c120, %c0_89] : memref<196x512xf32, #tpu.memory_space<vmem>>, vector<4x256xf32>
    tpu.vector_store %arg8[%c120, %c0_89], %270 {strides = array<i32>} : memref<196x512xf32, #tpu.memory_space<vmem>>, vector<4x256xf32>,
    %272 = vector.extract_strided_slice %54 {offsets = [0, 67], sizes = [4, 256], strides = [1, 1]} : vector<4x358xf32> to vector<4x256xf32>
    %273 = vector.extract_strided_slice %52 {offsets = [3, 0], sizes = [1, 256], strides = [1, 1]} : vector<7x256xf32> to vector<1x256xf32>
    %274 = vector.shape_cast %273 : vector<1x256xf32> to vector<256xf32>
    %275 = vector.shape_cast %274 : vector<256xf32> to vector<1x256xf32>
    %276 = vector.broadcast %275 : vector<1x256xf32> to vector<4x256xf32>
    %277 = arith.mulf %272, %276 : vector<4x256xf32>
    %c124 = arith.constant 124 : index
    %c0_90 = arith.constant 0 : index
    %278 = vector.load %arg8[%c124, %c0_90] : memref<196x512xf32, #tpu.memory_space<vmem>>, vector<4x256xf32>
    tpu.vector_store %arg8[%c124, %c0_90], %277 {strides = array<i32>} : memref<196x512xf32, #tpu.memory_space<vmem>>, vector<4x256xf32>,
    %279 = vector.extract_strided_slice %54 {offsets = [0, 68], sizes = [4, 256], strides = [1, 1]} : vector<4x358xf32> to vector<4x256xf32>
    %280 = vector.extract_strided_slice %52 {offsets = [4, 0], sizes = [1, 256], strides = [1, 1]} : vector<7x256xf32> to vector<1x256xf32>
    %281 = vector.shape_cast %280 : vector<1x256xf32> to vector<256xf32>
    %282 = vector.shape_cast %281 : vector<256xf32> to vector<1x256xf32>
    %283 = vector.broadcast %282 : vector<1x256xf32> to vector<4x256xf32>
    %284 = arith.mulf %279, %283 : vector<4x256xf32>
    %c128 = arith.constant 128 : index
    %c0_91 = arith.constant 0 : index
    %285 = vector.load %arg8[%c128, %c0_91] : memref<196x512xf32, #tpu.memory_space<vmem>>, vector<4x256xf32>
    tpu.vector_store %arg8[%c128, %c0_91], %284 {strides = array<i32>} : memref<196x512xf32, #tpu.memory_space<vmem>>, vector<4x256xf32>,
    %286 = vector.extract_strided_slice %54 {offsets = [0, 69], sizes = [4, 256], strides = [1, 1]} : vector<4x358xf32> to vector<4x256xf32>
    %287 = vector.extract_strided_slice %52 {offsets = [5, 0], sizes = [1, 256], strides = [1, 1]} : vector<7x256xf32> to vector<1x256xf32>
    %288 = vector.shape_cast %287 : vector<1x256xf32> to vector<256xf32>
    %289 = vector.shape_cast %288 : vector<256xf32> to vector<1x256xf32>
    %290 = vector.broadcast %289 : vector<1x256xf32> to vector<4x256xf32>
    %291 = arith.mulf %286, %290 : vector<4x256xf32>
    %c132 = arith.constant 132 : index
    %c0_92 = arith.constant 0 : index
    %292 = vector.load %arg8[%c132, %c0_92] : memref<196x512xf32, #tpu.memory_space<vmem>>, vector<4x256xf32>
    tpu.vector_store %arg8[%c132, %c0_92], %291 {strides = array<i32>} : memref<196x512xf32, #tpu.memory_space<vmem>>, vector<4x256xf32>,
    %293 = vector.extract_strided_slice %54 {offsets = [0, 70], sizes = [4, 256], strides = [1, 1]} : vector<4x358xf32> to vector<4x256xf32>
    %294 = vector.extract_strided_slice %52 {offsets = [6, 0], sizes = [1, 256], strides = [1, 1]} : vector<7x256xf32> to vector<1x256xf32>
    %295 = vector.shape_cast %294 : vector<1x256xf32> to vector<256xf32>
    %296 = vector.shape_cast %295 : vector<256xf32> to vector<1x256xf32>
    %297 = vector.broadcast %296 : vector<1x256xf32> to vector<4x256xf32>
    %298 = arith.mulf %293, %297 : vector<4x256xf32>
    %c136 = arith.constant 136 : index
    %c0_93 = arith.constant 0 : index
    %299 = vector.load %arg8[%c136, %c0_93] : memref<196x512xf32, #tpu.memory_space<vmem>>, vector<4x256xf32>
    tpu.vector_store %arg8[%c136, %c0_93], %298 {strides = array<i32>} : memref<196x512xf32, #tpu.memory_space<vmem>>, vector<4x256xf32>,
    %300 = vector.extract_strided_slice %54 {offsets = [0, 80], sizes = [4, 256], strides = [1, 1]} : vector<4x358xf32> to vector<4x256xf32>
    %301 = vector.extract_strided_slice %52 {offsets = [0, 0], sizes = [1, 256], strides = [1, 1]} : vector<7x256xf32> to vector<1x256xf32>
    %302 = vector.shape_cast %301 : vector<1x256xf32> to vector<256xf32>
    %303 = vector.shape_cast %302 : vector<256xf32> to vector<1x256xf32>
    %304 = vector.broadcast %303 : vector<1x256xf32> to vector<4x256xf32>
    %305 = arith.mulf %300, %304 : vector<4x256xf32>
    %c140 = arith.constant 140 : index
    %c0_94 = arith.constant 0 : index
    %306 = vector.load %arg8[%c140, %c0_94] : memref<196x512xf32, #tpu.memory_space<vmem>>, vector<4x256xf32>
    tpu.vector_store %arg8[%c140, %c0_94], %305 {strides = array<i32>} : memref<196x512xf32, #tpu.memory_space<vmem>>, vector<4x256xf32>,
    %307 = vector.extract_strided_slice %54 {offsets = [0, 81], sizes = [4, 256], strides = [1, 1]} : vector<4x358xf32> to vector<4x256xf32>
    %308 = vector.extract_strided_slice %52 {offsets = [1, 0], sizes = [1, 256], strides = [1, 1]} : vector<7x256xf32> to vector<1x256xf32>
    %309 = vector.shape_cast %308 : vector<1x256xf32> to vector<256xf32>
    %310 = vector.shape_cast %309 : vector<256xf32> to vector<1x256xf32>
    %311 = vector.broadcast %310 : vector<1x256xf32> to vector<4x256xf32>
    %312 = arith.mulf %307, %311 : vector<4x256xf32>
    %c144 = arith.constant 144 : index
    %c0_95 = arith.constant 0 : index
    %313 = vector.load %arg8[%c144, %c0_95] : memref<196x512xf32, #tpu.memory_space<vmem>>, vector<4x256xf32>
    tpu.vector_store %arg8[%c144, %c0_95], %312 {strides = array<i32>} : memref<196x512xf32, #tpu.memory_space<vmem>>, vector<4x256xf32>,
    %314 = vector.extract_strided_slice %54 {offsets = [0, 82], sizes = [4, 256], strides = [1, 1]} : vector<4x358xf32> to vector<4x256xf32>
    %315 = vector.extract_strided_slice %52 {offsets = [2, 0], sizes = [1, 256], strides = [1, 1]} : vector<7x256xf32> to vector<1x256xf32>
    %316 = vector.shape_cast %315 : vector<1x256xf32> to vector<256xf32>
    %317 = vector.shape_cast %316 : vector<256xf32> to vector<1x256xf32>
    %318 = vector.broadcast %317 : vector<1x256xf32> to vector<4x256xf32>
    %319 = arith.mulf %314, %318 : vector<4x256xf32>
    %c148 = arith.constant 148 : index
    %c0_96 = arith.constant 0 : index
    %320 = vector.load %arg8[%c148, %c0_96] : memref<196x512xf32, #tpu.memory_space<vmem>>, vector<4x256xf32>
    tpu.vector_store %arg8[%c148, %c0_96], %319 {strides = array<i32>} : memref<196x512xf32, #tpu.memory_space<vmem>>, vector<4x256xf32>,
    %321 = vector.extract_strided_slice %54 {offsets = [0, 83], sizes = [4, 256], strides = [1, 1]} : vector<4x358xf32> to vector<4x256xf32>
    %322 = vector.extract_strided_slice %52 {offsets = [3, 0], sizes = [1, 256], strides = [1, 1]} : vector<7x256xf32> to vector<1x256xf32>
    %323 = vector.shape_cast %322 : vector<1x256xf32> to vector<256xf32>
    %324 = vector.shape_cast %323 : vector<256xf32> to vector<1x256xf32>
    %325 = vector.broadcast %324 : vector<1x256xf32> to vector<4x256xf32>
    %326 = arith.mulf %321, %325 : vector<4x256xf32>
    %c152 = arith.constant 152 : index
    %c0_97 = arith.constant 0 : index
    %327 = vector.load %arg8[%c152, %c0_97] : memref<196x512xf32, #tpu.memory_space<vmem>>, vector<4x256xf32>
    tpu.vector_store %arg8[%c152, %c0_97], %326 {strides = array<i32>} : memref<196x512xf32, #tpu.memory_space<vmem>>, vector<4x256xf32>,
    %328 = vector.extract_strided_slice %54 {offsets = [0, 84], sizes = [4, 256], strides = [1, 1]} : vector<4x358xf32> to vector<4x256xf32>
    %329 = vector.extract_strided_slice %52 {offsets = [4, 0], sizes = [1, 256], strides = [1, 1]} : vector<7x256xf32> to vector<1x256xf32>
    %330 = vector.shape_cast %329 : vector<1x256xf32> to vector<256xf32>
    %331 = vector.shape_cast %330 : vector<256xf32> to vector<1x256xf32>
    %332 = vector.broadcast %331 : vector<1x256xf32> to vector<4x256xf32>
    %333 = arith.mulf %328, %332 : vector<4x256xf32>
    %c156 = arith.constant 156 : index
    %c0_98 = arith.constant 0 : index
    %334 = vector.load %arg8[%c156, %c0_98] : memref<196x512xf32, #tpu.memory_space<vmem>>, vector<4x256xf32>
    tpu.vector_store %arg8[%c156, %c0_98], %333 {strides = array<i32>} : memref<196x512xf32, #tpu.memory_space<vmem>>, vector<4x256xf32>,
    %335 = vector.extract_strided_slice %54 {offsets = [0, 85], sizes = [4, 256], strides = [1, 1]} : vector<4x358xf32> to vector<4x256xf32>
    %336 = vector.extract_strided_slice %52 {offsets = [5, 0], sizes = [1, 256], strides = [1, 1]} : vector<7x256xf32> to vector<1x256xf32>
    %337 = vector.shape_cast %336 : vector<1x256xf32> to vector<256xf32>
    %338 = vector.shape_cast %337 : vector<256xf32> to vector<1x256xf32>
    %339 = vector.broadcast %338 : vector<1x256xf32> to vector<4x256xf32>
    %340 = arith.mulf %335, %339 : vector<4x256xf32>
    %c160 = arith.constant 160 : index
    %c0_99 = arith.constant 0 : index
    %341 = vector.load %arg8[%c160, %c0_99] : memref<196x512xf32, #tpu.memory_space<vmem>>, vector<4x256xf32>
    tpu.vector_store %arg8[%c160, %c0_99], %340 {strides = array<i32>} : memref<196x512xf32, #tpu.memory_space<vmem>>, vector<4x256xf32>,
    %342 = vector.extract_strided_slice %54 {offsets = [0, 86], sizes = [4, 256], strides = [1, 1]} : vector<4x358xf32> to vector<4x256xf32>
    %343 = vector.extract_strided_slice %52 {offsets = [6, 0], sizes = [1, 256], strides = [1, 1]} : vector<7x256xf32> to vector<1x256xf32>
    %344 = vector.shape_cast %343 : vector<1x256xf32> to vector<256xf32>
    %345 = vector.shape_cast %344 : vector<256xf32> to vector<1x256xf32>
    %346 = vector.broadcast %345 : vector<1x256xf32> to vector<4x256xf32>
    %347 = arith.mulf %342, %346 : vector<4x256xf32>
    %c164 = arith.constant 164 : index
    %c0_100 = arith.constant 0 : index
    %348 = vector.load %arg8[%c164, %c0_100] : memref<196x512xf32, #tpu.memory_space<vmem>>, vector<4x256xf32>
    tpu.vector_store %arg8[%c164, %c0_100], %347 {strides = array<i32>} : memref<196x512xf32, #tpu.memory_space<vmem>>, vector<4x256xf32>,
    %349 = vector.extract_strided_slice %54 {offsets = [0, 96], sizes = [4, 256], strides = [1, 1]} : vector<4x358xf32> to vector<4x256xf32>
    %350 = vector.extract_strided_slice %52 {offsets = [0, 0], sizes = [1, 256], strides = [1, 1]} : vector<7x256xf32> to vector<1x256xf32>
    %351 = vector.shape_cast %350 : vector<1x256xf32> to vector<256xf32>
    %352 = vector.shape_cast %351 : vector<256xf32> to vector<1x256xf32>
    %353 = vector.broadcast %352 : vector<1x256xf32> to vector<4x256xf32>
    %354 = arith.mulf %349, %353 : vector<4x256xf32>
    %c168 = arith.constant 168 : index
    %c0_101 = arith.constant 0 : index
    %355 = vector.load %arg8[%c168, %c0_101] : memref<196x512xf32, #tpu.memory_space<vmem>>, vector<4x256xf32>
    tpu.vector_store %arg8[%c168, %c0_101], %354 {strides = array<i32>} : memref<196x512xf32, #tpu.memory_space<vmem>>, vector<4x256xf32>,
    %356 = vector.extract_strided_slice %54 {offsets = [0, 97], sizes = [4, 256], strides = [1, 1]} : vector<4x358xf32> to vector<4x256xf32>
    %357 = vector.extract_strided_slice %52 {offsets = [1, 0], sizes = [1, 256], strides = [1, 1]} : vector<7x256xf32> to vector<1x256xf32>
    %358 = vector.shape_cast %357 : vector<1x256xf32> to vector<256xf32>
    %359 = vector.shape_cast %358 : vector<256xf32> to vector<1x256xf32>
    %360 = vector.broadcast %359 : vector<1x256xf32> to vector<4x256xf32>
    %361 = arith.mulf %356, %360 : vector<4x256xf32>
    %c172 = arith.constant 172 : index
    %c0_102 = arith.constant 0 : index
    %362 = vector.load %arg8[%c172, %c0_102] : memref<196x512xf32, #tpu.memory_space<vmem>>, vector<4x256xf32>
    tpu.vector_store %arg8[%c172, %c0_102], %361 {strides = array<i32>} : memref<196x512xf32, #tpu.memory_space<vmem>>, vector<4x256xf32>,
    %363 = vector.extract_strided_slice %54 {offsets = [0, 98], sizes = [4, 256], strides = [1, 1]} : vector<4x358xf32> to vector<4x256xf32>
    %364 = vector.extract_strided_slice %52 {offsets = [2, 0], sizes = [1, 256], strides = [1, 1]} : vector<7x256xf32> to vector<1x256xf32>
    %365 = vector.shape_cast %364 : vector<1x256xf32> to vector<256xf32>
    %366 = vector.shape_cast %365 : vector<256xf32> to vector<1x256xf32>
    %367 = vector.broadcast %366 : vector<1x256xf32> to vector<4x256xf32>
    %368 = arith.mulf %363, %367 : vector<4x256xf32>
    %c176 = arith.constant 176 : index
    %c0_103 = arith.constant 0 : index
    %369 = vector.load %arg8[%c176, %c0_103] : memref<196x512xf32, #tpu.memory_space<vmem>>, vector<4x256xf32>
    tpu.vector_store %arg8[%c176, %c0_103], %368 {strides = array<i32>} : memref<196x512xf32, #tpu.memory_space<vmem>>, vector<4x256xf32>,
    %370 = vector.extract_strided_slice %54 {offsets = [0, 99], sizes = [4, 256], strides = [1, 1]} : vector<4x358xf32> to vector<4x256xf32>
    %371 = vector.extract_strided_slice %52 {offsets = [3, 0], sizes = [1, 256], strides = [1, 1]} : vector<7x256xf32> to vector<1x256xf32>
    %372 = vector.shape_cast %371 : vector<1x256xf32> to vector<256xf32>
    %373 = vector.shape_cast %372 : vector<256xf32> to vector<1x256xf32>
    %374 = vector.broadcast %373 : vector<1x256xf32> to vector<4x256xf32>
    %375 = arith.mulf %370, %374 : vector<4x256xf32>
    %c180 = arith.constant 180 : index
    %c0_104 = arith.constant 0 : index
    %376 = vector.load %arg8[%c180, %c0_104] : memref<196x512xf32, #tpu.memory_space<vmem>>, vector<4x256xf32>
    tpu.vector_store %arg8[%c180, %c0_104], %375 {strides = array<i32>} : memref<196x512xf32, #tpu.memory_space<vmem>>, vector<4x256xf32>,
    %377 = vector.extract_strided_slice %54 {offsets = [0, 100], sizes = [4, 256], strides = [1, 1]} : vector<4x358xf32> to vector<4x256xf32>
    %378 = vector.extract_strided_slice %52 {offsets = [4, 0], sizes = [1, 256], strides = [1, 1]} : vector<7x256xf32> to vector<1x256xf32>
    %379 = vector.shape_cast %378 : vector<1x256xf32> to vector<256xf32>
    %380 = vector.shape_cast %379 : vector<256xf32> to vector<1x256xf32>
    %381 = vector.broadcast %380 : vector<1x256xf32> to vector<4x256xf32>
    %382 = arith.mulf %377, %381 : vector<4x256xf32>
    %c184 = arith.constant 184 : index
    %c0_105 = arith.constant 0 : index
    %383 = vector.load %arg8[%c184, %c0_105] : memref<196x512xf32, #tpu.memory_space<vmem>>, vector<4x256xf32>
    tpu.vector_store %arg8[%c184, %c0_105], %382 {strides = array<i32>} : memref<196x512xf32, #tpu.memory_space<vmem>>, vector<4x256xf32>,
    %384 = vector.extract_strided_slice %54 {offsets = [0, 101], sizes = [4, 256], strides = [1, 1]} : vector<4x358xf32> to vector<4x256xf32>
    %385 = vector.extract_strided_slice %52 {offsets = [5, 0], sizes = [1, 256], strides = [1, 1]} : vector<7x256xf32> to vector<1x256xf32>
    %386 = vector.shape_cast %385 : vector<1x256xf32> to vector<256xf32>
    %387 = vector.shape_cast %386 : vector<256xf32> to vector<1x256xf32>
    %388 = vector.broadcast %387 : vector<1x256xf32> to vector<4x256xf32>
    %389 = arith.mulf %384, %388 : vector<4x256xf32>
    %c188 = arith.constant 188 : index
    %c0_106 = arith.constant 0 : index
    %390 = vector.load %arg8[%c188, %c0_106] : memref<196x512xf32, #tpu.memory_space<vmem>>, vector<4x256xf32>
    tpu.vector_store %arg8[%c188, %c0_106], %389 {strides = array<i32>} : memref<196x512xf32, #tpu.memory_space<vmem>>, vector<4x256xf32>,
    %391 = vector.extract_strided_slice %54 {offsets = [0, 102], sizes = [4, 256], strides = [1, 1]} : vector<4x358xf32> to vector<4x256xf32>
    %392 = vector.extract_strided_slice %52 {offsets = [6, 0], sizes = [1, 256], strides = [1, 1]} : vector<7x256xf32> to vector<1x256xf32>
    %393 = vector.shape_cast %392 : vector<1x256xf32> to vector<256xf32>
    %394 = vector.shape_cast %393 : vector<256xf32> to vector<1x256xf32>
    %395 = vector.broadcast %394 : vector<1x256xf32> to vector<4x256xf32>
    %396 = arith.mulf %391, %395 : vector<4x256xf32>
    %c192 = arith.constant 192 : index
    %c0_107 = arith.constant 0 : index
    %397 = vector.load %arg8[%c192, %c0_107] : memref<196x512xf32, #tpu.memory_space<vmem>>, vector<4x256xf32>
    tpu.vector_store %arg8[%c192, %c0_107], %396 {strides = array<i32>} : memref<196x512xf32, #tpu.memory_space<vmem>>, vector<4x256xf32>,
    %c1_108 = arith.constant 1 : index
    %c0_109 = arith.constant 0 : index
    %c0_110 = arith.constant 0 : index
    %398 = vector.load %arg7[%c1_108, %c0_109, %c0_110] : memref<2x4x358xf32, #tpu.memory_space<vmem>>, vector<1x4x358xf32>
    %399 = vector.shape_cast %398 : vector<1x4x358xf32> to vector<4x358xf32>
    %400 = vector.extract_strided_slice %399 {offsets = [0, 0], sizes = [4, 256], strides = [1, 1]} : vector<4x358xf32> to vector<4x256xf32>
    %401 = vector.extract_strided_slice %52 {offsets = [0, 0], sizes = [1, 256], strides = [1, 1]} : vector<7x256xf32> to vector<1x256xf32>
    %402 = vector.shape_cast %401 : vector<1x256xf32> to vector<256xf32>
    %403 = vector.shape_cast %402 : vector<256xf32> to vector<1x256xf32>
    %404 = vector.broadcast %403 : vector<1x256xf32> to vector<4x256xf32>
    %405 = arith.mulf %400, %404 : vector<4x256xf32>
    %c0_111 = arith.constant 0 : index
    %c256 = arith.constant 256 : index
    %406 = vector.load %arg8[%c0_111, %c256] : memref<196x512xf32, #tpu.memory_space<vmem>>, vector<4x256xf32>
    tpu.vector_store %arg8[%c0_111, %c256], %405 {strides = array<i32>} : memref<196x512xf32, #tpu.memory_space<vmem>>, vector<4x256xf32>,
    %407 = vector.extract_strided_slice %399 {offsets = [0, 1], sizes = [4, 256], strides = [1, 1]} : vector<4x358xf32> to vector<4x256xf32>
    %408 = vector.extract_strided_slice %52 {offsets = [1, 0], sizes = [1, 256], strides = [1, 1]} : vector<7x256xf32> to vector<1x256xf32>
    %409 = vector.shape_cast %408 : vector<1x256xf32> to vector<256xf32>
    %410 = vector.shape_cast %409 : vector<256xf32> to vector<1x256xf32>
    %411 = vector.broadcast %410 : vector<1x256xf32> to vector<4x256xf32>
    %412 = arith.mulf %407, %411 : vector<4x256xf32>
    %c4_112 = arith.constant 4 : index
    %c256_113 = arith.constant 256 : index
    %413 = vector.load %arg8[%c4_112, %c256_113] : memref<196x512xf32, #tpu.memory_space<vmem>>, vector<4x256xf32>
    tpu.vector_store %arg8[%c4_112, %c256_113], %412 {strides = array<i32>} : memref<196x512xf32, #tpu.memory_space<vmem>>, vector<4x256xf32>,
    %414 = vector.extract_strided_slice %399 {offsets = [0, 2], sizes = [4, 256], strides = [1, 1]} : vector<4x358xf32> to vector<4x256xf32>
    %415 = vector.extract_strided_slice %52 {offsets = [2, 0], sizes = [1, 256], strides = [1, 1]} : vector<7x256xf32> to vector<1x256xf32>
    %416 = vector.shape_cast %415 : vector<1x256xf32> to vector<256xf32>
    %417 = vector.shape_cast %416 : vector<256xf32> to vector<1x256xf32>
    %418 = vector.broadcast %417 : vector<1x256xf32> to vector<4x256xf32>
    %419 = arith.mulf %414, %418 : vector<4x256xf32>
    %c8_114 = arith.constant 8 : index
    %c256_115 = arith.constant 256 : index
    %420 = vector.load %arg8[%c8_114, %c256_115] : memref<196x512xf32, #tpu.memory_space<vmem>>, vector<4x256xf32>
    tpu.vector_store %arg8[%c8_114, %c256_115], %419 {strides = array<i32>} : memref<196x512xf32, #tpu.memory_space<vmem>>, vector<4x256xf32>,
    %421 = vector.extract_strided_slice %399 {offsets = [0, 3], sizes = [4, 256], strides = [1, 1]} : vector<4x358xf32> to vector<4x256xf32>
    %422 = vector.extract_strided_slice %52 {offsets = [3, 0], sizes = [1, 256], strides = [1, 1]} : vector<7x256xf32> to vector<1x256xf32>
    %423 = vector.shape_cast %422 : vector<1x256xf32> to vector<256xf32>
    %424 = vector.shape_cast %423 : vector<256xf32> to vector<1x256xf32>
    %425 = vector.broadcast %424 : vector<1x256xf32> to vector<4x256xf32>
    %426 = arith.mulf %421, %425 : vector<4x256xf32>
    %c12_116 = arith.constant 12 : index
    %c256_117 = arith.constant 256 : index
    %427 = vector.load %arg8[%c12_116, %c256_117] : memref<196x512xf32, #tpu.memory_space<vmem>>, vector<4x256xf32>
    tpu.vector_store %arg8[%c12_116, %c256_117], %426 {strides = array<i32>} : memref<196x512xf32, #tpu.memory_space<vmem>>, vector<4x256xf32>,
    %428 = vector.extract_strided_slice %399 {offsets = [0, 4], sizes = [4, 256], strides = [1, 1]} : vector<4x358xf32> to vector<4x256xf32>
    %429 = vector.extract_strided_slice %52 {offsets = [4, 0], sizes = [1, 256], strides = [1, 1]} : vector<7x256xf32> to vector<1x256xf32>
    %430 = vector.shape_cast %429 : vector<1x256xf32> to vector<256xf32>
    %431 = vector.shape_cast %430 : vector<256xf32> to vector<1x256xf32>
    %432 = vector.broadcast %431 : vector<1x256xf32> to vector<4x256xf32>
    %433 = arith.mulf %428, %432 : vector<4x256xf32>
    %c16_118 = arith.constant 16 : index
    %c256_119 = arith.constant 256 : index
    %434 = vector.load %arg8[%c16_118, %c256_119] : memref<196x512xf32, #tpu.memory_space<vmem>>, vector<4x256xf32>
    tpu.vector_store %arg8[%c16_118, %c256_119], %433 {strides = array<i32>} : memref<196x512xf32, #tpu.memory_space<vmem>>, vector<4x256xf32>,
    %435 = vector.extract_strided_slice %399 {offsets = [0, 5], sizes = [4, 256], strides = [1, 1]} : vector<4x358xf32> to vector<4x256xf32>
    %436 = vector.extract_strided_slice %52 {offsets = [5, 0], sizes = [1, 256], strides = [1, 1]} : vector<7x256xf32> to vector<1x256xf32>
    %437 = vector.shape_cast %436 : vector<1x256xf32> to vector<256xf32>
    %438 = vector.shape_cast %437 : vector<256xf32> to vector<1x256xf32>
    %439 = vector.broadcast %438 : vector<1x256xf32> to vector<4x256xf32>
    %440 = arith.mulf %435, %439 : vector<4x256xf32>
    %c20_120 = arith.constant 20 : index
    %c256_121 = arith.constant 256 : index
    %441 = vector.load %arg8[%c20_120, %c256_121] : memref<196x512xf32, #tpu.memory_space<vmem>>, vector<4x256xf32>
    tpu.vector_store %arg8[%c20_120, %c256_121], %440 {strides = array<i32>} : memref<196x512xf32, #tpu.memory_space<vmem>>, vector<4x256xf32>,
    %442 = vector.extract_strided_slice %399 {offsets = [0, 6], sizes = [4, 256], strides = [1, 1]} : vector<4x358xf32> to vector<4x256xf32>
    %443 = vector.extract_strided_slice %52 {offsets = [6, 0], sizes = [1, 256], strides = [1, 1]} : vector<7x256xf32> to vector<1x256xf32>
    %444 = vector.shape_cast %443 : vector<1x256xf32> to vector<256xf32>
    %445 = vector.shape_cast %444 : vector<256xf32> to vector<1x256xf32>
    %446 = vector.broadcast %445 : vector<1x256xf32> to vector<4x256xf32>
    %447 = arith.mulf %442, %446 : vector<4x256xf32>
    %c24_122 = arith.constant 24 : index
    %c256_123 = arith.constant 256 : index
    %448 = vector.load %arg8[%c24_122, %c256_123] : memref<196x512xf32, #tpu.memory_space<vmem>>, vector<4x256xf32>
    tpu.vector_store %arg8[%c24_122, %c256_123], %447 {strides = array<i32>} : memref<196x512xf32, #tpu.memory_space<vmem>>, vector<4x256xf32>,
    %449 = vector.extract_strided_slice %399 {offsets = [0, 16], sizes = [4, 256], strides = [1, 1]} : vector<4x358xf32> to vector<4x256xf32>
    %450 = vector.extract_strided_slice %52 {offsets = [0, 0], sizes = [1, 256], strides = [1, 1]} : vector<7x256xf32> to vector<1x256xf32>
    %451 = vector.shape_cast %450 : vector<1x256xf32> to vector<256xf32>
    %452 = vector.shape_cast %451 : vector<256xf32> to vector<1x256xf32>
    %453 = vector.broadcast %452 : vector<1x256xf32> to vector<4x256xf32>
    %454 = arith.mulf %449, %453 : vector<4x256xf32>
    %c28_124 = arith.constant 28 : index
    %c256_125 = arith.constant 256 : index
    %455 = vector.load %arg8[%c28_124, %c256_125] : memref<196x512xf32, #tpu.memory_space<vmem>>, vector<4x256xf32>
    tpu.vector_store %arg8[%c28_124, %c256_125], %454 {strides = array<i32>} : memref<196x512xf32, #tpu.memory_space<vmem>>, vector<4x256xf32>,
    %456 = vector.extract_strided_slice %399 {offsets = [0, 17], sizes = [4, 256], strides = [1, 1]} : vector<4x358xf32> to vector<4x256xf32>
    %457 = vector.extract_strided_slice %52 {offsets = [1, 0], sizes = [1, 256], strides = [1, 1]} : vector<7x256xf32> to vector<1x256xf32>
    %458 = vector.shape_cast %457 : vector<1x256xf32> to vector<256xf32>
    %459 = vector.shape_cast %458 : vector<256xf32> to vector<1x256xf32>
    %460 = vector.broadcast %459 : vector<1x256xf32> to vector<4x256xf32>
    %461 = arith.mulf %456, %460 : vector<4x256xf32>
    %c32_126 = arith.constant 32 : index
    %c256_127 = arith.constant 256 : index
    %462 = vector.load %arg8[%c32_126, %c256_127] : memref<196x512xf32, #tpu.memory_space<vmem>>, vector<4x256xf32>
    tpu.vector_store %arg8[%c32_126, %c256_127], %461 {strides = array<i32>} : memref<196x512xf32, #tpu.memory_space<vmem>>, vector<4x256xf32>,
    %463 = vector.extract_strided_slice %399 {offsets = [0, 18], sizes = [4, 256], strides = [1, 1]} : vector<4x358xf32> to vector<4x256xf32>
    %464 = vector.extract_strided_slice %52 {offsets = [2, 0], sizes = [1, 256], strides = [1, 1]} : vector<7x256xf32> to vector<1x256xf32>
    %465 = vector.shape_cast %464 : vector<1x256xf32> to vector<256xf32>
    %466 = vector.shape_cast %465 : vector<256xf32> to vector<1x256xf32>
    %467 = vector.broadcast %466 : vector<1x256xf32> to vector<4x256xf32>
    %468 = arith.mulf %463, %467 : vector<4x256xf32>
    %c36_128 = arith.constant 36 : index
    %c256_129 = arith.constant 256 : index
    %469 = vector.load %arg8[%c36_128, %c256_129] : memref<196x512xf32, #tpu.memory_space<vmem>>, vector<4x256xf32>
    tpu.vector_store %arg8[%c36_128, %c256_129], %468 {strides = array<i32>} : memref<196x512xf32, #tpu.memory_space<vmem>>, vector<4x256xf32>,
    %470 = vector.extract_strided_slice %399 {offsets = [0, 19], sizes = [4, 256], strides = [1, 1]} : vector<4x358xf32> to vector<4x256xf32>
    %471 = vector.extract_strided_slice %52 {offsets = [3, 0], sizes = [1, 256], strides = [1, 1]} : vector<7x256xf32> to vector<1x256xf32>
    %472 = vector.shape_cast %471 : vector<1x256xf32> to vector<256xf32>
    %473 = vector.shape_cast %472 : vector<256xf32> to vector<1x256xf32>
    %474 = vector.broadcast %473 : vector<1x256xf32> to vector<4x256xf32>
    %475 = arith.mulf %470, %474 : vector<4x256xf32>
    %c40_130 = arith.constant 40 : index
    %c256_131 = arith.constant 256 : index
    %476 = vector.load %arg8[%c40_130, %c256_131] : memref<196x512xf32, #tpu.memory_space<vmem>>, vector<4x256xf32>
    tpu.vector_store %arg8[%c40_130, %c256_131], %475 {strides = array<i32>} : memref<196x512xf32, #tpu.memory_space<vmem>>, vector<4x256xf32>,
    %477 = vector.extract_strided_slice %399 {offsets = [0, 20], sizes = [4, 256], strides = [1, 1]} : vector<4x358xf32> to vector<4x256xf32>
    %478 = vector.extract_strided_slice %52 {offsets = [4, 0], sizes = [1, 256], strides = [1, 1]} : vector<7x256xf32> to vector<1x256xf32>
    %479 = vector.shape_cast %478 : vector<1x256xf32> to vector<256xf32>
    %480 = vector.shape_cast %479 : vector<256xf32> to vector<1x256xf32>
    %481 = vector.broadcast %480 : vector<1x256xf32> to vector<4x256xf32>
    %482 = arith.mulf %477, %481 : vector<4x256xf32>
    %c44_132 = arith.constant 44 : index
    %c256_133 = arith.constant 256 : index
    %483 = vector.load %arg8[%c44_132, %c256_133] : memref<196x512xf32, #tpu.memory_space<vmem>>, vector<4x256xf32>
    tpu.vector_store %arg8[%c44_132, %c256_133], %482 {strides = array<i32>} : memref<196x512xf32, #tpu.memory_space<vmem>>, vector<4x256xf32>,
    %484 = vector.extract_strided_slice %399 {offsets = [0, 21], sizes = [4, 256], strides = [1, 1]} : vector<4x358xf32> to vector<4x256xf32>
    %485 = vector.extract_strided_slice %52 {offsets = [5, 0], sizes = [1, 256], strides = [1, 1]} : vector<7x256xf32> to vector<1x256xf32>
    %486 = vector.shape_cast %485 : vector<1x256xf32> to vector<256xf32>
    %487 = vector.shape_cast %486 : vector<256xf32> to vector<1x256xf32>
    %488 = vector.broadcast %487 : vector<1x256xf32> to vector<4x256xf32>
    %489 = arith.mulf %484, %488 : vector<4x256xf32>
    %c48_134 = arith.constant 48 : index
    %c256_135 = arith.constant 256 : index
    %490 = vector.load %arg8[%c48_134, %c256_135] : memref<196x512xf32, #tpu.memory_space<vmem>>, vector<4x256xf32>
    tpu.vector_store %arg8[%c48_134, %c256_135], %489 {strides = array<i32>} : memref<196x512xf32, #tpu.memory_space<vmem>>, vector<4x256xf32>,
    %491 = vector.extract_strided_slice %399 {offsets = [0, 22], sizes = [4, 256], strides = [1, 1]} : vector<4x358xf32> to vector<4x256xf32>
    %492 = vector.extract_strided_slice %52 {offsets = [6, 0], sizes = [1, 256], strides = [1, 1]} : vector<7x256xf32> to vector<1x256xf32>
    %493 = vector.shape_cast %492 : vector<1x256xf32> to vector<256xf32>
    %494 = vector.shape_cast %493 : vector<256xf32> to vector<1x256xf32>
    %495 = vector.broadcast %494 : vector<1x256xf32> to vector<4x256xf32>
    %496 = arith.mulf %491, %495 : vector<4x256xf32>
    %c52_136 = arith.constant 52 : index
    %c256_137 = arith.constant 256 : index
    %497 = vector.load %arg8[%c52_136, %c256_137] : memref<196x512xf32, #tpu.memory_space<vmem>>, vector<4x256xf32>
    tpu.vector_store %arg8[%c52_136, %c256_137], %496 {strides = array<i32>} : memref<196x512xf32, #tpu.memory_space<vmem>>, vector<4x256xf32>,
    %498 = vector.extract_strided_slice %399 {offsets = [0, 32], sizes = [4, 256], strides = [1, 1]} : vector<4x358xf32> to vector<4x256xf32>
    %499 = vector.extract_strided_slice %52 {offsets = [0, 0], sizes = [1, 256], strides = [1, 1]} : vector<7x256xf32> to vector<1x256xf32>
    %500 = vector.shape_cast %499 : vector<1x256xf32> to vector<256xf32>
    %501 = vector.shape_cast %500 : vector<256xf32> to vector<1x256xf32>
    %502 = vector.broadcast %501 : vector<1x256xf32> to vector<4x256xf32>
    %503 = arith.mulf %498, %502 : vector<4x256xf32>
    %c56_138 = arith.constant 56 : index
    %c256_139 = arith.constant 256 : index
    %504 = vector.load %arg8[%c56_138, %c256_139] : memref<196x512xf32, #tpu.memory_space<vmem>>, vector<4x256xf32>
    tpu.vector_store %arg8[%c56_138, %c256_139], %503 {strides = array<i32>} : memref<196x512xf32, #tpu.memory_space<vmem>>, vector<4x256xf32>,
    %505 = vector.extract_strided_slice %399 {offsets = [0, 33], sizes = [4, 256], strides = [1, 1]} : vector<4x358xf32> to vector<4x256xf32>
    %506 = vector.extract_strided_slice %52 {offsets = [1, 0], sizes = [1, 256], strides = [1, 1]} : vector<7x256xf32> to vector<1x256xf32>
    %507 = vector.shape_cast %506 : vector<1x256xf32> to vector<256xf32>
    %508 = vector.shape_cast %507 : vector<256xf32> to vector<1x256xf32>
    %509 = vector.broadcast %508 : vector<1x256xf32> to vector<4x256xf32>
    %510 = arith.mulf %505, %509 : vector<4x256xf32>
    %c60_140 = arith.constant 60 : index
    %c256_141 = arith.constant 256 : index
    %511 = vector.load %arg8[%c60_140, %c256_141] : memref<196x512xf32, #tpu.memory_space<vmem>>, vector<4x256xf32>
    tpu.vector_store %arg8[%c60_140, %c256_141], %510 {strides = array<i32>} : memref<196x512xf32, #tpu.memory_space<vmem>>, vector<4x256xf32>,
    %512 = vector.extract_strided_slice %399 {offsets = [0, 34], sizes = [4, 256], strides = [1, 1]} : vector<4x358xf32> to vector<4x256xf32>
    %513 = vector.extract_strided_slice %52 {offsets = [2, 0], sizes = [1, 256], strides = [1, 1]} : vector<7x256xf32> to vector<1x256xf32>
    %514 = vector.shape_cast %513 : vector<1x256xf32> to vector<256xf32>
    %515 = vector.shape_cast %514 : vector<256xf32> to vector<1x256xf32>
    %516 = vector.broadcast %515 : vector<1x256xf32> to vector<4x256xf32>
    %517 = arith.mulf %512, %516 : vector<4x256xf32>
    %c64_142 = arith.constant 64 : index
    %c256_143 = arith.constant 256 : index
    %518 = vector.load %arg8[%c64_142, %c256_143] : memref<196x512xf32, #tpu.memory_space<vmem>>, vector<4x256xf32>
    tpu.vector_store %arg8[%c64_142, %c256_143], %517 {strides = array<i32>} : memref<196x512xf32, #tpu.memory_space<vmem>>, vector<4x256xf32>,
    %519 = vector.extract_strided_slice %399 {offsets = [0, 35], sizes = [4, 256], strides = [1, 1]} : vector<4x358xf32> to vector<4x256xf32>
    %520 = vector.extract_strided_slice %52 {offsets = [3, 0], sizes = [1, 256], strides = [1, 1]} : vector<7x256xf32> to vector<1x256xf32>
    %521 = vector.shape_cast %520 : vector<1x256xf32> to vector<256xf32>
    %522 = vector.shape_cast %521 : vector<256xf32> to vector<1x256xf32>
    %523 = vector.broadcast %522 : vector<1x256xf32> to vector<4x256xf32>
    %524 = arith.mulf %519, %523 : vector<4x256xf32>
    %c68_144 = arith.constant 68 : index
    %c256_145 = arith.constant 256 : index
    %525 = vector.load %arg8[%c68_144, %c256_145] : memref<196x512xf32, #tpu.memory_space<vmem>>, vector<4x256xf32>
    tpu.vector_store %arg8[%c68_144, %c256_145], %524 {strides = array<i32>} : memref<196x512xf32, #tpu.memory_space<vmem>>, vector<4x256xf32>,
    %526 = vector.extract_strided_slice %399 {offsets = [0, 36], sizes = [4, 256], strides = [1, 1]} : vector<4x358xf32> to vector<4x256xf32>
    %527 = vector.extract_strided_slice %52 {offsets = [4, 0], sizes = [1, 256], strides = [1, 1]} : vector<7x256xf32> to vector<1x256xf32>
    %528 = vector.shape_cast %527 : vector<1x256xf32> to vector<256xf32>
    %529 = vector.shape_cast %528 : vector<256xf32> to vector<1x256xf32>
    %530 = vector.broadcast %529 : vector<1x256xf32> to vector<4x256xf32>
    %531 = arith.mulf %526, %530 : vector<4x256xf32>
    %c72_146 = arith.constant 72 : index
    %c256_147 = arith.constant 256 : index
    %532 = vector.load %arg8[%c72_146, %c256_147] : memref<196x512xf32, #tpu.memory_space<vmem>>, vector<4x256xf32>
    tpu.vector_store %arg8[%c72_146, %c256_147], %531 {strides = array<i32>} : memref<196x512xf32, #tpu.memory_space<vmem>>, vector<4x256xf32>,
    %533 = vector.extract_strided_slice %399 {offsets = [0, 37], sizes = [4, 256], strides = [1, 1]} : vector<4x358xf32> to vector<4x256xf32>
    %534 = vector.extract_strided_slice %52 {offsets = [5, 0], sizes = [1, 256], strides = [1, 1]} : vector<7x256xf32> to vector<1x256xf32>
    %535 = vector.shape_cast %534 : vector<1x256xf32> to vector<256xf32>
    %536 = vector.shape_cast %535 : vector<256xf32> to vector<1x256xf32>
    %537 = vector.broadcast %536 : vector<1x256xf32> to vector<4x256xf32>
    %538 = arith.mulf %533, %537 : vector<4x256xf32>
    %c76_148 = arith.constant 76 : index
    %c256_149 = arith.constant 256 : index
    %539 = vector.load %arg8[%c76_148, %c256_149] : memref<196x512xf32, #tpu.memory_space<vmem>>, vector<4x256xf32>
    tpu.vector_store %arg8[%c76_148, %c256_149], %538 {strides = array<i32>} : memref<196x512xf32, #tpu.memory_space<vmem>>, vector<4x256xf32>,
    %540 = vector.extract_strided_slice %399 {offsets = [0, 38], sizes = [4, 256], strides = [1, 1]} : vector<4x358xf32> to vector<4x256xf32>
    %541 = vector.extract_strided_slice %52 {offsets = [6, 0], sizes = [1, 256], strides = [1, 1]} : vector<7x256xf32> to vector<1x256xf32>
    %542 = vector.shape_cast %541 : vector<1x256xf32> to vector<256xf32>
    %543 = vector.shape_cast %542 : vector<256xf32> to vector<1x256xf32>
    %544 = vector.broadcast %543 : vector<1x256xf32> to vector<4x256xf32>
    %545 = arith.mulf %540, %544 : vector<4x256xf32>
    %c80_150 = arith.constant 80 : index
    %c256_151 = arith.constant 256 : index
    %546 = vector.load %arg8[%c80_150, %c256_151] : memref<196x512xf32, #tpu.memory_space<vmem>>, vector<4x256xf32>
    tpu.vector_store %arg8[%c80_150, %c256_151], %545 {strides = array<i32>} : memref<196x512xf32, #tpu.memory_space<vmem>>, vector<4x256xf32>,
    %547 = vector.extract_strided_slice %399 {offsets = [0, 48], sizes = [4, 256], strides = [1, 1]} : vector<4x358xf32> to vector<4x256xf32>
    %548 = vector.extract_strided_slice %52 {offsets = [0, 0], sizes = [1, 256], strides = [1, 1]} : vector<7x256xf32> to vector<1x256xf32>
    %549 = vector.shape_cast %548 : vector<1x256xf32> to vector<256xf32>
    %550 = vector.shape_cast %549 : vector<256xf32> to vector<1x256xf32>
    %551 = vector.broadcast %550 : vector<1x256xf32> to vector<4x256xf32>
    %552 = arith.mulf %547, %551 : vector<4x256xf32>
    %c84_152 = arith.constant 84 : index
    %c256_153 = arith.constant 256 : index
    %553 = vector.load %arg8[%c84_152, %c256_153] : memref<196x512xf32, #tpu.memory_space<vmem>>, vector<4x256xf32>
    tpu.vector_store %arg8[%c84_152, %c256_153], %552 {strides = array<i32>} : memref<196x512xf32, #tpu.memory_space<vmem>>, vector<4x256xf32>,
    %554 = vector.extract_strided_slice %399 {offsets = [0, 49], sizes = [4, 256], strides = [1, 1]} : vector<4x358xf32> to vector<4x256xf32>
    %555 = vector.extract_strided_slice %52 {offsets = [1, 0], sizes = [1, 256], strides = [1, 1]} : vector<7x256xf32> to vector<1x256xf32>
    %556 = vector.shape_cast %555 : vector<1x256xf32> to vector<256xf32>
    %557 = vector.shape_cast %556 : vector<256xf32> to vector<1x256xf32>
    %558 = vector.broadcast %557 : vector<1x256xf32> to vector<4x256xf32>
    %559 = arith.mulf %554, %558 : vector<4x256xf32>
    %c88_154 = arith.constant 88 : index
    %c256_155 = arith.constant 256 : index
    %560 = vector.load %arg8[%c88_154, %c256_155] : memref<196x512xf32, #tpu.memory_space<vmem>>, vector<4x256xf32>
    tpu.vector_store %arg8[%c88_154, %c256_155], %559 {strides = array<i32>} : memref<196x512xf32, #tpu.memory_space<vmem>>, vector<4x256xf32>,
    %561 = vector.extract_strided_slice %399 {offsets = [0, 50], sizes = [4, 256], strides = [1, 1]} : vector<4x358xf32> to vector<4x256xf32>
    %562 = vector.extract_strided_slice %52 {offsets = [2, 0], sizes = [1, 256], strides = [1, 1]} : vector<7x256xf32> to vector<1x256xf32>
    %563 = vector.shape_cast %562 : vector<1x256xf32> to vector<256xf32>
    %564 = vector.shape_cast %563 : vector<256xf32> to vector<1x256xf32>
    %565 = vector.broadcast %564 : vector<1x256xf32> to vector<4x256xf32>
    %566 = arith.mulf %561, %565 : vector<4x256xf32>
    %c92_156 = arith.constant 92 : index
    %c256_157 = arith.constant 256 : index
    %567 = vector.load %arg8[%c92_156, %c256_157] : memref<196x512xf32, #tpu.memory_space<vmem>>, vector<4x256xf32>
    tpu.vector_store %arg8[%c92_156, %c256_157], %566 {strides = array<i32>} : memref<196x512xf32, #tpu.memory_space<vmem>>, vector<4x256xf32>,
    %568 = vector.extract_strided_slice %399 {offsets = [0, 51], sizes = [4, 256], strides = [1, 1]} : vector<4x358xf32> to vector<4x256xf32>
    %569 = vector.extract_strided_slice %52 {offsets = [3, 0], sizes = [1, 256], strides = [1, 1]} : vector<7x256xf32> to vector<1x256xf32>
    %570 = vector.shape_cast %569 : vector<1x256xf32> to vector<256xf32>
    %571 = vector.shape_cast %570 : vector<256xf32> to vector<1x256xf32>
    %572 = vector.broadcast %571 : vector<1x256xf32> to vector<4x256xf32>
    %573 = arith.mulf %568, %572 : vector<4x256xf32>
    %c96_158 = arith.constant 96 : index
    %c256_159 = arith.constant 256 : index
    %574 = vector.load %arg8[%c96_158, %c256_159] : memref<196x512xf32, #tpu.memory_space<vmem>>, vector<4x256xf32>
    tpu.vector_store %arg8[%c96_158, %c256_159], %573 {strides = array<i32>} : memref<196x512xf32, #tpu.memory_space<vmem>>, vector<4x256xf32>,
    %575 = vector.extract_strided_slice %399 {offsets = [0, 52], sizes = [4, 256], strides = [1, 1]} : vector<4x358xf32> to vector<4x256xf32>
    %576 = vector.extract_strided_slice %52 {offsets = [4, 0], sizes = [1, 256], strides = [1, 1]} : vector<7x256xf32> to vector<1x256xf32>
    %577 = vector.shape_cast %576 : vector<1x256xf32> to vector<256xf32>
    %578 = vector.shape_cast %577 : vector<256xf32> to vector<1x256xf32>
    %579 = vector.broadcast %578 : vector<1x256xf32> to vector<4x256xf32>
    %580 = arith.mulf %575, %579 : vector<4x256xf32>
    %c100_160 = arith.constant 100 : index
    %c256_161 = arith.constant 256 : index
    %581 = vector.load %arg8[%c100_160, %c256_161] : memref<196x512xf32, #tpu.memory_space<vmem>>, vector<4x256xf32>
    tpu.vector_store %arg8[%c100_160, %c256_161], %580 {strides = array<i32>} : memref<196x512xf32, #tpu.memory_space<vmem>>, vector<4x256xf32>,
    %582 = vector.extract_strided_slice %399 {offsets = [0, 53], sizes = [4, 256], strides = [1, 1]} : vector<4x358xf32> to vector<4x256xf32>
    %583 = vector.extract_strided_slice %52 {offsets = [5, 0], sizes = [1, 256], strides = [1, 1]} : vector<7x256xf32> to vector<1x256xf32>
    %584 = vector.shape_cast %583 : vector<1x256xf32> to vector<256xf32>
    %585 = vector.shape_cast %584 : vector<256xf32> to vector<1x256xf32>
    %586 = vector.broadcast %585 : vector<1x256xf32> to vector<4x256xf32>
    %587 = arith.mulf %582, %586 : vector<4x256xf32>
    %c104_162 = arith.constant 104 : index
    %c256_163 = arith.constant 256 : index
    %588 = vector.load %arg8[%c104_162, %c256_163] : memref<196x512xf32, #tpu.memory_space<vmem>>, vector<4x256xf32>
    tpu.vector_store %arg8[%c104_162, %c256_163], %587 {strides = array<i32>} : memref<196x512xf32, #tpu.memory_space<vmem>>, vector<4x256xf32>,
    %589 = vector.extract_strided_slice %399 {offsets = [0, 54], sizes = [4, 256], strides = [1, 1]} : vector<4x358xf32> to vector<4x256xf32>
    %590 = vector.extract_strided_slice %52 {offsets = [6, 0], sizes = [1, 256], strides = [1, 1]} : vector<7x256xf32> to vector<1x256xf32>
    %591 = vector.shape_cast %590 : vector<1x256xf32> to vector<256xf32>
    %592 = vector.shape_cast %591 : vector<256xf32> to vector<1x256xf32>
    %593 = vector.broadcast %592 : vector<1x256xf32> to vector<4x256xf32>
    %594 = arith.mulf %589, %593 : vector<4x256xf32>
    %c108_164 = arith.constant 108 : index
    %c256_165 = arith.constant 256 : index
    %595 = vector.load %arg8[%c108_164, %c256_165] : memref<196x512xf32, #tpu.memory_space<vmem>>, vector<4x256xf32>
    tpu.vector_store %arg8[%c108_164, %c256_165], %594 {strides = array<i32>} : memref<196x512xf32, #tpu.memory_space<vmem>>, vector<4x256xf32>,
    %596 = vector.extract_strided_slice %399 {offsets = [0, 64], sizes = [4, 256], strides = [1, 1]} : vector<4x358xf32> to vector<4x256xf32>
    %597 = vector.extract_strided_slice %52 {offsets = [0, 0], sizes = [1, 256], strides = [1, 1]} : vector<7x256xf32> to vector<1x256xf32>
    %598 = vector.shape_cast %597 : vector<1x256xf32> to vector<256xf32>
    %599 = vector.shape_cast %598 : vector<256xf32> to vector<1x256xf32>
    %600 = vector.broadcast %599 : vector<1x256xf32> to vector<4x256xf32>
    %601 = arith.mulf %596, %600 : vector<4x256xf32>
    %c112_166 = arith.constant 112 : index
    %c256_167 = arith.constant 256 : index
    %602 = vector.load %arg8[%c112_166, %c256_167] : memref<196x512xf32, #tpu.memory_space<vmem>>, vector<4x256xf32>
    tpu.vector_store %arg8[%c112_166, %c256_167], %601 {strides = array<i32>} : memref<196x512xf32, #tpu.memory_space<vmem>>, vector<4x256xf32>,
    %603 = vector.extract_strided_slice %399 {offsets = [0, 65], sizes = [4, 256], strides = [1, 1]} : vector<4x358xf32> to vector<4x256xf32>
    %604 = vector.extract_strided_slice %52 {offsets = [1, 0], sizes = [1, 256], strides = [1, 1]} : vector<7x256xf32> to vector<1x256xf32>
    %605 = vector.shape_cast %604 : vector<1x256xf32> to vector<256xf32>
    %606 = vector.shape_cast %605 : vector<256xf32> to vector<1x256xf32>
    %607 = vector.broadcast %606 : vector<1x256xf32> to vector<4x256xf32>
    %608 = arith.mulf %603, %607 : vector<4x256xf32>
    %c116_168 = arith.constant 116 : index
    %c256_169 = arith.constant 256 : index
    %609 = vector.load %arg8[%c116_168, %c256_169] : memref<196x512xf32, #tpu.memory_space<vmem>>, vector<4x256xf32>
    tpu.vector_store %arg8[%c116_168, %c256_169], %608 {strides = array<i32>} : memref<196x512xf32, #tpu.memory_space<vmem>>, vector<4x256xf32>,
    %610 = vector.extract_strided_slice %399 {offsets = [0, 66], sizes = [4, 256], strides = [1, 1]} : vector<4x358xf32> to vector<4x256xf32>
    %611 = vector.extract_strided_slice %52 {offsets = [2, 0], sizes = [1, 256], strides = [1, 1]} : vector<7x256xf32> to vector<1x256xf32>
    %612 = vector.shape_cast %611 : vector<1x256xf32> to vector<256xf32>
    %613 = vector.shape_cast %612 : vector<256xf32> to vector<1x256xf32>
    %614 = vector.broadcast %613 : vector<1x256xf32> to vector<4x256xf32>
    %615 = arith.mulf %610, %614 : vector<4x256xf32>
    %c120_170 = arith.constant 120 : index
    %c256_171 = arith.constant 256 : index
    %616 = vector.load %arg8[%c120_170, %c256_171] : memref<196x512xf32, #tpu.memory_space<vmem>>, vector<4x256xf32>
    tpu.vector_store %arg8[%c120_170, %c256_171], %615 {strides = array<i32>} : memref<196x512xf32, #tpu.memory_space<vmem>>, vector<4x256xf32>,
    %617 = vector.extract_strided_slice %399 {offsets = [0, 67], sizes = [4, 256], strides = [1, 1]} : vector<4x358xf32> to vector<4x256xf32>
    %618 = vector.extract_strided_slice %52 {offsets = [3, 0], sizes = [1, 256], strides = [1, 1]} : vector<7x256xf32> to vector<1x256xf32>
    %619 = vector.shape_cast %618 : vector<1x256xf32> to vector<256xf32>
    %620 = vector.shape_cast %619 : vector<256xf32> to vector<1x256xf32>
    %621 = vector.broadcast %620 : vector<1x256xf32> to vector<4x256xf32>
    %622 = arith.mulf %617, %621 : vector<4x256xf32>
    %c124_172 = arith.constant 124 : index
    %c256_173 = arith.constant 256 : index
    %623 = vector.load %arg8[%c124_172, %c256_173] : memref<196x512xf32, #tpu.memory_space<vmem>>, vector<4x256xf32>
    tpu.vector_store %arg8[%c124_172, %c256_173], %622 {strides = array<i32>} : memref<196x512xf32, #tpu.memory_space<vmem>>, vector<4x256xf32>,
    %624 = vector.extract_strided_slice %399 {offsets = [0, 68], sizes = [4, 256], strides = [1, 1]} : vector<4x358xf32> to vector<4x256xf32>
    %625 = vector.extract_strided_slice %52 {offsets = [4, 0], sizes = [1, 256], strides = [1, 1]} : vector<7x256xf32> to vector<1x256xf32>
    %626 = vector.shape_cast %625 : vector<1x256xf32> to vector<256xf32>
    %627 = vector.shape_cast %626 : vector<256xf32> to vector<1x256xf32>
    %628 = vector.broadcast %627 : vector<1x256xf32> to vector<4x256xf32>
    %629 = arith.mulf %624, %628 : vector<4x256xf32>
    %c128_174 = arith.constant 128 : index
    %c256_175 = arith.constant 256 : index
    %630 = vector.load %arg8[%c128_174, %c256_175] : memref<196x512xf32, #tpu.memory_space<vmem>>, vector<4x256xf32>
    tpu.vector_store %arg8[%c128_174, %c256_175], %629 {strides = array<i32>} : memref<196x512xf32, #tpu.memory_space<vmem>>, vector<4x256xf32>,
    %631 = vector.extract_strided_slice %399 {offsets = [0, 69], sizes = [4, 256], strides = [1, 1]} : vector<4x358xf32> to vector<4x256xf32>
    %632 = vector.extract_strided_slice %52 {offsets = [5, 0], sizes = [1, 256], strides = [1, 1]} : vector<7x256xf32> to vector<1x256xf32>
    %633 = vector.shape_cast %632 : vector<1x256xf32> to vector<256xf32>
    %634 = vector.shape_cast %633 : vector<256xf32> to vector<1x256xf32>
    %635 = vector.broadcast %634 : vector<1x256xf32> to vector<4x256xf32>
    %636 = arith.mulf %631, %635 : vector<4x256xf32>
    %c132_176 = arith.constant 132 : index
    %c256_177 = arith.constant 256 : index
    %637 = vector.load %arg8[%c132_176, %c256_177] : memref<196x512xf32, #tpu.memory_space<vmem>>, vector<4x256xf32>
    tpu.vector_store %arg8[%c132_176, %c256_177], %636 {strides = array<i32>} : memref<196x512xf32, #tpu.memory_space<vmem>>, vector<4x256xf32>,
    %638 = vector.extract_strided_slice %399 {offsets = [0, 70], sizes = [4, 256], strides = [1, 1]} : vector<4x358xf32> to vector<4x256xf32>
    %639 = vector.extract_strided_slice %52 {offsets = [6, 0], sizes = [1, 256], strides = [1, 1]} : vector<7x256xf32> to vector<1x256xf32>
    %640 = vector.shape_cast %639 : vector<1x256xf32> to vector<256xf32>
    %641 = vector.shape_cast %640 : vector<256xf32> to vector<1x256xf32>
    %642 = vector.broadcast %641 : vector<1x256xf32> to vector<4x256xf32>
    %643 = arith.mulf %638, %642 : vector<4x256xf32>
    %c136_178 = arith.constant 136 : index
    %c256_179 = arith.constant 256 : index
    %644 = vector.load %arg8[%c136_178, %c256_179] : memref<196x512xf32, #tpu.memory_space<vmem>>, vector<4x256xf32>
    tpu.vector_store %arg8[%c136_178, %c256_179], %643 {strides = array<i32>} : memref<196x512xf32, #tpu.memory_space<vmem>>, vector<4x256xf32>,
    %645 = vector.extract_strided_slice %399 {offsets = [0, 80], sizes = [4, 256], strides = [1, 1]} : vector<4x358xf32> to vector<4x256xf32>
    %646 = vector.extract_strided_slice %52 {offsets = [0, 0], sizes = [1, 256], strides = [1, 1]} : vector<7x256xf32> to vector<1x256xf32>
    %647 = vector.shape_cast %646 : vector<1x256xf32> to vector<256xf32>
    %648 = vector.shape_cast %647 : vector<256xf32> to vector<1x256xf32>
    %649 = vector.broadcast %648 : vector<1x256xf32> to vector<4x256xf32>
    %650 = arith.mulf %645, %649 : vector<4x256xf32>
    %c140_180 = arith.constant 140 : index
    %c256_181 = arith.constant 256 : index
    %651 = vector.load %arg8[%c140_180, %c256_181] : memref<196x512xf32, #tpu.memory_space<vmem>>, vector<4x256xf32>
    tpu.vector_store %arg8[%c140_180, %c256_181], %650 {strides = array<i32>} : memref<196x512xf32, #tpu.memory_space<vmem>>, vector<4x256xf32>,
    %652 = vector.extract_strided_slice %399 {offsets = [0, 81], sizes = [4, 256], strides = [1, 1]} : vector<4x358xf32> to vector<4x256xf32>
    %653 = vector.extract_strided_slice %52 {offsets = [1, 0], sizes = [1, 256], strides = [1, 1]} : vector<7x256xf32> to vector<1x256xf32>
    %654 = vector.shape_cast %653 : vector<1x256xf32> to vector<256xf32>
    %655 = vector.shape_cast %654 : vector<256xf32> to vector<1x256xf32>
    %656 = vector.broadcast %655 : vector<1x256xf32> to vector<4x256xf32>
    %657 = arith.mulf %652, %656 : vector<4x256xf32>
    %c144_182 = arith.constant 144 : index
    %c256_183 = arith.constant 256 : index
    %658 = vector.load %arg8[%c144_182, %c256_183] : memref<196x512xf32, #tpu.memory_space<vmem>>, vector<4x256xf32>
    tpu.vector_store %arg8[%c144_182, %c256_183], %657 {strides = array<i32>} : memref<196x512xf32, #tpu.memory_space<vmem>>, vector<4x256xf32>,
    %659 = vector.extract_strided_slice %399 {offsets = [0, 82], sizes = [4, 256], strides = [1, 1]} : vector<4x358xf32> to vector<4x256xf32>
    %660 = vector.extract_strided_slice %52 {offsets = [2, 0], sizes = [1, 256], strides = [1, 1]} : vector<7x256xf32> to vector<1x256xf32>
    %661 = vector.shape_cast %660 : vector<1x256xf32> to vector<256xf32>
    %662 = vector.shape_cast %661 : vector<256xf32> to vector<1x256xf32>
    %663 = vector.broadcast %662 : vector<1x256xf32> to vector<4x256xf32>
    %664 = arith.mulf %659, %663 : vector<4x256xf32>
    %c148_184 = arith.constant 148 : index
    %c256_185 = arith.constant 256 : index
    %665 = vector.load %arg8[%c148_184, %c256_185] : memref<196x512xf32, #tpu.memory_space<vmem>>, vector<4x256xf32>
    tpu.vector_store %arg8[%c148_184, %c256_185], %664 {strides = array<i32>} : memref<196x512xf32, #tpu.memory_space<vmem>>, vector<4x256xf32>,
    %666 = vector.extract_strided_slice %399 {offsets = [0, 83], sizes = [4, 256], strides = [1, 1]} : vector<4x358xf32> to vector<4x256xf32>
    %667 = vector.extract_strided_slice %52 {offsets = [3, 0], sizes = [1, 256], strides = [1, 1]} : vector<7x256xf32> to vector<1x256xf32>
    %668 = vector.shape_cast %667 : vector<1x256xf32> to vector<256xf32>
    %669 = vector.shape_cast %668 : vector<256xf32> to vector<1x256xf32>
    %670 = vector.broadcast %669 : vector<1x256xf32> to vector<4x256xf32>
    %671 = arith.mulf %666, %670 : vector<4x256xf32>
    %c152_186 = arith.constant 152 : index
    %c256_187 = arith.constant 256 : index
    %672 = vector.load %arg8[%c152_186, %c256_187] : memref<196x512xf32, #tpu.memory_space<vmem>>, vector<4x256xf32>
    tpu.vector_store %arg8[%c152_186, %c256_187], %671 {strides = array<i32>} : memref<196x512xf32, #tpu.memory_space<vmem>>, vector<4x256xf32>,
    %673 = vector.extract_strided_slice %399 {offsets = [0, 84], sizes = [4, 256], strides = [1, 1]} : vector<4x358xf32> to vector<4x256xf32>
    %674 = vector.extract_strided_slice %52 {offsets = [4, 0], sizes = [1, 256], strides = [1, 1]} : vector<7x256xf32> to vector<1x256xf32>
    %675 = vector.shape_cast %674 : vector<1x256xf32> to vector<256xf32>
    %676 = vector.shape_cast %675 : vector<256xf32> to vector<1x256xf32>
    %677 = vector.broadcast %676 : vector<1x256xf32> to vector<4x256xf32>
    %678 = arith.mulf %673, %677 : vector<4x256xf32>
    %c156_188 = arith.constant 156 : index
    %c256_189 = arith.constant 256 : index
    %679 = vector.load %arg8[%c156_188, %c256_189] : memref<196x512xf32, #tpu.memory_space<vmem>>, vector<4x256xf32>
    tpu.vector_store %arg8[%c156_188, %c256_189], %678 {strides = array<i32>} : memref<196x512xf32, #tpu.memory_space<vmem>>, vector<4x256xf32>,
    %680 = vector.extract_strided_slice %399 {offsets = [0, 85], sizes = [4, 256], strides = [1, 1]} : vector<4x358xf32> to vector<4x256xf32>
    %681 = vector.extract_strided_slice %52 {offsets = [5, 0], sizes = [1, 256], strides = [1, 1]} : vector<7x256xf32> to vector<1x256xf32>
    %682 = vector.shape_cast %681 : vector<1x256xf32> to vector<256xf32>
    %683 = vector.shape_cast %682 : vector<256xf32> to vector<1x256xf32>
    %684 = vector.broadcast %683 : vector<1x256xf32> to vector<4x256xf32>
    %685 = arith.mulf %680, %684 : vector<4x256xf32>
    %c160_190 = arith.constant 160 : index
    %c256_191 = arith.constant 256 : index
    %686 = vector.load %arg8[%c160_190, %c256_191] : memref<196x512xf32, #tpu.memory_space<vmem>>, vector<4x256xf32>
    tpu.vector_store %arg8[%c160_190, %c256_191], %685 {strides = array<i32>} : memref<196x512xf32, #tpu.memory_space<vmem>>, vector<4x256xf32>,
    %687 = vector.extract_strided_slice %399 {offsets = [0, 86], sizes = [4, 256], strides = [1, 1]} : vector<4x358xf32> to vector<4x256xf32>
    %688 = vector.extract_strided_slice %52 {offsets = [6, 0], sizes = [1, 256], strides = [1, 1]} : vector<7x256xf32> to vector<1x256xf32>
    %689 = vector.shape_cast %688 : vector<1x256xf32> to vector<256xf32>
    %690 = vector.shape_cast %689 : vector<256xf32> to vector<1x256xf32>
    %691 = vector.broadcast %690 : vector<1x256xf32> to vector<4x256xf32>
    %692 = arith.mulf %687, %691 : vector<4x256xf32>
    %c164_192 = arith.constant 164 : index
    %c256_193 = arith.constant 256 : index
    %693 = vector.load %arg8[%c164_192, %c256_193] : memref<196x512xf32, #tpu.memory_space<vmem>>, vector<4x256xf32>
    tpu.vector_store %arg8[%c164_192, %c256_193], %692 {strides = array<i32>} : memref<196x512xf32, #tpu.memory_space<vmem>>, vector<4x256xf32>,
    %694 = vector.extract_strided_slice %399 {offsets = [0, 96], sizes = [4, 256], strides = [1, 1]} : vector<4x358xf32> to vector<4x256xf32>
    %695 = vector.extract_strided_slice %52 {offsets = [0, 0], sizes = [1, 256], strides = [1, 1]} : vector<7x256xf32> to vector<1x256xf32>
    %696 = vector.shape_cast %695 : vector<1x256xf32> to vector<256xf32>
    %697 = vector.shape_cast %696 : vector<256xf32> to vector<1x256xf32>
    %698 = vector.broadcast %697 : vector<1x256xf32> to vector<4x256xf32>
    %699 = arith.mulf %694, %698 : vector<4x256xf32>
    %c168_194 = arith.constant 168 : index
    %c256_195 = arith.constant 256 : index
    %700 = vector.load %arg8[%c168_194, %c256_195] : memref<196x512xf32, #tpu.memory_space<vmem>>, vector<4x256xf32>
    tpu.vector_store %arg8[%c168_194, %c256_195], %699 {strides = array<i32>} : memref<196x512xf32, #tpu.memory_space<vmem>>, vector<4x256xf32>,
    %701 = vector.extract_strided_slice %399 {offsets = [0, 97], sizes = [4, 256], strides = [1, 1]} : vector<4x358xf32> to vector<4x256xf32>
    %702 = vector.extract_strided_slice %52 {offsets = [1, 0], sizes = [1, 256], strides = [1, 1]} : vector<7x256xf32> to vector<1x256xf32>
    %703 = vector.shape_cast %702 : vector<1x256xf32> to vector<256xf32>
    %704 = vector.shape_cast %703 : vector<256xf32> to vector<1x256xf32>
    %705 = vector.broadcast %704 : vector<1x256xf32> to vector<4x256xf32>
    %706 = arith.mulf %701, %705 : vector<4x256xf32>
    %c172_196 = arith.constant 172 : index
    %c256_197 = arith.constant 256 : index
    %707 = vector.load %arg8[%c172_196, %c256_197] : memref<196x512xf32, #tpu.memory_space<vmem>>, vector<4x256xf32>
    tpu.vector_store %arg8[%c172_196, %c256_197], %706 {strides = array<i32>} : memref<196x512xf32, #tpu.memory_space<vmem>>, vector<4x256xf32>,
    %708 = vector.extract_strided_slice %399 {offsets = [0, 98], sizes = [4, 256], strides = [1, 1]} : vector<4x358xf32> to vector<4x256xf32>
    %709 = vector.extract_strided_slice %52 {offsets = [2, 0], sizes = [1, 256], strides = [1, 1]} : vector<7x256xf32> to vector<1x256xf32>
    %710 = vector.shape_cast %709 : vector<1x256xf32> to vector<256xf32>
    %711 = vector.shape_cast %710 : vector<256xf32> to vector<1x256xf32>
    %712 = vector.broadcast %711 : vector<1x256xf32> to vector<4x256xf32>
    %713 = arith.mulf %708, %712 : vector<4x256xf32>
    %c176_198 = arith.constant 176 : index
    %c256_199 = arith.constant 256 : index
    %714 = vector.load %arg8[%c176_198, %c256_199] : memref<196x512xf32, #tpu.memory_space<vmem>>, vector<4x256xf32>
    tpu.vector_store %arg8[%c176_198, %c256_199], %713 {strides = array<i32>} : memref<196x512xf32, #tpu.memory_space<vmem>>, vector<4x256xf32>,
    %715 = vector.extract_strided_slice %399 {offsets = [0, 99], sizes = [4, 256], strides = [1, 1]} : vector<4x358xf32> to vector<4x256xf32>
    %716 = vector.extract_strided_slice %52 {offsets = [3, 0], sizes = [1, 256], strides = [1, 1]} : vector<7x256xf32> to vector<1x256xf32>
    %717 = vector.shape_cast %716 : vector<1x256xf32> to vector<256xf32>
    %718 = vector.shape_cast %717 : vector<256xf32> to vector<1x256xf32>
    %719 = vector.broadcast %718 : vector<1x256xf32> to vector<4x256xf32>
    %720 = arith.mulf %715, %719 : vector<4x256xf32>
    %c180_200 = arith.constant 180 : index
    %c256_201 = arith.constant 256 : index
    %721 = vector.load %arg8[%c180_200, %c256_201] : memref<196x512xf32, #tpu.memory_space<vmem>>, vector<4x256xf32>
    tpu.vector_store %arg8[%c180_200, %c256_201], %720 {strides = array<i32>} : memref<196x512xf32, #tpu.memory_space<vmem>>, vector<4x256xf32>,
    %722 = vector.extract_strided_slice %399 {offsets = [0, 100], sizes = [4, 256], strides = [1, 1]} : vector<4x358xf32> to vector<4x256xf32>
    %723 = vector.extract_strided_slice %52 {offsets = [4, 0], sizes = [1, 256], strides = [1, 1]} : vector<7x256xf32> to vector<1x256xf32>
    %724 = vector.shape_cast %723 : vector<1x256xf32> to vector<256xf32>
    %725 = vector.shape_cast %724 : vector<256xf32> to vector<1x256xf32>
    %726 = vector.broadcast %725 : vector<1x256xf32> to vector<4x256xf32>
    %727 = arith.mulf %722, %726 : vector<4x256xf32>
    %c184_202 = arith.constant 184 : index
    %c256_203 = arith.constant 256 : index
    %728 = vector.load %arg8[%c184_202, %c256_203] : memref<196x512xf32, #tpu.memory_space<vmem>>, vector<4x256xf32>
    tpu.vector_store %arg8[%c184_202, %c256_203], %727 {strides = array<i32>} : memref<196x512xf32, #tpu.memory_space<vmem>>, vector<4x256xf32>,
    %729 = vector.extract_strided_slice %399 {offsets = [0, 101], sizes = [4, 256], strides = [1, 1]} : vector<4x358xf32> to vector<4x256xf32>
    %730 = vector.extract_strided_slice %52 {offsets = [5, 0], sizes = [1, 256], strides = [1, 1]} : vector<7x256xf32> to vector<1x256xf32>
    %731 = vector.shape_cast %730 : vector<1x256xf32> to vector<256xf32>
    %732 = vector.shape_cast %731 : vector<256xf32> to vector<1x256xf32>
    %733 = vector.broadcast %732 : vector<1x256xf32> to vector<4x256xf32>
    %734 = arith.mulf %729, %733 : vector<4x256xf32>
    %c188_204 = arith.constant 188 : index
    %c256_205 = arith.constant 256 : index
    %735 = vector.load %arg8[%c188_204, %c256_205] : memref<196x512xf32, #tpu.memory_space<vmem>>, vector<4x256xf32>
    tpu.vector_store %arg8[%c188_204, %c256_205], %734 {strides = array<i32>} : memref<196x512xf32, #tpu.memory_space<vmem>>, vector<4x256xf32>,
    %736 = vector.extract_strided_slice %399 {offsets = [0, 102], sizes = [4, 256], strides = [1, 1]} : vector<4x358xf32> to vector<4x256xf32>
    %737 = vector.extract_strided_slice %52 {offsets = [6, 0], sizes = [1, 256], strides = [1, 1]} : vector<7x256xf32> to vector<1x256xf32>
    %738 = vector.shape_cast %737 : vector<1x256xf32> to vector<256xf32>
    %739 = vector.shape_cast %738 : vector<256xf32> to vector<1x256xf32>
    %740 = vector.broadcast %739 : vector<1x256xf32> to vector<4x256xf32>
    %741 = arith.mulf %736, %740 : vector<4x256xf32>
    %c192_206 = arith.constant 192 : index
    %c256_207 = arith.constant 256 : index
    %742 = vector.load %arg8[%c192_206, %c256_207] : memref<196x512xf32, #tpu.memory_space<vmem>>, vector<4x256xf32>
    tpu.vector_store %arg8[%c192_206, %c256_207], %741 {strides = array<i32>} : memref<196x512xf32, #tpu.memory_space<vmem>>, vector<4x256xf32>,
    %c0_208 = arith.constant 0 : index
    %c0_209 = arith.constant 0 : index
    %743 = vector.load %arg2[%c0_208, %c0_209] : memref<8x196xf32, #tpu.memory_space<vmem>>, vector<8x196xf32>
    %c0_210 = arith.constant 0 : index
    %c0_211 = arith.constant 0 : index
    %744 = vector.load %arg8[%c0_210, %c0_211] : memref<196x512xf32, #tpu.memory_space<vmem>>, vector<196x512xf32>
    %cst_212 = arith.constant dense<0.000000e+00> : vector<8x512xf32>
    %745 = tpu.matmul %743, %744, %cst_212 {dimension_numbers = #tpu.dot_dimension_numbers<[1], [0], [0], [1], [0, 0, 1, 1], [], []>} : vector<8x196xf32>, vector<196x512xf32>, vector<8x512xf32> -> vector<8x512xf32>
    %746 = vector.extract_strided_slice %745 {offsets = [0, 0], sizes = [1, 256], strides = [1, 1]} : vector<8x512xf32> to vector<1x256xf32>
    %747 = vector.shape_cast %746 : vector<1x256xf32> to vector<256xf32>
    %c0_213 = arith.constant 0 : index
    %748 = memref.load %arg4[%c0_213] : memref<2xf32, #tpu.memory_space<smem>>
    %749 = vector.broadcast %748 : f32 to vector<256xf32>
    %750 = arith.mulf %747, %749 : vector<256xf32>
    %c0_214 = arith.constant 0 : index
    %751 = memref.load %arg5[%c0_214] : memref<2xf32, #tpu.memory_space<smem>>
    %752 = vector.broadcast %751 : f32 to vector<256xf32>
    %753 = arith.addf %750, %752 : vector<256xf32>
    %754 = arith.negf %753 : vector<256xf32>
    %755 = math.exp %754 : vector<256xf32>
    %cst_215 = arith.constant 1.000000e+00 : f32
    %756 = vector.broadcast %cst_215 : f32 to vector<256xf32>
    %757 = arith.addf %756, %755 : vector<256xf32>
    %758 = arith.divf %756, %757 : vector<256xf32>
    %c0_216 = arith.constant 0 : index
    %c0_217 = arith.constant 0 : index
    %c0_218 = arith.constant 0 : index
    %c0_219 = arith.constant 0 : index
    %759 = vector.load %arg6[%c0_216, %c0_217, %c0_218, %c0_219] : memref<2x2x1x256xf32, #tpu.memory_space<vmem>>, vector<1x1x1x256xf32>
    %760 = vector.shape_cast %759 : vector<1x1x1x256xf32> to vector<256xf32>
    %761 = vector.shape_cast %758 : vector<256xf32> to vector<1x1x1x256xf32>
    tpu.vector_store %arg6[%c0_216, %c0_217, %c0_218, %c0_219], %761 {strides = array<i32>} : memref<2x2x1x256xf32, #tpu.memory_space<vmem>>, vector<1x1x1x256xf32>,
    %762 = vector.extract_strided_slice %745 {offsets = [0, 256], sizes = [1, 256], strides = [1, 1]} : vector<8x512xf32> to vector<1x256xf32>
    %763 = vector.shape_cast %762 : vector<1x256xf32> to vector<256xf32>
    %c0_220 = arith.constant 0 : index
    %764 = memref.load %arg4[%c0_220] : memref<2xf32, #tpu.memory_space<smem>>
    %765 = vector.broadcast %764 : f32 to vector<256xf32>
    %766 = arith.mulf %763, %765 : vector<256xf32>
    %c0_221 = arith.constant 0 : index
    %767 = memref.load %arg5[%c0_221] : memref<2xf32, #tpu.memory_space<smem>>
    %768 = vector.broadcast %767 : f32 to vector<256xf32>
    %769 = arith.addf %766, %768 : vector<256xf32>
    %770 = arith.negf %769 : vector<256xf32>
    %771 = math.exp %770 : vector<256xf32>
    %cst_222 = arith.constant 1.000000e+00 : f32
    %772 = vector.broadcast %cst_222 : f32 to vector<256xf32>
    %773 = arith.addf %772, %771 : vector<256xf32>
    %774 = arith.divf %772, %773 : vector<256xf32>
    %c0_223 = arith.constant 0 : index
    %c1_224 = arith.constant 1 : index
    %c0_225 = arith.constant 0 : index
    %c0_226 = arith.constant 0 : index
    %775 = vector.load %arg6[%c0_223, %c1_224, %c0_225, %c0_226] : memref<2x2x1x256xf32, #tpu.memory_space<vmem>>, vector<1x1x1x256xf32>
    %776 = vector.shape_cast %775 : vector<1x1x1x256xf32> to vector<256xf32>
    %777 = vector.shape_cast %774 : vector<256xf32> to vector<1x1x1x256xf32>
    tpu.vector_store %arg6[%c0_223, %c1_224, %c0_225, %c0_226], %777 {strides = array<i32>} : memref<2x2x1x256xf32, #tpu.memory_space<vmem>>, vector<1x1x1x256xf32>,
    %778 = vector.extract_strided_slice %745 {offsets = [1, 0], sizes = [1, 256], strides = [1, 1]} : vector<8x512xf32> to vector<1x256xf32>
    %779 = vector.shape_cast %778 : vector<1x256xf32> to vector<256xf32>
    %c1_227 = arith.constant 1 : index
    %780 = memref.load %arg4[%c1_227] : memref<2xf32, #tpu.memory_space<smem>>
    %781 = vector.broadcast %780 : f32 to vector<256xf32>
    %782 = arith.mulf %779, %781 : vector<256xf32>
    %c1_228 = arith.constant 1 : index
    %783 = memref.load %arg5[%c1_228] : memref<2xf32, #tpu.memory_space<smem>>
    %784 = vector.broadcast %783 : f32 to vector<256xf32>
    %785 = arith.addf %782, %784 : vector<256xf32>
    %786 = arith.negf %785 : vector<256xf32>
    %787 = math.exp %786 : vector<256xf32>
    %cst_229 = arith.constant 1.000000e+00 : f32
    %788 = vector.broadcast %cst_229 : f32 to vector<256xf32>
    %789 = arith.addf %788, %787 : vector<256xf32>
    %790 = arith.divf %788, %789 : vector<256xf32>
    %c1_230 = arith.constant 1 : index
    %c0_231 = arith.constant 0 : index
    %c0_232 = arith.constant 0 : index
    %c0_233 = arith.constant 0 : index
    %791 = vector.load %arg6[%c1_230, %c0_231, %c0_232, %c0_233] : memref<2x2x1x256xf32, #tpu.memory_space<vmem>>, vector<1x1x1x256xf32>
    %792 = vector.shape_cast %791 : vector<1x1x1x256xf32> to vector<256xf32>
    %793 = vector.shape_cast %790 : vector<256xf32> to vector<1x1x1x256xf32>
    tpu.vector_store %arg6[%c1_230, %c0_231, %c0_232, %c0_233], %793 {strides = array<i32>} : memref<2x2x1x256xf32, #tpu.memory_space<vmem>>, vector<1x1x1x256xf32>,
    %794 = vector.extract_strided_slice %745 {offsets = [1, 256], sizes = [1, 256], strides = [1, 1]} : vector<8x512xf32> to vector<1x256xf32>
    %795 = vector.shape_cast %794 : vector<1x256xf32> to vector<256xf32>
    %c1_234 = arith.constant 1 : index
    %796 = memref.load %arg4[%c1_234] : memref<2xf32, #tpu.memory_space<smem>>
    %797 = vector.broadcast %796 : f32 to vector<256xf32>
    %798 = arith.mulf %795, %797 : vector<256xf32>
    %c1_235 = arith.constant 1 : index
    %799 = memref.load %arg5[%c1_235] : memref<2xf32, #tpu.memory_space<smem>>
    %800 = vector.broadcast %799 : f32 to vector<256xf32>
    %801 = arith.addf %798, %800 : vector<256xf32>
    %802 = arith.negf %801 : vector<256xf32>
    %803 = math.exp %802 : vector<256xf32>
    %cst_236 = arith.constant 1.000000e+00 : f32
    %804 = vector.broadcast %cst_236 : f32 to vector<256xf32>
    %805 = arith.addf %804, %803 : vector<256xf32>
    %806 = arith.divf %804, %805 : vector<256xf32>
    %c1_237 = arith.constant 1 : index
    %c1_238 = arith.constant 1 : index
    %c0_239 = arith.constant 0 : index
    %c0_240 = arith.constant 0 : index
    %807 = vector.load %arg6[%c1_237, %c1_238, %c0_239, %c0_240] : memref<2x2x1x256xf32, #tpu.memory_space<vmem>>, vector<1x1x1x256xf32>
    %808 = vector.shape_cast %807 : vector<1x1x1x256xf32> to vector<256xf32>
    %809 = vector.shape_cast %806 : vector<256xf32> to vector<1x1x1x256xf32>
    tpu.vector_store %arg6[%c1_237, %c1_238, %c0_239, %c0_240], %809 {strides = array<i32>} : memref<2x2x1x256xf32, #tpu.memory_space<vmem>>, vector<1x1x1x256xf32>,
    return
  }
  func.func @transform_0(%arg0: i32) -> (i32, i32, i32, i32) {
    %c0_i32 = arith.constant 0 : i32
    %c0_i32_0 = arith.constant 0 : i32
    %c0_i32_1 = arith.constant 0 : i32
    %c0_i32_2 = arith.constant 0 : i32
    return %c0_i32, %arg0, %c0_i32_0, %c0_i32_1 : i32, i32, i32, i32
  }
  func.func @transform_1(%arg0: i32) -> (i32, i32) {
    %c0_i32 = arith.constant 0 : i32
    %c0_i32_0 = arith.constant 0 : i32
    %c0_i32_1 = arith.constant 0 : i32
    return %c0_i32, %c0_i32_0 : i32, i32
  }
  func.func @transform_2(%arg0: i32) -> (i32, i32) {
    %c0_i32 = arith.constant 0 : i32
    %c0_i32_0 = arith.constant 0 : i32
    %c0_i32_1 = arith.constant 0 : i32
    return %c0_i32, %c0_i32_0 : i32, i32
  }
  func.func @transform_3(%arg0: i32) -> i32 {
    %c0_i32 = arith.constant 0 : i32
    %c0_i32_0 = arith.constant 0 : i32
    return %c0_i32 : i32
  }
  func.func @transform_4(%arg0: i32) -> i32 {
    %c0_i32 = arith.constant 0 : i32
    %c0_i32_0 = arith.constant 0 : i32
    return %c0_i32 : i32
  }
  func.func @transform_5(%arg0: i32) -> (i32, i32, i32, i32) {
    %c0_i32 = arith.constant 0 : i32
    %c0_i32_0 = arith.constant 0 : i32
    %c0_i32_1 = arith.constant 0 : i32
    %c0_i32_2 = arith.constant 0 : i32
    return %c0_i32, %arg0, %c0_i32_0, %c0_i32_1 : i32, i32, i32, i32
  }
}

</mosaic_0001>

<bundles_post_ra>
// kernel: tpu_custom_call.1
= control target key start
LH: loop header
LB: loop body
LE: loop exit
PB: predicated region body
PF: predicated region fallthrough
CT: control target
= control target key end

     0   :  { %s6393_s0 = inlined_call_operand.hbm [shape: f32[2,4,4,256], index: 0, kind: input, shape index: {}]   ;;  %s6394_s1 = inlined_call_operand.hbm [shape: f32[8,196], index: 1, kind: input, shape index: {}]   ;;  %s6395_s2 = inlined_call_operand.hbm [shape: f32[7,256], index: 2, kind: input, shape index: {}]   ;;  %s6396_s3 = inlined_call_operand.vmem [shape: f32[2], index: 3, kind: input, shape index: {}]   ;;  %s6397_s4 = inlined_call_operand.vmem [shape: f32[2], index: 4, kind: input, shape index: {}]   ;;  %s6398_s5 = inlined_call_operand.hbm [shape: f32[2,4,1,256], index: 5, kind: output, shape index: {}]  }
   0x1   :  { %6551 = sst [smem:[#allocation77_spill]] %s6394_s1 }
   0x2   :  { %10 = vsyncpa [#allocation5], 0 }
   0x3   :  { %12 = vsyncpa [#allocation5 + $0x1], 0 }
   0x4   :  { %13 = vsyncpa [#allocation9], 0 }
   0x5   :  { %14 = vsyncpa [#allocation7], 0 }
   0x6   :  { %15 = vsyncpa [#allocation13], 0 }
   0x7   :  { %16 = vsyncpa [#allocation6], 0 }
   0x8   :  { %18 = vsyncpa [#allocation6 + $0x1], 0  ;;  %s4438_s18 = smov 0   ;;  %s4440_s19 = smov 0  }
   0x9   :  { %s4442_s20 = smov 0   ;;  %s4444_s21 = smov 0  }
   0xa LB: > { %s4459_s22 = sadd.s32 4294967295, %s4297_s21   ;;  %s3863_s23 = sadd.s32 4294967294, %s4297_s21   ;;  %s4297_s21 = sphi %s4444_s21, %s6787_s21   ;;  %s4293_s20 = sphi %s4442_s20, %s6786_s20   ;;  %s4289_s19 = sphi %s4440_s19, %s6785_s19   ;;  %s4285_s18 = sphi %s4438_s18, %s6784_s18  }
   0xb   : > { %s4463_s24 = sadd.s32 1, %s4297_s21   ;;  %s31_s25 = sadd.s32 1, %s4293_s20 }
   0xc   : > { %s28_s26 = ssub.s32 %s4297_s21, %s4463_s24  ;;  %p38_p0 = scmp.ne.s32.totalorder %s4293_s20, %s4289_s19 }
   0xd   : > { %p29_p1 = scmp.eq.s32.totalorder %s28_s26, 0  ;;  %p39_p2 = scmp.eq.s32.totalorder %s4297_s21, 0 }
   0xe   : > { %p44_p3 = scmp.ne.s32.totalorder %s4289_s19, %s4285_s18  ;;  %p45_p4 = scmp.eq.s32.totalorder %s4459_s22, 0 }
   0xf   : > { %s4475_s27 = scalar_select %p29_p1, %s4293_s20, %s31_s25  }
  0x10   : > { %p4477_p5 = por %p39_p2, %p38_p0  ;;  %p4483_p6 = por %p45_p4, %p44_p3 }
  0x11   : > { %p152_p7 = scmp.eq.s32.totalorder %s4459_s22, 1  ;;  %p158_p8 = scmp.eq.s32.totalorder %s3863_s23, 1 }
  0x12   : > { %p3864_p9 = scmp.ge.s32.totalorder %s4297_s21, 1  ;;  %p165_p10 = scmp.lt.s32.totalorder %s4297_s21, 3 }
  0x13   : > { %p4490_p11 = por %p152_p7, %p38_p0  ;;  %p4494_p12 = por %p158_p8, %p44_p3 }
  0x14   : > { %p4498_p13 = pnand %p3864_p9, %p165_p10  ;;  %s6557_s1 = sld [smem:[#allocation77_spill]] }
  0x15   : > { %s4299_s11 = smov [#allocation8]   ;;  %s189_s15 = sshll.u32 %s6395_s2, 4  ;;  %s190_s15 = int_to_ptr.hbm [resolvable:$true] %s189_s15 }
  0x16   : > { %p3950_p1 = pneg %p4498_p13  ;;  %s179_s12 = sshll.u32 %s4299_s11, 4  ;;  %s180_s12 = int_to_ptr.vmem [resolvable:$true] %s179_s12 }
  0x17   : > { %s4300_s17 = smov [#allocation10]   ;;  %s201_s8 = sshll.u32 %s6396_s3, 4  ;;  %s202_s8 = int_to_ptr.vmem [resolvable:$true] %s201_s8 }
  0x18   : > { %p4512_p0 = pnand %p3950_p1, %p45_p4  ;;  %s191_s23 = sshll.u32 %s4300_s17, 4  ;;  %s192_s23 = int_to_ptr.vmem [resolvable:$true] %s191_s23 }
  0x19   : > { %s4301_s9 = smov [#allocation11]   ;;  %s211_s14 = sshll.u32 %s6397_s4, 4  ;;  %s212_s14 = int_to_ptr.vmem [resolvable:$true] %s211_s14 }
  0x1a   : > { %s177_s10 = sshll.u32 %s6557_s1, 4  ;;  %s4302_s1 = smov [#allocation12]   ;;  %s178_s10 = int_to_ptr.hbm [resolvable:$true] %s177_s10 }
  0x1b   : > { %3953 = dma.hbm_to_vmem [thread:$0]  (!%p4512_p0), %s178_s10, 256, %s180_s12, [#allocation9]  }
  0x1c   : > { %3956 = dma.hbm_to_vmem [thread:$0]  (!%p4512_p0), %s190_s15, 256, %s192_s23, [#allocation9]  }
  0x1d   : > { %3959 = dma.vmem_to_smem (!%p4512_p0), %s202_s8, 16, %s4301_s9, [#allocation7]  }
  0x1e   : > { %3962 = dma.vmem_to_smem (!%p4512_p0), %s212_s14, 16, %s4302_s1, [#allocation13]  }
  0x1f   : > { %p3869_p2 = scmp.ge.s32.totalorder %s4297_s21, 2 }
  0x21   : > { %218 = sbr.rel (%p3869_p2) target bundleno = 52 (0x34), region = 32 }
  0x26   : > { %s222_s10 = sand.u32 1, %s4293_s20   ;;  %s3915_s12 = sshll.u32 %s4297_s21, 4 }
  0x27   : > { %s3870_s15 = sshll.u32 %s222_s10, 5  ;;  %s232_s16 = scalar_lea.hbm %s6393_s0, %s3915_s12 }
  0x28   : > { %s3925_s1 = scalar_select %p4477_p5, [#allocation0], [#allocation19] }
  0x29   : > { %s245_s25 = sshll.u32 %s232_s16, 4  ;;  %s226_s26 = scalar_lea.vmem [#allocation4], %s3870_s15  ;;  %s246_s25 = int_to_ptr.hbm [resolvable:$true] %s245_s25 }
  0x2a   : > { %s247_s8 = sshll.u32 %s226_s26, 4  ;;  %s237_s9 = sld [smem:[%s3925_s1]]   ;;  %s248_s8 = int_to_ptr.vmem [resolvable:$true] %s247_s8 }
  0x2b   : > { %s4303_s11 = smov 512   ;;  %s4304_s13 = smov 256  }
  0x2c   : > { %3926 = sst [smem:[#allocation16]] (%p4477_p5), %s4303_s11  ;;  %s4305_s14 = smov 2  }
  0x2d   : > { %3927 = sst [smem:[#allocation16 + $0x1]] (%p4477_p5), %s4304_s13  ;;  %s4306_s12 = smov 128  }
  0x2e   : > { %3928 = sst [smem:[#allocation16 + $0x2]] (%p4477_p5), %s4305_s14  ;;  %s4307_s23 = smov 8  }
  0x2f   : > { %3929 = sst [smem:[#allocation16 + $0x3]] (%p4477_p5), %s4306_s12  ;;  %s223_s16 = scalar_lea.sflag [#allocation5], %s222_s10 }
  0x30   : > { %s3874_s17 = sshll.u32 %s237_s9, 26  ;;  %3930 = sst [smem:[#allocation16 + $0x4]] (%p4477_p5), %s4306_s12 }
  0x31   : > { %s3875_s15 = sadd.s32 134217728, %s3874_s17  ;;  %3931 = sst [smem:[#allocation16 + $0x5]] (%p4477_p5), %s4307_s23 }
  0x32   : > { %s4308_s1 = smov [#allocation15]  }
  0x33   : > { %3932 = dma.general (%p4477_p5), %s246_s25, 512, %s248_s8, %s223_s16, %s4308_s1, [#allocation16], %s3875_s15, 0  }
  0x34 PF: > { %272 = sbr.rel (%p4498_p13) target bundleno = 1367 (0x557), region = 40 }
  0x39   : > { %s4557_s26 = sand.u32 1, %s4289_s19  }
  0x3a   : > { %s3877_s9 = sshll.u32 %s4557_s26, 5  ;;  %s275_s11 = scalar_lea.sflag [#allocation5], %s4557_s26 }
  0x3b   : > { %s4561_s13 = scalar_lea.vmem [#allocation4], %s3877_s9 }
  0x3c   : > { %4264 = dma.done.wait (%p4483_p6), %s275_s11, 512  }
  0x3d   : > { %4266 = vsyncadd (%p4483_p6), %s275_s11, 4294966784 }
  0x3e   : > { %4268 = dma.done.wait (%p45_p4), [#allocation9], 512  }
  0x3f   : > { %4270 = vsyncadd (%p45_p4), [#allocation9], 4294966784 }
  0x40   : > { %4272 = dma.done.wait (%p45_p4), [#allocation7], 16  }
  0x41   : > { %4274 = vsyncadd (%p45_p4), [#allocation7], 4294967280 }
  0x42   : > { %4276 = dma.done.wait (%p45_p4), [#allocation13], 16  }
  0x43   : > { %4278 = vsyncadd (%p45_p4), [#allocation13], 4294967280 }
  0x44   : > { %304 = sfence }
  0x45   : > { %v607_v0 = vld [vmem:[#allocation10] sm:$0x7f]  ;;  %v608_v1 = vld [vmem:[#allocation10 + $0x8] sm:$0x7f]  ;;  %vm342_vm0 = vcmask 1043456   ;;  %v335_v16 = vld [vmem:[%s4561_s13] sm:$0xff] }
  0x46   : > { %v737_v2 = vperm.slane %v607_v0, 4  ;;  %v738_v3 = vperm.slane %v608_v1, 4  ;;  %v700_v4 = vperm.slane %v607_v0, 3  ;;  %v701_v5 = vperm.slane %v608_v1, 3  ;;  %s4309_s28 = smov 4   ;;  %s4310_s29 = smov 3  }
  0x47   : > { %v627_v6 = vperm.slane %v607_v0, 1  ;;  %v628_v7 = vperm.slane %v608_v1, 1  ;;  %v811_v10 = vperm.slane %v608_v1, 6  ;;  %v665_v12 = vperm.slane %v608_v1, 2  ;;  %337 = vst [vmem:[#allocation1] ss:$2 sm:$0xff] %v335_v16 }
  0x48   : > { %v741_v8 = vrot.slane %v738_v3, 4  ;;  %v704_v9 = vrot.slane %v701_v5, 4  ;;  %v612_v13 = vperm.slane %v608_v1, 0  ;;  %v810_v18 = vperm.slane %v607_v0, 6  ;;  %s4311_s7 = smov 1   ;;  %s4313_s10 = smov 6  }
  0x49   : > { %v631_v11 = vrot.slane %v628_v7, 4  ;;  %v814_v19 = vrot.slane %v811_v10, 4  ;;  %v611_v20 = vperm.slane %v607_v0, 0  ;;  %v664_v22 = vperm.slane %v607_v0, 2  ;;  %s4314_s25 = smov 16   ;;  %s4315_s8 = smov 2  }
  0x4a   : > { %v4580_v14 = vsel %vm342_vm0, %v737_v2, %v741_v8  ;;  %v4583_v15 = vsel %vm342_vm0, %v700_v4, %v704_v9  ;;  %v615_v21 = vrot.slane %v612_v13, 4  ;;  %v668_v23 = vrot.slane %v665_v12, 4  ;;  %v3883_v41 = vld [vmem:[%s4561_s13 + $0x10] sm:$0xff]  ;;  %s4316_s14 = smov 19   ;;  %s4317_s12 = smov 18  }
  0x4b   : > { %743 = vrot.lane.b32.xlu1 %v4580_v14, %s4309_s28  ;;  %706 = vrot.lane.b32.xlu0 %v4583_v15, %s4310_s29  ;;  %v4589_v17 = vsel %vm342_vm0, %v627_v6, %v631_v11  ;;  %v4312_v24 = vmov 4.0   ;;  %v4593_v25 = vsel %vm342_vm0, %v810_v18, %v814_v19  ;;  %v774_v28 = vperm.slane %v608_v1, 5  ;;  %s4318_s17 = smov 5   ;;  %s4319_s15 = smov 34  }
  0x4c   : > { %633 = vrot.lane.b32.xlu2 %v4589_v17, %s4311_s7  ;;  %4117 = vrcp.f32 %v4312_v24  ;;  %v4596_v26 = vsel %vm342_vm0, %v611_v20, %v615_v21  ;;  %v4599_v27 = vsel %vm342_vm0, %v664_v22, %v668_v23  ;;  %v773_v36 = vperm.slane %v607_v0, 5  ;;  %s4320_s23 = smov 51   ;;  %s4321_s16 = smov 17   ;;  %v3884_v20 = vld [vmem:[%s4561_s13 + $0x8] sm:$0xff] }
  0x4d   : > { %v777_v37 = vrot.slane %v774_v28, 4  ;;  %vm6455_vm1 = vcmask 1040384   ;;  %s4322_s1 = smov 35   ;;  %s4323_s9 = smov 22   ;;  %vm329_vm3 = vcmask 412672   ;;  %vm332_vm4 = vcmask 830872  }
  0x4e   : > { %v338_v29 = vld.sshfl [vmem:[#allocation1] sm:$0xff pattern:$0x75316420]  ;;  %v339_v30 = vld.sshfl [vmem:[#allocation1 + $0x8] sm:$0xff pattern:$0x75316420] }
  0x4f   : > { %373 = vst [vmem:[#allocation1] ss:$2 sm:$0xff] %v335_v16  ;;  %v343_v32 = vsel %vm342_vm0, %v338_v29, -inf  ;;  %v350_v33 = vsel %vm342_vm0, %v339_v30, -inf  ;;  %v4611_v44 = vsel %vm342_vm0, %v773_v36, %v777_v37  ;;  %s6522_s11 = smov 32   ;;  %s4325_s28 = smov 20  }
  0x50   : > { %v344_v34 = vrot.slane %v343_v32, 4  ;;  %v351_v35 = vrot.slane %v350_v33, 4  ;;  %s4326_s29 = smov 33   ;;  %s4328_s7 = smov 49   ;;  %vm365_vm7 = vcmask 416768   ;;  %vm636_vm9 = vcmask 7168  }
  0x51   : > { %vm673_vm10 = vcmask 15360   ;;  %vm709_vm11 = vcmask 23552   ;;  %vm746_vm12 = vcmask 31744   ;;  %vm782_vm13 = vcmask 39936  }
  0x52   : > { %v4601_v31 = vpop.eup %4117  ;;  %v345_v39 = vmax.f32 %v343_v32, %v344_v34  ;;  %v352_v40 = vmax.f32 %v350_v33, %v351_v35  ;;  %vm819_vm14 = vcmask 48128   ;;  %vm849_vm15 = vcmask 130048  }
  0x53   : > { %816 = vrot.lane.b32.xlu0 %v4593_v25, %s4313_s10  ;;  %846 = vrot.lane.b32.xlu1 %v4596_v26, %s4314_s25  ;;  %v393_v38 = vmul.f32 4.0, %v4601_v31  ;;  %vm397_vm2 = vweird.f32 %v4601_v31  ;;  %s4329_s10 = smov 36   ;;  %s4330_s25 = smov 37  }
  0x54   : > { %670 = vrot.lane.b32.xlu2 %v4599_v27, %s4315_s8  ;;  %v346_v42 = vrot.slane %v345_v39, 2  ;;  %v353_v43 = vrot.slane %v352_v40, 2  ;;  %s4331_s8 = smov 50  }
  0x55   : > { %v394_v45 = vsub.f32 1.0, %v393_v38 }
  0x56   : > { %v374_v46 = vld.sshfl [vmem:[#allocation1] sm:$0xff pattern:$0x75316420]  ;;  %v375_v47 = vld.sshfl [vmem:[#allocation1 + $0x8] sm:$0xff pattern:$0x75316420]  ;;  %v347_v48 = vmax.f32 %v345_v39, %v346_v42  ;;  %v354_v49 = vmax.f32 %v352_v40, %v353_v43 }
  0x57   : > { %415 = vst [vmem:[#allocation1] ss:$2 sm:$0xff] %v3883_v41  ;;  %v378_v50 = vsel %vm342_vm0, %v374_v46, 0.0  ;;  %v385_v51 = vsel %vm342_vm0, %v375_v47, 0.0  ;;  %v395_v56 = vmul.f32 %v4601_v31, %v394_v45 }
  0x58   : > { %v348_v52 = vrot.slane %v347_v48, 1  ;;  %v355_v53 = vrot.slane %v354_v49, 1  ;;  %v379_v54 = vrot.slane %v378_v50, 4  ;;  %v386_v55 = vrot.slane %v385_v51, 4 }
  0x59   : > { %v396_v0 = vadd.f32 %v4601_v31, %v395_v56 }
  0x5a   : > { %v349_v57 = vmax.f32 %v347_v48, %v348_v52  ;;  %v356_v58 = vmax.f32 %v354_v49, %v355_v53  ;;  %v380_v59 = vadd.f32 %v379_v54, %v378_v50  ;;  %v387_v60 = vadd.f32 %v386_v55, %v385_v51 }
  0x5b   : > { %938 = vrot.lane.b32.xlu0 %v4583_v15, %s4316_s14  ;;  %907 = vrot.lane.b32.xlu1 %v4599_v27, %s4317_s12  ;;  %v4628_v12 = vsel %vm397_vm2, %v4601_v31, %v396_v0  ;;  %s4332_s14 = smov 38   ;;  %s4333_s12 = smov 52   ;;  %vm880_vm2 = vcmask 138240  }
  0x5c   : > { %779 = vrot.lane.b32.xlu2 %v4611_v44, %s4318_s17  ;;  %v359_v61 = vrot.slane %v356_v58, 7  ;;  %v381_v62 = vrot.slane %v380_v59, 2  ;;  %v388_v63 = vrot.slane %v387_v60, 2  ;;  %s6498_s17 = smov 48  }
  0x5e   : > { %v416_v1 = vld.sshfl [vmem:[#allocation1] sm:$0xff pattern:$0x75316420]  ;;  %v417_v2 = vld.sshfl [vmem:[#allocation1 + $0x8] sm:$0xff pattern:$0x75316420]  ;;  %v361_v3 = vsel %vm6455_vm1, %v349_v57, %v359_v61  ;;  %v382_v4 = vadd.f32 %v381_v62, %v380_v59  ;;  %v389_v5 = vadd.f32 %v388_v63, %v387_v60 }
  0x5f   : > { %445 = vst [vmem:[#allocation1] ss:$2 sm:$0xff] %v3883_v41  ;;  %v420_v6 = vsel %vm342_vm0, %v416_v1, -inf  ;;  %v427_v7 = vsel %vm342_vm0, %v417_v2, -inf  ;;  %v3885_v63 = vld [vmem:[%s4561_s13 + $0x18] sm:$0xff]  ;;  %s4327_s13 = smov 21  }
  0x60   : > { %v383_v8 = vrot.slane %v382_v4, 1  ;;  %v390_v9 = vrot.slane %v389_v5, 1  ;;  %v421_v10 = vrot.slane %v420_v6, 4  ;;  %v428_v11 = vrot.slane %v427_v7, 4 }
  0x62   : > { %v384_v13 = vadd.f32 %v383_v8, %v382_v4  ;;  %v391_v16 = vadd.f32 %v390_v9, %v389_v5  ;;  %v422_v18 = vmax.f32 %v420_v6, %v421_v10  ;;  %v429_v19 = vmax.f32 %v427_v7, %v428_v11 }
  0x63   : > { %1121 = vrot.lane.b32.xlu1 %v4599_v27, %s4319_s15  ;;  %362 = vrot.lane.b32.xlu0 %v361_v3, %s4320_s23  ;;  %s4335_s15 = smov 53  }
  0x64   : > { %877 = vrot.lane.b32.xlu2 %v4589_v17, %s4321_s16  ;;  %v400_v21 = vmul.f32 %v4628_v12, %v391_v16  ;;  %v423_v22 = vrot.slane %v422_v18, 2  ;;  %v430_v23 = vrot.slane %v429_v19, 2  ;;  %v399_v24 = vmul.f32 %v4628_v12, %v384_v13  ;;  %s6472_s16 = smov 64  }
  0x66   : > { %v446_v28 = vld.sshfl [vmem:[#allocation1] sm:$0xff pattern:$0x75316420]  ;;  %v447_v29 = vld.sshfl [vmem:[#allocation1 + $0x8] sm:$0xff pattern:$0x75316420]  ;;  %v424_v30 = vmax.f32 %v422_v18, %v423_v22  ;;  %v431_v32 = vmax.f32 %v429_v19, %v430_v23 }
  0x67   : > { %480 = vst [vmem:[#allocation1] ss:$2 sm:$0xff] %v3884_v20  ;;  %v403_v31 = vrot.slane %v400_v21, 7  ;;  %v450_v33 = vsel %vm342_vm0, %v446_v28, 0.0  ;;  %v457_v34 = vsel %vm342_vm0, %v447_v29, 0.0 }
  0x68   : > { %v425_v35 = vrot.slane %v424_v30, 1  ;;  %v432_v36 = vrot.slane %v431_v32, 1  ;;  %v451_v37 = vrot.slane %v450_v33, 4  ;;  %v458_v38 = vrot.slane %v457_v34, 4 }
  0x69   : > { %v404_v39 = vsel %vm6455_vm1, %v399_v24, %v403_v31 }
  0x6a   : > { %v426_v40 = vmax.f32 %v424_v30, %v425_v35  ;;  %v433_v41 = vmax.f32 %v431_v32, %v432_v36  ;;  %v452_v42 = vadd.f32 %v451_v37, %v450_v33  ;;  %v459_v43 = vadd.f32 %v458_v38, %v457_v34 }
  0x6b   : > { %1151 = vrot.lane.b32.xlu1 %v4583_v15, %s4322_s1  ;;  %405 = vrot.lane.b32.xlu0 %v404_v39, %s4320_s23  ;;  %s4337_s1 = smov 54  }
  0x6c   : > { %1029 = vrot.lane.b32.xlu2 %v4593_v25, %s4323_s9  ;;  %v436_v45 = vrot.slane %v433_v41, 7  ;;  %v453_v46 = vrot.slane %v452_v42, 2  ;;  %v460_v47 = vrot.slane %v459_v43, 2  ;;  %s4338_s9 = smov 67  }
  0x6e   : > { %v481_v48 = vld.sshfl [vmem:[#allocation1] sm:$0xff pattern:$0x75316420]  ;;  %v482_v49 = vld.sshfl [vmem:[#allocation1 + $0x8] sm:$0xff pattern:$0x75316420]  ;;  %v437_v50 = vsel %vm6455_vm1, %v426_v40, %v436_v45  ;;  %v454_v51 = vadd.f32 %v453_v46, %v452_v42  ;;  %v461_v52 = vadd.f32 %v460_v47, %v459_v43 }
  0x6f   : > { %510 = vst [vmem:[#allocation1] ss:$2 sm:$0xff] %v3884_v20  ;;  %v485_v53 = vsel %vm342_vm0, %v481_v48, -inf  ;;  %v492_v54 = vsel %vm342_vm0, %v482_v49, -inf }
  0x70   : > { %v455_v55 = vrot.slane %v454_v51, 1  ;;  %v462_v56 = vrot.slane %v461_v52, 1  ;;  %v486_v57 = vrot.slane %v485_v53, 4  ;;  %v493_v58 = vrot.slane %v492_v54, 4 }
  0x72   : > { %v456_v59 = vadd.f32 %v455_v55, %v454_v51  ;;  %v463_v60 = vadd.f32 %v462_v56, %v461_v52  ;;  %v487_v61 = vmax.f32 %v485_v53, %v486_v57  ;;  %v494_v62 = vmax.f32 %v492_v54, %v493_v58 }
  0x73   : > { %438 = vrot.lane.b32.xlu1 %v437_v50, %s4320_s23  ;;  %968 = vrot.lane.b32.xlu0 %v4580_v14, %s4325_s28  ;;  %s4339_s28 = smov 65  }
  0x74   : > { %1060 = vrot.lane.b32.xlu2 %v4596_v26, %s6522_s11  ;;  %v465_v0 = vmul.f32 %v463_v60, %v4628_v12  ;;  %v488_v1 = vrot.slane %v487_v61, 2  ;;  %v495_v2 = vrot.slane %v494_v62, 2  ;;  %v464_v3 = vmul.f32 %v456_v59, %v4628_v12 }
  0x76   : > { %v511_v4 = vld.sshfl [vmem:[#allocation1] sm:$0xff pattern:$0x75316420]  ;;  %v512_v5 = vld.sshfl [vmem:[#allocation1 + $0x8] sm:$0xff pattern:$0x75316420]  ;;  %v489_v6 = vmax.f32 %v487_v61, %v488_v1  ;;  %v496_v7 = vmax.f32 %v494_v62, %v495_v2 }
  0x77   : > { %545 = vst [vmem:[#allocation1] ss:$2 sm:$0xff] %v3885_v63  ;;  %v468_v8 = vrot.slane %v465_v0, 7  ;;  %v515_v9 = vsel %vm342_vm0, %v511_v4, 0.0  ;;  %v522_v10 = vsel %vm342_vm0, %v512_v5, 0.0 }
  0x78   : > { %v490_v11 = vrot.slane %v489_v6, 1  ;;  %v497_v13 = vrot.slane %v496_v7, 1  ;;  %v516_v16 = vrot.slane %v515_v9, 4  ;;  %v523_v18 = vrot.slane %v522_v10, 4 }
  0x79   : > { %v469_v19 = vsel %vm6455_vm1, %v464_v3, %v468_v8 }
  0x7a   : > { %v498_v20 = vmax.f32 %v496_v7, %v497_v13  ;;  %v517_v21 = vadd.f32 %v516_v16, %v515_v9  ;;  %v491_v22 = vmax.f32 %v489_v6, %v490_v11  ;;  %v524_v23 = vadd.f32 %v523_v18, %v522_v10 }
  0x7b   : > { %470 = vrot.lane.b32.xlu1 %v469_v19, %s4320_s23  ;;  %999 = vrot.lane.b32.xlu0 %v4611_v44, %s4327_s13  ;;  %s4342_s13 = smov 66  }
  0x7c   : > { %1090 = vrot.lane.b32.xlu2 %v4589_v17, %s4326_s29  ;;  %v501_v24 = vrot.slane %v498_v20, 7  ;;  %v518_v28 = vrot.slane %v517_v21, 2  ;;  %v525_v29 = vrot.slane %v524_v23, 2  ;;  %s4340_s29 = smov 70  }
  0x7e   : > { %v546_v30 = vld.sshfl [vmem:[#allocation1] sm:$0xff pattern:$0x75316420]  ;;  %v547_v32 = vld.sshfl [vmem:[#allocation1 + $0x8] sm:$0xff pattern:$0x75316420]  ;;  %v519_v31 = vadd.f32 %v518_v28, %v517_v21  ;;  %v502_v33 = vsel %vm6455_vm1, %v491_v22, %v501_v24  ;;  %v526_v34 = vadd.f32 %v525_v29, %v524_v23 }
  0x7f   : > { %575 = vst [vmem:[#allocation1] ss:$2 sm:$0xff] %v3885_v63  ;;  %v550_v35 = vsel %vm342_vm0, %v546_v30, -inf  ;;  %v557_v36 = vsel %vm342_vm0, %v547_v32, -inf  ;;  %v4344_v22 = vmov 0.0  }
  0x80   : > { %v520_v37 = vrot.slane %v519_v31, 1  ;;  %v551_v38 = vrot.slane %v550_v35, 4  ;;  %v558_v39 = vrot.slane %v557_v36, 4  ;;  %v527_v40 = vrot.slane %v526_v34, 1  ;;  %330 = vst.msk [vmem:[#allocation2] sm:$0xf] %vm329_vm3, %v4344_v22 }
  0x81   : > { %333 = vst.msk [vmem:[#allocation2 + $0x8] sm:$0xf] %vm332_vm4, %v4344_v22 }
  0x82   : > { %v521_v41 = vadd.f32 %v520_v37, %v519_v31  ;;  %v552_v42 = vmax.f32 %v550_v35, %v551_v38  ;;  %v559_v43 = vmax.f32 %v557_v36, %v558_v39  ;;  %v528_v45 = vadd.f32 %v527_v40, %v526_v34  ;;  %331 = vst.msk [vmem:[#allocation2 + $0xc] sm:$0xf] %vm329_vm3, %v4344_v22 }
  0x83   : > { %1182 = vrot.lane.b32.xlu1 %v4580_v14, %s4329_s10  ;;  %503 = vrot.lane.b32.xlu0 %v502_v33, %s4320_s23  ;;  %s4345_s10 = smov 69   ;;  %334 = vst.msk [vmem:[#allocation2 + $0x14] sm:$0xf] %vm332_vm4, %v4344_v22  ;;  %v6399_v35 = vlaneseq  ;;  %vm910_vm3 = vcmask 146432   ;;  %vm941_vm4 = vcmask 154624  }
  0x84   : > { %1304 = vrot.lane.b32.xlu2 %v4589_v17, %s4328_s7  ;;  %v553_v46 = vrot.slane %v552_v42, 2  ;;  %v560_v47 = vrot.slane %v559_v43, 2  ;;  %v529_v48 = vmul.f32 %v521_v41, %v4628_v12  ;;  %v530_v49 = vmul.f32 %v528_v45, %v4628_v12  ;;  %s6447_s7 = smov 80  }
  0x85   : > { %vm369_vm5 = vcmp.ge.s32.totalorder %v6399_v35, 51  ;;  %vm370_vm6 = vcmp.lt.s32.totalorder %v6399_v35, 307 }
  0x86   : > { %v576_v50 = vld.sshfl [vmem:[#allocation1] sm:$0xff pattern:$0x75316420]  ;;  %v577_v51 = vld.sshfl [vmem:[#allocation1 + $0x8] sm:$0xff pattern:$0x75316420]  ;;  %v554_v52 = vmax.f32 %v552_v42, %v553_v46  ;;  %v561_v53 = vmax.f32 %v559_v43, %v560_v47  ;;  %vm4734_vm8 = vmand %vm369_vm5, %vm370_vm6 }
  0x87   : > { %v533_v54 = vrot.slane %v530_v49, 7  ;;  %v580_v55 = vsel %vm342_vm0, %v576_v50, 0.0  ;;  %v587_v56 = vsel %vm342_vm0, %v577_v51, 0.0  ;;  %vm971_vm5 = vcmask 162816  }
  0x88   : > { %v555_v57 = vrot.slane %v554_v52, 1  ;;  %v562_v58 = vrot.slane %v561_v53, 1  ;;  %v581_v59 = vrot.slane %v580_v55, 4  ;;  %v588_v60 = vrot.slane %v587_v56, 4 }
  0x89   : > { %v534_v61 = vsel %vm6455_vm1, %v529_v48, %v533_v54  ;;  %vm1002_vm6 = vcmask 171008  }
  0x8a   : > { %v556_v62 = vmax.f32 %v554_v52, %v555_v57  ;;  %v563_v63 = vmax.f32 %v561_v53, %v562_v58  ;;  %v582_v0 = vadd.f32 %v581_v59, %v580_v55  ;;  %v589_v1 = vadd.f32 %v588_v60, %v587_v56 }
  0x8b   : > { %1212 = vrot.lane.b32.xlu0 %v4611_v44, %s4330_s25  ;;  %s4346_s25 = smov 82  }
  0x8c   : > { %535 = vrot.lane.b32.xlu2 %v534_v61, %s4320_s23  ;;  %v566_v2 = vrot.slane %v563_v63, 7  ;;  %v583_v3 = vrot.slane %v582_v0, 2  ;;  %v590_v4 = vrot.slane %v589_v1, 2 }
  0x8e   : > { %v567_v5 = vsel %vm6455_vm1, %v556_v62, %v566_v2  ;;  %v584_v6 = vadd.f32 %v583_v3, %v582_v0  ;;  %v591_v7 = vadd.f32 %v590_v4, %v589_v1 }
  0x8f   : > { %568 = vrot.lane.b32.xlu1 %v567_v5, %s4320_s23 }
  0x90   : > { %v585_v8 = vrot.slane %v584_v6, 1  ;;  %v592_v9 = vrot.slane %v591_v7, 1 }
  0x92   : > { %v586_v10 = vadd.f32 %v585_v8, %v584_v6  ;;  %v593_v11 = vadd.f32 %v592_v9, %v591_v7 }
  0x93   : > { %1243 = vrot.lane.b32.xlu0 %v4593_v25, %s4332_s14  ;;  %s4348_s14 = smov 85  }
  0x94   : > { %1334 = vrot.lane.b32.xlu2 %v4599_v27, %s4331_s8  ;;  %v594_v13 = vmul.f32 %v586_v10, %v4628_v12  ;;  %v595_v16 = vmul.f32 %v593_v11, %v4628_v12  ;;  %s4347_s8 = smov 81  }
  0x96   : > { %v598_v18 = vrot.slane %v595_v16, 7 }
  0x97   : > { %1394 = vrot.lane.b32.xlu1 %v4580_v14, %s4333_s12  ;;  %s4349_s12 = smov 83  }
  0x98   : > { %v599_v19 = vsel %vm6455_vm1, %v594_v13, %v598_v18  ;;  %vm6524_vm1 = vcmask 523264  }
  0x9b   : > { %1273 = vrot.lane.b32.xlu0 %v4596_v26, %s6498_s17 }
  0x9c   : > { %600 = vrot.lane.b32.xlu2 %v599_v19, %s4320_s23 }
  0x9f   : > { %1425 = vrot.lane.b32.xlu1 %v4611_v44, %s4335_s15  ;;  %s4350_s15 = smov 97  }
  0xa3   : > { %1486 = vrot.lane.b32.xlu0 %v4596_v26, %s6472_s16 }
  0xa4   : > { %1365 = vrot.lane.b32.xlu2 %v4583_v15, %s4320_s23  ;;  %s4341_s23 = smov 68  }
  0xa6   : > { %v4684_v12 = vpop.permute.xlu2 %633 }
  0xa7   : > { %1455 = vrot.lane.b32.xlu1 %v4593_v25, %s4337_s1  ;;  %s4351_s1 = smov 86   ;;  %v4767_v56 = vrot.slane %v4684_v12, 4 }
  0xa9   : > { %v4784_v63 = vsel %vm636_vm9, %v4767_v56, %v4684_v12  ;;  %vm6546_vm9 = vcmask 261120  }
  0xab   : > { %1515 = vrot.lane.b32.xlu0 %v4589_v17, %s4339_s28  ;;  %s4353_s28 = smov 98  }
  0xac   : > { %1576 = vrot.lane.b32.xlu2 %v4583_v15, %s4338_s9  ;;  %s4352_s9 = smov 84  }
  0xae   : > { %v4689_v20 = vpop.permute.xlu2 %670 }
  0xaf   : > { %1668 = vrot.lane.b32.xlu1 %v4593_v25, %s4340_s29  ;;  %s6426_s29 = smov 96   ;;  %v4787_v0 = vrot.slane %v4689_v20, 4 }
  0xb1   : > { %v4797_v11 = vsel %vm673_vm10, %v4787_v0, %v4689_v20  ;;  %vm1093_vm10 = vcmask 269312  }
  0xb3   : > { %1546 = vrot.lane.b32.xlu0 %v4599_v27, %s4342_s13  ;;  %s4356_s13 = smov 99  }
  0xb4   : > { %1607 = vrot.lane.b32.xlu2 %v4580_v14, %s4341_s23  ;;  %s4355_s23 = smov 100  }
  0xb6   : > { %v4694_v21 = vpop.permute.xlu2 %779 }
  0xb7   : > { %1698 = vrot.lane.b32.xlu1 %v4596_v26, %s6447_s7 }
  0xbb   : > { %1757 = vrot.lane.b32.xlu0 %v4599_v27, %s4346_s25  ;;  %s4358_s25 = smov 102  }
  0xbc   : > { %1637 = vrot.lane.b32.xlu2 %v4611_v44, %s4345_s10  ;;  %s4357_s10 = smov 101  }
  0xbd   : > { %v4698_v23 = vpop.permute.xlu1 %743  ;;  %v4700_v24 = vpop.permute.xlu0 %706 }
  0xbe   : > { %v4704_v28 = vpop.permute.xlu2 %877  ;;  %v4803_v16 = vrot.slane %v4700_v24, 4  ;;  %v4817_v38 = vrot.slane %v4698_v23, 4 }
  0xbf   : > { %1727 = vrot.lane.b32.xlu1 %v4589_v17, %s4347_s8  ;;  %s4359_s8 = smov 127  }
  0xc3   : > { %1788 = vrot.lane.b32.xlu0 %v4583_v15, %s4349_s12  ;;  %s4361_s12 = smov 125  }
  0xc4   : > { %1849 = vrot.lane.b32.xlu2 %v4611_v44, %s4348_s14  ;;  %s4360_s14 = smov 126  }
  0xc5   : > { %v4707_v29 = vpop.permute.xlu0 %816  ;;  %v4709_v30 = vpop.permute.xlu1 %846 }
  0xc6   : > { %v4713_v32 = vpop.permute.xlu2 %1029 }
  0xc7   : > { %1938 = vrot.lane.b32.xlu1 %v4589_v17, %s4350_s15  ;;  %s4362_s15 = smov 124  }
  0xcb   : > { %1818 = vrot.lane.b32.xlu0 %v4580_v14, %s4352_s9  ;;  %s4364_s9 = smov 122  }
  0xcc   : > { %1879 = vrot.lane.b32.xlu2 %v4593_v25, %s4351_s1  ;;  %s4363_s1 = smov 123  }
  0xcd   : > { %v4716_v31 = vpop.permute.xlu0 %938  ;;  %v4718_v33 = vpop.permute.xlu1 %907 }
  0xce   : > { %v4722_v34 = vpop.permute.xlu2 %1060 }
  0xcf   : > { %1969 = vrot.lane.b32.xlu1 %v4599_v27, %s4353_s28  ;;  %s4365_s28 = smov 112  }
  0xd3   : > { %2030 = vrot.lane.b32.xlu0 %v4580_v14, %s4355_s23  ;;  %s4366_s23 = smov 111  }
  0xd4   : > { %1910 = vrot.lane.b32.xlu2 %v4596_v26, %s6426_s29 }
  0xd5   : > { %v4727_v17 = vpop.permute.xlu1 %1121  ;;  %v363_v36 = vpop.permute.xlu0 %362 }
  0xd6   : > { %v4732_v37 = vpop.permute.xlu2 %1090  ;;  %v364_v27 = vrot.slane %v363_v36, 7 }
  0xd7   : > { %1999 = vrot.lane.b32.xlu1 %v4583_v15, %s4356_s13  ;;  %s6403_s13 = smov 110  }
  0xd8   : > { %v366_v39 = vsel %vm365_vm7, %v364_v27, %v363_v36  ;;  %v4821_v27 = vsel %vm709_vm11, %v4803_v16, %v4700_v24  ;;  %v4831_v24 = vrot.slane %v4694_v21, 4  ;;  %vm657_vm11 = vcmask 1039360  }
  0xd9   : > { %372 = vst.msk [vmem:[#allocation2] ss:$4 sm:$0x7] %vm4734_vm8, %v366_v39 }
  0xdb   : > { %2060 = vrot.lane.b32.xlu0 %v4611_v44, %s4357_s10  ;;  %s6412_s10 = smov 109  }
  0xdd   : > { %v4742_v40 = vpop.permute.xlu1 %1151  ;;  %v406_v41 = vpop.permute.xlu0 %405 }
  0xde   : > { %v4745_v14 = vpop.permute.xlu2 %1304  ;;  %v407_v42 = vrot.slane %v406_v41, 7 }
  0xe0   : > { %v408_v43 = vsel %vm365_vm7, %v407_v42, %v406_v41 }
  0xe1   : > { %411 = vst.msk [vmem:[#allocation2 + $0x1] ss:$4 sm:$0x7] %vm4734_vm8, %v408_v43 }
  0xe3   : > { %2091 = vrot.lane.b32.xlu0 %v4593_v25, %s4358_s25  ;;  %s4369_s25 = smov 108  }
  0xe5   : > { %v439_v45 = vpop.permute.xlu1 %438  ;;  %v4757_v49 = vpop.permute.xlu0 %968 }
  0xe6   : > { %v440_v46 = vrot.slane %v439_v45, 7  ;;  %v536_v15 = vpop.permute.xlu2 %535 }
  0xe7   : > { %v537_v48 = vrot.slane %v536_v15, 7 }
  0xe8   : > { %v441_v47 = vsel %vm365_vm7, %v440_v46, %v439_v45 }
  0xe9   : > { %444 = vst.msk [vmem:[#allocation2 + $0x2] ss:$4 sm:$0x7] %vm4734_vm8, %v441_v47  ;;  %v538_v44 = vsel %vm365_vm7, %v537_v48, %v536_v15  ;;  %v4837_v15 = vsel %vm746_vm12, %v4817_v38, %v4698_v23  ;;  %vm1124_vm12 = vcmask 277504  }
  0xea   : > { %541 = vst.msk [vmem:[#allocation2 + $0xd] ss:$4 sm:$0x7] %vm4734_vm8, %v538_v44 }
  0xed   : > { %v471_v51 = vpop.permute.xlu1 %470  ;;  %v4764_v53 = vpop.permute.xlu0 %999 }
  0xee   : > { %v4759_v50 = vpop.permute.xlu2 %1334  ;;  %v472_v52 = vrot.slane %v471_v51, 7 }
  0xf0   : > { %v473_v25 = vsel %vm365_vm7, %v472_v52, %v471_v51 }
  0xf1   : > { %476 = vst.msk [vmem:[#allocation2 + $0x3] ss:$4 sm:$0x7] %vm4734_vm8, %v473_v25 }
  0xf5   : > { %v4780_v62 = vpop.permute.xlu1 %1182  ;;  %v504_v1 = vpop.permute.xlu0 %503 }
  0xf6   : > { %v601_v54 = vpop.permute.xlu2 %600  ;;  %v505_v2 = vrot.slane %v504_v1, 7 }
  0xf7   : > { %v602_v55 = vrot.slane %v601_v54, 7 }
  0xf8   : > { %v4769_v57 = vld [vmem:[#allocation2] sm:$0xff]  ;;  %v4771_v58 = vld [vmem:[#allocation2 + $0x8] sm:$0xf]  ;;  %v506_v9 = vsel %vm365_vm7, %v505_v2, %v504_v1 }
  0xf9   : > { %v603_v59 = vsel %vm365_vm7, %v602_v55, %v601_v54  ;;  %v618_v60 = vmul.f32 %v4596_v26, %v4769_v57  ;;  %v641_v61 = vmul.f32 %v4767_v56, %v4771_v58  ;;  %v640_v3 = vmul.f32 %v4784_v63, %v4769_v57  ;;  %509 = vst.msk [vmem:[#allocation2 + $0xc] ss:$4 sm:$0x7] %vm4734_vm8, %v506_v9 }
  0xfa   : > { %606 = vst.msk [vmem:[#allocation2 + $0xf] ss:$4 sm:$0x7] %vm4734_vm8, %v603_v59  ;;  %v678_v4 = vmul.f32 %v4787_v0, %v4771_v58  ;;  %v677_v18 = vmul.f32 %v4797_v11, %v4769_v57  ;;  %v714_v12 = vmul.f32 %v4803_v16, %v4771_v58  ;;  %v713_v39 = vmul.f32 %v4821_v27, %v4769_v57 }
  0xfb   : > { %620 = vst [vmem:[#allocation1] ss:$2 sm:$0xff] %v618_v60  ;;  %v751_v41 = vmul.f32 %v4817_v38, %v4771_v58  ;;  %v750_v47 = vmul.f32 %v4837_v15, %v4769_v57  ;;  %v787_v48 = vmul.f32 %v4831_v24, %v4771_v58  ;;  %v4847_v54 = vsel %vm782_vm13, %v4831_v24, %v4694_v21 }
  0xfc   : > { %647 = vst [vmem:[#allocation1 + $0x11] ss:$2 sm:$0xff] %v641_v61  ;;  %v4854_v55 = vrot.slane %v4707_v29, 4  ;;  %v786_v59 = vmul.f32 %v4847_v54, %v4769_v57  ;;  %vm1154_vm13 = vcmask 285696  }
  0xfd   : > { %v4809_v19 = vpop.permute.xlu0 %1212 }
  0xfe   : > { %v824_v60 = vmul.f32 %v4854_v55, %v4771_v58  ;;  %v4861_v2 = vpop.permute.xlu2 %1365 }
 0x101   : > { %v569_v7 = vpop.permute.xlu1 %568 }
 0x102   : > { %v621_v5 = vld.sshfl [vmem:[#allocation1] sm:$0xff pattern:$0x75316420]  ;;  %v622_v6 = vld.sshfl [vmem:[#allocation1 + $0x8] sm:$0xff pattern:$0x75316420] }
 0x103   : > { %645 = vst [vmem:[#allocation1 + $0x1] ss:$2 sm:$0xff] %v640_v3  ;;  %v650_v8 = vld.sshfl [vmem:[#allocation1 + $0x10] sm:$0xff pattern:$0x75316420]  ;;  %v570_v10 = vrot.slane %v569_v7, 7 }
 0x104   : > { %683 = vst [vmem:[#allocation1 + $0x10] ss:$2 sm:$0xff] %v678_v4  ;;  %655 = vrot.lane.b32.xlu1 %v650_v8, %s4359_s8  ;;  %v4868_v4 = vsel %vm819_vm14, %v4854_v55, %v4707_v29  ;;  %v4881_v29 = vrot.slane %v4704_v28, 4  ;;  %vm1185_vm14 = vcmask 293888  }
 0x105   : > { %625 = vst [vmem:[#allocation3 + $0x250] sm:$0xf] %v621_v5  ;;  %v571_v13 = vsel %vm365_vm7, %v570_v10, %v569_v7  ;;  %v4827_v46 = vpop.permute.xlu0 %1243  ;;  %v4871_v5 = vrot.slane %v4709_v30, 4  ;;  %v823_v7 = vmul.f32 %v4868_v4, %v4769_v57 }
 0x106   : > { %626 = vst [vmem:[#allocation3 + $0x1a0] sm:$0xf] %v622_v6 }
 0x107   : > { %574 = vst.msk [vmem:[#allocation2 + $0xe] ss:$4 sm:$0x7] %vm4734_vm8, %v571_v13  ;;  %v854_v8 = vmul.f32 %v4871_v5, %v4771_v58  ;;  %vm1032_vm8 = vcmask 179200  }
 0x108   : > { %6561 = vst [vmem:[#allocation25_spill] sm:$0xff] %v4868_v4 }
 0x109   : > { %v4849_v23 = vpop.permute.xlu1 %1394  ;;  %6562 = vst [vmem:[#allocation26_spill] sm:$0xff] %v4881_v29 }
 0x10a   : > { %v648_v20 = vld.sshfl [vmem:[#allocation1] sm:$0xff pattern:$0x75316420]  ;;  %v649_v22 = vld.sshfl [vmem:[#allocation1 + $0x8] sm:$0xff pattern:$0x75316420] }
 0x10b   : > { %681 = vst [vmem:[#allocation1] ss:$2 sm:$0xff] %v677_v18  ;;  %v686_v36 = vld.sshfl [vmem:[#allocation1 + $0x10] sm:$0xff pattern:$0x75316420]  ;;  %653 = vrot.lane.b32.xlu2 %v649_v22, %s4359_s8  ;;  %v4887_v18 = vsel %vm849_vm15, %v4871_v5, %v4709_v30  ;;  %v4902_v30 = vsel %vm880_vm2, %v4881_v29, %v4704_v28  ;;  %vm693_vm15 = vcmask 1031168  }
 0x10c   : > { %720 = vst [vmem:[#allocation1 + $0x11] ss:$2 sm:$0xff] %v714_v12  ;;  %691 = vrot.lane.b32.xlu0 %v686_v36, %s4360_s14  ;;  %651 = vrot.lane.b32.xlu1 %v648_v20, %s4359_s8  ;;  %v853_v12 = vmul.f32 %v4887_v18, %v4769_v57  ;;  %v4891_v20 = vpop.permute.xlu2 %1576  ;;  %v885_v36 = vmul.f32 %v4881_v29, %v4771_v58  ;;  %vm1215_vm2 = vcmask 302080  }
 0x10d   : > { %v4843_v25 = vpop.permute.xlu0 %1273  ;;  %6563 = vst [vmem:[#allocation27_spill] sm:$0xff] %v4887_v18 }
 0x10e   : > { %6564 = vst [vmem:[#allocation28_spill] sm:$0xff] %v4902_v30 }
 0x111   : > { %v4873_v6 = vpop.permute.xlu1 %1425 }
 0x112   : > { %v684_v42 = vld.sshfl [vmem:[#allocation1] sm:$0xff pattern:$0x75316420]  ;;  %v685_v43 = vld.sshfl [vmem:[#allocation1 + $0x8] sm:$0xff pattern:$0x75316420] }
 0x113   : > { %718 = vst [vmem:[#allocation1 + $0x1] ss:$2 sm:$0xff] %v713_v39  ;;  %v723_v45 = vld.sshfl [vmem:[#allocation1 + $0x10] sm:$0xff pattern:$0x75316420] }
 0x114   : > { %756 = vst [vmem:[#allocation1 + $0x10] ss:$2 sm:$0xff] %v751_v41  ;;  %728 = vrot.lane.b32.xlu2 %v723_v45, %s4361_s12  ;;  %689 = vrot.lane.b32.xlu1 %v685_v43, %s4360_s14  ;;  %v4907_v45 = vrot.slane %v4718_v33, 4 }
 0x115   : > { %687 = vrot.lane.b32.xlu0 %v684_v42, %s4360_s14  ;;  %v4863_v3 = vpop.permute.xlu0 %1486 }
 0x116   : > { %6565 = vst [vmem:[#allocation29_spill] sm:$0xff] %v4907_v45 }
 0x119   : > { %v4897_v42 = vpop.permute.xlu1 %1455 }
 0x11a   : > { %v721_v44 = vld.sshfl [vmem:[#allocation1] sm:$0xff pattern:$0x75316420]  ;;  %v722_v51 = vld.sshfl [vmem:[#allocation1 + $0x8] sm:$0xff pattern:$0x75316420] }
 0x11b   : > { %754 = vst [vmem:[#allocation1] ss:$2 sm:$0xff] %v750_v47  ;;  %v759_v52 = vld.sshfl [vmem:[#allocation1 + $0x10] sm:$0xff pattern:$0x75316420]  ;;  %v884_v47 = vmul.f32 %v4902_v30, %v4769_v57 }
 0x11c   : > { %793 = vst [vmem:[#allocation1 + $0x11] ss:$2 sm:$0xff] %v787_v48  ;;  %724 = vrot.lane.b32.xlu1 %v721_v44, %s4361_s12  ;;  %v915_v48 = vmul.f32 %v4907_v45, %v4771_v58 }
 0x11d   : > { %726 = vrot.lane.b32.xlu0 %v722_v51, %s4361_s12  ;;  %v4893_v22 = vpop.permute.xlu0 %1515 }
 0x122   : > { %v757_v61 = vld.sshfl [vmem:[#allocation1] sm:$0xff pattern:$0x75316420]  ;;  %v758_v1 = vld.sshfl [vmem:[#allocation1 + $0x8] sm:$0xff pattern:$0x75316420] }
 0x123   : > { %791 = vst [vmem:[#allocation1 + $0x1] ss:$2 sm:$0xff] %v786_v59  ;;  %v796_v21 = vld.sshfl [vmem:[#allocation1 + $0x10] sm:$0xff pattern:$0x75316420]  ;;  %762 = vrot.lane.b32.xlu2 %v758_v1, %s4362_s15  ;;  %v4927_v1 = vsel %vm910_vm3, %v4907_v45, %v4718_v33  ;;  %v4939_v33 = vrot.slane %v4757_v49, 4 }
 0x124   : > { %829 = vst [vmem:[#allocation1 + $0x10] ss:$2 sm:$0xff] %v824_v60  ;;  %v4917_v60 = vpop.permute.xlu1 %1668  ;;  %vm730_vm3 = vcmask 1022976  }
 0x125   : > { %764 = vrot.lane.b32.xlu0 %v759_v52, %s4362_s15  ;;  %v4913_v52 = vpop.permute.xlu2 %1607  ;;  %v4915_v59 = vpop.permute.xlu0 %1546  ;;  %6567 = vst [vmem:[#allocation31_spill] sm:$0xff] %v4927_v1 }
 0x126   : > { %6568 = vst [vmem:[#allocation32_spill] sm:$0xff] %v4939_v33 }
 0x12a   : > { %v794_v9 = vld.sshfl [vmem:[#allocation1] sm:$0xff pattern:$0x75316420]  ;;  %v795_v10 = vld.sshfl [vmem:[#allocation1 + $0x8] sm:$0xff pattern:$0x75316420] }
 0x12b   : > { %827 = vst [vmem:[#allocation1] ss:$2 sm:$0xff] %v823_v7  ;;  %v832_v13 = vld.sshfl [vmem:[#allocation1 + $0x10] sm:$0xff pattern:$0x75316420]  ;;  %801 = vrot.lane.b32.xlu2 %v796_v21, %s4363_s1  ;;  %799 = vrot.lane.b32.xlu1 %v795_v10, %s4363_s1  ;;  %v914_v21 = vmul.f32 %v4927_v1, %v4769_v57 }
 0x12c   : > { %860 = vst [vmem:[#allocation1 + $0x11] ss:$2 sm:$0xff] %v854_v8 }
 0x12d   : > { %760 = vrot.lane.b32.xlu0 %v757_v61, %s4362_s15  ;;  %v4923_v61 = vrot.slane %v4716_v31, 4 }
 0x12f   : > { %6566 = vst [vmem:[#allocation30_spill] sm:$0xff] %v4923_v61  ;;  %v946_v7 = vmul.f32 %v4923_v61, %v4771_v58 }
 0x132   : > { %v830_v39 = vld.sshfl [vmem:[#allocation1] sm:$0xff pattern:$0x75316420]  ;;  %v831_v41 = vld.sshfl [vmem:[#allocation1 + $0x8] sm:$0xff pattern:$0x75316420] }
 0x133   : > { %858 = vst [vmem:[#allocation1 + $0x1] ss:$2 sm:$0xff] %v853_v12  ;;  %v863_v43 = vld.sshfl [vmem:[#allocation1 + $0x10] sm:$0xff pattern:$0x75316420]  ;;  %797 = vrot.lane.b32.xlu2 %v794_v9, %s4363_s1  ;;  %837 = vrot.lane.b32.xlu1 %v832_v13, %s4364_s9  ;;  %v4933_v13 = vpop.permute.xlu2 %1637  ;;  %v4935_v12 = vpop.permute.xlu0 %1757 }
 0x134   : > { %890 = vst [vmem:[#allocation1 + $0x10] ss:$2 sm:$0xff] %v885_v36  ;;  %v4941_v36 = vpop.permute.xlu1 %1698 }
 0x135   : > { %868 = vrot.lane.b32.xlu0 %v863_v43, %s4365_s28  ;;  %v976_v43 = vmul.f32 %v4939_v33, %v4771_v58 }
 0x13a   : > { %v861_v44 = vld.sshfl [vmem:[#allocation1] sm:$0xff pattern:$0x75316420]  ;;  %v862_v51 = vld.sshfl [vmem:[#allocation1 + $0x8] sm:$0xff pattern:$0x75316420] }
 0x13b   : > { %888 = vst [vmem:[#allocation1] ss:$2 sm:$0xff] %v884_v47  ;;  %v893_v28 = vld.sshfl [vmem:[#allocation1 + $0x10] sm:$0xff pattern:$0x75316420]  ;;  %835 = vrot.lane.b32.xlu2 %v831_v41, %s4364_s9  ;;  %833 = vrot.lane.b32.xlu1 %v830_v39, %s4364_s9  ;;  %v4947_v39 = vsel %vm941_vm4, %v4923_v61, %v4716_v31  ;;  %v4959_v31 = vrot.slane %v4764_v53, 4 }
 0x13c   : > { %921 = vst [vmem:[#allocation1 + $0x11] ss:$2 sm:$0xff] %v915_v48  ;;  %v945_v41 = vmul.f32 %v4947_v39, %v4769_v57  ;;  %vm1246_vm4 = vcmask 310272  }
 0x13d   : > { %864 = vrot.lane.b32.xlu0 %v861_v44, %s4365_s28  ;;  %6569 = vst [vmem:[#allocation33_spill] sm:$0xff] %v4947_v39 }
 0x13e   : > { %6571 = vst [vmem:[#allocation35_spill] sm:$0xff] %v4959_v31 }
 0x142   : > { %v891_v8 = vld.sshfl [vmem:[#allocation1] sm:$0xff pattern:$0x75316420]  ;;  %v892_v9 = vld.sshfl [vmem:[#allocation1 + $0x8] sm:$0xff pattern:$0x75316420] }
 0x143   : > { %919 = vst [vmem:[#allocation1 + $0x1] ss:$2 sm:$0xff] %v914_v21  ;;  %v924_v10 = vld.sshfl [vmem:[#allocation1 + $0x10] sm:$0xff pattern:$0x75316420]  ;;  %898 = vrot.lane.b32.xlu2 %v893_v28, %s4366_s23  ;;  %866 = vrot.lane.b32.xlu1 %v862_v51, %s4365_s28  ;;  %v4956_v51 = vsel %vm971_vm5, %v4939_v33, %v4757_v49  ;;  %v4962_v28 = vpop.permute.xlu2 %1849  ;;  %v4964_v21 = vpop.permute.xlu0 %1788  ;;  %v1007_v49 = vmul.f32 %v4959_v31, %v4771_v58  ;;  %vm766_vm5 = vcmask 1014784  }
 0x144   : > { %951 = vst [vmem:[#allocation1 + $0x10] ss:$2 sm:$0xff] %v946_v7  ;;  %v4967_v7 = vpop.permute.xlu1 %1727 }
 0x145   : > { %896 = vrot.lane.b32.xlu0 %v892_v9, %s4366_s23  ;;  %6570 = vst [vmem:[#allocation34_spill] sm:$0xff] %v4956_v51  ;;  %v975_v9 = vmul.f32 %v4956_v51, %v4769_v57 }
 0x14a   : > { %v922_v47 = vld.sshfl [vmem:[#allocation1] sm:$0xff pattern:$0x75316420]  ;;  %v923_v48 = vld.sshfl [vmem:[#allocation1 + $0x8] sm:$0xff pattern:$0x75316420] }
 0x14b   : > { %949 = vst [vmem:[#allocation1] ss:$2 sm:$0xff] %v945_v41  ;;  %v954_v44 = vld.sshfl [vmem:[#allocation1 + $0x10] sm:$0xff pattern:$0x75316420]  ;;  %927 = vrot.lane.b32.xlu2 %v923_v48, %s6403_s13  ;;  %894 = vrot.lane.b32.xlu1 %v891_v8, %s4366_s23  ;;  %v4975_v8 = vrot.slane %v4713_v32, 4  ;;  %v4985_v35 = vpop.permute.xlu2 %1879 }
 0x14c   : > { %982 = vst [vmem:[#allocation1 + $0x11] ss:$2 sm:$0xff] %v976_v43  ;;  %v4991_v1 = vpop.permute.xlu1 %1938 }
 0x14d   : > { %929 = vrot.lane.b32.xlu0 %v924_v10, %s6403_s13  ;;  %6572 = vst [vmem:[#allocation36_spill] sm:$0xff] %v4975_v8  ;;  %v4979_v10 = vsel %vm1002_vm6, %v4959_v31, %v4764_v53  ;;  %vm6540_vm6 = vcmask 392192  }
 0x14e   : > { %6573 = vst [vmem:[#allocation37_spill] sm:$0xff] %v4979_v10 }
 0x152   : > { %v952_v41 = vld.sshfl [vmem:[#allocation1] sm:$0xff pattern:$0x75316420]  ;;  %v953_v43 = vld.sshfl [vmem:[#allocation1 + $0x8] sm:$0xff pattern:$0x75316420] }
 0x153   : > { %980 = vst [vmem:[#allocation1 + $0x1] ss:$2 sm:$0xff] %v975_v9  ;;  %v985_v48 = vld.sshfl [vmem:[#allocation1 + $0x10] sm:$0xff pattern:$0x75316420]  ;;  %959 = vrot.lane.b32.xlu2 %v954_v44, %s6412_s10  ;;  %957 = vrot.lane.b32.xlu1 %v953_v43, %s6412_s10  ;;  %v1006_v9 = vmul.f32 %v4979_v10, %v4769_v57  ;;  %v1037_v44 = vmul.f32 %v4975_v8, %v4771_v58  ;;  %v4999_v43 = vrot.slane %v4722_v34, 4 }
 0x154   : > { %1012 = vst [vmem:[#allocation1 + $0x10] ss:$2 sm:$0xff] %v1007_v49  ;;  %v4987_v49 = vpop.permute.xlu0 %1818 }
 0x155   : > { %925 = vrot.lane.b32.xlu0 %v922_v47, %s6403_s13  ;;  %v4996_v47 = vsel %vm1032_vm8, %v4975_v8, %v4713_v32  ;;  %6575 = vst [vmem:[#allocation39_spill] sm:$0xff] %v4999_v43  ;;  %s6428_s13 = smov 107   ;;  %v5007_v8 = vpop.permute.xlu2 %1910  ;;  %vm803_vm8 = vcmask 1006592  }
 0x156   : > { %6574 = vst [vmem:[#allocation38_spill] sm:$0xff] %v4996_v47 }
 0x15a   : > { %v983_v51 = vld.sshfl [vmem:[#allocation1] sm:$0xff pattern:$0x75316420]  ;;  %v984_v39 = vld.sshfl [vmem:[#allocation1 + $0x8] sm:$0xff pattern:$0x75316420] }
 0x15b   : > { %1010 = vst [vmem:[#allocation1] ss:$2 sm:$0xff] %v1006_v9  ;;  %v1015_v53 = vld.sshfl [vmem:[#allocation1 + $0x10] sm:$0xff pattern:$0x75316420]  ;;  %955 = vrot.lane.b32.xlu2 %v952_v41, %s6412_s10  ;;  %990 = vrot.lane.b32.xlu1 %v985_v48, %s4369_s25  ;;  %v1036_v9 = vmul.f32 %v4996_v47, %v4769_v57  ;;  %v5011_v48 = vpop.permute.xlu1 %1969  ;;  %v5020_v47 = vrot.slane %v4732_v37, 4 }
 0x15c   : > { %1043 = vst [vmem:[#allocation1 + $0x11] ss:$2 sm:$0xff] %v1037_v44  ;;  %v1068_v44 = vmul.f32 %v4999_v43, %v4771_v58  ;;  %v5009_v31 = vpop.permute.xlu0 %2030  ;;  %s6420_s10 = smov 106  }
 0x15d   : > { %1020 = vrot.lane.b32.xlu0 %v1015_v53, %s6428_s13  ;;  %v5017_v53 = vsel %vm6546_vm9, %v4999_v43, %v4722_v34  ;;  %6577 = vst [vmem:[#allocation41_spill] sm:$0xff] %v5020_v47 }
 0x15e   : > { %6576 = vst [vmem:[#allocation40_spill] sm:$0xff] %v5017_v53 }
 0x162   : > { %v1013_v41 = vld.sshfl [vmem:[#allocation1] sm:$0xff pattern:$0x75316420]  ;;  %v1014_v10 = vld.sshfl [vmem:[#allocation1 + $0x8] sm:$0xff pattern:$0x75316420] }
 0x163   : > { %1041 = vst [vmem:[#allocation1 + $0x1] ss:$2 sm:$0xff] %v1036_v9  ;;  %v1046_v32 = vld.sshfl [vmem:[#allocation1 + $0x10] sm:$0xff pattern:$0x75316420]  ;;  %988 = vrot.lane.b32.xlu2 %v984_v39, %s4369_s25  ;;  %986 = vrot.lane.b32.xlu1 %v983_v51, %s4369_s25  ;;  %v1067_v9 = vmul.f32 %v5017_v53, %v4769_v57  ;;  %v5033_v51 = vsel %vm1093_vm10, %v5020_v47, %v4732_v37  ;;  %vm1307_vm10 = vcmask 400384  }
 0x164   : > { %1073 = vst [vmem:[#allocation1 + $0x10] ss:$2 sm:$0xff] %v1068_v44  ;;  %v1098_v44 = vmul.f32 %v5020_v47, %v4771_v58  ;;  %v5028_v43 = vpop.permute.xlu0 %2060 }
 0x165   : > { %1016 = vrot.lane.b32.xlu0 %v1013_v41, %s6428_s13  ;;  %v654_v34 = vpop.permute.xlu2 %653  ;;  %6578 = vst [vmem:[#allocation42_spill] sm:$0xff] %v5033_v51  ;;  %v5035_v41 = vpop.permute.xlu1 %1999 }
 0x16a   : > { %v1044_v33 = vld.sshfl [vmem:[#allocation1] sm:$0xff pattern:$0x75316420]  ;;  %v1045_v39 = vld.sshfl [vmem:[#allocation1 + $0x8] sm:$0xff pattern:$0x75316420] }
 0x16b   : > { %1071 = vst [vmem:[#allocation1] ss:$2 sm:$0xff] %v1067_v9  ;;  %v1076_v30 = vld.sshfl [vmem:[#allocation1 + $0x10] sm:$0xff pattern:$0x75316420]  ;;  %1051 = vrot.lane.b32.xlu2 %v1046_v32, %s6420_s10  ;;  %1018 = vrot.lane.b32.xlu1 %v1014_v10, %s6428_s13  ;;  %v5040_v9 = vrot.slane %v4727_v17, 4 }
 0x16c   : > { %1104 = vst [vmem:[#allocation1 + $0x11] ss:$2 sm:$0xff] %v1098_v44  ;;  %v1097_v44 = vmul.f32 %v5033_v51, %v4769_v57  ;;  %s6435_s13 = smov 93  }
 0x16d   : > { %1049 = vrot.lane.b32.xlu0 %v1045_v39, %s6420_s10  ;;  %6579 = vst [vmem:[#allocation43_spill] sm:$0xff] %v5040_v9  ;;  %v1129_v53 = vmul.f32 %v5040_v9, %v4771_v58  ;;  %v5050_v39 = vpop.permute.xlu0 %2091 }
 0x16e   : > { %v5046_v47 = vpop.permute.xlu2 %728 }
 0x172   : > { %v1074_v32 = vld.sshfl [vmem:[#allocation1] sm:$0xff pattern:$0x75316420]  ;;  %v1075_v61 = vld.sshfl [vmem:[#allocation1 + $0x8] sm:$0xff pattern:$0x75316420] }
 0x173   : > { %1102 = vst [vmem:[#allocation1 + $0x1] ss:$2 sm:$0xff] %v1097_v44  ;;  %v1107_v37 = vld.sshfl [vmem:[#allocation1 + $0x10] sm:$0xff pattern:$0x75316420]  ;;  %1079 = vrot.lane.b32.xlu2 %v1075_v61, %s6426_s29  ;;  %1047 = vrot.lane.b32.xlu1 %v1044_v33, %s6420_s10  ;;  %v5056_v44 = vsel %vm1124_vm12, %v5040_v9, %v4727_v17  ;;  %s4372_s10 = smov 95  }
 0x174   : > { %1134 = vst [vmem:[#allocation1 + $0x10] ss:$2 sm:$0xff] %v1129_v53  ;;  %v5059_v53 = vrot.slane %v4742_v40, 4  ;;  %v1128_v61 = vmul.f32 %v5056_v44, %v4769_v57  ;;  %vm839_vm12 = vcmask 998400  }
 0x175   : > { %1081 = vrot.lane.b32.xlu0 %v1076_v30, %s6426_s29  ;;  %6580 = vst [vmem:[#allocation44_spill] sm:$0xff] %v5056_v44 }
 0x176   : > { %v656_v10 = vpop.permute.xlu1 %655  ;;  %v1159_v33 = vmul.f32 %v5059_v53, %v4771_v58 }
 0x177   : > { %v659_v51 = vsel %vm657_vm11, %v654_v34, %v656_v10  ;;  %v5069_v10 = vrot.slane %v4780_v62, 4 }
 0x178   : > { %663 = vst [vmem:[#allocation3 + $0x1a0] sm:$0xf0] %v659_v51 }
 0x179   : > { %6581 = vst [vmem:[#allocation45_spill] sm:$0xff] %v5069_v10 }
 0x17a   : > { %v1105_v18 = vld.sshfl [vmem:[#allocation1] sm:$0xff pattern:$0x75316420]  ;;  %v1106_v45 = vld.sshfl [vmem:[#allocation1 + $0x8] sm:$0xff pattern:$0x75316420] }
 0x17b   : > { %1132 = vst [vmem:[#allocation1] ss:$2 sm:$0xff] %v1128_v61  ;;  %v1137_v30 = vld.sshfl [vmem:[#allocation1 + $0x10] sm:$0xff pattern:$0x75316420]  ;;  %1112 = vrot.lane.b32.xlu2 %v1107_v37, %s4372_s10  ;;  %1110 = vrot.lane.b32.xlu1 %v1106_v45, %s4372_s10  ;;  %v5076_v61 = vsel %vm1154_vm13, %v5059_v53, %v4742_v40  ;;  %v1190_v45 = vmul.f32 %v5069_v10, %v4771_v58  ;;  %v5088_v40 = vrot.slane %v4809_v19, 4 }
 0x17c   : > { %1165 = vst [vmem:[#allocation1 + $0x11] ss:$2 sm:$0xff] %v1159_v33  ;;  %v1158_v37 = vmul.f32 %v5076_v61, %v4769_v57  ;;  %vm1337_vm13 = vcmask 408576  }
 0x17d   : > { %v5066_v17 = vpop.permute.xlu2 %762  ;;  %1077 = vrot.lane.b32.xlu0 %v1074_v32, %s6426_s29  ;;  %6582 = vst [vmem:[#allocation46_spill] sm:$0xff] %v5076_v61  ;;  %s6433_s29 = smov 94  }
 0x17e   : > { %v652_v51 = vpop.permute.xlu1 %651  ;;  %v692_v44 = vpop.permute.xlu0 %691 }
 0x17f   : > { %v658_v9 = vsel %vm657_vm11, %v652_v51, %v654_v34  ;;  %v5085_v34 = vsel %vm1185_vm14, %v5069_v10, %v4780_v62  ;;  %v5106_v10 = vrot.slane %v4827_v46, 4  ;;  %vm870_vm14 = vcmask 916480  }
 0x180   : > { %662 = vst [vmem:[#allocation3 + $0x250] sm:$0xf0] %v658_v9 }
 0x181   : > { %6583 = vst [vmem:[#allocation47_spill] sm:$0xff] %v5085_v34 }
 0x182   : > { %v1135_v33 = vld.sshfl [vmem:[#allocation1] sm:$0xff pattern:$0x75316420]  ;;  %v1136_v4 = vld.sshfl [vmem:[#allocation1 + $0x8] sm:$0xff pattern:$0x75316420] }
 0x183   : > { %1163 = vst [vmem:[#allocation1 + $0x1] ss:$2 sm:$0xff] %v1158_v37  ;;  %v1168_v29 = vld.sshfl [vmem:[#allocation1 + $0x10] sm:$0xff pattern:$0x75316420]  ;;  %1108 = vrot.lane.b32.xlu2 %v1105_v18, %s4372_s10  ;;  %1142 = vrot.lane.b32.xlu1 %v1137_v30, %s6433_s29  ;;  %v1189_v18 = vmul.f32 %v5085_v34, %v4769_v57  ;;  %v5103_v34 = vsel %vm1215_vm2, %v5088_v40, %v4809_v19  ;;  %vm6489_vm2 = vcmask 908288  }
 0x184   : > { %1195 = vst [vmem:[#allocation1 + $0x10] ss:$2 sm:$0xff] %v1190_v45  ;;  %v1220_v45 = vmul.f32 %v5088_v40, %v4771_v58  ;;  %v1251_v19 = vmul.f32 %v5106_v10, %v4771_v58 }
 0x185   : > { %1173 = vrot.lane.b32.xlu0 %v1168_v29, %s6435_s13  ;;  %v5092_v9 = vpop.permute.xlu2 %801  ;;  %6584 = vst [vmem:[#allocation48_spill] sm:$0xff] %v5103_v34 }
 0x186   : > { %v690_v32 = vpop.permute.xlu1 %689 }
 0x187   : > { %v688_v51 = vpop.permute.xlu0 %687  ;;  %v695_v61 = vsel %vm693_vm15, %v690_v32, %v692_v44 }
 0x188   : > { %v694_v29 = vsel %vm693_vm15, %v688_v51, %v690_v32  ;;  %699 = vst [vmem:[#allocation3 + $0x88] sm:$0xf] %v695_v61  ;;  %v1219_v61 = vmul.f32 %v5103_v34, %v4769_v57 }
 0x189   : > { %698 = vst [vmem:[#allocation3 + $0x20] sm:$0xf] %v694_v29 }
 0x18a   : > { %v1166_v37 = vld.sshfl [vmem:[#allocation1] sm:$0xff pattern:$0x75316420]  ;;  %v1167_v62 = vld.sshfl [vmem:[#allocation1 + $0x8] sm:$0xff pattern:$0x75316420] }
 0x18b   : > { %1193 = vst [vmem:[#allocation1] ss:$2 sm:$0xff] %v1189_v18  ;;  %v1198_v30 = vld.sshfl [vmem:[#allocation1 + $0x10] sm:$0xff pattern:$0x75316420]  ;;  %1140 = vrot.lane.b32.xlu2 %v1136_v4, %s6433_s29  ;;  %1138 = vrot.lane.b32.xlu1 %v1135_v33, %s6433_s29  ;;  %s6439_s29 = smov 92  }
 0x18c   : > { %1226 = vst [vmem:[#allocation1 + $0x11] ss:$2 sm:$0xff] %v1220_v45 }
 0x18d   : > { %1169 = vrot.lane.b32.xlu0 %v1166_v37, %s6435_s13  ;;  %v798_v44 = vpop.permute.xlu2 %797  ;;  %v5119_v37 = vrot.slane %v4843_v25, 4 }
 0x18e   : > { %v725_v18 = vpop.permute.xlu1 %724 }
 0x18f   : > { %v727_v32 = vpop.permute.xlu0 %726  ;;  %6585 = vst [vmem:[#allocation49_spill] sm:$0xff] %v5119_v37 }
 0x190   : > { %v732_v45 = vsel %vm730_vm3, %v727_v32, %v5046_v47  ;;  %v731_v33 = vsel %vm730_vm3, %v725_v18, %v727_v32  ;;  %v5127_v18 = vsel %vm1246_vm4, %v5106_v10, %v4827_v46  ;;  %v5137_v46 = vrot.slane %v4745_v14, 4 }
 0x191   : > { %736 = vst [vmem:[#allocation3 + $0x88] sm:$0xf0] %v732_v45  ;;  %vm6471_vm4 = vcmask 900096  }
 0x192   : > { %v1196_v4 = vld.sshfl [vmem:[#allocation1] sm:$0xff pattern:$0x75316420]  ;;  %v1197_v51 = vld.sshfl [vmem:[#allocation1 + $0x8] sm:$0xff pattern:$0x75316420] }
 0x193   : > { %1224 = vst [vmem:[#allocation1 + $0x1] ss:$2 sm:$0xff] %v1219_v61  ;;  %v1229_v29 = vld.sshfl [vmem:[#allocation1 + $0x10] sm:$0xff pattern:$0x75316420]  ;;  %1203 = vrot.lane.b32.xlu2 %v1198_v30, %s6439_s29  ;;  %1171 = vrot.lane.b32.xlu1 %v1167_v62, %s6435_s13  ;;  %v1281_v30 = vmul.f32 %v5119_v37, %v4771_v58  ;;  %v1250_v62 = vmul.f32 %v5127_v18, %v4769_v57  ;;  %s4376_s13 = smov 91  }
 0x194   : > { %1256 = vst [vmem:[#allocation1 + $0x10] ss:$2 sm:$0xff] %v1251_v19 }
 0x195   : > { %735 = vst [vmem:[#allocation3 + $0x20] sm:$0xf0] %v731_v33  ;;  %1201 = vrot.lane.b32.xlu0 %v1197_v51, %s6439_s29  ;;  %v5123_v47 = vpop.permute.xlu2 %835 }
 0x196   : > { %6586 = vst [vmem:[#allocation50_spill] sm:$0xff] %v5127_v18 }
 0x197   : > { %v765_v61 = vpop.permute.xlu0 %764 }
 0x198   : > { %v768_v19 = vsel %vm766_vm5, %v5066_v17, %v765_v61 }
 0x199   : > { %772 = vst [vmem:[#allocation3 + $0x1e0] sm:$0xf] %v768_v19 }
 0x19a   : > { %v1228_v32 = vld.sshfl [vmem:[#allocation1 + $0x8] sm:$0xff pattern:$0x75316420]  ;;  %v1227_v45 = vld.sshfl [vmem:[#allocation1] sm:$0xff pattern:$0x75316420] }
 0x19b   : > { %v1259_v51 = vld.sshfl [vmem:[#allocation1 + $0x10] sm:$0xff pattern:$0x75316420]  ;;  %1232 = vrot.lane.b32.xlu2 %v1228_v32, %s4376_s13  ;;  %1254 = vst [vmem:[#allocation1] ss:$2 sm:$0xff] %v1250_v62  ;;  %1199 = vrot.lane.b32.xlu1 %v1196_v4, %s6439_s29  ;;  %v1312_v62 = vmul.f32 %v5137_v46, %v4771_v58  ;;  %s6444_s29 = smov 90  }
 0x19c   : > { %1287 = vst [vmem:[#allocation1 + $0x11] ss:$2 sm:$0xff] %v1281_v30  ;;  %v5146_v30 = vsel %vm6540_vm6, %v5119_v37, %v4843_v25  ;;  %v5159_v37 = vrot.slane %v4759_v50, 4 }
 0x19d   : > { %1234 = vrot.lane.b32.xlu0 %v1229_v29, %s4376_s13  ;;  %v5141_v33 = vpop.permute.xlu2 %898  ;;  %v800_v61 = vpop.permute.xlu1 %799  ;;  %6587 = vst [vmem:[#allocation51_spill] sm:$0xff] %v5146_v30  ;;  %v1280_v34 = vmul.f32 %v5146_v30, %v4769_v57 }
 0x19e   : > { %v804_v32 = vsel %vm803_vm8, %v798_v44, %v800_v61  ;;  %v805_v29 = vsel %vm803_vm8, %v800_v61, %v5092_v9  ;;  %v5167_v61 = vsel %vm1307_vm10, %v5137_v46, %v4745_v14  ;;  %v5177_v14 = vrot.slane %v4861_v2, 4 }
 0x19f   : > { %v761_v19 = vpop.permute.xlu0 %760  ;;  %808 = vst [vmem:[#allocation3 + $0x60] sm:$0xf0] %v804_v32  ;;  %v1342_v32 = vmul.f32 %v5159_v37, %v4771_v58  ;;  %vm6462_vm10 = vcmask 891904  }
 0x1a0   : > { %v767_v4 = vsel %vm766_vm5, %v761_v19, %v5066_v17  ;;  %809 = vst [vmem:[#allocation3 + $0x1e0] sm:$0xf0] %v805_v29 }
 0x1a1   : > { %771 = vst [vmem:[#allocation3 + $0x60] sm:$0xf] %v767_v4 }
 0x1a2   : > { %v1258_v25 = vld.sshfl [vmem:[#allocation1 + $0x8] sm:$0xff pattern:$0x75316420]  ;;  %v1257_v44 = vld.sshfl [vmem:[#allocation1] sm:$0xff pattern:$0x75316420] }
 0x1a3   : > { %v1290_v18 = vld.sshfl [vmem:[#allocation1 + $0x10] sm:$0xff pattern:$0x75316420]  ;;  %1264 = vrot.lane.b32.xlu2 %v1259_v51, %s6444_s29  ;;  %1262 = vrot.lane.b32.xlu1 %v1258_v25, %s6444_s29  ;;  %1285 = vst [vmem:[#allocation1 + $0x1] ss:$2 sm:$0xff] %v1280_v34  ;;  %v1311_v34 = vmul.f32 %v5167_v61, %v4769_v57 }
 0x1a4   : > { %1317 = vst [vmem:[#allocation1 + $0x10] ss:$2 sm:$0xff] %v1312_v62 }
 0x1a5   : > { %1230 = vrot.lane.b32.xlu0 %v1227_v45, %s4376_s13  ;;  %v5163_v17 = vpop.permute.xlu2 %927  ;;  %v838_v9 = vpop.permute.xlu1 %837  ;;  %6588 = vst [vmem:[#allocation52_spill] sm:$0xff] %v5167_v61 }
 0x1a6   : > { %v841_v51 = vsel %vm839_vm12, %v5123_v47, %v838_v9  ;;  %v5184_v9 = vsel %vm1337_vm13, %v5159_v37, %v4759_v50  ;;  %v5194_v50 = vrot.slane %v4849_v23, 4  ;;  %vm1428_vm13 = vcmask 433152  }
 0x1a7   : > { %v869_v19 = vpop.permute.xlu0 %868  ;;  %845 = vst [vmem:[#allocation3 + $0xe8] sm:$0xf] %v841_v51 }
 0x1a8   : > { %6589 = vst [vmem:[#allocation53_spill] sm:$0xff] %v5184_v9 }
 0x1aa   : > { %v1289_v45 = vld.sshfl [vmem:[#allocation1 + $0x8] sm:$0xff pattern:$0x75316420]  ;;  %v1288_v4 = vld.sshfl [vmem:[#allocation1] sm:$0xff pattern:$0x75316420] }
 0x1ab   : > { %v1320_v62 = vld.sshfl [vmem:[#allocation1 + $0x10] sm:$0xff pattern:$0x75316420]  ;;  %1260 = vrot.lane.b32.xlu2 %v1257_v44, %s6444_s29  ;;  %1295 = vrot.lane.b32.xlu1 %v1290_v18, %s6447_s7  ;;  %1315 = vst [vmem:[#allocation1] ss:$2 sm:$0xff] %v1311_v34  ;;  %v1341_v18 = vmul.f32 %v5184_v9, %v4769_v57  ;;  %s6450_s29 = smov 79   ;;  %v5203_v9 = vsel %vm365_vm7, %v5177_v14, %v4861_v2 }
 0x1ac   : > { %1348 = vst [vmem:[#allocation1 + $0x11] ss:$2 sm:$0xff] %v1342_v32  ;;  %v1372_v32 = vmul.f32 %v5177_v14, %v4771_v58  ;;  %v5213_v2 = vrot.slane %v4873_v6, 4  ;;  %vm1397_vm7 = vcmask 424960  }
 0x1ad   : > { %v5180_v29 = vpop.permute.xlu2 %959  ;;  %v834_v25 = vpop.permute.xlu1 %833  ;;  %6590 = vst [vmem:[#allocation54_spill] sm:$0xff] %v5203_v9 }
 0x1ae   : > { %v840_v51 = vsel %vm839_vm12, %v834_v25, %v5123_v47 }
 0x1af   : > { %v865_v44 = vpop.permute.xlu0 %864  ;;  %844 = vst [vmem:[#allocation3 + $0x1e8] sm:$0xf] %v840_v51 }
 0x1b2   : > { %v1319_v34 = vld.sshfl [vmem:[#allocation1 + $0x8] sm:$0xff pattern:$0x75316420]  ;;  %v1318_v30 = vld.sshfl [vmem:[#allocation1] sm:$0xff pattern:$0x75316420] }
 0x1b3   : > { %v1351_v61 = vld.sshfl [vmem:[#allocation1 + $0x10] sm:$0xff pattern:$0x75316420]  ;;  %1293 = vrot.lane.b32.xlu2 %v1289_v45, %s6447_s7  ;;  %1291 = vrot.lane.b32.xlu1 %v1288_v4, %s6447_s7  ;;  %1346 = vst [vmem:[#allocation1 + $0x1] ss:$2 sm:$0xff] %v1341_v18  ;;  %v1402_v4 = vmul.f32 %v5194_v50, %v4771_v58  ;;  %s6453_s7 = smov 78  }
 0x1b4   : > { %1377 = vst [vmem:[#allocation1 + $0x10] ss:$2 sm:$0xff] %v1372_v32  ;;  %1323 = vrot.lane.b32.xlu0 %v1319_v34, %s6450_s29 }
 0x1b5   : > { %v956_v47 = vpop.permute.xlu2 %955  ;;  %v867_v25 = vpop.permute.xlu1 %866 }
 0x1b6   : > { %v871_v51 = vsel %vm870_vm14, %v865_v44, %v867_v25  ;;  %v872_v32 = vsel %vm870_vm14, %v867_v25, %v869_v19  ;;  %v1371_v44 = vmul.f32 %v5203_v9, %v4769_v57  ;;  %v5231_v9 = vrot.slane %v4897_v42, 4 }
 0x1b7   : > { %v897_v45 = vpop.permute.xlu0 %896  ;;  %875 = vst [vmem:[#allocation3 + $0x1e8] sm:$0xf0] %v871_v51 }
 0x1b8   : > { %v902_v18 = vsel %vm6489_vm2, %v897_v45, %v5141_v33  ;;  %876 = vst [vmem:[#allocation3 + $0xe8] sm:$0xf0] %v872_v32 }
 0x1b9   : > { %906 = vst [vmem:[#allocation3 + $0x260] sm:$0xf] %v902_v18 }
 0x1ba   : > { %v1350_v19 = vld.sshfl [vmem:[#allocation1 + $0x8] sm:$0xff pattern:$0x75316420]  ;;  %v1349_v25 = vld.sshfl [vmem:[#allocation1] sm:$0xff pattern:$0x75316420] }
 0x1bb   : > { %v1380_v34 = vld.sshfl [vmem:[#allocation1 + $0x10] sm:$0xff pattern:$0x75316420]  ;;  %1321 = vrot.lane.b32.xlu2 %v1318_v30, %s6450_s29  ;;  %1325 = vrot.lane.b32.xlu1 %v1320_v62, %s6450_s29  ;;  %1375 = vst [vmem:[#allocation1] ss:$2 sm:$0xff] %v1371_v44  ;;  %v5222_v30 = vsel %vm1397_vm7, %v5194_v50, %v4849_v23  ;;  %v1433_v62 = vmul.f32 %v5213_v2, %v4771_v58  ;;  %s6456_s29 = smov 77  }
 0x1bc   : > { %1408 = vst [vmem:[#allocation1 + $0x11] ss:$2 sm:$0xff] %v1402_v4  ;;  %1354 = vrot.lane.b32.xlu0 %v1350_v19, %s6453_s7  ;;  %v1401_v44 = vmul.f32 %v5222_v30, %v4769_v57  ;;  %vm6459_vm7 = vcmask 883712  }
 0x1bd   : > { %v5217_v33 = vpop.permute.xlu2 %988  ;;  %v895_v51 = vpop.permute.xlu1 %894  ;;  %6591 = vst [vmem:[#allocation55_spill] sm:$0xff] %v5222_v30 }
 0x1be   : > { %v901_v4 = vsel %vm6489_vm2, %v895_v51, %v897_v45  ;;  %vm1730_vm2 = vcmask 662528  }
 0x1bf   : > { %v930_v32 = vpop.permute.xlu0 %929  ;;  %905 = vst [vmem:[#allocation3 + $0x2f0] sm:$0xf] %v901_v4 }
 0x1c0   : > { %v933_v18 = vsel %vm6471_vm4, %v5163_v17, %v930_v32 }
 0x1c1   : > { %937 = vst [vmem:[#allocation3 + $0x260] sm:$0xf0] %v933_v18  ;;  %v5241_v18 = vsel %vm1428_vm13, %v5213_v2, %v4873_v6  ;;  %vm1458_vm13 = vcmask 441344  }
 0x1c2   : > { %v1379_v23 = vld.sshfl [vmem:[#allocation1 + $0x8] sm:$0xff pattern:$0x75316420]  ;;  %v1378_v45 = vld.sshfl [vmem:[#allocation1] sm:$0xff pattern:$0x75316420] }
 0x1c3   : > { %v1411_v19 = vld.sshfl [vmem:[#allocation1 + $0x10] sm:$0xff pattern:$0x75316420]  ;;  %1352 = vrot.lane.b32.xlu2 %v1349_v25, %s6453_s7  ;;  %1356 = vrot.lane.b32.xlu1 %v1351_v61, %s6453_s7  ;;  %1406 = vst [vmem:[#allocation1 + $0x1] ss:$2 sm:$0xff] %v1401_v44  ;;  %v1463_v61 = vmul.f32 %v5231_v9, %v4771_v58  ;;  %v5252_v44 = vrot.slane %v4863_v3, 4 }
 0x1c4   : > { %1438 = vst [vmem:[#allocation1 + $0x10] ss:$2 sm:$0xff] %v1433_v62  ;;  %1383 = vrot.lane.b32.xlu0 %v1379_v23, %s6456_s29  ;;  %s6460_s7 = smov 76  }
 0x1c5   : > { %v5236_v51 = vpop.permute.xlu2 %1051  ;;  %v958_v32 = vpop.permute.xlu1 %957  ;;  %6592 = vst [vmem:[#allocation56_spill] sm:$0xff] %v5241_v18 }
 0x1c6   : > { %v962_v62 = vsel %vm6462_vm10, %v956_v47, %v958_v32  ;;  %v963_v23 = vsel %vm6462_vm10, %v958_v32, %v5180_v29  ;;  %v1432_v47 = vmul.f32 %v5241_v18, %v4769_v57  ;;  %vm6466_vm10 = vcmask 867328  }
 0x1c7   : > { %v926_v4 = vpop.permute.xlu0 %925  ;;  %966 = vst [vmem:[#allocation3 + $0x1c8] sm:$0xf] %v962_v62 }
 0x1c8   : > { %v932_v25 = vsel %vm6471_vm4, %v926_v4, %v5163_v17  ;;  %967 = vst [vmem:[#allocation3 + $0x80] sm:$0xf] %v963_v23  ;;  %v5270_v23 = vrot.slane %v4893_v22, 4  ;;  %vm6481_vm4 = vcmask 556032  }
 0x1c9   : > { %936 = vst [vmem:[#allocation3 + $0x2f0] sm:$0xf0] %v932_v25 }
 0x1ca   : > { %v1410_v6 = vld.sshfl [vmem:[#allocation1 + $0x8] sm:$0xff pattern:$0x75316420]  ;;  %v1409_v17 = vld.sshfl [vmem:[#allocation1] sm:$0xff pattern:$0x75316420] }
 0x1cb   : > { %v1441_v30 = vld.sshfl [vmem:[#allocation1 + $0x10] sm:$0xff pattern:$0x75316420]  ;;  %1381 = vrot.lane.b32.xlu2 %v1378_v45, %s6456_s29  ;;  %1385 = vrot.lane.b32.xlu1 %v1380_v34, %s6456_s29  ;;  %1436 = vst [vmem:[#allocation1] ss:$2 sm:$0xff] %v1432_v47  ;;  %v1494_v45 = vmul.f32 %v5252_v44, %v4771_v58  ;;  %v5265_v34 = vsel %vm1458_vm13, %v5231_v9, %v4897_v42  ;;  %s4382_s29 = smov 75  }
 0x1cc   : > { %1469 = vst [vmem:[#allocation1 + $0x11] ss:$2 sm:$0xff] %v1463_v61  ;;  %1414 = vrot.lane.b32.xlu0 %v1410_v6, %s6460_s7  ;;  %v1462_v25 = vmul.f32 %v5265_v34, %v4769_v57  ;;  %vm6465_vm13 = vcmask 875520  }
 0x1cd   : > { %v5257_v29 = vpop.permute.xlu2 %1079  ;;  %v991_v32 = vpop.permute.xlu1 %990  ;;  %6593 = vst [vmem:[#allocation57_spill] sm:$0xff] %v5265_v34  ;;  %v5291_v34 = vrot.slane %v4915_v59, 4 }
 0x1ce   : > { %v994_v62 = vsel %vm6459_vm7, %v5217_v33, %v991_v32 }
 0x1cf   : > { %v1021_v4 = vpop.permute.xlu0 %1020  ;;  %998 = vst [vmem:[#allocation3 + $0x80] sm:$0xf0] %v994_v62 }
 0x1d2   : > { %v1440_v47 = vld.sshfl [vmem:[#allocation1 + $0x8] sm:$0xff pattern:$0x75316420]  ;;  %v1439_v6 = vld.sshfl [vmem:[#allocation1] sm:$0xff pattern:$0x75316420] }
 0x1d3   : > { %v1472_v61 = vld.sshfl [vmem:[#allocation1 + $0x10] sm:$0xff pattern:$0x75316420]  ;;  %1412 = vrot.lane.b32.xlu2 %v1409_v17, %s6460_s7  ;;  %1416 = vrot.lane.b32.xlu1 %v1411_v19, %s6460_s7  ;;  %1467 = vst [vmem:[#allocation1 + $0x1] ss:$2 sm:$0xff] %v1462_v25  ;;  %v5282_v17 = vsel %vm6524_vm1, %v5252_v44, %v4863_v3  ;;  %v1523_v19 = vmul.f32 %v5270_v23, %v4771_v58  ;;  %s6467_s7 = smov 74  }
 0x1d4   : > { %1499 = vst [vmem:[#allocation1 + $0x10] ss:$2 sm:$0xff] %v1494_v45  ;;  %1444 = vrot.lane.b32.xlu0 %v1440_v47, %s4382_s29  ;;  %v5286_v47 = vld [vmem:[#allocation2] sm:$0xff] }
 0x1d5   : > { %v5275_v42 = vpop.permute.xlu2 %1112  ;;  %v987_v32 = vpop.permute.xlu1 %986  ;;  %6594 = vst [vmem:[#allocation58_spill] sm:$0xff] %v5282_v17  ;;  %v1493_v25 = vmul.f32 %v5286_v47, %v5282_v17 }
 0x1d6   : > { %v993_v57 = vsel %vm6459_vm7, %v987_v32, %v5217_v33  ;;  %vm1518_vm7 = vcmask 531456  }
 0x1d7   : > { %v1017_v62 = vpop.permute.xlu0 %1016  ;;  %997 = vst [vmem:[#allocation3 + $0x1c8] sm:$0xf0] %v993_v57 }
 0x1da   : > { %v1471_v3 = vld.sshfl [vmem:[#allocation1 + $0x8] sm:$0xff pattern:$0x75316420]  ;;  %v1470_v33 = vld.sshfl [vmem:[#allocation1] sm:$0xff pattern:$0x75316420] }
 0x1db   : > { %v1502_v45 = vld.sshfl [vmem:[#allocation1 + $0x10] sm:$0xff pattern:$0x75316420]  ;;  %1442 = vrot.lane.b32.xlu2 %v1439_v6, %s4382_s29  ;;  %1446 = vrot.lane.b32.xlu1 %v1441_v30, %s4382_s29  ;;  %1497 = vst [vmem:[#allocation1] ss:$2 sm:$0xff] %v1493_v25  ;;  %v5300_v6 = vsel %vm1518_vm7, %v5270_v23, %v4893_v22  ;;  %vm1549_vm7 = vcmask 539648  }
 0x1dc   : > { %1529 = vst [vmem:[#allocation1 + $0x11] ss:$2 sm:$0xff] %v1523_v19  ;;  %1475 = vrot.lane.b32.xlu0 %v1471_v3, %s6467_s7  ;;  %v5302_v30 = vld [vmem:[#allocation2 + $0x8] sm:$0xf] }
 0x1dd   : > { %v1109_v58 = vpop.permute.xlu2 %1108  ;;  %v1019_v32 = vpop.permute.xlu1 %1018  ;;  %6595 = vst [vmem:[#allocation59_spill] sm:$0xff] %v5300_v6  ;;  %v1554_v18 = vmul.f32 %v5302_v30, %v5291_v34 }
 0x1de   : > { %v1023_v57 = vsel %vm6465_vm13, %v1017_v62, %v1019_v32  ;;  %v1024_v19 = vsel %vm6465_vm13, %v1019_v32, %v1021_v4  ;;  %v5309_v62 = vrot.slane %v4891_v20, 4  ;;  %v1522_v4 = vmul.f32 %v5286_v47, %v5300_v6 }
 0x1df   : > { %v1050_v17 = vpop.permute.xlu0 %1049  ;;  %1027 = vst [vmem:[#allocation3 + $0x270] sm:$0xf] %v1023_v57  ;;  %vm1083_vm13 = vcmask 785408  }
 0x1e0   : > { %v1055_v3 = vsel %vm6466_vm10, %v1050_v17, %v5236_v51  ;;  %1028 = vst [vmem:[#allocation3 + $0x310] sm:$0xf] %v1024_v19 }
 0x1e1   : > { %1059 = vst [vmem:[#allocation3 + $0x310] sm:$0xf0] %v1055_v3  ;;  %v1584_v3 = vmul.f32 %v5302_v30, %v5309_v62 }
 0x1e2   : > { %v1501_v22 = vld.sshfl [vmem:[#allocation1 + $0x8] sm:$0xff pattern:$0x75316420]  ;;  %v1500_v32 = vld.sshfl [vmem:[#allocation1] sm:$0xff pattern:$0x75316420] }
 0x1e3   : > { %v1532_v25 = vld.sshfl [vmem:[#allocation1 + $0x10] sm:$0xff pattern:$0x75316420]  ;;  %1473 = vrot.lane.b32.xlu2 %v1470_v33, %s6467_s7  ;;  %1477 = vrot.lane.b32.xlu1 %v1472_v61, %s6467_s7  ;;  %1527 = vst [vmem:[#allocation1 + $0x1] ss:$2 sm:$0xff] %v1522_v4  ;;  %v5323_v33 = vsel %vm1549_vm7, %v5291_v34, %v4915_v59  ;;  %v5328_v4 = vrot.slane %v4913_v52, 4 }
 0x1e4   : > { %1559 = vst [vmem:[#allocation1 + $0x10] ss:$2 sm:$0xff] %v1554_v18  ;;  %1505 = vrot.lane.b32.xlu0 %v1501_v22, %s6472_s16  ;;  %vm1579_vm7 = vcmask 547840   ;;  %s6475_s7 = smov 63  }
 0x1e5   : > { %v5316_v51 = vpop.permute.xlu2 %1140  ;;  %v1048_v18 = vpop.permute.xlu1 %1047  ;;  %6596 = vst [vmem:[#allocation60_spill] sm:$0xff] %v5323_v33 }
 0x1e6   : > { %v1054_v19 = vsel %vm6466_vm10, %v1048_v18, %v1050_v17  ;;  %v1553_v17 = vmul.f32 %v5286_v47, %v5323_v33  ;;  %vm6474_vm10 = vcmask 777216   ;;  %v5340_v33 = vsel %vm1579_vm7, %v5309_v62, %v4891_v20 }
 0x1e7   : > { %v1082_v57 = vpop.permute.xlu0 %1081  ;;  %1058 = vst [vmem:[#allocation3 + $0x270] sm:$0xf0] %v1054_v19  ;;  %vm6478_vm7 = vcmask 769024  }
 0x1e8   : > { %v1085_v61 = vsel %vm1083_vm13, %v5257_v29, %v1082_v57  ;;  %6597 = vst [vmem:[#allocation61_spill] sm:$0xff] %v5340_v33 }
 0x1e9   : > { %1089 = vst [vmem:[#allocation3 + $0x258] sm:$0xf] %v1085_v61 }
 0x1ea   : > { %v1531_v59 = vld.sshfl [vmem:[#allocation1 + $0x8] sm:$0xff pattern:$0x75316420]  ;;  %v1530_v18 = vld.sshfl [vmem:[#allocation1] sm:$0xff pattern:$0x75316420] }
 0x1eb   : > { %v1562_v22 = vld.sshfl [vmem:[#allocation1 + $0x10] sm:$0xff pattern:$0x75316420]  ;;  %1503 = vrot.lane.b32.xlu2 %v1500_v32, %s6472_s16  ;;  %1507 = vrot.lane.b32.xlu1 %v1502_v45, %s6472_s16  ;;  %1557 = vst [vmem:[#allocation1] ss:$2 sm:$0xff] %v1553_v17  ;;  %v1615_v45 = vmul.f32 %v5302_v30, %v5328_v4  ;;  %v5351_v17 = vrot.slane %v4933_v13, 4 }
 0x1ec   : > { %1590 = vst [vmem:[#allocation1 + $0x11] ss:$2 sm:$0xff] %v1584_v3  ;;  %1535 = vrot.lane.b32.xlu0 %v1531_v59, %s6475_s7  ;;  %s6479_s16 = smov 62  }
 0x1ed   : > { %v5335_v57 = vpop.permute.xlu2 %1203  ;;  %v1111_v19 = vpop.permute.xlu1 %1110  ;;  %6598 = vst [vmem:[#allocation62_spill] sm:$0xff] %v5351_v17 }
 0x1ee   : > { %v1115_v61 = vsel %vm6474_vm10, %v1109_v58, %v1111_v19  ;;  %v1116_v59 = vsel %vm6474_vm10, %v1111_v19, %v5275_v42  ;;  %v1583_v58 = vmul.f32 %v5286_v47, %v5340_v33  ;;  %vm1640_vm10 = vcmask 564224  }
 0x1ef   : > { %v1078_v3 = vpop.permute.xlu0 %1077  ;;  %1119 = vst [vmem:[#allocation3 + $0x318] sm:$0xf0] %v1115_v61 }
 0x1f0   : > { %v1084_v32 = vsel %vm1083_vm13, %v1078_v3, %v5257_v29  ;;  %1120 = vst [vmem:[#allocation3 + $0x258] sm:$0xf0] %v1116_v59  ;;  %v5370_v59 = vrot.slane %v4917_v60, 4 }
 0x1f1   : > { %1088 = vst [vmem:[#allocation3 + $0x318] sm:$0xf] %v1084_v32 }
 0x1f2   : > { %v1561_v20 = vld.sshfl [vmem:[#allocation1 + $0x8] sm:$0xff pattern:$0x75316420]  ;;  %v1560_v29 = vld.sshfl [vmem:[#allocation1] sm:$0xff pattern:$0x75316420] }
 0x1f3   : > { %v1593_v6 = vld.sshfl [vmem:[#allocation1 + $0x10] sm:$0xff pattern:$0x75316420]  ;;  %1533 = vrot.lane.b32.xlu2 %v1530_v18, %s6475_s7  ;;  %1537 = vrot.lane.b32.xlu1 %v1532_v25, %s6475_s7  ;;  %1588 = vst [vmem:[#allocation1 + $0x1] ss:$2 sm:$0xff] %v1583_v58  ;;  %v5363_v18 = vsel %vm6481_vm4, %v5328_v4, %v4913_v52  ;;  %v1645_v25 = vmul.f32 %v5302_v30, %v5351_v17  ;;  %s6485_s7 = smov 61  }
 0x1f4   : > { %1620 = vst [vmem:[#allocation1 + $0x10] ss:$2 sm:$0xff] %v1615_v45  ;;  %1565 = vrot.lane.b32.xlu0 %v1561_v20, %s6479_s16  ;;  %v1614_v32 = vmul.f32 %v5286_v47, %v5363_v18  ;;  %vm6488_vm4 = vcmask 752640  }
 0x1f5   : > { %v5356_v42 = vpop.permute.xlu2 %1232  ;;  %v1143_v19 = vpop.permute.xlu1 %1142  ;;  %6599 = vst [vmem:[#allocation63_spill] sm:$0xff] %v5363_v18  ;;  %v5381_v18 = vsel %vm1640_vm10, %v5351_v17, %v4933_v13  ;;  %vm1671_vm10 = vcmask 572416  }
 0x1f6   : > { %v1146_v61 = vsel %vm6478_vm7, %v5316_v51, %v1143_v19  ;;  %6600 = vst [vmem:[#allocation64_spill] sm:$0xff] %v5381_v18 }
 0x1f7   : > { %v1174_v3 = vpop.permute.xlu0 %1173  ;;  %1150 = vst [vmem:[#allocation3 + $0x10] sm:$0xf] %v1146_v61 }
 0x1fa   : > { %v1592_v58 = vld.sshfl [vmem:[#allocation1 + $0x8] sm:$0xff pattern:$0x75316420]  ;;  %v1591_v20 = vld.sshfl [vmem:[#allocation1] sm:$0xff pattern:$0x75316420] }
 0x1fb   : > { %v1623_v45 = vld.sshfl [vmem:[#allocation1 + $0x10] sm:$0xff pattern:$0x75316420]  ;;  %1563 = vrot.lane.b32.xlu2 %v1560_v29, %s6479_s16  ;;  %1567 = vrot.lane.b32.xlu1 %v1562_v22, %s6479_s16  ;;  %1618 = vst [vmem:[#allocation1] ss:$2 sm:$0xff] %v1614_v32  ;;  %v1676_v22 = vmul.f32 %v5302_v30, %v5370_v59  ;;  %v5388_v32 = vrot.slane %v4941_v36, 4 }
 0x1fc   : > { %1651 = vst [vmem:[#allocation1 + $0x11] ss:$2 sm:$0xff] %v1645_v25  ;;  %1596 = vrot.lane.b32.xlu0 %v1592_v58, %s6485_s7  ;;  %v1644_v58 = vmul.f32 %v5286_v47, %v5381_v18  ;;  %s6490_s16 = smov 60  }
 0x1fd   : > { %v5375_v52 = vpop.permute.xlu2 %1264  ;;  %v1139_v19 = vpop.permute.xlu1 %1138 }
 0x1fe   : > { %v1145_v61 = vsel %vm6478_vm7, %v1139_v19, %v5316_v51  ;;  %vm6487_vm7 = vcmask 760832  }
 0x1ff   : > { %v1170_v25 = vpop.permute.xlu0 %1169  ;;  %1149 = vst [vmem:[#allocation3 + $0x300] sm:$0xf] %v1145_v61 }
 0x202   : > { %v1622_v51 = vld.sshfl [vmem:[#allocation1 + $0x8] sm:$0xff pattern:$0x75316420]  ;;  %v1621_v13 = vld.sshfl [vmem:[#allocation1] sm:$0xff pattern:$0x75316420] }
 0x203   : > { %v1654_v29 = vld.sshfl [vmem:[#allocation1 + $0x10] sm:$0xff pattern:$0x75316420]  ;;  %1594 = vrot.lane.b32.xlu2 %v1591_v20, %s6485_s7  ;;  %1598 = vrot.lane.b32.xlu1 %v1593_v6, %s6485_s7  ;;  %1649 = vst [vmem:[#allocation1 + $0x1] ss:$2 sm:$0xff] %v1644_v58  ;;  %v5397_v20 = vsel %vm1671_vm10, %v5370_v59, %v4917_v60  ;;  %v1705_v6 = vmul.f32 %v5302_v30, %v5388_v32  ;;  %vm6497_vm10 = vcmask 654336  }
 0x204   : > { %1681 = vst [vmem:[#allocation1 + $0x10] ss:$2 sm:$0xff] %v1676_v22  ;;  %1626 = vrot.lane.b32.xlu0 %v1622_v51, %s6490_s16  ;;  %s6494_s7 = smov 59  }
 0x205   : > { %v1261_v19 = vpop.permute.xlu2 %1260  ;;  %v1172_v61 = vpop.permute.xlu1 %1171 }
 0x206   : > { %v1176_v22 = vsel %vm6487_vm7, %v1170_v25, %v1172_v61  ;;  %v1177_v18 = vsel %vm6487_vm7, %v1172_v61, %v1174_v3  ;;  %v1675_v25 = vmul.f32 %v5286_v47, %v5397_v20  ;;  %v5406_v3 = vrot.slane %v4967_v7, 4 }
 0x207   : > { %v1202_v33 = vpop.permute.xlu0 %1201  ;;  %1180 = vst [vmem:[#allocation3 + $0x300] sm:$0xf0] %v1176_v22  ;;  %vm1236_vm7 = vcmask 744448  }
 0x208   : > { %v1207_v51 = vsel %vm6488_vm4, %v1202_v33, %v5335_v57  ;;  %1181 = vst [vmem:[#allocation3 + $0x10] sm:$0xf0] %v1177_v18 }
 0x209   : > { %1211 = vst [vmem:[#allocation3 + $0x278] sm:$0xf] %v1207_v51 }
 0x20a   : > { %v1653_v60 = vld.sshfl [vmem:[#allocation1 + $0x8] sm:$0xff pattern:$0x75316420]  ;;  %v1652_v58 = vld.sshfl [vmem:[#allocation1] sm:$0xff pattern:$0x75316420] }
 0x20b   : > { %v1684_v17 = vld.sshfl [vmem:[#allocation1 + $0x10] sm:$0xff pattern:$0x75316420]  ;;  %1624 = vrot.lane.b32.xlu2 %v1621_v13, %s6490_s16  ;;  %1628 = vrot.lane.b32.xlu1 %v1623_v45, %s6490_s16  ;;  %1679 = vst [vmem:[#allocation1] ss:$2 sm:$0xff] %v1675_v25  ;;  %v5417_v13 = vsel %vm6497_vm10, %v5388_v32, %v4941_v36  ;;  %v1735_v45 = vmul.f32 %v5302_v30, %v5406_v3  ;;  %s4389_s16 = smov 58  }
 0x20c   : > { %1711 = vst [vmem:[#allocation1 + $0x11] ss:$2 sm:$0xff] %v1705_v6  ;;  %1657 = vrot.lane.b32.xlu0 %v1653_v60, %s6494_s7  ;;  %v1704_v25 = vmul.f32 %v5286_v47, %v5417_v13 }
 0x20d   : > { %v5411_v57 = vpop.permute.xlu2 %1293  ;;  %v1200_v18 = vpop.permute.xlu1 %1199  ;;  %6601 = vst [vmem:[#allocation65_spill] sm:$0xff] %v5417_v13 }
 0x20e   : > { %v1206_v22 = vsel %vm6488_vm4, %v1200_v18, %v1202_v33  ;;  %v5426_v33 = vrot.slane %v4935_v12, 4  ;;  %vm6493_vm4 = vcmask 736256  }
 0x20f   : > { %v1235_v61 = vpop.permute.xlu0 %1234  ;;  %1210 = vst [vmem:[#allocation3 + $0x280] sm:$0xf] %v1206_v22 }
 0x210   : > { %v1238_v6 = vsel %vm1236_vm7, %v5356_v42, %v1235_v61 }
 0x211   : > { %1242 = vst [vmem:[#allocation3 + $0x278] sm:$0xf0] %v1238_v6  ;;  %v1765_v6 = vmul.f32 %v5302_v30, %v5426_v33 }
 0x212   : > { %v1683_v36 = vld.sshfl [vmem:[#allocation1 + $0x8] sm:$0xff pattern:$0x75316420]  ;;  %v1682_v60 = vld.sshfl [vmem:[#allocation1] sm:$0xff pattern:$0x75316420] }
 0x213   : > { %v1714_v51 = vld.sshfl [vmem:[#allocation1 + $0x10] sm:$0xff pattern:$0x75316420]  ;;  %1655 = vrot.lane.b32.xlu2 %v1652_v58, %s6494_s7  ;;  %1659 = vrot.lane.b32.xlu1 %v1654_v29, %s6494_s7  ;;  %1709 = vst [vmem:[#allocation1 + $0x1] ss:$2 sm:$0xff] %v1704_v25  ;;  %v5436_v58 = vsel %vm1730_vm2, %v5406_v3, %v4967_v7  ;;  %v5445_v25 = vrot.slane %v4964_v21, 4 }
 0x214   : > { %1740 = vst [vmem:[#allocation1 + $0x10] ss:$2 sm:$0xff] %v1735_v45  ;;  %1687 = vrot.lane.b32.xlu0 %v1683_v36, %s4389_s16  ;;  %vm1760_vm2 = vcmask 670720   ;;  %s6502_s7 = smov 47  }
 0x215   : > { %v1322_v18 = vpop.permute.xlu2 %1321  ;;  %v1263_v61 = vpop.permute.xlu1 %1262 }
 0x216   : > { %v1267_v45 = vsel %vm6493_vm4, %v1261_v19, %v1263_v61  ;;  %v1268_v13 = vsel %vm6493_vm4, %v1263_v61, %v5375_v52  ;;  %v1734_v19 = vmul.f32 %v5286_v47, %v5436_v58  ;;  %vm6501_vm4 = vcmask 646144  }
 0x217   : > { %v1231_v22 = vpop.permute.xlu0 %1230  ;;  %1271 = vst [vmem:[#allocation3 + $0x1b0] sm:$0xf] %v1267_v45  ;;  %v5454_v45 = vsel %vm1760_vm2, %v5426_v33, %v4935_v12  ;;  %vm1791_vm2 = vcmask 678912  }
 0x218   : > { %v1237_v29 = vsel %vm1236_vm7, %v1231_v22, %v5356_v42  ;;  %1272 = vst [vmem:[#allocation3 + $0x200] sm:$0xf] %v1268_v13  ;;  %v1796_v13 = vmul.f32 %v5302_v30, %v5445_v25 }
 0x219   : > { %1241 = vst [vmem:[#allocation3 + $0x280] sm:$0xf0] %v1237_v29 }
 0x21a   : > { %v1713_v7 = vld.sshfl [vmem:[#allocation1 + $0x8] sm:$0xff pattern:$0x75316420]  ;;  %v1712_v42 = vld.sshfl [vmem:[#allocation1] sm:$0xff pattern:$0x75316420] }
 0x21b   : > { %v1743_v36 = vld.sshfl [vmem:[#allocation1 + $0x10] sm:$0xff pattern:$0x75316420]  ;;  %1685 = vrot.lane.b32.xlu2 %v1682_v60, %s4389_s16  ;;  %1689 = vrot.lane.b32.xlu1 %v1684_v17, %s4389_s16  ;;  %1738 = vst [vmem:[#allocation1] ss:$2 sm:$0xff] %v1734_v19  ;;  %v1764_v60 = vmul.f32 %v5286_v47, %v5454_v45 }
 0x21c   : > { %1771 = vst [vmem:[#allocation1 + $0x11] ss:$2 sm:$0xff] %v1765_v6  ;;  %1717 = vrot.lane.b32.xlu0 %v1713_v7, %s6498_s17  ;;  %v5461_v6 = vrot.slane %v4987_v49, 4 }
 0x21d   : > { %v1353_v52 = vpop.permute.xlu2 %1352  ;;  %v1296_v61 = vpop.permute.xlu1 %1295  ;;  %6602 = vst [vmem:[#allocation66_spill] sm:$0xff] %v5454_v45 }
 0x21e   : > { %v1299_v22 = vsel %vm6497_vm10, %v5411_v57, %v1296_v61 }
 0x21f   : > { %1303 = vst [vmem:[#allocation3 + $0x200] sm:$0xf0] %v1299_v22 }
 0x222   : > { %v1742_v29 = vld.sshfl [vmem:[#allocation1 + $0x8] sm:$0xff pattern:$0x75316420]  ;;  %v1741_v12 = vld.sshfl [vmem:[#allocation1] sm:$0xff pattern:$0x75316420] }
 0x223   : > { %v1774_v17 = vld.sshfl [vmem:[#allocation1 + $0x10] sm:$0xff pattern:$0x75316420]  ;;  %1715 = vrot.lane.b32.xlu2 %v1712_v42, %s6498_s17  ;;  %1719 = vrot.lane.b32.xlu1 %v1714_v51, %s6498_s17  ;;  %1769 = vst [vmem:[#allocation1 + $0x1] ss:$2 sm:$0xff] %v1764_v60  ;;  %v5471_v42 = vsel %vm1791_vm2, %v5445_v25, %v4964_v21  ;;  %v1826_v51 = vmul.f32 %v5302_v30, %v5461_v6  ;;  %v5476_v60 = vrot.slane %v4962_v28, 4 }
 0x224   : > { %1801 = vst [vmem:[#allocation1 + $0x10] ss:$2 sm:$0xff] %v1796_v13  ;;  %1746 = vrot.lane.b32.xlu0 %v1742_v29, %s6502_s7  ;;  %v1795_v29 = vmul.f32 %v5286_v47, %v5471_v42  ;;  %vm1821_vm2 = vcmask 687104   ;;  %s6505_s17 = smov 46  }
 0x225   : > { %v1382_v19 = vpop.permute.xlu2 %1381  ;;  %v1292_v7 = vpop.permute.xlu1 %1291  ;;  %6603 = vst [vmem:[#allocation67_spill] sm:$0xff] %v5471_v42 }
 0x226   : > { %v1324_v61 = vpop.permute.xlu0 %1323  ;;  %v1298_v22 = vsel %vm6497_vm10, %v1292_v7, %v5411_v57  ;;  %vm6507_vm10 = vcmask 637952  }
 0x227   : > { %v1328_v13 = vsel %vm6501_vm4, %v1322_v18, %v1324_v61  ;;  %1302 = vst [vmem:[#allocation3 + $0x1b0] sm:$0xf0] %v1298_v22 }
 0x228   : > { %1332 = vst [vmem:[#allocation3 + $0x100] sm:$0xf] %v1328_v13 }
 0x22a   : > { %v1773_v21 = vld.sshfl [vmem:[#allocation1 + $0x8] sm:$0xff pattern:$0x75316420]  ;;  %v1772_v57 = vld.sshfl [vmem:[#allocation1] sm:$0xff pattern:$0x75316420] }
 0x22b   : > { %v1804_v45 = vld.sshfl [vmem:[#allocation1 + $0x10] sm:$0xff pattern:$0x75316420]  ;;  %1744 = vrot.lane.b32.xlu2 %v1741_v12, %s6502_s7  ;;  %1748 = vrot.lane.b32.xlu1 %v1743_v36, %s6502_s7  ;;  %1799 = vst [vmem:[#allocation1] ss:$2 sm:$0xff] %v1795_v29  ;;  %v1857_v12 = vmul.f32 %v5302_v30, %v5476_v60  ;;  %v5489_v36 = vsel %vm1821_vm2, %v5461_v6, %v4987_v49  ;;  %s6509_s7 = smov 45  }
 0x22c   : > { %1832 = vst [vmem:[#allocation1 + $0x11] ss:$2 sm:$0xff] %v1826_v51  ;;  %1777 = vrot.lane.b32.xlu0 %v1773_v21, %s6505_s17  ;;  %v5492_v21 = vrot.slane %v4985_v35, 4  ;;  %v1825_v29 = vmul.f32 %v5286_v47, %v5489_v36  ;;  %vm6514_vm2 = vcmask 629760  }
 0x22d   : > { %v1413_v18 = vpop.permute.xlu2 %1412  ;;  %v1326_v7 = vpop.permute.xlu1 %1325  ;;  %6604 = vst [vmem:[#allocation68_spill] sm:$0xff] %v5489_v36 }
 0x22e   : > { %v1355_v22 = vpop.permute.xlu0 %1354  ;;  %v1329_v13 = vsel %vm6501_vm4, %v1324_v61, %v1326_v7  ;;  %vm1852_vm4 = vcmask 695296  }
 0x22f   : > { %v1359_v51 = vsel %vm6507_vm10, %v1353_v52, %v1355_v22  ;;  %1333 = vst [vmem:[#allocation3 + $0x170] sm:$0xf] %v1329_v13 }
 0x230   : > { %1363 = vst [vmem:[#allocation3 + $0x100] sm:$0xf0] %v1359_v51 }
 0x232   : > { %v1803_v52 = vld.sshfl [vmem:[#allocation1 + $0x8] sm:$0xff pattern:$0x75316420]  ;;  %v1802_v61 = vld.sshfl [vmem:[#allocation1] sm:$0xff pattern:$0x75316420] }
 0x233   : > { %v1835_v42 = vld.sshfl [vmem:[#allocation1 + $0x10] sm:$0xff pattern:$0x75316420]  ;;  %1775 = vrot.lane.b32.xlu2 %v1772_v57, %s6505_s17  ;;  %1779 = vrot.lane.b32.xlu1 %v1774_v17, %s6505_s17  ;;  %1830 = vst [vmem:[#allocation1 + $0x1] ss:$2 sm:$0xff] %v1825_v29  ;;  %v1887_v17 = vmul.f32 %v5302_v30, %v5492_v21  ;;  %s6512_s17 = smov 44  }
 0x234   : > { %1862 = vst [vmem:[#allocation1 + $0x10] ss:$2 sm:$0xff] %v1857_v12  ;;  %1807 = vrot.lane.b32.xlu0 %v1803_v52, %s6509_s7  ;;  %v5502_v12 = vsel %vm1852_vm4, %v5476_v60, %v4962_v28  ;;  %v5510_v52 = vrot.slane %v5007_v8, 4  ;;  %vm1882_vm4 = vcmask 703488  }
 0x235   : > { %v1443_v49 = vpop.permute.xlu2 %1442  ;;  %v1357_v7 = vpop.permute.xlu1 %1356  ;;  %6605 = vst [vmem:[#allocation69_spill] sm:$0xff] %v5502_v12  ;;  %v1856_v29 = vmul.f32 %v5286_v47, %v5502_v12 }
 0x236   : > { %v1360_v13 = vsel %vm6507_vm10, %v1355_v22, %v1357_v7  ;;  %v1384_v51 = vpop.permute.xlu0 %1383  ;;  %vm6511_vm10 = vcmask 621568  }
 0x237   : > { %1364 = vst [vmem:[#allocation3 + $0x170] sm:$0xf0] %v1360_v13  ;;  %v1388_v57 = vsel %vm6514_vm2, %v1382_v19, %v1384_v51 }
 0x238   : > { %1392 = vst [vmem:[#allocation3 + $0x180] sm:$0xf] %v1388_v57  ;;  %v5518_v57 = vsel %vm1882_vm4, %v5492_v21, %v4985_v35  ;;  %vm1448_vm4 = vcmask 613376  }
 0x239   : > { %6606 = vst [vmem:[#allocation70_spill] sm:$0xff] %v5518_v57 }
 0x23a   : > { %v1834_v28 = vld.sshfl [vmem:[#allocation1 + $0x8] sm:$0xff pattern:$0x75316420]  ;;  %v1833_v22 = vld.sshfl [vmem:[#allocation1] sm:$0xff pattern:$0x75316420] }
 0x23b   : > { %v1865_v36 = vld.sshfl [vmem:[#allocation1 + $0x10] sm:$0xff pattern:$0x75316420]  ;;  %1805 = vrot.lane.b32.xlu2 %v1802_v61, %s6509_s7  ;;  %1809 = vrot.lane.b32.xlu1 %v1804_v45, %s6509_s7  ;;  %1860 = vst [vmem:[#allocation1] ss:$2 sm:$0xff] %v1856_v29  ;;  %v1917_v45 = vmul.f32 %v5302_v30, %v5510_v52  ;;  %v1886_v29 = vmul.f32 %v5286_v47, %v5518_v57  ;;  %s4394_s7 = smov 43  }
 0x23c   : > { %1893 = vst [vmem:[#allocation1 + $0x11] ss:$2 sm:$0xff] %v1887_v17  ;;  %1838 = vrot.lane.b32.xlu0 %v1834_v28, %s6512_s17  ;;  %v5526_v28 = vrot.slane %v4991_v1, 4 }
 0x23d   : > { %v1474_v19 = vpop.permute.xlu2 %1473  ;;  %v1386_v7 = vpop.permute.xlu1 %1385 }
 0x23e   : > { %v1389_v13 = vsel %vm6514_vm2, %v1384_v51, %v1386_v7  ;;  %v1415_v17 = vpop.permute.xlu0 %1414  ;;  %vm6520_vm2 = vcmask 605184  }
 0x23f   : > { %1393 = vst [vmem:[#allocation3 + $0x220] sm:$0xf] %v1389_v13  ;;  %v1419_v61 = vsel %vm6511_vm10, %v1413_v18, %v1415_v17 }
 0x240   : > { %1423 = vst [vmem:[#allocation3 + $0x180] sm:$0xf0] %v1419_v61  ;;  %v5535_v61 = vsel %vm1083_vm13, %v5510_v52, %v5007_v8 }
 0x241   : > { %6607 = vst [vmem:[#allocation71_spill] sm:$0xff] %v5535_v61 }
 0x242   : > { %v1864_v35 = vld.sshfl [vmem:[#allocation1 + $0x8] sm:$0xff pattern:$0x75316420]  ;;  %v1863_v51 = vld.sshfl [vmem:[#allocation1] sm:$0xff pattern:$0x75316420] }
 0x243   : > { %v1896_v12 = vld.sshfl [vmem:[#allocation1 + $0x10] sm:$0xff pattern:$0x75316420]  ;;  %1836 = vrot.lane.b32.xlu2 %v1833_v22, %s6512_s17  ;;  %1840 = vrot.lane.b32.xlu1 %v1835_v42, %s6512_s17  ;;  %1891 = vst [vmem:[#allocation1 + $0x1] ss:$2 sm:$0xff] %v1886_v29  ;;  %v1946_v42 = vmul.f32 %v5302_v30, %v5526_v28  ;;  %v1916_v29 = vmul.f32 %v5286_v47, %v5535_v61  ;;  %s6518_s17 = smov 42  }
 0x244   : > { %1922 = vst [vmem:[#allocation1 + $0x10] ss:$2 sm:$0xff] %v1917_v45  ;;  %1868 = vrot.lane.b32.xlu0 %v1864_v35, %s4394_s7 }
 0x245   : > { %v1504_v18 = vpop.permute.xlu2 %1503  ;;  %v1417_v7 = vpop.permute.xlu1 %1416 }
 0x246   : > { %v1420_v13 = vsel %vm6511_vm10, %v1415_v17, %v1417_v7  ;;  %v1445_v45 = vpop.permute.xlu0 %1444  ;;  %v5543_v17 = vrot.slane %v5011_v48, 4  ;;  %vm1941_vm10 = vcmask 793600  }
 0x247   : > { %1424 = vst [vmem:[#allocation3 + $0x220] sm:$0xf0] %v1420_v13  ;;  %v1449_v22 = vsel %vm1448_vm4, %v1443_v49, %v1445_v45  ;;  %v5551_v61 = vsel %vm1941_vm10, %v5526_v28, %v4991_v1  ;;  %vm1972_vm10 = vcmask 801792  }
 0x248   : > { %1453 = vst [vmem:[#allocation3 + $0x78] sm:$0xf] %v1449_v22 }
 0x249   : > { %6608 = vst [vmem:[#allocation72_spill] sm:$0xff] %v5551_v61 }
 0x24a   : > { %v1895_v8 = vld.sshfl [vmem:[#allocation1 + $0x8] sm:$0xff pattern:$0x75316420]  ;;  %v1894_v7 = vld.sshfl [vmem:[#allocation1] sm:$0xff pattern:$0x75316420] }
 0x24b   : > { %v1925_v35 = vld.sshfl [vmem:[#allocation1 + $0x10] sm:$0xff pattern:$0x75316420]  ;;  %1866 = vrot.lane.b32.xlu2 %v1863_v51, %s4394_s7  ;;  %1870 = vrot.lane.b32.xlu1 %v1865_v36, %s4394_s7  ;;  %1920 = vst [vmem:[#allocation1] ss:$2 sm:$0xff] %v1916_v29  ;;  %v1977_v36 = vmul.f32 %v5302_v30, %v5543_v17  ;;  %v1945_v29 = vmul.f32 %v5286_v47, %v5551_v61 }
 0x24c   : > { %1952 = vst [vmem:[#allocation1 + $0x11] ss:$2 sm:$0xff] %v1946_v42  ;;  %1899 = vrot.lane.b32.xlu0 %v1895_v8, %s6518_s17  ;;  %v5559_v8 = vrot.slane %v5035_v41, 4 }
 0x24d   : > { %v1534_v49 = vpop.permute.xlu2 %1533  ;;  %v1447_v13 = vpop.permute.xlu1 %1446 }
 0x24e   : > { %v1450_v42 = vsel %vm1448_vm4, %v1445_v45, %v1447_v13  ;;  %v1476_v22 = vpop.permute.xlu0 %1475 }
 0x24f   : > { %1454 = vst [vmem:[#allocation3 + $0x158] sm:$0xf] %v1450_v42  ;;  %v1480_v51 = vsel %vm6520_vm2, %v1474_v19, %v1476_v22 }
 0x250   : > { %1484 = vst [vmem:[#allocation3 + $0x78] sm:$0xf0] %v1480_v51  ;;  %v5567_v51 = vsel %vm1972_vm10, %v5543_v17, %v5011_v48  ;;  %vm2002_vm10 = vcmask 809984  }
 0x251   : > { %6609 = vst [vmem:[#allocation73_spill] sm:$0xff] %v5567_v51 }
 0x252   : > { %v1924_v1 = vld.sshfl [vmem:[#allocation1 + $0x8] sm:$0xff pattern:$0x75316420]  ;;  %v1923_v45 = vld.sshfl [vmem:[#allocation1] sm:$0xff pattern:$0x75316420] }
 0x253   : > { %v1955_v57 = vld.sshfl [vmem:[#allocation1 + $0x10] sm:$0xff pattern:$0x75316420]  ;;  %1897 = vrot.lane.b32.xlu2 %v1894_v7, %s6518_s17  ;;  %1901 = vrot.lane.b32.xlu1 %v1896_v12, %s6518_s17  ;;  %1950 = vst [vmem:[#allocation1 + $0x1] ss:$2 sm:$0xff] %v1945_v29  ;;  %v2007_v7 = vmul.f32 %v5302_v30, %v5559_v8  ;;  %v1976_v29 = vmul.f32 %v5286_v47, %v5567_v51  ;;  %s6526_s17 = smov 31  }
 0x254   : > { %1982 = vst [vmem:[#allocation1 + $0x10] ss:$2 sm:$0xff] %v1977_v36  ;;  %1928 = vrot.lane.b32.xlu0 %v1924_v1, %s6522_s11  ;;  %v5575_v1 = vrot.slane %v5009_v31, 4 }
 0x255   : > { %v1564_v13 = vpop.permute.xlu2 %1563  ;;  %v1478_v19 = vpop.permute.xlu1 %1477 }
 0x256   : > { %v1481_v42 = vsel %vm6520_vm2, %v1476_v22, %v1478_v19  ;;  %v1506_v36 = vpop.permute.xlu0 %1505  ;;  %vm6528_vm2 = vcmask 515072  }
 0x257   : > { %1485 = vst [vmem:[#allocation3 + $0x158] sm:$0xf0] %v1481_v42  ;;  %v1509_v12 = vsel %vm6524_vm1, %v1504_v18, %v1506_v36 }
 0x258   : > { %1513 = vst [vmem:[#allocation3 + $0x1d0] sm:$0xf] %v1509_v12  ;;  %v2038_v12 = vmul.f32 %v5302_v30, %v5575_v1 }
 0x25a   : > { %v1954_v48 = vld.sshfl [vmem:[#allocation1 + $0x8] sm:$0xff pattern:$0x75316420]  ;;  %v1953_v22 = vld.sshfl [vmem:[#allocation1] sm:$0xff pattern:$0x75316420] }
 0x25b   : > { %v1985_v61 = vld.sshfl [vmem:[#allocation1 + $0x10] sm:$0xff pattern:$0x75316420]  ;;  %1926 = vrot.lane.b32.xlu2 %v1923_v45, %s6522_s11  ;;  %1930 = vrot.lane.b32.xlu1 %v1925_v35, %s6522_s11  ;;  %1980 = vst [vmem:[#allocation1] ss:$2 sm:$0xff] %v1976_v29  ;;  %v5585_v45 = vsel %vm2002_vm10, %v5559_v8, %v5035_v41  ;;  %vm2033_vm10 = vcmask 818176  }
 0x25c   : > { %2013 = vst [vmem:[#allocation1 + $0x11] ss:$2 sm:$0xff] %v2007_v7  ;;  %1958 = vrot.lane.b32.xlu0 %v1954_v48, %s6526_s17  ;;  %v2006_v29 = vmul.f32 %v5286_v47, %v5585_v45  ;;  %v5591_v48 = vrot.slane %v5028_v43, 4  ;;  %s6530_s11 = smov 30  }
 0x25d   : > { %v1595_v18 = vpop.permute.xlu2 %1594  ;;  %v1508_v19 = vpop.permute.xlu1 %1507  ;;  %6610 = vst [vmem:[#allocation74_spill] sm:$0xff] %v5585_v45 }
 0x25e   : > { %v1510_v42 = vsel %vm6524_vm1, %v1506_v36, %v1508_v19  ;;  %v1536_v7 = vpop.permute.xlu0 %1535  ;;  %vm6532_vm1 = vcmask 506880  }
 0x25f   : > { %1514 = vst [vmem:[#allocation3 + $0x190] sm:$0xf] %v1510_v42  ;;  %v1540_v35 = vsel %vm6528_vm2, %v1534_v49, %v1536_v7 }
 0x260   : > { %1544 = vst [vmem:[#allocation3 + $0x1d0] sm:$0xf0] %v1540_v35  ;;  %v5599_v35 = vsel %vm2033_vm10, %v5575_v1, %v5009_v31  ;;  %vm2063_vm10 = vcmask 826368  }
 0x261   : > { %6611 = vst [vmem:[#allocation75_spill] sm:$0xff] %v5599_v35 }
 0x262   : > { %v1984_v36 = vld.sshfl [vmem:[#allocation1 + $0x8] sm:$0xff pattern:$0x75316420]  ;;  %v1983_v19 = vld.sshfl [vmem:[#allocation1] sm:$0xff pattern:$0x75316420] }
 0x263   : > { %v2016_v51 = vld.sshfl [vmem:[#allocation1 + $0x10] sm:$0xff pattern:$0x75316420]  ;;  %1956 = vrot.lane.b32.xlu2 %v1953_v22, %s6526_s17  ;;  %1960 = vrot.lane.b32.xlu1 %v1955_v57, %s6526_s17  ;;  %2011 = vst [vmem:[#allocation1 + $0x1] ss:$2 sm:$0xff] %v2006_v29  ;;  %v2068_v57 = vmul.f32 %v5302_v30, %v5591_v48  ;;  %v2037_v29 = vmul.f32 %v5286_v47, %v5599_v35  ;;  %s6533_s17 = smov 29  }
 0x264   : > { %2043 = vst [vmem:[#allocation1 + $0x10] ss:$2 sm:$0xff] %v2038_v12  ;;  %1988 = vrot.lane.b32.xlu0 %v1984_v36, %s6530_s11  ;;  %v5607_v36 = vrot.slane %v5050_v39, 4 }
 0x265   : > { %v1625_v41 = vpop.permute.xlu2 %1624  ;;  %v1538_v49 = vpop.permute.xlu1 %1537 }
 0x266   : > { %v1541_v42 = vsel %vm6528_vm2, %v1536_v7, %v1538_v49  ;;  %v1566_v12 = vpop.permute.xlu0 %1565  ;;  %vm1600_vm2 = vcmask 498688  }
 0x267   : > { %1545 = vst [vmem:[#allocation3 + $0x190] sm:$0xf0] %v1541_v42  ;;  %v1570_v22 = vsel %vm6532_vm1, %v1564_v13, %v1566_v12 }
 0x268   : > { %1574 = vst [vmem:[#allocation3 + $0x288] sm:$0xf] %v1570_v22  ;;  %v5615_v22 = vsel %vm2063_vm10, %v5591_v48, %v5028_v43  ;;  %vm2094_vm10 = vcmask 834560  }
 0x26a   : > { %v2015_v31 = vld.sshfl [vmem:[#allocation1 + $0x8] sm:$0xff pattern:$0x75316420]  ;;  %v2014_v7 = vld.sshfl [vmem:[#allocation1] sm:$0xff pattern:$0x75316420] }
 0x26b   : > { %v2046_v45 = vld.sshfl [vmem:[#allocation1 + $0x10] sm:$0xff pattern:$0x75316420]  ;;  %1986 = vrot.lane.b32.xlu2 %v1983_v19, %s6530_s11  ;;  %1990 = vrot.lane.b32.xlu1 %v1985_v61, %s6530_s11  ;;  %2041 = vst [vmem:[#allocation1] ss:$2 sm:$0xff] %v2037_v29  ;;  %v2099_v61 = vmul.f32 %v5302_v30, %v5607_v36  ;;  %v2067_v29 = vmul.f32 %v5286_v47, %v5615_v22  ;;  %s6536_s11 = smov 28  }
 0x26c   : > { %2074 = vst [vmem:[#allocation1 + $0x11] ss:$2 sm:$0xff] %v2068_v57  ;;  %2019 = vrot.lane.b32.xlu0 %v2015_v31, %s6533_s17  ;;  %v5626_v31 = vld [vmem:[#allocation2 + $0x14] sm:$0xf] }
 0x26d   : > { %v1656_v13 = vpop.permute.xlu2 %1655  ;;  %v1568_v49 = vpop.permute.xlu1 %1567 }
 0x26e   : > { %v1571_v42 = vsel %vm6532_vm1, %v1566_v12, %v1568_v49  ;;  %v1597_v57 = vpop.permute.xlu0 %1596  ;;  %vm6538_vm1 = vcmask 490496  }
 0x26f   : > { %1575 = vst [vmem:[#allocation3 + $0x2e0] sm:$0xf] %v1571_v42  ;;  %v1601_v19 = vsel %vm1600_vm2, %v1595_v18, %v1597_v57 }
 0x270   : > { %1605 = vst [vmem:[#allocation3 + $0x288] sm:$0xf0] %v1601_v19 }
 0x272   : > { %v2045_v12 = vld.sshfl [vmem:[#allocation1 + $0x8] sm:$0xff pattern:$0x75316420]  ;;  %v2044_v43 = vld.sshfl [vmem:[#allocation1] sm:$0xff pattern:$0x75316420] }
 0x273   : > { %v5620_v35 = vld.sshfl [vmem:[#allocation1 + $0x10] sm:$0xff pattern:$0x75316420]  ;;  %2017 = vrot.lane.b32.xlu2 %v2014_v7, %s6533_s17  ;;  %2021 = vrot.lane.b32.xlu1 %v2016_v51, %s6533_s17  ;;  %2072 = vst [vmem:[#allocation1 + $0x1] ss:$2 sm:$0xff] %v2067_v29  ;;  %v2133_v7 = vmul.f32 %v5626_v31, %v4767_v56  ;;  %v5636_v51 = vsel %vm2094_vm10, %v5607_v36, %v5050_v39  ;;  %s4400_s17 = smov 27  }
 0x274   : > { %2104 = vst [vmem:[#allocation1 + $0x10] ss:$2 sm:$0xff] %v2099_v61  ;;  %2049 = vrot.lane.b32.xlu0 %v2045_v12, %s6536_s11  ;;  %v3270_v29 = vld [vmem:[#allocation3 + $0x1d0] sm:$0xff]  ;;  %vm6539_vm10 = vcmask 482304  }
 0x275   : > { %v5629_v30 = vpop.permute.xlu2 %1685  ;;  %v1599_v18 = vpop.permute.xlu1 %1598  ;;  %6612 = vst [vmem:[#allocation76_spill] sm:$0xff] %v5636_v51 }
 0x276   : > { %v1602_v49 = vsel %vm1600_vm2, %v1597_v57, %v1599_v18  ;;  %v1627_v42 = vpop.permute.xlu0 %1626  ;;  %v2098_v57 = vmul.f32 %v5286_v47, %v5636_v51  ;;  %v3266_v18 = vld [vmem:[#allocation3 + $0x78] sm:$0xff]  ;;  %v3254_v51 = vld [vmem:[#allocation3 + $0x1b0] sm:$0xff] }
 0x277   : > { %1606 = vst [vmem:[#allocation3 + $0x2e0] sm:$0xf0] %v1602_v49  ;;  %v1631_v61 = vsel %vm6538_vm1, %v1625_v41, %v1627_v42  ;;  %v3274_v19 = vld [vmem:[#allocation3 + $0x288] sm:$0xff] }
 0x278   : > { %1635 = vst [vmem:[#allocation3 + $0x160] sm:$0xf] %v1631_v61  ;;  %3329 = vmatpush.msra.mxu0 %v3274_v19 }
 0x27a   : > { %3330 = vmatpush.msra.mxu0 %v3270_v29  ;;  %v2076_v56 = vld.sshfl [vmem:[#allocation1 + $0x8] sm:$0xff pattern:$0x75316420]  ;;  %v2075_v39 = vld.sshfl [vmem:[#allocation1] sm:$0xff pattern:$0x75316420] }
 0x27b   : > { %v5639_v12 = vld.sshfl [vmem:[#allocation1 + $0x10] sm:$0xff pattern:$0x75316420]  ;;  %2047 = vrot.lane.b32.xlu2 %v2044_v43, %s6536_s11  ;;  %2051 = vrot.lane.b32.xlu1 %v2046_v45, %s6536_s11  ;;  %2102 = vst [vmem:[#allocation1] ss:$2 sm:$0xff] %v2098_v57  ;;  %v2156_v45 = vmul.f32 %v5626_v31, %v4787_v0  ;;  %v3258_v29 = vld [vmem:[#allocation3 + $0x100] sm:$0xff] }
 0x27c   : > { %2139 = vst [vmem:[#allocation1 + $0x11] ss:$2 sm:$0xff] %v2133_v7  ;;  %3331 = vmatpush.msra.mxu0 %v3266_v18  ;;  %2080 = vrot.lane.b32.xlu0 %v2076_v56, %s4400_s17  ;;  %v3262_v7 = vld [vmem:[#allocation3 + $0x180] sm:$0xff]  ;;  %v3271_v18 = vld [vmem:[#allocation3 + $0x190] sm:$0xff]  ;;  %s4401_s11 = smov 26  }
 0x27d   : > { %v5646_v41 = vpop.permute.xlu2 %1715  ;;  %v1629_v49 = vpop.permute.xlu1 %1628  ;;  %v5654_v57 = vld [vmem:[#allocation2 + $0xc] sm:$0xff]  ;;  %v3250_v0 = vld [vmem:[#allocation3 + $0x280] sm:$0xff] }
 0x27e   : > { %v1632_v47 = vsel %vm6538_vm1, %v1627_v42, %v1629_v49  ;;  %3332 = vmatpush.msra.mxu0 %v3262_v7  ;;  %v1658_v61 = vpop.permute.xlu0 %1657  ;;  %v3275_v19 = vld [vmem:[#allocation3 + $0x2e0] sm:$0xff]  ;;  %v2123_v42 = vmul.f32 %v5654_v57, %v4596_v26  ;;  %v3267_v49 = vld [vmem:[#allocation3 + $0x158] sm:$0xff]  ;;  %vm1691_vm1 = vcmask 474112  }
 0x27f   : > { %1636 = vst [vmem:[#allocation3 + $0x2d8] sm:$0xf] %v1632_v47  ;;  %v1662_v43 = vsel %vm6539_vm10, %v1656_v13, %v1658_v61  ;;  %3369 = vmatpush.msra.mxu2 %v3275_v19  ;;  %v3263_v47 = vld [vmem:[#allocation3 + $0x220] sm:$0xff] }
 0x280   : > { %1666 = vst [vmem:[#allocation3 + $0x160] sm:$0xf0] %v1662_v43  ;;  %3333 = vmatpush.msra.mxu0 %v3258_v29  ;;  %v2178_v43 = vmul.f32 %v5626_v31, %v4803_v16  ;;  %v3251_v16 = vld [vmem:[#allocation3 + $0x278] sm:$0xff] }
 0x281   : > { %3370 = vmatpush.msra.mxu2 %v3271_v18  ;;  %v3242_v18 = vld [vmem:[#allocation3 + $0x318] sm:$0xff] }
 0x282   : > { %3334 = vmatpush.msra.mxu0 %v3254_v51  ;;  %v2106_v13 = vld.sshfl [vmem:[#allocation1 + $0x8] sm:$0xff pattern:$0x75316420]  ;;  %v2105_v7 = vld.sshfl [vmem:[#allocation1] sm:$0xff pattern:$0x75316420] }
 0x283   : > { %v5652_v56 = vld.sshfl [vmem:[#allocation1 + $0x10] sm:$0xff pattern:$0x75316420]  ;;  %2078 = vrot.lane.b32.xlu2 %v2075_v39, %s4400_s17  ;;  %2082 = vrot.lane.b32.xlu1 %v5620_v35, %s4400_s17  ;;  %2125 = vst [vmem:[#allocation1] ss:$2 sm:$0xff] %v2123_v42  ;;  %v3246_v51 = vld [vmem:[#allocation3 + $0x300] sm:$0xff] }
 0x284   : > { %2161 = vst [vmem:[#allocation1 + $0x10] ss:$2 sm:$0xff] %v2156_v45  ;;  %3371 = vmatpush.msra.mxu2 %v3267_v49  ;;  %3335 = vmatpush.msra.mxu0 %v3250_v0  ;;  %v3259_v35 = vld [vmem:[#allocation3 + $0x170] sm:$0xff]  ;;  %v3255_v42 = vld [vmem:[#allocation3 + $0x200] sm:$0xff] }
 0x285   : > { %2110 = vrot.lane.b32.xlu0 %v2106_v13, %s4401_s11  ;;  %v5662_v19 = vpop.permute.xlu2 %1744  ;;  %v1660_v26 = vpop.permute.xlu1 %1659  ;;  %v3238_v49 = vld [vmem:[#allocation3 + $0x270] sm:$0xff]  ;;  %v3234_v13 = vld [vmem:[#allocation3 + $0x1c8] sm:$0xff] }
 0x286   : > { %3372 = vmatpush.msra.mxu2 %v3263_v47  ;;  %v1663_v39 = vsel %vm6539_vm10, %v1658_v61, %v1660_v26  ;;  %3336 = vmatpush.msra.mxu0 %v3246_v51  ;;  %v1688_v45 = vpop.permute.xlu0 %1687  ;;  %v2132_v61 = vmul.f32 %v5654_v57, %v4784_v63  ;;  %v3247_v26 = vld [vmem:[#allocation3 + $0x10] sm:$0xff]  ;;  %vm6541_vm10 = vcmask 384000  }
 0x287   : > { %1667 = vst [vmem:[#allocation3 + $0x2d8] sm:$0xf0] %v1663_v39  ;;  %v1692_v29 = vsel %vm1691_vm1, %v5629_v30, %v1688_v45 }
 0x288   : > { %3373 = vmatpush.msra.mxu2 %v3259_v35  ;;  %1696 = vst [vmem:[#allocation3 + $0x70] sm:$0xf] %v1692_v29  ;;  %3337 = vmatpush.msra.mxu0 %v3242_v18  ;;  %v3230_v35 = vld [vmem:[#allocation3 + $0x2f0] sm:$0xff]  ;;  %v3226_v18 = vld [vmem:[#allocation3 + $0x1e8] sm:$0xff] }
 0x28a   : > { %3374 = vmatpush.msra.mxu2 %v3255_v42  ;;  %3338 = vmatpush.msra.mxu0 %v3238_v49  ;;  %v2126_v30 = vld.sshfl [vmem:[#allocation1] sm:$0xff pattern:$0x75316420]  ;;  %v2127_v47 = vld.sshfl [vmem:[#allocation1 + $0x8] sm:$0xff pattern:$0x75316420] }
 0x28b   : > { %v5669_v0 = vld.sshfl [vmem:[#allocation1 + $0x10] sm:$0xff pattern:$0x75316420]  ;;  %2108 = vrot.lane.b32.xlu2 %v2105_v7, %s4401_s11  ;;  %2112 = vrot.lane.b32.xlu1 %v5639_v12, %s4401_s11  ;;  %2137 = vst [vmem:[#allocation1 + $0x1] ss:$2 sm:$0xff] %v2132_v61  ;;  %v3243_v7 = vld [vmem:[#allocation3 + $0x258] sm:$0xff]  ;;  %v2201_v12 = vmul.f32 %v5626_v31, %v4817_v38 }
 0x28c   : > { %2184 = vst [vmem:[#allocation1 + $0x11] ss:$2 sm:$0xff] %v2178_v43  ;;  %3375 = vmatpush.msra.mxu2 %v3251_v16  ;;  %3339 = vmatpush.msra.mxu0 %v3234_v13  ;;  %v3239_v42 = vld [vmem:[#allocation3 + $0x310] sm:$0xff]  ;;  %v3222_v61 = vld [vmem:[#allocation3 + $0x60] sm:$0xff] }
 0x28d   : > { %v5676_v51 = vpop.permute.xlu2 %1775  ;;  %v1690_v39 = vpop.permute.xlu1 %1689  ;;  %2130 = vst [vmem:[#allocation3 + $0x48] sm:$0xf] %v2126_v30  ;;  %v3218_v13 = vld [vmem:[#allocation3 + $0x20] sm:$0xff] }
 0x28e   : > { %3376 = vmatpush.msra.mxu2 %v3247_v26  ;;  %v1693_v63 = vsel %vm1691_vm1, %v1688_v45, %v1690_v39  ;;  %3340 = vmatpush.msra.mxu0 %v3230_v35  ;;  %v1718_v43 = vpop.permute.xlu0 %1717  ;;  %2131 = vst [vmem:[#allocation3 + $0x148] sm:$0xf] %v2127_v47  ;;  %v2155_v45 = vmul.f32 %v5654_v57, %v4797_v11  ;;  %v3235_v16 = vld [vmem:[#allocation3 + $0x80] sm:$0xff]  ;;  %v3214_v11 = vld [vmem:[#allocation3 + $0x250] sm:$0xff] }
 0x28f   : > { %1697 = vst [vmem:[#allocation3 + $0x90] sm:$0xf] %v1693_v63  ;;  %v1721_v29 = vsel %vm6540_vm6, %v5646_v41, %v1718_v43  ;;  %v3231_v30 = vld [vmem:[#allocation3 + $0x260] sm:$0xff]  ;;  %v2223_v63 = vmul.f32 %v5626_v31, %v4831_v24 }
 0x290   : > { %3377 = vmatpush.msra.mxu2 %v3243_v7  ;;  %1725 = vst [vmem:[#allocation3 + $0x70] sm:$0xf0] %v1721_v29  ;;  %3341 = vmatpush.msra.mxu0 %v3226_v18  ;;  %v2177_v18 = vmul.f32 %v5654_v57, %v4821_v27 }
 0x292   : > { %3378 = vmatpush.msra.mxu2 %v3239_v42  ;;  %3342 = vmatpush.msra.mxu0 %v3222_v61  ;;  %v2141_v38 = vld.sshfl [vmem:[#allocation1 + $0x8] sm:$0xff pattern:$0x75316420]  ;;  %v2140_v41 = vld.sshfl [vmem:[#allocation1] sm:$0xff pattern:$0x75316420] }
 0x293   : > { %v2187_v49 = vld.sshfl [vmem:[#allocation1 + $0x10] sm:$0xff pattern:$0x75316420]  ;;  %2147 = vrot.lane.b32.xlu1 %v5652_v56, %s4359_s8  ;;  %2145 = vrot.lane.b32.xlu0 %v2141_v38, %s4359_s8  ;;  %2159 = vst [vmem:[#allocation1] ss:$2 sm:$0xff] %v2155_v45  ;;  %v3227_v56 = vld [vmem:[#allocation3 + $0xe8] sm:$0xff] }
 0x294   : > { %2206 = vst [vmem:[#allocation1 + $0x10] ss:$2 sm:$0xff] %v2201_v12  ;;  %3379 = vmatpush.msra.mxu2 %v3235_v16  ;;  %3343 = vmatpush.msra.mxu0 %v3218_v13  ;;  %v3223_v12 = vld [vmem:[#allocation3 + $0x1e0] sm:$0xff]  ;;  %v2246_v16 = vmul.f32 %v5626_v31, %v4854_v55 }
 0x295   : > { %v1806_v47 = vpop.permute.xlu2 %1805  ;;  %2143 = vrot.lane.b32.xlu2 %v2140_v41, %s4359_s8  ;;  %v1720_v26 = vpop.permute.xlu1 %1719  ;;  %v2200_v41 = vmul.f32 %v5654_v57, %v4837_v15  ;;  %s6623_s8 = smov 110  }
 0x296   : > { %3380 = vmatpush.msra.mxu2 %v3231_v30  ;;  %v1722_v39 = vsel %vm6540_vm6, %v1718_v43, %v1720_v26  ;;  %v1747_v35 = vpop.permute.xlu0 %1746  ;;  %3344 = vmatpush.msra.mxu0 %v3214_v11  ;;  %v3219_v43 = vld [vmem:[#allocation3 + $0x88] sm:$0xff]  ;;  %vm6542_vm6 = vcmask 375808  }
 0x297   : > { %1726 = vst [vmem:[#allocation3 + $0x90] sm:$0xf0] %v1722_v39  ;;  %v1751_v7 = vsel %vm6541_vm10, %v5662_v19, %v1747_v35  ;;  %v3215_v19 = vld [vmem:[#allocation3 + $0x1a0] sm:$0xff] }
 0x298   : > { %3381 = vmatpush.msra.mxu2 %v3227_v56  ;;  %1755 = vst [vmem:[#allocation3 + $0x128] sm:$0xf] %v1751_v7  ;;  %v2222_v56 = vmul.f32 %v5654_v57, %v4847_v54 }
 0x29a   : > { %3382 = vmatpush.msra.mxu2 %v3223_v12  ;;  %v2163_v42 = vld.sshfl [vmem:[#allocation1 + $0x8] sm:$0xff pattern:$0x75316420]  ;;  %v2162_v24 = vld.sshfl [vmem:[#allocation1] sm:$0xff pattern:$0x75316420] }
 0x29b   : > { %v2209_v29 = vld.sshfl [vmem:[#allocation1 + $0x10] sm:$0xff pattern:$0x75316420]  ;;  %2169 = vrot.lane.b32.xlu1 %v5669_v0, %s4360_s14  ;;  %2167 = vrot.lane.b32.xlu0 %v2163_v42, %s4360_s14  ;;  %2182 = vst [vmem:[#allocation1 + $0x1] ss:$2 sm:$0xff] %v2177_v18 }
 0x29c   : > { %2229 = vst [vmem:[#allocation1 + $0x11] ss:$2 sm:$0xff] %v2223_v63  ;;  %3383 = vmatpush.msra.mxu2 %v3219_v43  ;;  %v6613_v43 = vld [vmem:[#allocation26_spill] sm:$0xff] }
 0x29d   : > { %v1837_v61 = vpop.permute.xlu2 %1836  ;;  %2165 = vrot.lane.b32.xlu2 %v2162_v24, %s4360_s14  ;;  %v1749_v45 = vpop.permute.xlu1 %1748  ;;  %v2291_v42 = vmul.f32 %v5626_v31, %v6613_v43  ;;  %v6614_v24 = vld [vmem:[#allocation25_spill] sm:$0xff]  ;;  %s6626_s14 = smov 109  }
 0x29e   : > { %3384 = vmatpush.msra.mxu2 %v3215_v19  ;;  %v1752_v13 = vsel %vm6541_vm10, %v1747_v35, %v1749_v45  ;;  %v1778_v27 = vpop.permute.xlu0 %1777  ;;  %vm6543_vm10 = vcmask 367616   ;;  %v2268_v35 = vmul.f32 %v5626_v31, %v4871_v5  ;;  %v2245_v19 = vmul.f32 %v5654_v57, %v6614_v24 }
 0x29f   : > { %1756 = vst [vmem:[#allocation3 + $0x30] sm:$0xf] %v1752_v13  ;;  %v1782_v0 = vsel %vm6542_vm6, %v5676_v51, %v1778_v27 }
 0x2a0   : > { %1786 = vst [vmem:[#allocation3 + $0x128] sm:$0xf0] %v1782_v0 }
 0x2a2   : > { %v2186_v30 = vld.sshfl [vmem:[#allocation1 + $0x8] sm:$0xff pattern:$0x75316420]  ;;  %v2185_v26 = vld.sshfl [vmem:[#allocation1] sm:$0xff pattern:$0x75316420] }
 0x2a3   : > { %v2232_v38 = vld.sshfl [vmem:[#allocation1 + $0x10] sm:$0xff pattern:$0x75316420]  ;;  %2192 = vrot.lane.b32.xlu1 %v2187_v49, %s4361_s12  ;;  %2190 = vrot.lane.b32.xlu0 %v2186_v30, %s4361_s12  ;;  %2204 = vst [vmem:[#allocation1] ss:$2 sm:$0xff] %v2200_v41 }
 0x2a4   : > { %2251 = vst [vmem:[#allocation1 + $0x10] ss:$2 sm:$0xff] %v2246_v16  ;;  %v6615_v41 = vld [vmem:[#allocation29_spill] sm:$0xff] }
 0x2a5   : > { %v1867_v11 = vpop.permute.xlu2 %1866  ;;  %2188 = vrot.lane.b32.xlu2 %v2185_v26, %s4361_s12  ;;  %v1780_v55 = vpop.permute.xlu1 %1779  ;;  %v2313_v30 = vmul.f32 %v5626_v31, %v6615_v41  ;;  %s6631_s12 = smov 107  }
 0x2a6   : > { %v1783_v51 = vsel %vm6542_vm6, %v1778_v27, %v1780_v55  ;;  %v1808_v39 = vpop.permute.xlu0 %1807  ;;  %vm6544_vm6 = vcmask 359424   ;;  %v6616_v55 = vld [vmem:[#allocation27_spill] sm:$0xff] }
 0x2a7   : > { %1787 = vst [vmem:[#allocation3 + $0x30] sm:$0xf0] %v1783_v51  ;;  %v1812_v15 = vsel %vm6543_vm10, %v1806_v47, %v1808_v39  ;;  %v2267_v51 = vmul.f32 %v5654_v57, %v6616_v55 }
 0x2a8   : > { %1816 = vst [vmem:[#allocation3 + $0x130] sm:$0xf] %v1812_v15 }
 0x2aa   : > { %v2208_v63 = vld.sshfl [vmem:[#allocation1 + $0x8] sm:$0xff pattern:$0x75316420]  ;;  %v2207_v7 = vld.sshfl [vmem:[#allocation1] sm:$0xff pattern:$0x75316420] }
 0x2ab   : > { %v2254_v49 = vld.sshfl [vmem:[#allocation1 + $0x10] sm:$0xff pattern:$0x75316420]  ;;  %2214 = vrot.lane.b32.xlu1 %v2209_v29, %s4362_s15  ;;  %2212 = vrot.lane.b32.xlu0 %v2208_v63, %s4362_s15  ;;  %2227 = vst [vmem:[#allocation1 + $0x1] ss:$2 sm:$0xff] %v2222_v56 }
 0x2ac   : > { %2274 = vst [vmem:[#allocation1 + $0x11] ss:$2 sm:$0xff] %v2268_v35 }
 0x2ad   : > { %v1898_v12 = vpop.permute.xlu2 %1897  ;;  %2210 = vrot.lane.b32.xlu2 %v2207_v7, %s4362_s15  ;;  %v1810_v5 = vpop.permute.xlu1 %1809  ;;  %v6617_v7 = vld [vmem:[#allocation30_spill] sm:$0xff]  ;;  %s6634_s15 = smov 106  }
 0x2ae   : > { %v1813_v47 = vsel %vm6543_vm10, %v1808_v39, %v1810_v5  ;;  %v1839_v18 = vpop.permute.xlu0 %1838  ;;  %vm1872_vm10 = vcmask 351232   ;;  %v2336_v5 = vmul.f32 %v5626_v31, %v6617_v7 }
 0x2af   : > { %1817 = vst [vmem:[#allocation3 + $0x120] sm:$0xf] %v1813_v47  ;;  %v1843_v54 = vsel %vm6544_vm6, %v1837_v61, %v1839_v18 }
 0x2b0   : > { %1847 = vst [vmem:[#allocation3 + $0x130] sm:$0xf0] %v1843_v54 }
 0x2b2   : > { %v2231_v45 = vld.sshfl [vmem:[#allocation1 + $0x8] sm:$0xff pattern:$0x75316420]  ;;  %v2230_v13 = vld.sshfl [vmem:[#allocation1] sm:$0xff pattern:$0x75316420] }
 0x2b3   : > { %v2277_v29 = vld.sshfl [vmem:[#allocation1 + $0x10] sm:$0xff pattern:$0x75316420]  ;;  %2237 = vrot.lane.b32.xlu1 %v2232_v38, %s4363_s1  ;;  %2235 = vrot.lane.b32.xlu0 %v2231_v45, %s4363_s1  ;;  %2249 = vst [vmem:[#allocation1] ss:$2 sm:$0xff] %v2245_v19 }
 0x2b4   : > { %2296 = vst [vmem:[#allocation1 + $0x10] ss:$2 sm:$0xff] %v2291_v42 }
 0x2b5   : > { %v1927_v27 = vpop.permute.xlu2 %1926  ;;  %2233 = vrot.lane.b32.xlu2 %v2230_v13, %s4363_s1  ;;  %v1841_v16 = vpop.permute.xlu1 %1840  ;;  %v6619_v13 = vld [vmem:[#allocation32_spill] sm:$0xff]  ;;  %s6636_s1 = smov 96  }
 0x2b6   : > { %v1844_v61 = vsel %vm6544_vm6, %v1839_v18, %v1841_v16  ;;  %v1869_v0 = vpop.permute.xlu0 %1868  ;;  %vm6545_vm6 = vcmask 343040   ;;  %v6618_v18 = vld [vmem:[#allocation28_spill] sm:$0xff]  ;;  %v2358_v16 = vmul.f32 %v5626_v31, %v6619_v13 }
 0x2b7   : > { %1848 = vst [vmem:[#allocation3 + $0x120] sm:$0xf0] %v1844_v61  ;;  %v1873_v26 = vsel %vm1872_vm10, %v1867_v11, %v1869_v0  ;;  %v2290_v43 = vmul.f32 %v5654_v57, %v6618_v18 }
 0x2b8   : > { %1877 = vst [vmem:[#allocation3 + $0x38] sm:$0xf] %v1873_v26 }
 0x2ba   : > { %v2253_v39 = vld.sshfl [vmem:[#allocation1 + $0x8] sm:$0xff pattern:$0x75316420]  ;;  %v2252_v35 = vld.sshfl [vmem:[#allocation1] sm:$0xff pattern:$0x75316420] }
 0x2bb   : > { %v2299_v38 = vld.sshfl [vmem:[#allocation1 + $0x10] sm:$0xff pattern:$0x75316420]  ;;  %2259 = vrot.lane.b32.xlu1 %v2254_v49, %s4364_s9  ;;  %2257 = vrot.lane.b32.xlu0 %v2253_v39, %s4364_s9  ;;  %2272 = vst [vmem:[#allocation1 + $0x1] ss:$2 sm:$0xff] %v2267_v51 }
 0x2bc   : > { %2319 = vst [vmem:[#allocation1 + $0x11] ss:$2 sm:$0xff] %v2313_v30 }
 0x2bd   : > { %v1957_v15 = vpop.permute.xlu2 %1956  ;;  %2255 = vrot.lane.b32.xlu2 %v2252_v35, %s4364_s9  ;;  %v1871_v56 = vpop.permute.xlu1 %1870  ;;  %v6621_v35 = vld [vmem:[#allocation35_spill] sm:$0xff]  ;;  %s6640_s9 = smov 94  }
 0x2be   : > { %v1874_v11 = vsel %vm1872_vm10, %v1869_v0, %v1871_v56  ;;  %v1900_v63 = vpop.permute.xlu0 %1899  ;;  %v6620_v0 = vld [vmem:[#allocation31_spill] sm:$0xff]  ;;  %v2381_v56 = vmul.f32 %v5626_v31, %v6621_v35 }
 0x2bf   : > { %1878 = vst [vmem:[#allocation3 + $0x150] sm:$0xf] %v1874_v11  ;;  %v1904_v47 = vsel %vm6545_vm6, %v1898_v12, %v1900_v63  ;;  %v2312_v41 = vmul.f32 %v5654_v57, %v6620_v0 }
 0x2c0   : > { %1908 = vst [vmem:[#allocation3 + $0x38] sm:$0xf0] %v1904_v47 }
 0x2c2   : > { %v2276_v42 = vld.sshfl [vmem:[#allocation1 + $0x8] sm:$0xff pattern:$0x75316420]  ;;  %v2275_v54 = vld.sshfl [vmem:[#allocation1] sm:$0xff pattern:$0x75316420] }
 0x2c3   : > { %v2322_v49 = vld.sshfl [vmem:[#allocation1 + $0x10] sm:$0xff pattern:$0x75316420]  ;;  %2282 = vrot.lane.b32.xlu1 %v2277_v29, %s4365_s28  ;;  %2280 = vrot.lane.b32.xlu0 %v2276_v42, %s4365_s28  ;;  %2294 = vst [vmem:[#allocation1] ss:$2 sm:$0xff] %v2290_v43 }
 0x2c4   : > { %2341 = vst [vmem:[#allocation1 + $0x10] ss:$2 sm:$0xff] %v2336_v5 }
 0x2c5   : > { %v1987_v24 = vpop.permute.xlu2 %1986  ;;  %2278 = vrot.lane.b32.xlu2 %v2275_v54, %s4365_s28  ;;  %v1902_v19 = vpop.permute.xlu1 %1901  ;;  %v6624_v54 = vld [vmem:[#allocation36_spill] sm:$0xff]  ;;  %s6642_s28 = smov 93  }
 0x2c6   : > { %v1905_v45 = vsel %vm6545_vm6, %v1900_v63, %v1902_v19  ;;  %v1929_v12 = vpop.permute.xlu0 %1928  ;;  %vm6547_vm6 = vcmask 252928   ;;  %v6622_v63 = vld [vmem:[#allocation33_spill] sm:$0xff]  ;;  %v2403_v19 = vmul.f32 %v5626_v31, %v6624_v54 }
 0x2c7   : > { %1909 = vst [vmem:[#allocation3 + $0x150] sm:$0xf0] %v1905_v45  ;;  %v1932_v61 = vsel %vm6546_vm9, %v1927_v27, %v1929_v12  ;;  %v2335_v7 = vmul.f32 %v5654_v57, %v6622_v63 }
 0x2c8   : > { %1936 = vst [vmem:[#allocation3 + $0x1b8] sm:$0xf] %v1932_v61 }
 0x2ca   : > { %v2298_v30 = vld.sshfl [vmem:[#allocation1 + $0x8] sm:$0xff pattern:$0x75316420]  ;;  %v2297_v26 = vld.sshfl [vmem:[#allocation1] sm:$0xff pattern:$0x75316420] }
 0x2cb   : > { %v2344_v29 = vld.sshfl [vmem:[#allocation1 + $0x10] sm:$0xff pattern:$0x75316420]  ;;  %2304 = vrot.lane.b32.xlu1 %v2299_v38, %s4366_s23  ;;  %2302 = vrot.lane.b32.xlu0 %v2298_v30, %s4366_s23  ;;  %2317 = vst [vmem:[#allocation1 + $0x1] ss:$2 sm:$0xff] %v2312_v41 }
 0x2cc   : > { %2364 = vst [vmem:[#allocation1 + $0x11] ss:$2 sm:$0xff] %v2358_v16 }
 0x2cd   : > { %v2018_v55 = vpop.permute.xlu2 %2017  ;;  %2300 = vrot.lane.b32.xlu2 %v2297_v26, %s4366_s23  ;;  %v1931_v51 = vpop.permute.xlu1 %1930  ;;  %v6627_v26 = vld [vmem:[#allocation39_spill] sm:$0xff]  ;;  %s6645_s23 = smov 92  }
 0x2ce   : > { %v1933_v27 = vsel %vm6546_vm9, %v1929_v12, %v1931_v51  ;;  %v1959_v39 = vpop.permute.xlu0 %1958  ;;  %vm6548_vm9 = vcmask 244736   ;;  %v6625_v12 = vld [vmem:[#allocation34_spill] sm:$0xff]  ;;  %v2426_v51 = vmul.f32 %v5626_v31, %v6627_v26 }
 0x2cf   : > { %1937 = vst [vmem:[#allocation3 + $0xb0] sm:$0xf] %v1933_v27  ;;  %v1963_v11 = vsel %vm6547_vm6, %v1957_v15, %v1959_v39  ;;  %v2357_v13 = vmul.f32 %v5654_v57, %v6625_v12 }
 0x2d0   : > { %1967 = vst [vmem:[#allocation3 + $0x1b8] sm:$0xf0] %v1963_v11 }
 0x2d2   : > { %v2321_v5 = vld.sshfl [vmem:[#allocation1 + $0x8] sm:$0xff pattern:$0x75316420]  ;;  %v2320_v47 = vld.sshfl [vmem:[#allocation1] sm:$0xff pattern:$0x75316420] }
 0x2d3   : > { %v2367_v38 = vld.sshfl [vmem:[#allocation1 + $0x10] sm:$0xff pattern:$0x75316420]  ;;  %2327 = vrot.lane.b32.xlu1 %v2322_v49, %s6623_s8  ;;  %2325 = vrot.lane.b32.xlu0 %v2321_v5, %s6623_s8  ;;  %2339 = vst [vmem:[#allocation1] ss:$2 sm:$0xff] %v2335_v7 }
 0x2d4   : > { %2386 = vst [vmem:[#allocation1 + $0x10] ss:$2 sm:$0xff] %v2381_v56 }
 0x2d5   : > { %v2048_v18 = vpop.permute.xlu2 %2047  ;;  %2323 = vrot.lane.b32.xlu2 %v2320_v47, %s6623_s8  ;;  %v1961_v43 = vpop.permute.xlu1 %1960  ;;  %v6629_v47 = vld [vmem:[#allocation41_spill] sm:$0xff]  ;;  %s6656_s8 = smov 78  }
 0x2d6   : > { %v1964_v15 = vsel %vm6547_vm6, %v1959_v39, %v1961_v43  ;;  %v1989_v42 = vpop.permute.xlu0 %1988  ;;  %vm6549_vm6 = vcmask 236544   ;;  %v6628_v39 = vld [vmem:[#allocation37_spill] sm:$0xff]  ;;  %v2448_v43 = vmul.f32 %v5626_v31, %v6629_v47 }
 0x2d7   : > { %1968 = vst [vmem:[#allocation3 + $0xb0] sm:$0xf0] %v1964_v15  ;;  %v1993_v45 = vsel %vm6548_vm9, %v1987_v24, %v1989_v42  ;;  %v2380_v35 = vmul.f32 %v5654_v57, %v6628_v39 }
 0x2d8   : > { %1997 = vst [vmem:[#allocation3 + $0x218] sm:$0xf] %v1993_v45 }
 0x2da   : > { %v2343_v16 = vld.sshfl [vmem:[#allocation1 + $0x8] sm:$0xff pattern:$0x75316420]  ;;  %v2342_v61 = vld.sshfl [vmem:[#allocation1] sm:$0xff pattern:$0x75316420] }
 0x2db   : > { %v2389_v49 = vld.sshfl [vmem:[#allocation1 + $0x10] sm:$0xff pattern:$0x75316420]  ;;  %2349 = vrot.lane.b32.xlu1 %v2344_v29, %s6626_s14  ;;  %2347 = vrot.lane.b32.xlu0 %v2343_v16, %s6626_s14  ;;  %2362 = vst [vmem:[#allocation1 + $0x1] ss:$2 sm:$0xff] %v2357_v13  ;;  %v6632_v16 = vld [vmem:[#allocation43_spill] sm:$0xff] }
 0x2dc   : > { %2409 = vst [vmem:[#allocation1 + $0x11] ss:$2 sm:$0xff] %v2403_v19 }
 0x2dd   : > { %v2079_v0 = vpop.permute.xlu2 %2078  ;;  %2345 = vrot.lane.b32.xlu2 %v2342_v61, %s6626_s14  ;;  %v1991_v41 = vpop.permute.xlu1 %1990  ;;  %v2471_v61 = vmul.f32 %v5626_v31, %v6632_v16  ;;  %s6662_s14 = smov 77  }
 0x2de   : > { %v1994_v24 = vsel %vm6548_vm9, %v1989_v42, %v1991_v41  ;;  %v2020_v30 = vpop.permute.xlu0 %2019  ;;  %vm6550_vm9 = vcmask 228352   ;;  %v6630_v42 = vld [vmem:[#allocation38_spill] sm:$0xff] }
 0x2df   : > { %1998 = vst [vmem:[#allocation3 + $0x228] sm:$0xf] %v1994_v24  ;;  %v2024_v27 = vsel %vm6549_vm6, %v2018_v55, %v2020_v30  ;;  %v2402_v54 = vmul.f32 %v5654_v57, %v6630_v42 }
 0x2e0   : > { %2028 = vst [vmem:[#allocation3 + $0x218] sm:$0xf0] %v2024_v27 }
 0x2e2   : > { %v2366_v56 = vld.sshfl [vmem:[#allocation1 + $0x8] sm:$0xff pattern:$0x75316420]  ;;  %v2365_v11 = vld.sshfl [vmem:[#allocation1] sm:$0xff pattern:$0x75316420] }
 0x2e3   : > { %v2412_v29 = vld.sshfl [vmem:[#allocation1 + $0x10] sm:$0xff pattern:$0x75316420]  ;;  %2372 = vrot.lane.b32.xlu1 %v2367_v38, %s4369_s25  ;;  %2370 = vrot.lane.b32.xlu0 %v2366_v56, %s4369_s25  ;;  %2384 = vst [vmem:[#allocation1] ss:$2 sm:$0xff] %v2380_v35  ;;  %v2493_v56 = vmul.f32 %v5626_v31, %v5059_v53 }
 0x2e4   : > { %2431 = vst [vmem:[#allocation1 + $0x10] ss:$2 sm:$0xff] %v2426_v51 }
 0x2e5   : > { %2368 = vrot.lane.b32.xlu2 %v2365_v11, %s4369_s25  ;;  %v2022_v63 = vpop.permute.xlu1 %2021  ;;  %v2109_v7 = vpop.permute.xlu2 %2108  ;;  %s6651_s25 = smov 79  }
 0x2e6   : > { %v2025_v55 = vsel %vm6549_vm6, %v2020_v30, %v2022_v63  ;;  %v2050_v5 = vpop.permute.xlu0 %2049  ;;  %vm2084_vm6 = vcmask 220160   ;;  %v6633_v30 = vld [vmem:[#allocation40_spill] sm:$0xff] }
 0x2e7   : > { %2029 = vst [vmem:[#allocation3 + $0x228] sm:$0xf0] %v2025_v55  ;;  %v2054_v15 = vsel %vm6550_vm9, %v2048_v18, %v2050_v5  ;;  %v2425_v26 = vmul.f32 %v5654_v57, %v6633_v30  ;;  %v6635_v55 = vld [vmem:[#allocation42_spill] sm:$0xff] }
 0x2e8   : > { %2058 = vst [vmem:[#allocation3 + $0x8] sm:$0xf] %v2054_v15  ;;  %v6637_v15 = vld [vmem:[#allocation45_spill] sm:$0xff]  ;;  %v3298_v30 = vld [vmem:[#allocation3 + $0x1b8] sm:$0xff] }
 0x2e9   : > { %v2516_v42 = vmul.f32 %v5626_v31, %v6637_v15 }
 0x2ea   : > { %v2388_v19 = vld.sshfl [vmem:[#allocation1 + $0x8] sm:$0xff pattern:$0x75316420]  ;;  %v2387_v45 = vld.sshfl [vmem:[#allocation1] sm:$0xff pattern:$0x75316420] }
 0x2eb   : > { %v2434_v38 = vld.sshfl [vmem:[#allocation1 + $0x10] sm:$0xff pattern:$0x75316420]  ;;  %2394 = vrot.lane.b32.xlu1 %v2389_v49, %s6631_s12  ;;  %2392 = vrot.lane.b32.xlu0 %v2388_v19, %s6631_s12  ;;  %2407 = vst [vmem:[#allocation1 + $0x1] ss:$2 sm:$0xff] %v2402_v54 }
 0x2ec   : > { %2454 = vst [vmem:[#allocation1 + $0x11] ss:$2 sm:$0xff] %v2448_v43 }
 0x2ed   : > { %2390 = vrot.lane.b32.xlu2 %v2387_v45, %s6631_s12  ;;  %v2052_v12 = vpop.permute.xlu1 %2051  ;;  %s6666_s12 = smov 76  }
 0x2ee   : > { %v2055_v13 = vsel %vm6550_vm9, %v2050_v5, %v2052_v12  ;;  %v2081_v18 = vpop.permute.xlu0 %2080  ;;  %vm2114_vm9 = vcmask 211968   ;;  %v2447_v5 = vmul.f32 %v5654_v57, %v6635_v55  ;;  %v6638_v12 = vld [vmem:[#allocation44_spill] sm:$0xff]  ;;  %v3290_v55 = vld [vmem:[#allocation3 + $0x130] sm:$0xff] }
 0x2ef   : > { %2059 = vst [vmem:[#allocation3 + $0x230] sm:$0xf] %v2055_v13  ;;  %v2085_v41 = vsel %vm2084_vm6, %v2079_v0, %v2081_v18  ;;  %v2144_v24 = vpop.permute.xlu2 %2143  ;;  %v2470_v13 = vmul.f32 %v5654_v57, %v6638_v12 }
 0x2f0   : > { %2089 = vst [vmem:[#allocation3 + $0x8] sm:$0xf0] %v2085_v41 }
 0x2f2   : > { %v2411_v51 = vld.sshfl [vmem:[#allocation1 + $0x8] sm:$0xff pattern:$0x75316420]  ;;  %v2410_v27 = vld.sshfl [vmem:[#allocation1] sm:$0xff pattern:$0x75316420] }
 0x2f3   : > { %v2457_v49 = vld.sshfl [vmem:[#allocation1 + $0x10] sm:$0xff pattern:$0x75316420]  ;;  %2417 = vrot.lane.b32.xlu1 %v2412_v29, %s6634_s15  ;;  %2415 = vrot.lane.b32.xlu0 %v2411_v51, %s6634_s15  ;;  %2429 = vst [vmem:[#allocation1] ss:$2 sm:$0xff] %v2425_v26 }
 0x2f4   : > { %2476 = vst [vmem:[#allocation1 + $0x10] ss:$2 sm:$0xff] %v2471_v61 }
 0x2f5   : > { %2413 = vrot.lane.b32.xlu2 %v2410_v27, %s6634_s15  ;;  %v2083_v39 = vpop.permute.xlu1 %2082  ;;  %s6677_s15 = smov 64  }
 0x2f6   : > { %v2086_v0 = vsel %vm2084_vm6, %v2081_v18, %v2083_v39  ;;  %v3302_v18 = vld [vmem:[#allocation3 + $0x218] sm:$0xff] }
 0x2f7   : > { %v2111_v35 = vpop.permute.xlu0 %2110  ;;  %2090 = vst [vmem:[#allocation3 + $0x230] sm:$0xf0] %v2086_v0  ;;  %v5804_v63 = vpop.permute.xlu2 %2165  ;;  %v3306_v45 = vld [vmem:[#allocation3 + $0x8] sm:$0xff] }
 0x2f8   : > { %v2115_v11 = vsel %vm2114_vm9, %v2109_v7, %v2111_v35 }
 0x2f9   : > { %2119 = vst [vmem:[#allocation3 + $0xe0] sm:$0xf] %v2115_v11 }
 0x2fa   : > { %v2433_v47 = vld.sshfl [vmem:[#allocation1 + $0x8] sm:$0xff pattern:$0x75316420]  ;;  %v2432_v43 = vld.sshfl [vmem:[#allocation1] sm:$0xff pattern:$0x75316420] }
 0x2fb   : > { %v2479_v29 = vld.sshfl [vmem:[#allocation1 + $0x10] sm:$0xff pattern:$0x75316420]  ;;  %2439 = vrot.lane.b32.xlu1 %v2434_v38, %s6636_s1  ;;  %2437 = vrot.lane.b32.xlu0 %v2433_v47, %s6636_s1  ;;  %2452 = vst [vmem:[#allocation1 + $0x1] ss:$2 sm:$0xff] %v2447_v5  ;;  %v6639_v5 = vld [vmem:[#allocation46_spill] sm:$0xff] }
 0x2fc   : > { %2499 = vst [vmem:[#allocation1 + $0x11] ss:$2 sm:$0xff] %v2493_v56  ;;  %v3286_v47 = vld [vmem:[#allocation3 + $0x128] sm:$0xff] }
 0x2fd   : > { %2435 = vrot.lane.b32.xlu2 %v2432_v43, %s6636_s1  ;;  %v2113_v53 = vpop.permute.xlu1 %2112  ;;  %v3303_v43 = vld [vmem:[#allocation3 + $0x228] sm:$0xff]  ;;  %s6679_s1 = smov 63  }
 0x2fe   : > { %v2116_v7 = vsel %vm2114_vm9, %v2111_v35, %v2113_v53  ;;  %v2538_v35 = vmul.f32 %v5626_v31, %v5088_v40  ;;  %v3307_v56 = vld [vmem:[#allocation3 + $0x230] sm:$0xff] }
 0x2ff   : > { %2120 = vst [vmem:[#allocation3 + $0xc0] sm:$0xf] %v2116_v7  ;;  %v5814_v54 = vpop.permute.xlu2 %2188  ;;  %v3299_v40 = vld [vmem:[#allocation3 + $0xb0] sm:$0xff] }
 0x300   : > { %v3310_v19 = vld [vmem:[#allocation3 + $0xe0] sm:$0xf] }
 0x301   : > { %3886 = vmatpush.msk.msra.mxu1 %vm342_vm0, %v3310_v19 }
 0x302   : > { %v2456_v16 = vld.sshfl [vmem:[#allocation1 + $0x8] sm:$0xff pattern:$0x75316420]  ;;  %v2455_v61 = vld.sshfl [vmem:[#allocation1] sm:$0xff pattern:$0x75316420] }
 0x303   : > { %v5817_v38 = vld.sshfl [vmem:[#allocation1 + $0x10] sm:$0xff pattern:$0x75316420]  ;;  %3357 = vmatpush.msra.mxu1 %v3306_v45  ;;  %2462 = vrot.lane.b32.xlu1 %v2457_v49, %s4372_s10  ;;  %2474 = vst [vmem:[#allocation1] ss:$2 sm:$0xff] %v2470_v13  ;;  %v3294_v49 = vld [vmem:[#allocation3 + $0x38] sm:$0xff] }
 0x304   : > { %2521 = vst [vmem:[#allocation1 + $0x10] ss:$2 sm:$0xff] %v2516_v42  ;;  %2460 = vrot.lane.b32.xlu0 %v2456_v16, %s4372_s10  ;;  %v3282_v42 = vld [vmem:[#allocation3 + $0x70] sm:$0xff]  ;;  %v2561_v16 = vmul.f32 %v5626_v31, %v5106_v10 }
 0x305   : > { %3358 = vmatpush.msra.mxu1 %v3302_v18  ;;  %2458 = vrot.lane.b32.xlu2 %v2455_v61, %s4372_s10  ;;  %v2148_v41 = vpop.permute.xlu1 %2147  ;;  %v2146_v26 = vpop.permute.xlu0 %2145  ;;  %v3295_v45 = vld [vmem:[#allocation3 + $0x150] sm:$0xff]  ;;  %v3278_v18 = vld [vmem:[#allocation3 + $0x160] sm:$0xff]  ;;  %s6648_s10 = smov 90  }
 0x306   : > { %v3311_v51 = vld [vmem:[#allocation3 + $0xc0] sm:$0xf]  ;;  %v2149_v27 = vsel %vm657_vm11, %v2144_v24, %v2146_v26  ;;  %v2150_v39 = vsel %vm657_vm11, %v2146_v26, %v2148_v41  ;;  %v2492_v24 = vmul.f32 %v5654_v57, %v6639_v5  ;;  %v3283_v10 = vld [vmem:[#allocation3 + $0x90] sm:$0xff]  ;;  %vm6653_vm11 = vcmask 908288  }
 0x307   : > { %3359 = vmatpush.msra.mxu1 %v3298_v30  ;;  %v5826_v0 = vpop.permute.xlu2 %2210  ;;  %3888 = vmatpush.msk.msra.mxu3 %vm342_vm0, %v3311_v51  ;;  %2153 = vst [vmem:[#allocation3 + $0x48] sm:$0xf0] %v2149_v27  ;;  %v3291_v61 = vld [vmem:[#allocation3 + $0x120] sm:$0xff]  ;;  %v3287_v51 = vld [vmem:[#allocation3 + $0x30] sm:$0xff] }
 0x308   : > { %2154 = vst [vmem:[#allocation3 + $0x148] sm:$0xf0] %v2150_v39  ;;  %v6641_v30 = vld [vmem:[#allocation47_spill] sm:$0xff] }
 0x309   : > { %3360 = vmatpush.msra.mxu1 %v3294_v49  ;;  %3397 = vmatpush.msra.mxu3 %v3307_v56  ;;  %v2515_v26 = vmul.f32 %v5654_v57, %v6641_v30 }
 0x30a   : > { %v2478_v53 = vld.sshfl [vmem:[#allocation1 + $0x8] sm:$0xff pattern:$0x75316420]  ;;  %v2477_v7 = vld.sshfl [vmem:[#allocation1] sm:$0xff pattern:$0x75316420] }
 0x30b   : > { %v2524_v11 = vld.sshfl [vmem:[#allocation1 + $0x10] sm:$0xff pattern:$0x75316420]  ;;  %3361 = vmatpush.msra.mxu1 %v3290_v55  ;;  %2484 = vrot.lane.b32.xlu1 %v2479_v29, %s6640_s9  ;;  %2497 = vst [vmem:[#allocation1 + $0x1] ss:$2 sm:$0xff] %v2492_v24 }
 0x30c   : > { %2544 = vst [vmem:[#allocation1 + $0x11] ss:$2 sm:$0xff] %v2538_v35  ;;  %3398 = vmatpush.msra.mxu3 %v3303_v43  ;;  %2482 = vrot.lane.b32.xlu0 %v2478_v53, %s6640_s9  ;;  %v3279_v35 = vld [vmem:[#allocation3 + $0x2d8] sm:$0xff]  ;;  %v6644_v43 = vld [vmem:[#allocation48_spill] sm:$0xff] }
 0x30d   : > { %3362 = vmatpush.msra.mxu1 %v3286_v47  ;;  %2480 = vrot.lane.b32.xlu2 %v2477_v7, %s6640_s9  ;;  %v2170_v15 = vpop.permute.xlu1 %2169  ;;  %v2168_v19 = vpop.permute.xlu0 %2167  ;;  %v2537_v53 = vmul.f32 %v5654_v57, %v6644_v43  ;;  %s6684_s9 = smov 62  }
 0x30e   : > { %3399 = vmatpush.msra.mxu3 %v3299_v40  ;;  %v2171_v12 = vsel %vm693_vm15, %v5804_v63, %v2168_v19  ;;  %v2172_v29 = vsel %vm693_vm15, %v2168_v19, %v2170_v15  ;;  %vm6654_vm15 = vmmov %vm6653_vm11 }
 0x30f   : > { %3363 = vmatpush.msra.mxu1 %v3282_v42  ;;  %v2234_v13 = vpop.permute.xlu2 %2233  ;;  %2175 = vst [vmem:[#allocation3 + $0xf8] sm:$0xf] %v2171_v12  ;;  %v2606_v12 = vmul.f32 %v5626_v31, %v5137_v46 }
 0x310   : > { %3400 = vmatpush.msra.mxu3 %v3295_v45  ;;  %2176 = vst [vmem:[#allocation3 + $0x2d0] sm:$0xf] %v2172_v29  ;;  %v6646_v29 = vld [vmem:[#allocation50_spill] sm:$0xff] }
 0x311   : > { %3364 = vmatpush.msra.mxu1 %v3278_v18  ;;  %v2560_v18 = vmul.f32 %v5654_v57, %v6646_v29 }
 0x312   : > { %3401 = vmatpush.msra.mxu3 %v3291_v61  ;;  %v2501_v63 = vld.sshfl [vmem:[#allocation1 + $0x8] sm:$0xff pattern:$0x75316420]  ;;  %v2500_v27 = vld.sshfl [vmem:[#allocation1] sm:$0xff pattern:$0x75316420] }
 0x313   : > { %v2547_v41 = vld.sshfl [vmem:[#allocation1 + $0x10] sm:$0xff pattern:$0x75316420]  ;;  %2507 = vrot.lane.b32.xlu1 %v5817_v38, %s6642_s28  ;;  %2519 = vst [vmem:[#allocation1] ss:$2 sm:$0xff] %v2515_v26 }
 0x314   : > { %2566 = vst [vmem:[#allocation1 + $0x10] ss:$2 sm:$0xff] %v2561_v16  ;;  %3402 = vmatpush.msra.mxu3 %v3287_v51  ;;  %2505 = vrot.lane.b32.xlu0 %v2501_v63, %s6642_s28  ;;  %v6643_v38 = vld [vmem:[#allocation49_spill] sm:$0xff]  ;;  %v2628_v63 = vmul.f32 %v5626_v31, %v5159_v37 }
 0x315   : > { %2503 = vrot.lane.b32.xlu2 %v2500_v27, %s6642_s28  ;;  %v2193_v39 = vpop.permute.xlu1 %2192  ;;  %v2191_v49 = vpop.permute.xlu0 %2190  ;;  %v2583_v24 = vmul.f32 %v5626_v31, %v6643_v38  ;;  %v6647_v27 = vld [vmem:[#allocation51_spill] sm:$0xff]  ;;  %s6688_s28 = smov 61  }
 0x316   : > { %3403 = vmatpush.msra.mxu3 %v3283_v10  ;;  %v2194_v56 = vsel %vm730_vm3, %v5814_v54, %v2191_v49  ;;  %v2195_v55 = vsel %vm730_vm3, %v2191_v49, %v2193_v39  ;;  %v2582_v10 = vmul.f32 %v5654_v57, %v6647_v27  ;;  %vm6657_vm3 = vcmask 556032  }
 0x317   : > { %v2256_v5 = vpop.permute.xlu2 %2255  ;;  %2198 = vst [vmem:[#allocation3 + $0xf8] sm:$0xf0] %v2194_v56 }
 0x318   : > { %3404 = vmatpush.msra.mxu3 %v3279_v35  ;;  %2199 = vst [vmem:[#allocation3 + $0x2d0] sm:$0xf0] %v2195_v55  ;;  %v5878_v55 = vld [vmem:[#allocation2 + $0x14] sm:$0xf] }
 0x319   : > { %v2651_v38 = vmul.f32 %v5878_v55, %v5177_v14 }
 0x31a   : > { %v2523_v7 = vld.sshfl [vmem:[#allocation1 + $0x8] sm:$0xff pattern:$0x75316420]  ;;  %v2522_v40 = vld.sshfl [vmem:[#allocation1] sm:$0xff pattern:$0x75316420] }
 0x31b   : > { %v2569_v47 = vld.sshfl [vmem:[#allocation1 + $0x10] sm:$0xff pattern:$0x75316420]  ;;  %2529 = vrot.lane.b32.xlu1 %v2524_v11, %s6645_s23  ;;  %2542 = vst [vmem:[#allocation1 + $0x1] ss:$2 sm:$0xff] %v2537_v53 }
 0x31c   : > { %2589 = vst [vmem:[#allocation1 + $0x11] ss:$2 sm:$0xff] %v2583_v24  ;;  %2527 = vrot.lane.b32.xlu0 %v2523_v7, %s6645_s23 }
 0x31d   : > { %2525 = vrot.lane.b32.xlu2 %v2522_v40, %s6645_s23  ;;  %v2215_v54 = vpop.permute.xlu1 %2214  ;;  %v2213_v15 = vpop.permute.xlu0 %2212  ;;  %s6694_s23 = smov 48  }
 0x31e   : > { %v2216_v42 = vsel %vm766_vm5, %v5826_v0, %v2213_v15  ;;  %v2217_v19 = vsel %vm766_vm5, %v2213_v15, %v2215_v54  ;;  %vm6658_vm5 = vcmask 900096  }
 0x31f   : > { %v2279_v45 = vpop.permute.xlu2 %2278  ;;  %2220 = vst [vmem:[#allocation3 + $0x110] sm:$0xf] %v2216_v42  ;;  %v2673_v42 = vmul.f32 %v5878_v55, %v5194_v50 }
 0x320   : > { %2221 = vst [vmem:[#allocation3 + $0xa8] sm:$0xf] %v2217_v19 }
 0x322   : > { %v2546_v16 = vld.sshfl [vmem:[#allocation1 + $0x8] sm:$0xff pattern:$0x75316420]  ;;  %v2545_v61 = vld.sshfl [vmem:[#allocation1] sm:$0xff pattern:$0x75316420] }
 0x323   : > { %v2592_v11 = vld.sshfl [vmem:[#allocation1 + $0x10] sm:$0xff pattern:$0x75316420]  ;;  %2552 = vrot.lane.b32.xlu1 %v2547_v41, %s4376_s13  ;;  %2564 = vst [vmem:[#allocation1] ss:$2 sm:$0xff] %v2560_v18 }
 0x324   : > { %2611 = vst [vmem:[#allocation1 + $0x10] ss:$2 sm:$0xff] %v2606_v12  ;;  %2550 = vrot.lane.b32.xlu0 %v2546_v16, %s4376_s13  ;;  %v6652_v12 = vld [vmem:[#allocation53_spill] sm:$0xff] }
 0x325   : > { %2548 = vrot.lane.b32.xlu2 %v2545_v61, %s4376_s13  ;;  %v2238_v0 = vpop.permute.xlu1 %2237  ;;  %v2236_v30 = vpop.permute.xlu0 %2235  ;;  %s6650_s13 = smov 80  }
 0x326   : > { %v2239_v46 = vsel %vm803_vm8, %v2234_v13, %v2236_v30  ;;  %v2240_v26 = vsel %vm803_vm8, %v2236_v30, %v2238_v0  ;;  %v2696_v30 = vmul.f32 %v5878_v55, %v5213_v2  ;;  %vm6659_vm8 = vmmov %vm6658_vm5 }
 0x327   : > { %v2301_v51 = vpop.permute.xlu2 %2300  ;;  %2243 = vst [vmem:[#allocation3 + $0x110] sm:$0xf0] %v2239_v46 }
 0x328   : > { %2244 = vst [vmem:[#allocation3 + $0xa8] sm:$0xf0] %v2240_v26  ;;  %v6655_v26 = vld [vmem:[#allocation54_spill] sm:$0xff] }
 0x32a   : > { %v2568_v39 = vld.sshfl [vmem:[#allocation1 + $0x8] sm:$0xff pattern:$0x75316420]  ;;  %v2567_v49 = vld.sshfl [vmem:[#allocation1] sm:$0xff pattern:$0x75316420] }
 0x32b   : > { %v2614_v41 = vld.sshfl [vmem:[#allocation1 + $0x10] sm:$0xff pattern:$0x75316420]  ;;  %2574 = vrot.lane.b32.xlu1 %v2569_v47, %s6648_s10  ;;  %2587 = vst [vmem:[#allocation1 + $0x1] ss:$2 sm:$0xff] %v2582_v10  ;;  %v6649_v47 = vld [vmem:[#allocation52_spill] sm:$0xff] }
 0x32c   : > { %2634 = vst [vmem:[#allocation1 + $0x11] ss:$2 sm:$0xff] %v2628_v63  ;;  %2572 = vrot.lane.b32.xlu0 %v2568_v39, %s6648_s10  ;;  %v2605_v43 = vmul.f32 %v5654_v57, %v6649_v47  ;;  %v2650_v63 = vmul.f32 %v5654_v57, %v6655_v26  ;;  %v3212_v10 = vld [vmem:[#allocation8] sm:$0xff]  ;;  %v3213_v39 = vld [vmem:[#allocation8 + $0x8] sm:$0xff] }
 0x32d   : > { %2570 = vrot.lane.b32.xlu2 %v2567_v49, %s6648_s10  ;;  %v2260_v13 = vpop.permute.xlu1 %2259  ;;  %v2258_v35 = vpop.permute.xlu0 %2257  ;;  %3385 = vmatmul.f32.vlgmr.msra.gmra.mxu2 %v3212_v10  ;;  %s6696_s10 = smov 47  }
 0x32e   : > { %v2261_v37 = vsel %vm839_vm12, %v2256_v5, %v2258_v35  ;;  %v2262_v31 = vsel %vm839_vm12, %v2258_v35, %v2260_v13  ;;  %3889 = vmatmul.msk.f32.vlgmr.msra.gmra.mxu3 %vm6657_vm3, %v3213_v39  ;;  %vm6660_vm12 = vmmov %vm6657_vm3  ;;  %3345 = vmatmul.f32.vlgmr.msra.gmra.mxu0 %v3212_v10  ;;  %v2718_v35 = vmul.f32 %v5878_v55, %v5231_v9  ;;  %v6672_v10 = vld [vmem:[#allocation58_spill] sm:$0xff] }
 0x32f   : > { %v2324_v56 = vpop.permute.xlu2 %2323  ;;  %2265 = vst [vmem:[#allocation3 + $0x1c0] sm:$0xf] %v2261_v37  ;;  %3887 = vmatmul.msk.f32.vlgmr.msra.gmra.mxu1 %vm6660_vm12, %v3213_v39  ;;  %vm6674_vm12 = vcmask 867328  }
 0x330   : > { %2266 = vst [vmem:[#allocation3 + $0x1d8] sm:$0xf] %v2262_v31  ;;  %v5911_v31 = vld [vmem:[#allocation2 + $0xc] sm:$0xff] }
 0x331   : > { %v2740_v39 = vmul.f32 %v5911_v31, %v6672_v10 }
 0x332   : > { %v2590_v53 = vld.sshfl [vmem:[#allocation1] sm:$0xff pattern:$0x75316420]  ;;  %v2591_v7 = vld.sshfl [vmem:[#allocation1 + $0x8] sm:$0xff pattern:$0x75316420] }
 0x333   : > { %v2637_v24 = vld.sshfl [vmem:[#allocation1 + $0x10] sm:$0xff pattern:$0x75316420]  ;;  %2597 = vrot.lane.b32.xlu1 %v2592_v11, %s6650_s13  ;;  %2609 = vst [vmem:[#allocation1] ss:$2 sm:$0xff] %v2605_v43  ;;  %v2627_v11 = vmul.f32 %v5654_v57, %v6652_v12 }
 0x334   : > { %2656 = vst [vmem:[#allocation1 + $0x10] ss:$2 sm:$0xff] %v2651_v38  ;;  %2619 = vrot.lane.b32.xlu0 %v2614_v41, %s6651_s25  ;;  %v6661_v38 = vld [vmem:[#allocation55_spill] sm:$0xff] }
 0x335   : > { %2593 = vrot.lane.b32.xlu2 %v2590_v53, %s6650_s13  ;;  %v2283_v5 = vpop.permute.xlu1 %2282  ;;  %v2281_v40 = vpop.permute.xlu0 %2280 }
 0x336   : > { %v2284_v14 = vsel %vm870_vm14, %v2279_v45, %v2281_v40  ;;  %v2285_v54 = vsel %vm870_vm14, %v2281_v40, %v2283_v5  ;;  %vm6663_vm14 = vcmask 891904   ;;  %v2741_v40 = vmul.f32 %v5878_v55, %v5252_v44 }
 0x337   : > { %v2346_v15 = vpop.permute.xlu2 %2345  ;;  %2288 = vst [vmem:[#allocation3 + $0x1c0] sm:$0xf0] %v2284_v14 }
 0x338   : > { %2289 = vst [vmem:[#allocation3 + $0x1d8] sm:$0xf0] %v2285_v54  ;;  %v6665_v54 = vld [vmem:[#allocation56_spill] sm:$0xff] }
 0x33a   : > { %v2613_v29 = vld.sshfl [vmem:[#allocation1 + $0x8] sm:$0xff pattern:$0x75316420]  ;;  %v2612_v18 = vld.sshfl [vmem:[#allocation1] sm:$0xff pattern:$0x75316420] }
 0x33b   : > { %v2659_v19 = vld.sshfl [vmem:[#allocation1 + $0x10] sm:$0xff pattern:$0x75316420]  ;;  %2615 = vrot.lane.b32.xlu1 %v2612_v18, %s6651_s25  ;;  %2632 = vst [vmem:[#allocation1 + $0x1] ss:$2 sm:$0xff] %v2627_v11 }
 0x33c   : > { %2679 = vst [vmem:[#allocation1 + $0x11] ss:$2 sm:$0xff] %v2673_v42  ;;  %2595 = vrot.lane.b32.xlu0 %v2591_v7, %s6650_s13  ;;  %v2695_v42 = vmul.f32 %v5911_v31, %v6665_v54  ;;  %s6702_s13 = smov 45  }
 0x33d   : > { %2617 = vrot.lane.b32.xlu2 %v2613_v29, %s6651_s25  ;;  %v2305_v45 = vpop.permute.xlu1 %2304  ;;  %v2303_v16 = vpop.permute.xlu0 %2302  ;;  %s6707_s25 = smov 44  }
 0x33e   : > { %v2306_v50 = vsel %vm6653_vm11, %v2301_v51, %v2303_v16  ;;  %v2307_v61 = vsel %vm6654_vm15, %v2303_v16, %v2305_v45  ;;  %vm6664_vm11 = vmmov %vm6663_vm14  ;;  %vm6667_vm15 = vcmask 883712   ;;  %v2763_v45 = vmul.f32 %v5878_v55, %v5270_v23 }
 0x33f   : > { %v2369_v0 = vpop.permute.xlu2 %2368  ;;  %2310 = vst [vmem:[#allocation3 + $0x298] sm:$0xf] %v2306_v50  ;;  %vm6668_vm3 = vmmov %vm6667_vm15  ;;  %v6669_v50 = vld [vmem:[#allocation57_spill] sm:$0xff] }
 0x340   : > { %2311 = vst [vmem:[#allocation3 + $0x2a8] sm:$0xf] %v2307_v61  ;;  %v2717_v61 = vmul.f32 %v5911_v31, %v6669_v50 }
 0x342   : > { %v2636_v41 = vld.sshfl [vmem:[#allocation1 + $0x8] sm:$0xff pattern:$0x75316420]  ;;  %v2635_v27 = vld.sshfl [vmem:[#allocation1] sm:$0xff pattern:$0x75316420] }
 0x343   : > { %v2682_v46 = vld.sshfl [vmem:[#allocation1 + $0x10] sm:$0xff pattern:$0x75316420]  ;;  %2638 = vrot.lane.b32.xlu1 %v2635_v27, %s6656_s8  ;;  %2654 = vst [vmem:[#allocation1] ss:$2 sm:$0xff] %v2650_v63  ;;  %v2786_v27 = vmul.f32 %v5878_v55, %v5291_v34 }
 0x344   : > { %2701 = vst [vmem:[#allocation1 + $0x10] ss:$2 sm:$0xff] %v2696_v30  ;;  %2642 = vrot.lane.b32.xlu0 %v2637_v24, %s6656_s8  ;;  %v2672_v24 = vmul.f32 %v5911_v31, %v6661_v38  ;;  %v2808_v38 = vmul.f32 %v5878_v55, %v5309_v62 }
 0x345   : > { %2640 = vrot.lane.b32.xlu2 %v2636_v41, %s6656_s8  ;;  %v2328_v51 = vpop.permute.xlu1 %2327  ;;  %v2326_v2 = vpop.permute.xlu0 %2325  ;;  %s3489_s8 = sld [smem:[#allocation11]] }
 0x346   : > { %v2329_v49 = vsel %vm6658_vm5, %v2324_v56, %v2326_v2  ;;  %v2330_v57 = vsel %vm6659_vm8, %v2326_v2, %v2328_v51  ;;  %vm6670_vm5 = vcmask 875520  }
 0x347   : > { %v2391_v13 = vpop.permute.xlu2 %2390  ;;  %2333 = vst [vmem:[#allocation3 + $0x298] sm:$0xf0] %v2329_v49  ;;  %vm6671_vm8 = vmmov %vm6670_vm5 }
 0x348   : > { %2334 = vst [vmem:[#allocation3 + $0x2a8] sm:$0xf0] %v2330_v57 }
 0x34a   : > { %v2658_v47 = vld.sshfl [vmem:[#allocation1 + $0x8] sm:$0xff pattern:$0x75316420]  ;;  %v2657_v56 = vld.sshfl [vmem:[#allocation1] sm:$0xff pattern:$0x75316420] }
 0x34b   : > { %v2704_v37 = vld.sshfl [vmem:[#allocation1 + $0x10] sm:$0xff pattern:$0x75316420]  ;;  %2660 = vrot.lane.b32.xlu1 %v2657_v56, %s6662_s14  ;;  %2677 = vst [vmem:[#allocation1 + $0x1] ss:$2 sm:$0xff] %v2672_v24 }
 0x34c   : > { %2724 = vst [vmem:[#allocation1 + $0x11] ss:$2 sm:$0xff] %v2718_v35  ;;  %2664 = vrot.lane.b32.xlu0 %v2659_v19, %s6662_s14 }
 0x34d   : > { %2662 = vrot.lane.b32.xlu2 %v2658_v47, %s6662_s14  ;;  %v2350_v43 = vpop.permute.xlu1 %2349  ;;  %v2348_v9 = vpop.permute.xlu0 %2347  ;;  %v6676_v47 = vld [vmem:[#allocation59_spill] sm:$0xff]  ;;  %s6714_s14 = smov 42  }
 0x34e   : > { %v2351_v53 = vsel %vm6663_vm14, %v2346_v15, %v2348_v9  ;;  %v2352_v7 = vsel %vm6664_vm11, %v2348_v9, %v2350_v43  ;;  %vm6675_vm14 = vmmov %vm6674_vm12  ;;  %v2762_v56 = vmul.f32 %v5911_v31, %v6676_v47  ;;  %v6691_v47 = vld [vmem:[#allocation64_spill] sm:$0xff] }
 0x34f   : > { %v2414_v5 = vpop.permute.xlu2 %2413  ;;  %2355 = vst [vmem:[#allocation3 + $0x68] sm:$0xf] %v2351_v53 }
 0x350   : > { %2356 = vst [vmem:[#allocation3 + $0x18] sm:$0xf] %v2352_v7 }
 0x352   : > { %v2681_v19 = vld.sshfl [vmem:[#allocation1 + $0x8] sm:$0xff pattern:$0x75316420]  ;;  %v2680_v12 = vld.sshfl [vmem:[#allocation1] sm:$0xff pattern:$0x75316420] }
 0x353   : > { %v2727_v14 = vld.sshfl [vmem:[#allocation1 + $0x10] sm:$0xff pattern:$0x75316420]  ;;  %2683 = vrot.lane.b32.xlu1 %v2680_v12, %s6666_s12  ;;  %2699 = vst [vmem:[#allocation1] ss:$2 sm:$0xff] %v2695_v42  ;;  %v6678_v42 = vld [vmem:[#allocation60_spill] sm:$0xff] }
 0x354   : > { %2746 = vst [vmem:[#allocation1 + $0x10] ss:$2 sm:$0xff] %v2741_v40  ;;  %2687 = vrot.lane.b32.xlu0 %v2682_v46, %s6666_s12 }
 0x355   : > { %2685 = vrot.lane.b32.xlu2 %v2681_v19, %s6666_s12  ;;  %v2373_v15 = vpop.permute.xlu1 %2372  ;;  %v2371_v11 = vpop.permute.xlu0 %2370  ;;  %v2785_v19 = vmul.f32 %v5911_v31, %v6678_v42  ;;  %s3493_s12 = sld [smem:[#allocation12]] }
 0x356   : > { %v2374_v44 = vsel %vm6667_vm15, %v2369_v0, %v2371_v11  ;;  %v2375_v29 = vsel %vm6668_vm3, %v2371_v11, %v2373_v15  ;;  %vm6685_vm15 = vcmask 769024  }
 0x357   : > { %v2436_v18 = vpop.permute.xlu2 %2435  ;;  %2378 = vst [vmem:[#allocation3 + $0x68] sm:$0xf0] %v2374_v44  ;;  %vm6686_vm3 = vmmov %vm6685_vm15 }
 0x358   : > { %2379 = vst [vmem:[#allocation3 + $0x18] sm:$0xf0] %v2375_v29 }
 0x35a   : > { %v2703_v30 = vld.sshfl [vmem:[#allocation1 + $0x8] sm:$0xff pattern:$0x75316420]  ;;  %v2702_v46 = vld.sshfl [vmem:[#allocation1] sm:$0xff pattern:$0x75316420] }
 0x35b   : > { %v2749_v16 = vld.sshfl [vmem:[#allocation1 + $0x10] sm:$0xff pattern:$0x75316420]  ;;  %2705 = vrot.lane.b32.xlu1 %v2702_v46, %s4382_s29  ;;  %2722 = vst [vmem:[#allocation1 + $0x1] ss:$2 sm:$0xff] %v2717_v61 }
 0x35c   : > { %2769 = vst [vmem:[#allocation1 + $0x11] ss:$2 sm:$0xff] %v2763_v45  ;;  %2709 = vrot.lane.b32.xlu0 %v2704_v37, %s4382_s29  ;;  %v6682_v45 = vld [vmem:[#allocation62_spill] sm:$0xff]  ;;  %v6683_v61 = vld [vmem:[#allocation61_spill] sm:$0xff] }
 0x35d   : > { %2707 = vrot.lane.b32.xlu2 %v2703_v30, %s4382_s29  ;;  %v2395_v0 = vpop.permute.xlu1 %2394  ;;  %v2393_v26 = vpop.permute.xlu0 %2392  ;;  %s6673_s29 = smov 74   ;;  %v2807_v30 = vmul.f32 %v5911_v31, %v6683_v61 }
 0x35e   : > { %v2396_v23 = vsel %vm6670_vm5, %v2391_v13, %v2393_v26  ;;  %v2397_v63 = vsel %vm6671_vm8, %v2393_v26, %v2395_v0  ;;  %vm6689_vm5 = vcmask 760832  }
 0x35f   : > { %v2459_v41 = vpop.permute.xlu2 %2458  ;;  %2400 = vst [vmem:[#allocation3 + $0x2c8] sm:$0xf] %v2396_v23  ;;  %vm6690_vm8 = vmmov %vm6689_vm5 }
 0x360   : > { %2401 = vst [vmem:[#allocation3 + $0x50] sm:$0xf] %v2397_v63 }
 0x362   : > { %v2726_v2 = vld.sshfl [vmem:[#allocation1 + $0x8] sm:$0xff pattern:$0x75316420]  ;;  %v2725_v49 = vld.sshfl [vmem:[#allocation1] sm:$0xff pattern:$0x75316420] }
 0x363   : > { %v2772_v51 = vld.sshfl [vmem:[#allocation1 + $0x10] sm:$0xff pattern:$0x75316420]  ;;  %2728 = vrot.lane.b32.xlu1 %v2725_v49, %s6673_s29  ;;  %2744 = vst [vmem:[#allocation1] ss:$2 sm:$0xff] %v2740_v39  ;;  %v6687_v39 = vld [vmem:[#allocation63_spill] sm:$0xff] }
 0x364   : > { %2791 = vst [vmem:[#allocation1 + $0x10] ss:$2 sm:$0xff] %v2786_v27  ;;  %2732 = vrot.lane.b32.xlu0 %v2727_v14, %s6673_s29  ;;  %v2831_v14 = vmul.f32 %v5878_v55, %v5328_v4 }
 0x365   : > { %2730 = vrot.lane.b32.xlu2 %v2726_v2, %s6673_s29  ;;  %v2418_v57 = vpop.permute.xlu1 %2417  ;;  %v2416_v13 = vpop.permute.xlu0 %2415  ;;  %v2830_v2 = vmul.f32 %v5911_v31, %v6687_v39  ;;  %s3899_s29 = sld [smem:[#allocation11 + $0x1]] }
 0x366   : > { %v2419_v34 = vsel %vm6674_vm12, %v2414_v5, %v2416_v13  ;;  %v2420_v35 = vsel %vm6675_vm14, %v2416_v13, %v2418_v57  ;;  %vm6692_vm12 = vcmask 752640  }
 0x367   : > { %v2481_v37 = vpop.permute.xlu2 %2480  ;;  %2423 = vst [vmem:[#allocation3 + $0x2c8] sm:$0xf0] %v2419_v34  ;;  %vm6693_vm14 = vmmov %vm6692_vm12 }
 0x368   : > { %2424 = vst [vmem:[#allocation3 + $0x50] sm:$0xf0] %v2420_v35 }
 0x36a   : > { %v2748_v43 = vld.sshfl [vmem:[#allocation1 + $0x8] sm:$0xff pattern:$0x75316420]  ;;  %v2747_v9 = vld.sshfl [vmem:[#allocation1] sm:$0xff pattern:$0x75316420] }
 0x36b   : > { %v2794_v24 = vld.sshfl [vmem:[#allocation1 + $0x10] sm:$0xff pattern:$0x75316420]  ;;  %2750 = vrot.lane.b32.xlu1 %v2747_v9, %s6677_s15  ;;  %2767 = vst [vmem:[#allocation1 + $0x1] ss:$2 sm:$0xff] %v2762_v56  ;;  %v2852_v56 = vmul.f32 %v5911_v31, %v6691_v47  ;;  %v3011_v47 = vmul.f32 %v5878_v55, %v5476_v60 }
 0x36c   : > { %2814 = vst [vmem:[#allocation1 + $0x11] ss:$2 sm:$0xff] %v2808_v38  ;;  %2754 = vrot.lane.b32.xlu0 %v2749_v16, %s6677_s15  ;;  %v2853_v16 = vmul.f32 %v5878_v55, %v6682_v45  ;;  %v2898_v38 = vmul.f32 %v5878_v55, %v5388_v32 }
 0x36d   : > { %2752 = vrot.lane.b32.xlu2 %v2748_v43, %s6677_s15  ;;  %v2440_v53 = vpop.permute.xlu1 %2439  ;;  %v2438_v7 = vpop.permute.xlu0 %2437  ;;  %s6072_s15 = sld [smem:[#allocation12 + $0x1]] }
 0x36e   : > { %v2441_v62 = vsel %vm1083_vm13, %v2436_v18, %v2438_v7  ;;  %v2442_v5 = vsel %vm1083_vm13, %v2438_v7, %v2440_v53  ;;  %vm6680_vm13 = vcmask 777216  }
 0x36f   : > { %v2504_v40 = vpop.permute.xlu2 %2503  ;;  %2445 = vst [vmem:[#allocation3 + $0x140] sm:$0xf] %v2441_v62  ;;  %vm6681_vm11 = vmmov %vm6680_vm13 }
 0x370   : > { %2446 = vst [vmem:[#allocation3 + $0x248] sm:$0xf] %v2442_v5 }
 0x372   : > { %v2771_v12 = vld.sshfl [vmem:[#allocation1 + $0x8] sm:$0xff pattern:$0x75316420]  ;;  %v2770_v15 = vld.sshfl [vmem:[#allocation1] sm:$0xff pattern:$0x75316420] }
 0x373   : > { %v2817_v54 = vld.sshfl [vmem:[#allocation1 + $0x10] sm:$0xff pattern:$0x75316420]  ;;  %2773 = vrot.lane.b32.xlu1 %v2770_v15, %s6679_s1  ;;  %2789 = vst [vmem:[#allocation1] ss:$2 sm:$0xff] %v2785_v19 }
 0x374   : > { %2836 = vst [vmem:[#allocation1 + $0x10] ss:$2 sm:$0xff] %v2831_v14  ;;  %2777 = vrot.lane.b32.xlu0 %v2772_v51, %s6679_s1  ;;  %v2876_v51 = vmul.f32 %v5878_v55, %v5370_v59 }
 0x375   : > { %2775 = vrot.lane.b32.xlu2 %v2771_v12, %s6679_s1  ;;  %v2463_v11 = vpop.permute.xlu1 %2462  ;;  %s6718_s1 = smov 32  }
 0x376   : > { %v2461_v44 = vpop.permute.xlu0 %2460 }
 0x377   : > { %v2464_v4 = vsel %vm6680_vm13, %v2459_v41, %v2461_v44  ;;  %v2465_v29 = vsel %vm6681_vm11, %v2461_v44, %v2463_v11  ;;  %v2526_v18 = vpop.permute.xlu2 %2525  ;;  %vm6700_vm11 = vcmask 646144  }
 0x378   : > { %2468 = vst [vmem:[#allocation3 + $0x140] sm:$0xf0] %v2464_v4  ;;  %v2943_v4 = vmul.f32 %v5878_v55, %v5426_v33 }
 0x379   : > { %2469 = vst [vmem:[#allocation3 + $0x248] sm:$0xf0] %v2465_v29  ;;  %v6695_v29 = vld [vmem:[#allocation65_spill] sm:$0xff] }
 0x37a   : > { %v2793_v46 = vld.sshfl [vmem:[#allocation1 + $0x8] sm:$0xff pattern:$0x75316420]  ;;  %v2792_v0 = vld.sshfl [vmem:[#allocation1] sm:$0xff pattern:$0x75316420] }
 0x37b   : > { %v5967_v50 = vld.sshfl [vmem:[#allocation1 + $0x10] sm:$0xff pattern:$0x75316420]  ;;  %2795 = vrot.lane.b32.xlu1 %v2792_v0, %s6684_s9  ;;  %2812 = vst [vmem:[#allocation1 + $0x1] ss:$2 sm:$0xff] %v2807_v30 }
 0x37c   : > { %2859 = vst [vmem:[#allocation1 + $0x11] ss:$2 sm:$0xff] %v2853_v16  ;;  %2799 = vrot.lane.b32.xlu0 %v2794_v24, %s6684_s9 }
 0x37d   : > { %2797 = vrot.lane.b32.xlu2 %v2793_v46, %s6684_s9  ;;  %v2485_v26 = vpop.permute.xlu1 %2484  ;;  %s6724_s9 = smov 30  }
 0x37e   : > { %v2483_v23 = vpop.permute.xlu0 %2482 }
 0x37f   : > { %v2486_v63 = vsel %vm6685_vm15, %v2481_v37, %v2483_v23  ;;  %v2487_v41 = vsel %vm6686_vm3, %v2483_v23, %v2485_v26  ;;  %v2549_v27 = vpop.permute.xlu2 %2548  ;;  %v2966_v26 = vmul.f32 %v5878_v55, %v5445_v25  ;;  %vm6703_vm15 = vcmask 654336  }
 0x380   : > { %2490 = vst [vmem:[#allocation3 + $0x118] sm:$0xf] %v2486_v63  ;;  %v2920_v63 = vmul.f32 %v5911_v31, %v5436_v58  ;;  %vm6704_vm3 = vmmov %vm6703_vm15 }
 0x381   : > { %2491 = vst [vmem:[#allocation3 + $0x188] sm:$0xf] %v2487_v41 }
 0x382   : > { %v2816_v49 = vld.sshfl [vmem:[#allocation1 + $0x8] sm:$0xff pattern:$0x75316420]  ;;  %v2815_v57 = vld.sshfl [vmem:[#allocation1] sm:$0xff pattern:$0x75316420] }
 0x383   : > { %v5978_v10 = vld.sshfl [vmem:[#allocation1 + $0x10] sm:$0xff pattern:$0x75316420]  ;;  %2818 = vrot.lane.b32.xlu1 %v2815_v57, %s6688_s28  ;;  %2834 = vst [vmem:[#allocation1] ss:$2 sm:$0xff] %v2830_v2  ;;  %v2988_v2 = vmul.f32 %v5878_v55, %v5461_v6  ;;  %v6701_v57 = vld [vmem:[#allocation66_spill] sm:$0xff] }
 0x384   : > { %2881 = vst [vmem:[#allocation1 + $0x10] ss:$2 sm:$0xff] %v2876_v51  ;;  %2822 = vrot.lane.b32.xlu0 %v2817_v54, %s6688_s28  ;;  %v2875_v54 = vmul.f32 %v5911_v31, %v5397_v20 }
 0x385   : > { %2820 = vrot.lane.b32.xlu2 %v2816_v49, %s6688_s28  ;;  %v2508_v13 = vpop.permute.xlu1 %2507  ;;  %s6728_s28 = smov 29  }
 0x386   : > { %v2506_v34 = vpop.permute.xlu0 %2505 }
 0x387   : > { %v2509_v59 = vsel %vm6689_vm5, %v2504_v40, %v2506_v34  ;;  %v2510_v35 = vsel %vm6690_vm8, %v2506_v34, %v2508_v13  ;;  %v2571_v37 = vpop.permute.xlu2 %2570  ;;  %v2921_v40 = vmul.f32 %v5878_v55, %v5406_v3  ;;  %v2942_v13 = vmul.f32 %v5911_v31, %v6701_v57  ;;  %vm6705_vm5 = vmmov %vm6700_vm11 }
 0x388   : > { %2513 = vst [vmem:[#allocation3 + $0x118] sm:$0xf0] %v2509_v59  ;;  %vm6708_vm8 = vcmask 637952   ;;  %v6070_v57 = vstv %s3489_s8 }
 0x389   : > { %2514 = vst [vmem:[#allocation3 + $0x188] sm:$0xf0] %v2510_v35 }
 0x38a   : > { %v5991_v43 = vld.sshfl [vmem:[#allocation1] sm:$0xff pattern:$0x75316420]  ;;  %v5993_v9 = vld.sshfl [vmem:[#allocation1 + $0x8] sm:$0xff pattern:$0x75316420] }
 0x38b   : > { %v2884_v24 = vld.sshfl [vmem:[#allocation1 + $0x10] sm:$0xff pattern:$0x75316420]  ;;  %2857 = vst [vmem:[#allocation1 + $0x1] ss:$2 sm:$0xff] %v2852_v56 }
 0x38c   : > { %2904 = vst [vmem:[#allocation1 + $0x11] ss:$2 sm:$0xff] %v2898_v38  ;;  %2889 = vrot.lane.b32.xlu1 %v2884_v24, %s4389_s16 }
 0x38d   : > { %v2530_v53 = vpop.permute.xlu1 %2529 }
 0x38e   : > { %v2528_v7 = vpop.permute.xlu0 %2527 }
 0x38f   : > { %v2531_v62 = vsel %vm6692_vm12, %v2526_v18, %v2528_v7  ;;  %v2532_v32 = vsel %vm6693_vm14, %v2528_v7, %v2530_v53  ;;  %v5998_v5 = vpop.permute.xlu2 %2593  ;;  %v2897_v18 = vmul.f32 %v5911_v31, %v6695_v29  ;;  %v6706_v53 = vld [vmem:[#allocation67_spill] sm:$0xff]  ;;  %vm6709_vm12 = vmmov %vm6708_vm8  ;;  %vm6711_vm14 = vcmask 629760  }
 0x390   : > { %2535 = vst [vmem:[#allocation3 + $0x178] sm:$0xf] %v2531_v62  ;;  %v2965_v7 = vmul.f32 %v5911_v31, %v6706_v53 }
 0x391   : > { %2536 = vst [vmem:[#allocation3 + $0x2c0] sm:$0xf] %v2532_v32 }
 0x392   : > { %v6004_v42 = vld.sshfl [vmem:[#allocation1] sm:$0xff pattern:$0x75316420]  ;;  %v6006_v19 = vld.sshfl [vmem:[#allocation1 + $0x8] sm:$0xff pattern:$0x75316420] }
 0x393   : > { %v2907_v14 = vld.sshfl [vmem:[#allocation1 + $0x10] sm:$0xff pattern:$0x75316420]  ;;  %2879 = vst [vmem:[#allocation1] ss:$2 sm:$0xff] %v2875_v54 }
 0x394   : > { %2926 = vst [vmem:[#allocation1 + $0x10] ss:$2 sm:$0xff] %v2921_v40  ;;  %2912 = vrot.lane.b32.xlu1 %v2907_v14, %s6694_s23 }
 0x395   : > { %v2553_v12 = vpop.permute.xlu1 %2552 }
 0x396   : > { %v2551_v15 = vpop.permute.xlu0 %2550 }
 0x397   : > { %v2554_v11 = vsel %vm1236_vm7, %v2549_v27, %v2551_v15  ;;  %v2555_v3 = vsel %vm1236_vm7, %v2551_v15, %v2553_v12  ;;  %v2618_v44 = vpop.permute.xlu2 %2617  ;;  %vm6697_vm7 = vcmask 736256   ;;  %v3033_v12 = vmul.f32 %v5878_v55, %v5492_v21 }
 0x398   : > { %2558 = vst [vmem:[#allocation3 + $0x178] sm:$0xf0] %v2554_v11  ;;  %vm6698_vm13 = vmmov %vm6697_vm7  ;;  %v6710_v11 = vld [vmem:[#allocation68_spill] sm:$0xff] }
 0x399   : > { %2559 = vst [vmem:[#allocation3 + $0x2c0] sm:$0xf0] %v2555_v3  ;;  %v2987_v3 = vmul.f32 %v5911_v31, %v6710_v11 }
 0x39a   : > { %v2883_v45 = vld.sshfl [vmem:[#allocation1 + $0x8] sm:$0xff pattern:$0x75316420]  ;;  %v2882_v16 = vld.sshfl [vmem:[#allocation1] sm:$0xff pattern:$0x75316420] }
 0x39b   : > { %v2929_v20 = vld.sshfl [vmem:[#allocation1 + $0x10] sm:$0xff pattern:$0x75316420]  ;;  %2887 = vrot.lane.b32.xlu0 %v2883_v45, %s4389_s16  ;;  %2902 = vst [vmem:[#allocation1 + $0x1] ss:$2 sm:$0xff] %v2897_v18  ;;  %2885 = vrot.lane.b32.xlu2 %v2882_v16, %s4389_s16  ;;  %s6699_s16 = smov 46   ;;  %v3056_v16 = vmul.f32 %v5878_v55, %v5510_v52 }
 0x39c   : > { %2949 = vst [vmem:[#allocation1 + $0x11] ss:$2 sm:$0xff] %v2943_v4  ;;  %2934 = vrot.lane.b32.xlu1 %v2929_v20, %s6696_s10 }
 0x39d   : > { %v2575_v61 = vpop.permute.xlu1 %2574 }
 0x39e   : > { %v2573_v30 = vpop.permute.xlu0 %2572 }
 0x39f   : > { %v2576_v33 = vsel %vm6697_vm7, %v2571_v37, %v2573_v30  ;;  %v2577_v46 = vsel %vm6698_vm13, %v2573_v30, %v2575_v61  ;;  %v2641_v0 = vpop.permute.xlu2 %2640  ;;  %vm6712_vm7 = vmmov %vm6711_vm14  ;;  %v6713_v30 = vld [vmem:[#allocation69_spill] sm:$0xff]  ;;  %vm6715_vm13 = vcmask 621568  }
 0x3a0   : > { %2580 = vst [vmem:[#allocation3 + $0x198] sm:$0xf] %v2576_v33  ;;  %v3010_v33 = vmul.f32 %v5911_v31, %v6713_v30 }
 0x3a1   : > { %2581 = vst [vmem:[#allocation3 + $0x2b0] sm:$0xf] %v2577_v46 }
 0x3a2   : > { %v2906_v41 = vld.sshfl [vmem:[#allocation1 + $0x8] sm:$0xff pattern:$0x75316420]  ;;  %v2905_v27 = vld.sshfl [vmem:[#allocation1] sm:$0xff pattern:$0x75316420] }
 0x3a3   : > { %v2952_v23 = vld.sshfl [vmem:[#allocation1 + $0x10] sm:$0xff pattern:$0x75316420]  ;;  %2910 = vrot.lane.b32.xlu0 %v2906_v41, %s6694_s23  ;;  %2924 = vst [vmem:[#allocation1] ss:$2 sm:$0xff] %v2920_v63  ;;  %2908 = vrot.lane.b32.xlu2 %v2905_v27, %s6694_s23  ;;  %v3078_v27 = vmul.f32 %v5878_v55, %v5526_v28  ;;  %s6734_s23 = smov 28  }
 0x3a4   : > { %2971 = vst [vmem:[#allocation1 + $0x10] ss:$2 sm:$0xff] %v2966_v26  ;;  %2957 = vrot.lane.b32.xlu1 %v2952_v23, %s6699_s16 }
 0x3a5   : > { %v2598_v51 = vpop.permute.xlu1 %2597 }
 0x3a6   : > { %v2620_v39 = vpop.permute.xlu0 %2619 }
 0x3a7   : > { %v2622_v25 = vsel %vm6700_vm11, %v2618_v44, %v2620_v39  ;;  %v2663_v49 = vpop.permute.xlu2 %2662  ;;  %vm6716_vm11 = vmmov %vm6715_vm13 }
 0x3a8   : > { %2626 = vst [vmem:[#allocation3] sm:$0xf] %v2622_v25 }
 0x3aa   : > { %v2928_v34 = vld.sshfl [vmem:[#allocation1 + $0x8] sm:$0xff pattern:$0x75316420]  ;;  %v2927_v59 = vld.sshfl [vmem:[#allocation1] sm:$0xff pattern:$0x75316420] }
 0x3ab   : > { %v2974_v58 = vld.sshfl [vmem:[#allocation1 + $0x10] sm:$0xff pattern:$0x75316420]  ;;  %2932 = vrot.lane.b32.xlu0 %v2928_v34, %s6696_s10  ;;  %2947 = vst [vmem:[#allocation1 + $0x1] ss:$2 sm:$0xff] %v2942_v13  ;;  %2930 = vrot.lane.b32.xlu2 %v2927_v59, %s6696_s10  ;;  %s3882_s10 = sshll.u32 %s4557_s26, 3 }
 0x3ac   : > { %2994 = vst [vmem:[#allocation1 + $0x11] ss:$2 sm:$0xff] %v2988_v2  ;;  %2979 = vrot.lane.b32.xlu1 %v2974_v58, %s6702_s13  ;;  %v3366_v39 = vpop.f32.mrf.mxu1 }
 0x3ad   : > { %v2616_v37 = vpop.permute.xlu1 %2615 }
 0x3ae   : > { %v2596_v35 = vpop.permute.xlu0 %2595  ;;  %v2621_v24 = vsel %vm6705_vm5, %v2616_v37, %v2618_v44  ;;  %v6078_v37 = vstv %s3493_s12 }
 0x3af   : > { %v2599_v6 = vsel %vm6703_vm15, %v5998_v5, %v2596_v35  ;;  %v2600_v38 = vsel %vm6704_vm3, %v2596_v35, %v2598_v51  ;;  %2625 = vst [vmem:[#allocation3 + $0x210] sm:$0xf] %v2621_v24  ;;  %v2686_v62 = vpop.permute.xlu2 %2685  ;;  %v3346_v51 = vpop.f32.mrf.mxu0  ;;  %vm6725_vm3 = vcmask 523264  }
 0x3b0   : > { %2603 = vst [vmem:[#allocation3 + $0x198] sm:$0xf0] %v2599_v6  ;;  %v3367_v2 = vadd.f32 %v3366_v39, %v3346_v51  ;;  %v3386_v28 = vpop.f32.mrf.mxu2  ;;  %vm6726_vm5 = vmmov %vm6725_vm3 }
 0x3b1   : > { %2604 = vst [vmem:[#allocation3 + $0x2b0] sm:$0xf0] %v2600_v38  ;;  %v3406_v35 = vpop.f32.mrf.mxu3 }
 0x3b2   : > { %v2951_v32 = vld.sshfl [vmem:[#allocation1 + $0x8] sm:$0xff pattern:$0x75316420]  ;;  %v2950_v5 = vld.sshfl [vmem:[#allocation1] sm:$0xff pattern:$0x75316420]  ;;  %v3491_v59 = vmul.f32 %v6070_v57, %v3367_v2  ;;  %v3407_v6 = vadd.f32 %v3406_v35, %v3386_v28 }
 0x3b3   : > { %v2997_v56 = vld.sshfl [vmem:[#allocation1 + $0x10] sm:$0xff pattern:$0x75316420]  ;;  %2955 = vrot.lane.b32.xlu0 %v2951_v32, %s6699_s16  ;;  %2953 = vrot.lane.b32.xlu2 %v2950_v5, %s6699_s16  ;;  %2969 = vst [vmem:[#allocation1] ss:$2 sm:$0xff] %v2965_v7  ;;  %v6084_v32 = vstv %s3899_s29  ;;  %v3101_v5 = vmul.f32 %v5878_v55, %v5543_v17  ;;  %s6189_s16 = scalar_lea.vmem [#allocation14], %s3882_s10 }
 0x3b4   : > { %3016 = vst [vmem:[#allocation1 + $0x10] ss:$2 sm:$0xff] %v3011_v47  ;;  %3002 = vrot.lane.b32.xlu1 %v2997_v56, %s6707_s25  ;;  %v3495_v47 = vadd.f32 %v6078_v37, %v3491_v59  ;;  %v3492_v7 = vmul.f32 %v6070_v57, %v3407_v6  ;;  %v6727_v28 = vld [vmem:[#allocation73_spill] sm:$0xff] }
 0x3b5   : > { %v2639_v14 = vpop.permute.xlu1 %2638  ;;  %v3100_v35 = vmul.f32 %v5911_v31, %v6727_v28  ;;  %v6742_v28 = vld [vmem:[#allocation75_spill] sm:$0xff] }
 0x3b6   : > { %v2643_v40 = vpop.permute.xlu0 %2642  ;;  %v2644_v54 = vsel %vm6709_vm12, %v2639_v14, %v2641_v0  ;;  %v3496_v14 = vadd.f32 %v6078_v37, %v3492_v7 }
 0x3b7   : > { %v2645_v60 = vsel %vm6708_vm8, %v2641_v0, %v2643_v40  ;;  %2648 = vst [vmem:[#allocation3 + $0x210] sm:$0xf0] %v2644_v54  ;;  %v2708_v20 = vpop.permute.xlu2 %2707  ;;  %v6719_v54 = vld [vmem:[#allocation71_spill] sm:$0xff]  ;;  %vm6729_vm8 = vcmask 515072  }
 0x3b8   : > { %2649 = vst [vmem:[#allocation3] sm:$0xf0] %v2645_v60  ;;  %v3895_v11 = vmul.f32 -1.442695, %v3496_v14  ;;  %vm6730_vm12 = vmmov %vm6729_vm8 }
 0x3ba   : > { %v2973_v44 = vld.sshfl [vmem:[#allocation1 + $0x8] sm:$0xff pattern:$0x75316420]  ;;  %v2972_v4 = vld.sshfl [vmem:[#allocation1] sm:$0xff pattern:$0x75316420] }
 0x3bb   : > { %v3019_v15 = vld.sshfl [vmem:[#allocation1 + $0x10] sm:$0xff pattern:$0x75316420]  ;;  %2977 = vrot.lane.b32.xlu0 %v2973_v44, %s6702_s13  ;;  %2975 = vrot.lane.b32.xlu2 %v2972_v4, %s6702_s13  ;;  %2992 = vst [vmem:[#allocation1 + $0x1] ss:$2 sm:$0xff] %v2987_v3  ;;  %v6094_v4 = vstv %s6072_s15  ;;  %s3708_s13 = scalar_lea.sflag [#allocation6], %s4557_s26 }
 0x3bc   : > { %3039 = vst [vmem:[#allocation1 + $0x11] ss:$2 sm:$0xff] %v3033_v12  ;;  %3024 = vrot.lane.b32.xlu1 %v3019_v15, %s4394_s7  ;;  %v3055_v12 = vmul.f32 %v5911_v31, %v6719_v54  ;;  %v3599_v15 = vmul.f32 %v6084_v32, %v3367_v2 }
 0x3bd   : > { %v2661_v18 = vpop.permute.xlu1 %2660 }
 0x3be   : > { %v2665_v29 = vpop.permute.xlu0 %2664  ;;  %v2666_v45 = vsel %vm6712_vm7, %v2661_v18, %v2663_v49 }
 0x3bf   : > { %v2667_v21 = vsel %vm6711_vm14, %v2663_v49, %v2665_v29  ;;  %2670 = vst [vmem:[#allocation3 + $0x240] sm:$0xf] %v2666_v45  ;;  %v2731_v52 = vpop.permute.xlu2 %2730  ;;  %v6717_v49 = vld [vmem:[#allocation70_spill] sm:$0xff]  ;;  %v3600_v29 = vmul.f32 %v6084_v32, %v3407_v6  ;;  %v3603_v45 = vadd.f32 %v6094_v4, %v3599_v15 }
 0x3c0   : > { %2671 = vst [vmem:[#allocation3 + $0xc8] sm:$0xf] %v2667_v21  ;;  %v3032_v58 = vmul.f32 %v5911_v31, %v6717_v49 }
 0x3c2   : > { %v2996_v46 = vld.sshfl [vmem:[#allocation1 + $0x8] sm:$0xff pattern:$0x75316420]  ;;  %v2995_v0 = vld.sshfl [vmem:[#allocation1] sm:$0xff pattern:$0x75316420] }
 0x3c3   : > { %v3042_v61 = vld.sshfl [vmem:[#allocation1 + $0x10] sm:$0xff pattern:$0x75316420]  ;;  %3000 = vrot.lane.b32.xlu0 %v2996_v46, %s6707_s25  ;;  %2998 = vrot.lane.b32.xlu2 %v2995_v0, %s6707_s25  ;;  %3014 = vst [vmem:[#allocation1] ss:$2 sm:$0xff] %v3010_v33  ;;  %v3604_v46 = vadd.f32 %v6094_v4, %v3600_v29  ;;  %v6731_v29 = vld [vmem:[#allocation74_spill] sm:$0xff] }
 0x3c4   : > { %3061 = vst [vmem:[#allocation1 + $0x10] ss:$2 sm:$0xff] %v3056_v16  ;;  %3047 = vrot.lane.b32.xlu1 %v3042_v61, %s6714_s14  ;;  %v3123_v61 = vmul.f32 %v5878_v55, %v5559_v8 }
 0x3c5   : > { %v2684_v23 = vpop.permute.xlu1 %2683 }
 0x3c6   : > { %v2688_v26 = vpop.permute.xlu0 %2687  ;;  %v2689_v41 = vsel %vm6716_vm11, %v2684_v23, %v2686_v62 }
 0x3c7   : > { %v2690_v63 = vsel %vm6715_vm13, %v2686_v62, %v2688_v26  ;;  %2693 = vst [vmem:[#allocation3 + $0x240] sm:$0xf0] %v2689_v41  ;;  %v3894_v62 = vmul.f32 -1.442695, %v3495_v47  ;;  %v2753_v40 = vpop.permute.xlu2 %2752  ;;  %v6723_v26 = vld [vmem:[#allocation72_spill] sm:$0xff] }
 0x3c8   : > { %2694 = vst [vmem:[#allocation3 + $0xc8] sm:$0xf0] %v2690_v63  ;;  %v3077_v23 = vmul.f32 %v5911_v31, %v6723_v26 }
 0x3c9   : > { %4119 = vpow2.f32 %v3894_v62  ;;  %v3168_v62 = vmul.f32 %v5878_v55, %v5591_v48 }
 0x3ca   : > { %v3018_v13 = vld.sshfl [vmem:[#allocation1 + $0x8] sm:$0xff pattern:$0x75316420]  ;;  %v3017_v34 = vld.sshfl [vmem:[#allocation1] sm:$0xff pattern:$0x75316420]  ;;  %4121 = vpow2.f32 %v3895_v11 }
 0x3cb   : > { %v3064_v25 = vld.sshfl [vmem:[#allocation1 + $0x10] sm:$0xff pattern:$0x75316420]  ;;  %3022 = vrot.lane.b32.xlu0 %v3018_v13, %s4394_s7  ;;  %3020 = vrot.lane.b32.xlu2 %v3017_v34, %s4394_s7  ;;  %3037 = vst [vmem:[#allocation1 + $0x1] ss:$2 sm:$0xff] %v3032_v58  ;;  %s6720_s7 = smov 31   ;;  %v3146_v13 = vmul.f32 %v5878_v55, %v5575_v1 }
 0x3cc   : > { %3084 = vst [vmem:[#allocation1 + $0x11] ss:$2 sm:$0xff] %v3078_v27  ;;  %3069 = vrot.lane.b32.xlu1 %v3064_v25, %s6718_s1  ;;  %v3902_v25 = vmul.f32 -1.442695, %v3604_v46 }
 0x3cd   : > { %v2706_v24 = vpop.permute.xlu1 %2705 }
 0x3ce   : > { %v2710_v38 = vpop.permute.xlu0 %2709  ;;  %v2711_v53 = vsel %vm1448_vm4, %v2706_v24, %v2708_v20 }
 0x3cf   : > { %v2712_v56 = vsel %vm1448_vm4, %v2708_v20, %v2710_v38  ;;  %2715 = vst [vmem:[#allocation3 + $0xf0] sm:$0xf] %v2711_v53  ;;  %vm6721_vm4 = vcmask 605184   ;;  %v4120_v16 = vpop.eup %4119  ;;  %v2776_v63 = vpop.permute.xlu2 %2775 }
 0x3d0   : > { %2716 = vst [vmem:[#allocation3 + $0x98] sm:$0xf] %v2712_v56  ;;  %vm6722_vm15 = vmmov %vm6721_vm4  ;;  %v6104_v30 = vadd.f32 1.0, %v4120_v16  ;;  %v4122_v0 = vpop.eup %4121 }
 0x3d1   : > { %v6113_v39 = vadd.f32 1.0, %v4122_v0 }
 0x3d2   : > { %v3041_v3 = vld.sshfl [vmem:[#allocation1 + $0x8] sm:$0xff pattern:$0x75316420]  ;;  %v3040_v44 = vld.sshfl [vmem:[#allocation1] sm:$0xff pattern:$0x75316420]  ;;  %4123 = vrcp.f32 %v6104_v30  ;;  %vm3510_vm14 = vweird.f32 %v6104_v30 }
 0x3d3   : > { %v3087_v60 = vld.sshfl [vmem:[#allocation1 + $0x10] sm:$0xff pattern:$0x75316420]  ;;  %3045 = vrot.lane.b32.xlu0 %v3041_v3, %s6714_s14  ;;  %3043 = vrot.lane.b32.xlu2 %v3040_v44, %s6714_s14  ;;  %3059 = vst [vmem:[#allocation1] ss:$2 sm:$0xff] %v3055_v12  ;;  %v3516_v48 = vand.u32 2147483648, %v6104_v30  ;;  %vm3525_vm13 = vweird.f32 %v6113_v39 }
 0x3d4   : > { %3106 = vst [vmem:[#allocation1 + $0x10] ss:$2 sm:$0xff] %v3101_v5  ;;  %3092 = vrot.lane.b32.xlu1 %v3087_v60, %s6720_s7  ;;  %v3514_v15 = vand.u32 2147483647, %v6104_v30  ;;  %v3531_v11 = vand.u32 2147483648, %v6113_v39 }
 0x3d5   : > { %v2729_v20 = vpop.permute.xlu1 %2728  ;;  %v3517_v46 = vor.u32 1.1754944e-38, %v3516_v48 }
 0x3d6   : > { %v2733_v17 = vpop.permute.xlu0 %2732  ;;  %v2734_v21 = vsel %vm6722_vm15, %v2729_v20, %v2731_v52  ;;  %v3532_v0 = vor.u32 1.1754944e-38, %v3531_v11 }
 0x3d7   : > { %v2735_v18 = vsel %vm6721_vm4, %v2731_v52, %v2733_v17  ;;  %2738 = vst [vmem:[#allocation3 + $0xf0] sm:$0xf0] %v2734_v21  ;;  %v3901_v52 = vmul.f32 -1.442695, %v3603_v45  ;;  %v2798_v47 = vpop.permute.xlu2 %2797  ;;  %v3529_v17 = vand.u32 2147483647, %v6113_v39 }
 0x3d8   : > { %2739 = vst [vmem:[#allocation3 + $0x98] sm:$0xf0] %v2735_v18  ;;  %v6118_v58 = vpop.eup %4123  ;;  %v3122_v18 = vmul.f32 %v5911_v31, %v6731_v29 }
 0x3d9   : > { %4125 = vpow2.f32 %v3901_v52  ;;  %v3506_v59 = vmul.f32 %v6118_v58, %v6104_v30  ;;  %vm3511_vm7 = vweird.f32 %v6118_v58 }
 0x3da   : > { %v3063_v41 = vld.sshfl [vmem:[#allocation1 + $0x8] sm:$0xff pattern:$0x75316420]  ;;  %v3062_v27 = vld.sshfl [vmem:[#allocation1] sm:$0xff pattern:$0x75316420]  ;;  %4127 = vrcp.f32 %v6113_v39  ;;  %vm6149_vm4 = vmor %vm3510_vm14, %vm3511_vm7 }
 0x3db   : > { %v3109_v33 = vld.sshfl [vmem:[#allocation1 + $0x10] sm:$0xff pattern:$0x75316420]  ;;  %3067 = vrot.lane.b32.xlu0 %v3063_v41, %s6718_s1  ;;  %3065 = vrot.lane.b32.xlu2 %v3062_v27, %s6718_s1  ;;  %3082 = vst [vmem:[#allocation1 + $0x1] ss:$2 sm:$0xff] %v3077_v23  ;;  %4129 = vpow2.f32 %v3902_v25  ;;  %v3507_v1 = vsub.f32 1.0, %v3506_v59 }
 0x3dc   : > { %3129 = vst [vmem:[#allocation1 + $0x11] ss:$2 sm:$0xff] %v3123_v61  ;;  %3114 = vrot.lane.b32.xlu1 %v3109_v33, %s6724_s9  ;;  %vm6743_vm7 = vcmask 1040384  }
 0x3dd   : > { %v2751_v51 = vpop.permute.xlu1 %2750  ;;  %v3508_v14 = vmul.f32 %v6118_v58, %v3507_v1 }
 0x3de   : > { %v2755_v8 = vpop.permute.xlu0 %2754  ;;  %v2756_v49 = vsel %vm6726_vm5, %v2751_v51, %v2753_v40  ;;  %vm3530_vm5 = vcmp.eq.f32.partialorder %v3529_v17, 8.507059e+37 }
 0x3df   : > { %v2757_v2 = vsel %vm6725_vm3, %v2753_v40, %v2755_v8  ;;  %2760 = vst [vmem:[#allocation3 + $0x2b8] sm:$0xf] %v2756_v49  ;;  %v4126_v24 = vpop.eup %4125  ;;  %v3509_v3 = vadd.f32 %v6118_v58, %v3508_v14  ;;  %vm3515_vm3 = vcmp.eq.f32.partialorder %v3514_v15, 8.507059e+37  ;;  %v2821_v41 = vpop.permute.xlu2 %2820 }
 0x3e0   : > { %2761 = vst [vmem:[#allocation3 + $0xd0] sm:$0xf] %v2757_v2  ;;  %v4128_v56 = vpop.eup %4127  ;;  %v6136_v54 = vadd.f32 1.0, %v4126_v24 }
 0x3e1   : > { %v4130_v60 = vpop.eup %4129  ;;  %v3521_v12 = vmul.f32 %v4128_v56, %v6113_v39  ;;  %vm3526_vm11 = vweird.f32 %v4128_v56  ;;  %v3513_v26 = vsel %vm6149_vm4, %v6118_v58, %v3509_v3  ;;  %v3191_v39 = vmul.f32 %v5878_v55, %v5607_v36 }
 0x3e2   : > { %v3086_v6 = vld.sshfl [vmem:[#allocation1 + $0x8] sm:$0xff pattern:$0x75316420]  ;;  %v3085_v38 = vld.sshfl [vmem:[#allocation1] sm:$0xff pattern:$0x75316420]  ;;  %4131 = vrcp.f32 %v6136_v54  ;;  %vm6159_vm15 = vmor %vm3525_vm13, %vm3526_vm11  ;;  %v3518_v25 = vsel %vm3515_vm3, %v3517_v46, %v3513_v26  ;;  %vm3618_vm11 = vweird.f32 %v6136_v54 }
 0x3e3   : > { %v3132_v34 = vld.sshfl [vmem:[#allocation1 + $0x10] sm:$0xff pattern:$0x75316420]  ;;  %3090 = vrot.lane.b32.xlu0 %v3086_v6, %s6720_s7  ;;  %3088 = vrot.lane.b32.xlu2 %v3085_v38, %s6720_s7  ;;  %3104 = vst [vmem:[#allocation1] ss:$2 sm:$0xff] %v3100_v35  ;;  %v3522_v44 = vsub.f32 1.0, %v3521_v12  ;;  %v3145_v35 = vmul.f32 %v5911_v31, %v6742_v28 }
 0x3e4   : > { %3151 = vst [vmem:[#allocation1 + $0x10] ss:$2 sm:$0xff] %v3146_v13  ;;  %3137 = vrot.lane.b32.xlu1 %v3132_v34, %s6728_s28  ;;  %v6153_v45 = vadd.f32 1.0, %v4130_v60  ;;  %v6739_v34 = vlaneseq  ;;  %v3622_v46 = vand.u32 2147483647, %v6136_v54  ;;  %v3624_v30 = vand.u32 2147483648, %v6136_v54 }
 0x3e5   : > { %v2774_v7 = vpop.permute.xlu1 %2773  ;;  %v3523_v16 = vmul.f32 %v4128_v56, %v3522_v44  ;;  %v3256_v28 = vld [vmem:[#allocation3 + $0x198] sm:$0xff] }
 0x3e6   : > { %v2778_v53 = vpop.permute.xlu0 %2777  ;;  %v2779_v40 = vsel %vm6730_vm12, %v2774_v7, %v2776_v63  ;;  %4133 = vrcp.f32 %v6153_v45  ;;  %vm6179_vm14 = vcmp.lt.s32.totalorder %v6739_v34, 256  ;;  %v3637_v26 = vand.u32 2147483647, %v6153_v45  ;;  %v3257_v34 = vld [vmem:[#allocation3 + $0x2b0] sm:$0xff] }
 0x3e7   : > { %v2780_v5 = vsel %vm6729_vm8, %v2776_v63, %v2778_v53  ;;  %2783 = vst [vmem:[#allocation3 + $0x2b8] sm:$0xf0] %v2779_v40  ;;  %v3524_v23 = vadd.f32 %v4128_v56, %v3523_v16  ;;  %vm6737_vm8 = vcmask 506880   ;;  %v3167_v40 = vmul.f32 %v5911_v31, %v5615_v22 }
 0x3e8   : > { %2784 = vst [vmem:[#allocation3 + $0xd0] sm:$0xf0] %v2780_v5  ;;  %vm6738_vm12 = vmmov %vm6737_vm8  ;;  %v6176_v13 = vpop.eup %4131  ;;  %v3639_v16 = vand.u32 2147483648, %v6153_v45 }
 0x3e9   : > { %v3528_v51 = vsel %vm6159_vm15, %v4128_v56, %v3524_v23  ;;  %v3614_v7 = vmul.f32 %v6176_v13, %v6136_v54  ;;  %vm3619_vm4 = vweird.f32 %v6176_v13  ;;  %v3268_v23 = vld [vmem:[#allocation3 + $0xf0] sm:$0xff] }
 0x3ea   : > { %v3108_v61 = vld.sshfl [vmem:[#allocation1 + $0x8] sm:$0xff pattern:$0x75316420]  ;;  %v3107_v33 = vld.sshfl [vmem:[#allocation1] sm:$0xff pattern:$0x75316420]  ;;  %v3533_v2 = vsel %vm3530_vm5, %v3532_v0, %v3528_v51  ;;  %vm6239_vm3 = vmor %vm3618_vm11, %vm3619_vm4 }
 0x3eb   : > { %v3154_v20 = vld.sshfl [vmem:[#allocation1 + $0x10] sm:$0xff pattern:$0x75316420]  ;;  %3112 = vrot.lane.b32.xlu0 %v3108_v61, %s6724_s9  ;;  %3110 = vrot.lane.b32.xlu2 %v3107_v33, %s6724_s9  ;;  %3127 = vst [vmem:[#allocation1 + $0x1] ss:$2 sm:$0xff] %v3122_v18  ;;  %v3537_v49 = vrot.slane %v3533_v2, 7 }
 0x3ec   : > { %3174 = vst [vmem:[#allocation1 + $0x11] ss:$2 sm:$0xff] %v3168_v62  ;;  %3159 = vrot.lane.b32.xlu1 %v3154_v20, %s6734_s23  ;;  %v6187_v38 = vpop.eup %4133  ;;  %v3615_v14 = vsub.f32 1.0, %v3614_v7  ;;  %v6744_v18 = vld [vmem:[#allocation76_spill] sm:$0xff]  ;;  %v3269_v61 = vld [vmem:[#allocation3 + $0x98] sm:$0xff]  ;;  %v3640_v51 = vor.u32 1.1754944e-38, %v3639_v16 }
 0x3ed   : > { %v2796_v52 = vpop.permute.xlu1 %2795  ;;  %v3538_v6 = vsel %vm6743_vm7, %v3518_v25, %v3537_v49  ;;  %v3629_v62 = vmul.f32 %v6187_v38, %v6153_v45  ;;  %vm3634_vm13 = vweird.f32 %v6187_v38  ;;  %v3190_v21 = vmul.f32 %v5911_v31, %v6744_v18  ;;  %v3265_v33 = vld [vmem:[#allocation3 + $0xc8] sm:$0xff]  ;;  %v3261_v25 = vld [vmem:[#allocation3] sm:$0xff]  ;;  %v3260_v49 = vld [vmem:[#allocation3 + $0x210] sm:$0xff] }
 0x3ee   : > { %v2800_v63 = vpop.permute.xlu0 %2799  ;;  %v2801_v8 = vsel %vm6738_vm12, %v2796_v52, %v2798_v47  ;;  %3543 = vst.msk [vmem:[%s6189_s16] sm:$0x3] %vm6179_vm14, %v3538_v6  ;;  %v3616_v22 = vmul.f32 %v6176_v13, %v3615_v14  ;;  %v3272_v29 = vld [vmem:[#allocation3 + $0x2b8] sm:$0xff]  ;;  %v3625_v2 = vor.u32 1.1754944e-38, %v3624_v30  ;;  %vm3638_vm5 = vcmp.eq.f32.partialorder %v3637_v26, 8.507059e+37  ;;  %v3253_v6 = vld [vmem:[#allocation3 + $0x2c0] sm:$0xff] }
 0x3ef   : > { %v2802_v27 = vsel %vm6737_vm8, %v2798_v47, %v2800_v63  ;;  %2805 = vst [vmem:[#allocation3 + $0xb8] sm:$0xf] %v2801_v8  ;;  %v3630_v60 = vsub.f32 1.0, %v3629_v62  ;;  %v3273_v20 = vld [vmem:[#allocation3 + $0xd0] sm:$0xff]  ;;  %vm3623_vm8 = vcmp.eq.f32.partialorder %v3622_v46, 8.507059e+37  ;;  %v3245_v14 = vld [vmem:[#allocation3 + $0x248] sm:$0xff] }
 0x3f0   : > { %2806 = vst [vmem:[#allocation3 + $0xa0] sm:$0xf] %v2802_v27  ;;  %v3617_v31 = vadd.f32 %v6176_v13, %v3616_v22  ;;  %v3224_v18 = vld [vmem:[#allocation3 + $0x110] sm:$0xff]  ;;  %v3220_v16 = vld [vmem:[#allocation3 + $0xf8] sm:$0xff]  ;;  %vm6753_vm7 = vcmask 384000   ;;  %v3216_v26 = vld [vmem:[#allocation3 + $0x48] sm:$0xff] }
 0x3f1   : > { %v3631_v44 = vmul.f32 %v6187_v38, %v3630_v60  ;;  %v3240_v60 = vld [vmem:[#allocation3 + $0x2c8] sm:$0xff]  ;;  %vm6757_vm4 = vcmask 367616  }
 0x3f2   : > { %v3131_v36 = vld.sshfl [vmem:[#allocation1 + $0x8] sm:$0xff pattern:$0x75316420]  ;;  %v3130_v55 = vld.sshfl [vmem:[#allocation1] sm:$0xff pattern:$0x75316420] }
 0x3f3   : > { %v3177_v58 = vld.sshfl [vmem:[#allocation1 + $0x10] sm:$0xff pattern:$0x75316420]  ;;  %3135 = vrot.lane.b32.xlu0 %v3131_v36, %s6728_s28  ;;  %3133 = vrot.lane.b32.xlu2 %v3130_v55, %s6728_s28  ;;  %3149 = vst [vmem:[#allocation1] ss:$2 sm:$0xff] %v3145_v35  ;;  %v3632_v0 = vadd.f32 %v6187_v38, %v3631_v44  ;;  %v3252_v55 = vld [vmem:[#allocation3 + $0x178] sm:$0xff] }
 0x3f4   : > { %3196 = vst [vmem:[#allocation1 + $0x10] ss:$2 sm:$0xff] %v3191_v39  ;;  %3182 = vrot.lane.b32.xlu1 %v3177_v58, %s4400_s17  ;;  %v3621_v58 = vsel %vm6239_vm3, %v6176_v13, %v3617_v31  ;;  %v3248_v13 = vld [vmem:[#allocation3 + $0x118] sm:$0xff]  ;;  %vm6759_vm3 = vcmask 359424  }
 0x3f5   : > { %v2819_v47 = vpop.permute.xlu1 %2818  ;;  %v6198_v53 = vpop.permute.xlu2 %2885  ;;  %v3626_v36 = vsel %vm3623_vm8, %v3625_v2, %v3621_v58  ;;  %vm6761_vm8 = vcmask 343040  }
 0x3f6   : > { %v2823_v24 = vpop.permute.xlu0 %2822  ;;  %v2824_v56 = vsel %vm1600_vm2, %v2819_v47, %v2821_v41 }
 0x3f7   : > { %v2825_v1 = vsel %vm1600_vm2, %v2821_v41, %v2823_v24  ;;  %2828 = vst [vmem:[#allocation3 + $0xb8] sm:$0xf0] %v2824_v56  ;;  %vm3633_vm2 = vweird.f32 %v6153_v45  ;;  %v3264_v45 = vld [vmem:[#allocation3 + $0x240] sm:$0xff]  ;;  %v3249_v56 = vld [vmem:[#allocation3 + $0x188] sm:$0xff] }
 0x3f8   : > { %2829 = vst [vmem:[#allocation3 + $0xa0] sm:$0xf0] %v2825_v1  ;;  %vm6230_vm15 = vmor %vm3633_vm2, %vm3634_vm13  ;;  %vm6755_vm13 = vcmask 375808  }
 0x3f9   : > { %v3636_v54 = vsel %vm6230_vm15, %v6187_v38, %v3632_v0  ;;  %vm6754_vm2 = vmmov %vm6753_vm7 }
 0x3fa   : > { %v3152_v12 = vld.sshfl [vmem:[#allocation1] sm:$0xff pattern:$0x75316420]  ;;  %v3153_v15 = vld.sshfl [vmem:[#allocation1 + $0x8] sm:$0xff pattern:$0x75316420]  ;;  %v3641_v35 = vsel %vm3638_vm5, %v3640_v51, %v3636_v54  ;;  %vm6756_vm11 = vmmov %vm6755_vm13 }
 0x3fb   : > { %v3199_v5 = vld.sshfl [vmem:[#allocation1 + $0x10] sm:$0xff pattern:$0x75316420]  ;;  %3155 = vrot.lane.b32.xlu2 %v3152_v12, %s6734_s23  ;;  %3172 = vst [vmem:[#allocation1 + $0x1] ss:$2 sm:$0xff] %v3167_v40  ;;  %v3244_v40 = vld [vmem:[#allocation3 + $0x140] sm:$0xff]  ;;  %vm6758_vm15 = vmmov %vm6757_vm4 }
 0x3fc   : > { %3204 = vrot.lane.b32.xlu0 %v3199_v5, %s4401_s11  ;;  %v3241_v12 = vld [vmem:[#allocation3 + $0x50] sm:$0xff]  ;;  %vm6760_vm5 = vmmov %vm6759_vm3 }
 0x3fd   : > { %v6210_v11 = vpop.permute.xlu2 %2908 }
 0x3fe   : > { %v6208_v48 = vpop.permute.xlu1 %2889  ;;  %v3276_v17 = vld [vmem:[#allocation3 + $0xb8] sm:$0xff] }
 0x3ff   : > { %v3277_v3 = vld [vmem:[#allocation3 + $0xa0] sm:$0xff]  ;;  %3409 = vmatpush.msrb.mxu1 %v3276_v17 }
 0x400   : > { %3449 = vmatpush.msrb.mxu0 %v3277_v3 }
 0x401   : > { %3410 = vmatpush.msrb.mxu1 %v3272_v29  ;;  %v3229_v29 = vld [vmem:[#allocation3 + $0x1d8] sm:$0xff] }
 0x402   : > { %3450 = vmatpush.msrb.mxu0 %v3273_v20  ;;  %v3175_v52 = vld.sshfl [vmem:[#allocation1] sm:$0xff pattern:$0x75316420]  ;;  %v3176_v41 = vld.sshfl [vmem:[#allocation1 + $0x8] sm:$0xff pattern:$0x75316420] }
 0x403   : > { %3411 = vmatpush.msrb.mxu1 %v3268_v23  ;;  %3178 = vrot.lane.b32.xlu2 %v3175_v52, %s4400_s17  ;;  %3194 = vst [vmem:[#allocation1] ss:$2 sm:$0xff] %v3190_v21  ;;  %v3225_v21 = vld [vmem:[#allocation3 + $0xa8] sm:$0xff] }
 0x404   : > { %3451 = vmatpush.msrb.mxu0 %v3269_v61  ;;  %3157 = vrot.lane.b32.xlu0 %v3153_v15, %s6734_s23  ;;  %v3236_v15 = vld [vmem:[#allocation3 + $0x68] sm:$0xff] }
 0x405   : > { %3412 = vmatpush.msrb.mxu1 %v3264_v45  ;;  %v6246_v39 = vpop.permute.xlu2 %2930 }
 0x406   : > { %v6244_v8 = vpop.permute.xlu1 %2912  ;;  %3452 = vmatpush.msrb.mxu0 %v3265_v33 }
 0x407   : > { %3413 = vmatpush.msrb.mxu1 %v3260_v49 }
 0x408   : > { %3453 = vmatpush.msrb.mxu0 %v3261_v25 }
 0x409   : > { %3414 = vmatpush.msrb.mxu1 %v3256_v28 }
 0x40a   : > { %3454 = vmatpush.msrb.mxu0 %v3257_v34  ;;  %v3198_v38 = vld.sshfl [vmem:[#allocation1 + $0x8] sm:$0xff pattern:$0x75316420]  ;;  %v3197_v24 = vld.sshfl [vmem:[#allocation1] sm:$0xff pattern:$0x75316420] }
 0x40b   : > { %3415 = vmatpush.msrb.mxu1 %v3252_v55  ;;  %3202 = vrot.lane.b32.xlu2 %v3198_v38, %s4401_s11  ;;  %3646 = vst [vmem:[#allocation1 + $0x9] sm:$0xff] %v3641_v35 }
 0x40c   : > { %3455 = vmatpush.msrb.mxu0 %v3253_v6  ;;  %3180 = vrot.lane.b32.xlu0 %v3176_v41, %s4400_s17  ;;  %3645 = vst [vmem:[#allocation1] sm:$0xff] %v3626_v36  ;;  %s6752_s17 = smov 59  }
 0x40d   : > { %3200 = vrot.lane.b32.xlu1 %v3197_v24, %s4401_s11  ;;  %v2888_v1 = vpop.permute.xlu0 %2887  ;;  %3416 = vmatpush.msrb.mxu1 %v3248_v13  ;;  %v6261_v5 = vpop.permute.xlu2 %2953  ;;  %s6749_s11 = smov 60  }
 0x40e   : > { %v2935_v47 = vpop.permute.xlu1 %2934  ;;  %v2891_v7 = vsel %vm1691_vm1, %v6198_v53, %v2888_v1  ;;  %v2892_v62 = vsel %vm1691_vm1, %v2888_v1, %v6208_v48  ;;  %3456 = vmatpush.msrb.mxu0 %v3249_v56  ;;  %v3237_v53 = vld [vmem:[#allocation3 + $0x18] sm:$0xff]  ;;  %vm6750_vm1 = vcmask 392192  }
 0x40f   : > { %2895 = vst [vmem:[#allocation3 + $0x168] sm:$0xf] %v2891_v7  ;;  %3417 = vmatpush.msrb.mxu1 %v3244_v40  ;;  %v3232_v48 = vld [vmem:[#allocation3 + $0x298] sm:$0xff]  ;;  %vm6751_vm12 = vmmov %vm6750_vm1 }
 0x410   : > { %2896 = vst [vmem:[#allocation3 + $0x108] sm:$0xf] %v2892_v62  ;;  %3457 = vmatpush.msrb.mxu0 %v3245_v14 }
 0x411   : > { %3418 = vmatpush.msrb.mxu1 %v3240_v60 }
 0x412   : > { %3458 = vmatpush.msrb.mxu0 %v3241_v12 }
 0x413   : > { %3419 = vmatpush.msrb.mxu1 %v3236_v15  ;;  %2840 = vrot.lane.b32.xlu2 %v5991_v43, %s6749_s11  ;;  %v3648_v17 = vld [vmem:[#allocation1 + $0x1] ss:$9 sm:$0xff] }
 0x414   : > { %2842 = vrot.lane.b32.xlu0 %v5993_v9, %s6749_s11  ;;  %3459 = vmatpush.msrb.mxu0 %v3237_v53  ;;  %3903 = vst.msk [vmem:[%s6189_s16 + $0x4] sm:$0x3] %vm6179_vm14, %v3648_v17  ;;  %v3233_v43 = vld [vmem:[#allocation3 + $0x2a8] sm:$0xff] }
 0x415   : > { %2844 = vrot.lane.b32.xlu1 %v5967_v50, %s6749_s11  ;;  %v2911_v44 = vpop.permute.xlu0 %2910  ;;  %3420 = vmatpush.msrb.mxu1 %v3232_v48  ;;  %v2976_v9 = vpop.permute.xlu2 %2975  ;;  %v3228_v50 = vld [vmem:[#allocation3 + $0x1c0] sm:$0xff] }
 0x416   : > { %v2958_v3 = vpop.permute.xlu1 %2957  ;;  %v2914_v22 = vsel %vm6750_vm1, %v6210_v11, %v2911_v44  ;;  %v2915_v20 = vsel %vm6751_vm12, %v2911_v44, %v6244_v8  ;;  %3460 = vmatpush.msrb.mxu0 %v3233_v43  ;;  %v3221_v11 = vld [vmem:[#allocation3 + $0x2d0] sm:$0xff]  ;;  %vm6762_vm1 = vmmov %vm6761_vm8  ;;  %vm6763_vm12 = vcmask 261120  }
 0x417   : > { %2918 = vst [vmem:[#allocation3 + $0x168] sm:$0xf0] %v2914_v22  ;;  %3421 = vmatpush.msrb.mxu1 %v3228_v50 }
 0x418   : > { %2919 = vst [vmem:[#allocation3 + $0x108] sm:$0xf0] %v2915_v20  ;;  %3461 = vmatpush.msrb.mxu0 %v3229_v29 }
 0x419   : > { %3422 = vmatpush.msrb.mxu1 %v3224_v18 }
 0x41a   : > { %3462 = vmatpush.msrb.mxu0 %v3225_v21 }
 0x41b   : > { %3423 = vmatpush.msrb.mxu1 %v3220_v16  ;;  %2863 = vrot.lane.b32.xlu2 %v6004_v42, %s6752_s17  ;;  %v4155_v42 = vld [vmem:[#allocation8] sm:$0xff] }
 0x41c   : > { %2865 = vrot.lane.b32.xlu0 %v6006_v19, %s6752_s17  ;;  %3463 = vmatpush.msrb.mxu0 %v3221_v11  ;;  %v3217_v19 = vld [vmem:[#allocation3 + $0x148] sm:$0xff] }
 0x41d   : > { %v2933_v33 = vpop.permute.xlu0 %2932  ;;  %2867 = vrot.lane.b32.xlu1 %v5978_v10, %s6752_s17  ;;  %v2999_v0 = vpop.permute.xlu2 %2998  ;;  %3424 = vmatpush.msrb.mxu1 %v3216_v26 }
 0x41e   : > { %v2980_v61 = vpop.permute.xlu1 %2979  ;;  %v2936_v46 = vsel %vm6753_vm7, %v6246_v39, %v2933_v33  ;;  %v2937_v30 = vsel %vm6754_vm2, %v2933_v33, %v2935_v47  ;;  %3464 = vmatpush.msrb.mxu0 %v3217_v19  ;;  %3425 = vmatmul.f32.vlgmr.msrb.gmra.mxu1 %v4155_v42  ;;  %vm6764_vm7 = vmmov %vm6763_vm12 }
 0x41f   : > { %2940 = vst [vmem:[#allocation3 + $0x308] sm:$0xf] %v2936_v46  ;;  %3465 = vmatmul.f32.vlgmr.msrb.gmra.mxu0 %v4155_v42 }
 0x420   : > { %2941 = vst [vmem:[#allocation3 + $0x40] sm:$0xf] %v2937_v30 }
 0x425   : > { %v2956_v23 = vpop.permute.xlu0 %2955  ;;  %v3021_v63 = vpop.permute.xlu2 %3020 }
 0x426   : > { %v2959_v10 = vsel %vm6755_vm13, %v6261_v5, %v2956_v23  ;;  %v2960_v31 = vsel %vm6756_vm11, %v2956_v23, %v2958_v3  ;;  %v3003_v52 = vpop.permute.xlu1 %3002  ;;  %vm6767_vm13 = vcmask 244736  }
 0x427   : > { %2963 = vst [vmem:[#allocation3 + $0x308] sm:$0xf0] %v2959_v10  ;;  %vm6768_vm11 = vmmov %vm6767_vm13 }
 0x428   : > { %2964 = vst [vmem:[#allocation3 + $0x40] sm:$0xf0] %v2960_v31 }
 0x42d   : > { %v2978_v41 = vpop.permute.xlu0 %2977  ;;  %v3044_v27 = vpop.permute.xlu2 %3043 }
 0x42e   : > { %v2981_v45 = vsel %vm6757_vm4, %v2976_v9, %v2978_v41  ;;  %v2982_v8 = vsel %vm6758_vm15, %v2978_v41, %v2980_v61  ;;  %v3025_v51 = vpop.permute.xlu1 %3024  ;;  %vm6769_vm4 = vcmask 236544  }
 0x42f   : > { %2985 = vst [vmem:[#allocation3 + $0x28] sm:$0xf] %v2981_v45  ;;  %vm6770_vm15 = vmmov %vm6769_vm4 }
 0x430   : > { %2986 = vst [vmem:[#allocation3 + $0x1a8] sm:$0xf] %v2982_v8 }
 0x435   : > { %v3001_v39 = vpop.permute.xlu0 %3000  ;;  %v3066_v25 = vpop.permute.xlu2 %3065 }
 0x436   : > { %v3004_v2 = vsel %vm6759_vm3, %v2999_v0, %v3001_v39  ;;  %v3005_v54 = vsel %vm6760_vm5, %v3001_v39, %v3003_v52  ;;  %v3048_v49 = vpop.permute.xlu1 %3047  ;;  %vm6771_vm3 = vcmask 228352  }
 0x437   : > { %3008 = vst [vmem:[#allocation3 + $0x28] sm:$0xf0] %v3004_v2  ;;  %vm6772_vm5 = vmmov %vm6771_vm3 }
 0x438   : > { %3009 = vst [vmem:[#allocation3 + $0x1a8] sm:$0xf0] %v3005_v54 }
 0x43d   : > { %v3023_v58 = vpop.permute.xlu0 %3022  ;;  %v3089_v34 = vpop.permute.xlu2 %3088 }
 0x43e   : > { %v3026_v28 = vsel %vm1872_vm10, %v3021_v63, %v3023_v58  ;;  %v3027_v35 = vsel %vm1872_vm10, %v3023_v58, %v3025_v51  ;;  %v3070_v6 = vpop.permute.xlu1 %3069  ;;  %vm6765_vm10 = vcmask 252928  }
 0x43f   : > { %3030 = vst [vmem:[#allocation3 + $0xd8] sm:$0xf] %v3026_v28  ;;  %vm6766_vm2 = vmmov %vm6765_vm10  ;;  %v3289_v28 = vld [vmem:[#allocation3 + $0x40] sm:$0xff] }
 0x440   : > { %3031 = vst [vmem:[#allocation3 + $0x2f8] sm:$0xf] %v3027_v35  ;;  %v3292_v35 = vld [vmem:[#allocation3 + $0x28] sm:$0xff] }
 0x445   : > { %v3046_v36 = vpop.permute.xlu0 %3045  ;;  %v3111_v55 = vpop.permute.xlu2 %3110 }
 0x446   : > { %v3049_v38 = vsel %vm6761_vm8, %v3044_v27, %v3046_v36  ;;  %v3050_v24 = vsel %vm6762_vm1, %v3046_v36, %v3048_v49  ;;  %v3093_v47 = vpop.permute.xlu1 %3092  ;;  %vm6773_vm8 = vcmask 490496   ;;  %v3293_v49 = vld [vmem:[#allocation3 + $0x1a8] sm:$0xff] }
 0x447   : > { %3053 = vst [vmem:[#allocation3 + $0xd8] sm:$0xf0] %v3049_v38  ;;  %vm6774_vm1 = vmmov %vm6773_vm8  ;;  %v3288_v36 = vld [vmem:[#allocation3 + $0x308] sm:$0xff] }
 0x448   : > { %3054 = vst [vmem:[#allocation3 + $0x2f8] sm:$0xf0] %v3050_v24 }
 0x44d   : > { %v3068_v13 = vpop.permute.xlu0 %3067  ;;  %v3134_v7 = vpop.permute.xlu2 %3133 }
 0x44e   : > { %v3071_v1 = vsel %vm6763_vm12, %v3066_v25, %v3068_v13  ;;  %v3072_v56 = vsel %vm6764_vm7, %v3068_v13, %v3070_v6  ;;  %v3115_v14 = vpop.permute.xlu1 %3114  ;;  %v3285_v6 = vld [vmem:[#allocation3 + $0x108] sm:$0xff] }
 0x44f   : > { %3075 = vst [vmem:[#allocation3 + $0x1f0] sm:$0xf] %v3071_v1  ;;  %v3297_v8 = vld [vmem:[#allocation3 + $0x2f8] sm:$0xff]  ;;  %v4156_v13 = vld [vmem:[#allocation8 + $0x8] sm:$0xff] }
 0x450   : > { %3076 = vst [vmem:[#allocation3 + $0x1f8] sm:$0xf] %v3072_v56 }
 0x455   : > { %v3091_v62 = vpop.permute.xlu0 %3090  ;;  %v3156_v60 = vpop.permute.xlu2 %3155 }
 0x456   : > { %v3094_v5 = vsel %vm6765_vm10, %v3089_v34, %v3091_v62  ;;  %v3095_v40 = vsel %vm6766_vm2, %v3091_v62, %v3093_v47  ;;  %v3138_v48 = vpop.permute.xlu1 %3137  ;;  %v3296_v34 = vld [vmem:[#allocation3 + $0xd8] sm:$0xff] }
 0x457   : > { %3098 = vst [vmem:[#allocation3 + $0x1f0] sm:$0xf0] %v3094_v5 }
 0x458   : > { %3099 = vst [vmem:[#allocation3 + $0x1f8] sm:$0xf0] %v3095_v40 }
 0x45d   : > { %v3113_v12 = vpop.permute.xlu0 %3112  ;;  %v3179_v3 = vpop.permute.xlu2 %3178 }
 0x45e   : > { %v3116_v15 = vsel %vm6767_vm13, %v3111_v55, %v3113_v12  ;;  %v3117_v53 = vsel %vm6768_vm11, %v3113_v12, %v3115_v14  ;;  %v3160_v20 = vpop.permute.xlu1 %3159  ;;  %v3300_v25 = vld [vmem:[#allocation3 + $0x1f0] sm:$0xff]  ;;  %v3284_v55 = vld [vmem:[#allocation3 + $0x168] sm:$0xff] }
 0x45f   : > { %3120 = vst [vmem:[#allocation3 + $0x2a0] sm:$0xf] %v3116_v15  ;;  %v3301_v27 = vld [vmem:[#allocation3 + $0x1f8] sm:$0xff] }
 0x460   : > { %3121 = vst [vmem:[#allocation3 + $0x268] sm:$0xf] %v3117_v53 }
 0x465   : > { %v3136_v44 = vpop.permute.xlu0 %3135  ;;  %v3203_v9 = vpop.permute.xlu2 %3202 }
 0x466   : > { %v3139_v17 = vsel %vm6769_vm4, %v3134_v7, %v3136_v44  ;;  %v3140_v22 = vsel %vm6770_vm15, %v3136_v44, %v3138_v48  ;;  %v3183_v18 = vpop.permute.xlu1 %3182 }
 0x467   : > { %3143 = vst [vmem:[#allocation3 + $0x2a0] sm:$0xf0] %v3139_v17 }
 0x468   : > { %3144 = vst [vmem:[#allocation3 + $0x268] sm:$0xf0] %v3140_v22 }
 0x46d   : > { %v2841_v26 = vpop.permute.xlu2 %2840 }
 0x46e   : > { %v3205_v43 = vpop.permute.xlu0 %3204  ;;  %v3304_v45 = vld [vmem:[#allocation3 + $0x2a0] sm:$0xff] }
 0x46f   : > { %v3207_v50 = vsel %vm2114_vm9, %v3203_v9, %v3205_v43  ;;  %v3305_v52 = vld [vmem:[#allocation3 + $0x268] sm:$0xff] }
 0x470   : > { %3211 = vst [vmem:[#allocation3 + $0x138] sm:$0xf] %v3207_v50 }
 0x475   : > { %v2864_v51 = vpop.permute.xlu2 %2863 }
 0x476   : > { %v3158_v29 = vpop.permute.xlu0 %3157 }
 0x477   : > { %v3161_v21 = vsel %vm6771_vm3, %v3156_v60, %v3158_v29  ;;  %v3162_v16 = vsel %vm6772_vm5, %v3158_v29, %v3160_v20  ;;  %v3313_v11 = vld [vmem:[#allocation3 + $0x138] sm:$0xf] }
 0x478   : > { %3165 = vst [vmem:[#allocation3 + $0x290] sm:$0xf] %v3161_v21  ;;  %3892 = vmatpush.msk.msrb.mxu2 %vm342_vm0, %v3313_v11 }
 0x479   : > { %3166 = vst [vmem:[#allocation3 + $0x58] sm:$0xf] %v3162_v16 }
 0x47e   : > { %v3181_v61 = vpop.permute.xlu0 %3180 }
 0x47f   : > { %v3184_v33 = vsel %vm2084_vm6, %v3179_v3, %v3181_v61  ;;  %v3185_v46 = vsel %vm2084_vm6, %v3181_v61, %v3183_v18  ;;  %v3201_v30 = vpop.permute.xlu1 %3200  ;;  %vm6777_vm6 = vcmask 556032  }
 0x480   : > { %3188 = vst [vmem:[#allocation3 + $0x290] sm:$0xf0] %v3184_v33  ;;  %v3206_v0 = vsel %vm2114_vm9, %v3201_v30, %v3203_v9  ;;  %vm6775_vm9 = vcmask 482304   ;;  %vm6778_vm12 = vmmov %vm6777_vm6 }
 0x481   : > { %3189 = vst [vmem:[#allocation3 + $0x58] sm:$0xf0] %v3185_v46 }
 0x482   : > { %3210 = vst [vmem:[#allocation3 + $0x2e8] sm:$0xf] %v3206_v0 }
 0x486   : > { %v2843_v19 = vpop.permute.xlu0 %2842 }
 0x487   : > { %v2846_v42 = vsel %vm6773_vm8, %v2841_v26, %v2843_v19  ;;  %v2845_v23 = vpop.permute.xlu1 %2844  ;;  %v3308_v41 = vld [vmem:[#allocation3 + $0x290] sm:$0xff] }
 0x488   : > { %2850 = vst [vmem:[#allocation3 + $0x238] sm:$0xf] %v2846_v42  ;;  %v2847_v10 = vsel %vm6774_vm1, %v2843_v19, %v2845_v23  ;;  %v3309_v31 = vld [vmem:[#allocation3 + $0x58] sm:$0xff] }
 0x489   : > { %2851 = vst [vmem:[#allocation3 + $0x208] sm:$0xf] %v2847_v10  ;;  %v3312_v63 = vld [vmem:[#allocation3 + $0x2e8] sm:$0xf]  ;;  %3477 = vmatpush.msrb.mxu2 %v3309_v31 }
 0x48a   : > { %3890 = vmatpush.msk.msrb.mxu3 %vm342_vm0, %v3312_v63  ;;  %vm6776_vm0 = vmmov %vm6775_vm9 }
 0x48b   : > { %3478 = vmatpush.msrb.mxu2 %v3305_v52 }
 0x48c   : > { %3437 = vmatpush.msrb.mxu3 %v3308_v41 }
 0x48d   : > { %3479 = vmatpush.msrb.mxu2 %v3301_v27 }
 0x48e   : > { %3438 = vmatpush.msrb.mxu3 %v3304_v45  ;;  %v2866_v39 = vpop.permute.xlu0 %2865 }
 0x48f   : > { %3480 = vmatpush.msrb.mxu2 %v3297_v8  ;;  %v2869_v2 = vsel %vm6775_vm9, %v2864_v51, %v2866_v39  ;;  %v2868_v54 = vpop.permute.xlu1 %2867 }
 0x490   : > { %3439 = vmatpush.msrb.mxu3 %v3300_v25  ;;  %2873 = vst [vmem:[#allocation3 + $0x238] sm:$0xf0] %v2869_v2  ;;  %v2870_v58 = vsel %vm6776_vm0, %v2866_v39, %v2868_v54 }
 0x491   : > { %3481 = vmatpush.msrb.mxu2 %v3293_v49  ;;  %2874 = vst [vmem:[#allocation3 + $0x208] sm:$0xf0] %v2870_v58 }
 0x492   : > { %3440 = vmatpush.msrb.mxu3 %v3296_v34 }
 0x493   : > { %3482 = vmatpush.msrb.mxu2 %v3289_v28 }
 0x494   : > { %3441 = vmatpush.msrb.mxu3 %v3292_v35 }
 0x495   : > { %3483 = vmatpush.msrb.mxu2 %v3285_v6 }
 0x496   : > { %3442 = vmatpush.msrb.mxu3 %v3288_v36 }
 0x497   : > { %v3280_v38 = vld [vmem:[#allocation3 + $0x238] sm:$0xff] }
 0x498   : > { %3443 = vmatpush.msrb.mxu3 %v3284_v55  ;;  %v3281_v24 = vld [vmem:[#allocation3 + $0x208] sm:$0xff] }
 0x499   : > { %3484 = vmatpush.msrb.mxu2 %v3281_v24 }
 0x49a   : > { %3444 = vmatpush.msrb.mxu3 %v3280_v38  ;;  %3893 = vmatmul.msk.f32.vlgmr.msrb.gmra.mxu2 %vm6778_vm12, %v4156_v13 }
 0x49b   : > { %3891 = vmatmul.msk.f32.vlgmr.msrb.gmra.mxu3 %vm6777_vm6, %v4156_v13  ;;  %v3426_v47 = vpop.f32.mrf.mxu1 }
 0x49c   : > { %v3466_v1 = vpop.f32.mrf.mxu0 }
 0x51d   : > { %v3486_v7 = vpop.f32.mrf.mxu2 }
 0x51e   : > { %v3446_v56 = vpop.f32.mrf.mxu3  ;;  %v3487_v5 = vadd.f32 %v3486_v7, %v3466_v1 }
 0x51f   : > { %v3447_v62 = vadd.f32 %v3446_v56, %v3426_v47 }
 0x520   : > { %v3547_v60 = vmul.f32 %v6070_v57, %v3487_v5  ;;  %v3655_v12 = vmul.f32 %v6084_v32, %v3487_v5 }
 0x521   : > { %v3546_v40 = vmul.f32 %v6070_v57, %v3447_v62  ;;  %v3654_v14 = vmul.f32 %v6084_v32, %v3447_v62 }
 0x522   : > { %v3551_v48 = vadd.f32 %v3547_v60, %v6078_v37  ;;  %v3659_v3 = vadd.f32 %v3655_v12, %v6094_v4 }
 0x523   : > { %v3550_v15 = vadd.f32 %v3546_v40, %v6078_v37  ;;  %v3658_v53 = vadd.f32 %v3654_v14, %v6094_v4 }
 0x524   : > { %v3897_v22 = vmul.f32 -1.442695, %v3551_v48  ;;  %v3907_v20 = vmul.f32 -1.442695, %v3659_v3 }
 0x525   : > { %v3896_v44 = vmul.f32 -1.442695, %v3550_v15  ;;  %v3906_v17 = vmul.f32 -1.442695, %v3658_v53 }
 0x527   : > { %4135 = vpow2.f32 %v3896_v44 }
 0x528   : > { %4137 = vpow2.f32 %v3906_v17 }
 0x529   : > { %4139 = vpow2.f32 %v3897_v22 }
 0x52a   : > { %4141 = vpow2.f32 %v3907_v20 }
 0x52d   : > { %v4136_v9 = vpop.eup %4135 }
 0x52e   : > { %v4138_v57 = vpop.eup %4137  ;;  %v6326_v43 = vadd.f32 1.0, %v4136_v9 }
 0x52f   : > { %v4140_v32 = vpop.eup %4139  ;;  %v3666_v50 = vadd.f32 1.0, %v4138_v57 }
 0x530   : > { %v4142_v29 = vpop.eup %4141  ;;  %4143 = vrcp.f32 %v6326_v43  ;;  %v3559_v37 = vadd.f32 1.0, %v4140_v32  ;;  %vm3565_vm7 = vweird.f32 %v6326_v43  ;;  %v3571_v42 = vand.u32 2147483648, %v6326_v43 }
 0x531   : > { %4145 = vrcp.f32 %v3666_v50  ;;  %v3667_v4 = vadd.f32 1.0, %v4142_v29  ;;  %v3677_v33 = vand.u32 2147483647, %v3666_v50  ;;  %v3679_v46 = vand.u32 2147483648, %v3666_v50 }
 0x532   : > { %4147 = vrcp.f32 %v3559_v37  ;;  %vm3673_vm10 = vweird.f32 %v3666_v50  ;;  %v3584_v27 = vand.u32 2147483647, %v3559_v37  ;;  %v3586_v8 = vand.u32 2147483648, %v3559_v37 }
 0x533   : > { %4149 = vrcp.f32 %v3667_v4  ;;  %vm6332_vm13 = vcmp.eq.f32.partialorder %v3677_v33, 8.507059e+37  ;;  %v3680_v52 = vor.u32 1.1754944e-38, %v3679_v46  ;;  %v3694_v2 = vand.u32 2147483648, %v3667_v4 }
 0x534   : > { %v3692_v58 = vand.u32 2147483647, %v3667_v4  ;;  %v3569_v28 = vand.u32 2147483647, %v6326_v43  ;;  %vm3580_vm8 = vweird.f32 %v3559_v37  ;;  %v3587_v36 = vor.u32 1.1754944e-38, %v3586_v8 }
 0x535   : > { %vm3688_vm9 = vweird.f32 %v3667_v4  ;;  %vm3585_vm0 = vcmp.eq.f32.partialorder %v3584_v27, 8.507059e+37  ;;  %v3695_v13 = vor.u32 1.1754944e-38, %v3694_v2  ;;  %v3572_v47 = vor.u32 1.1754944e-38, %v3571_v42 }
 0x536   : > { %v4144_v18 = vpop.eup %4143  ;;  %vm3693_vm12 = vcmp.eq.f32.partialorder %v3692_v58, 8.507059e+37 }
 0x537   : > { %v4146_v21 = vpop.eup %4145  ;;  %v3561_v16 = vmul.f32 %v4144_v18, %v6326_v43  ;;  %vm3566_vm11 = vweird.f32 %v4144_v18 }
 0x538   : > { %v3669_v11 = vmul.f32 %v4146_v21, %v3666_v50  ;;  %v4148_v30 = vpop.eup %4147  ;;  %vm3674_vm2 = vweird.f32 %v4146_v21  ;;  %vm6338_vm5 = vmor %vm3565_vm7, %vm3566_vm11  ;;  %vm3570_vm7 = vcmp.eq.f32.partialorder %v3569_v28, 8.507059e+37 }
 0x539   : > { %v3562_v61 = vsub.f32 1.0, %v3561_v16  ;;  %v4150_v26 = vpop.eup %4149  ;;  %v3576_v23 = vmul.f32 %v4148_v30, %v3559_v37  ;;  %vm3675_vm4 = vmor %vm3673_vm10, %vm3674_vm2  ;;  %vm3581_vm15 = vweird.f32 %v4148_v30  ;;  %vm6783_vm10 = vcmask 1040384  }
 0x53a   : > { %v3670_v0 = vsub.f32 1.0, %v3669_v11  ;;  %v3684_v31 = vmul.f32 %v4150_v26, %v3667_v4  ;;  %vm3689_vm3 = vweird.f32 %v4150_v26  ;;  %vm3582_vm1 = vmor %vm3580_vm8, %vm3581_vm15 }
 0x53b   : > { %v3563_v19 = vmul.f32 %v4144_v18, %v3562_v61  ;;  %v3577_v41 = vsub.f32 1.0, %v3576_v23  ;;  %vm3690_vm6 = vmor %vm3688_vm9, %vm3689_vm3 }
 0x53c   : > { %v3671_v10 = vmul.f32 %v4146_v21, %v3670_v0  ;;  %v3685_v51 = vsub.f32 1.0, %v3684_v31 }
 0x53d   : > { %v3564_v39 = vadd.f32 %v4144_v18, %v3563_v19  ;;  %v3578_v25 = vmul.f32 %v4148_v30, %v3577_v41 }
 0x53e   : > { %v3672_v45 = vadd.f32 %v4146_v21, %v3671_v10  ;;  %v3686_v49 = vmul.f32 %v4150_v26, %v3685_v51 }
 0x53f   : > { %v3579_v6 = vadd.f32 %v4148_v30, %v3578_v25  ;;  %v3568_v38 = vsel %vm6338_vm5, %v4144_v18, %v3564_v39 }
 0x540   : > { %v3676_v54 = vsel %vm3675_vm4, %v4146_v21, %v3672_v45  ;;  %v3687_v55 = vadd.f32 %v4150_v26, %v3686_v49  ;;  %v3573_v5 = vsel %vm3570_vm7, %v3572_v47, %v3568_v38 }
 0x541   : > { %v3681_v35 = vsel %vm6332_vm13, %v3680_v52, %v3676_v54  ;;  %v3583_v24 = vsel %vm3582_vm1, %v4148_v30, %v3579_v6 }
 0x542   : > { %3700 = vst [vmem:[#allocation1] sm:$0xff] %v3681_v35  ;;  %v3588_v1 = vsel %vm3585_vm0, %v3587_v36, %v3583_v24  ;;  %v3691_v56 = vsel %vm3690_vm6, %v4150_v26, %v3687_v55 }
 0x543   : > { %v3592_v7 = vrot.slane %v3588_v1, 7  ;;  %v3696_v62 = vsel %vm3693_vm12, %v3695_v13, %v3691_v56 }
 0x544   : > { %3701 = vst [vmem:[#allocation1 + $0x9] sm:$0xff] %v3696_v62 }
 0x545   : > { %v3593_v40 = vsel %vm6783_vm10, %v3573_v5, %v3592_v7 }
 0x546   : > { %3898 = vst.msk [vmem:[%s6189_s16 + $0x2] sm:$0x3] %vm6179_vm14, %v3593_v40 }
 0x54b   : > { %v3703_v14 = vld [vmem:[#allocation1 + $0x1] ss:$9 sm:$0xff] }
 0x54c   : > { %3908 = vst.msk [vmem:[%s6189_s16 + $0x6] sm:$0x3] %vm6179_vm14, %v3703_v14 }
 0x54d   : > { %s3916_s25 = sshll.u32 %s4459_s22, 2  ;;  %s3730_s8 = sshll.u32 %s6189_s16, 4  ;;  %s3731_s8 = int_to_ptr.vmem [resolvable:$true] %s3730_s8 }
 0x54e   : > { %s3719_s29 = scalar_lea.hbm %s6398_s5, %s3916_s25  ;;  %s4402_s1 = smov 64  }
 0x54f   : > { %s3732_s15 = sshll.u32 %s3719_s29, 4  ;;  %3942 = sst [smem:[#allocation18]] (%p4490_p11), %s4402_s1  ;;  %s3733_s15 = int_to_ptr.hbm [resolvable:$true] %s3732_s15 }
 0x550   : > { %s4403_s26 = smov 128   ;;  %s4404_s7 = smov 2  }
 0x551   : > { %3943 = sst [smem:[#allocation18 + $0x1]] (%p4490_p11), %s4403_s26  ;;  %s4405_s9 = smov 32  }
 0x552   : > { %3944 = sst [smem:[#allocation18 + $0x2]] (%p4490_p11), %s4404_s7  ;;  %s4406_s22 = smov [#allocation17]  }
 0x553   : > { %3945 = sst [smem:[#allocation18 + $0x3]] (%p4490_p11), %s4405_s9  ;;  %s4407_s28 = smov 0  }
 0x554   : > { %3946 = sst [smem:[#allocation18 + $0x4]] (%p4490_p11), %s4405_s9 }
 0x555   : > { %3947 = sst [smem:[#allocation18 + $0x5]] (%p4490_p11), %s4404_s7 }
 0x556   : > { %3948 = dma.general (%p4490_p11), %s3731_s8, 128, %s3733_s15, %s3708_s13, %s4406_s22, [#allocation18], %s4407_s28, 0  }
 0x557 PF: > { %s3760_s23 = sand.u32 1, %s4285_s18   ;;  %p3964_p3 = pnand %p3869_p2, %p4494_p12 }
 0x558   : > { %s3761_s10 = scalar_lea.sflag [#allocation6], %s3760_s23 }
 0x559   : > { %p3965_p4 = pneg %p3964_p3 }
 0x55b   : > { %4280 = dma.done.wait (%p3965_p4), %s3761_s10, 128  }
 0x55c   : > { %4282 = vsyncadd (%p3965_p4), %s3761_s10, 4294967168  ;;  %p21_p5 = scmp.ge.s32.totalorder %s4463_s24, 4   ;;  %s6784_s18 = smov %s4289_s19 }
 0x55d   : > { %s6785_s19 = smov %s4293_s20  ;;  %s6786_s20 = smov %s4475_s27 }
 0x55e   : > { %s6787_s21 = smov %s4463_s24  ;;  %23 = sbr.rel (!%p21_p5) target bundleno = 10 (0xa), region = 271 }
 0x563   :  { %3767 = vsyncpa [#allocation5], 1 }
 0x564   :  { %3769 = vsyncpa [#allocation5 + $0x1], 1 }
 0x565   :  { %3770 = vsyncpa [#allocation9], 1 }
 0x566   :  { %3771 = vsyncpa [#allocation6], 1 }
 0x567   :  { %3773 = vsyncpa [#allocation6 + $0x1], 1 }
 0x568   :  { %3774 = vsyncpa [#allocation7], 1 }
 0x569   :  { %3776 = vsyncpa [#allocation7 + $0x1], 1 }
 0x56a   :  { %3777 = vsyncpa [#allocation13], 1 }

</bundles_post_ra>
